<compile_context>
chip_gen: v5e
topology: v5e:2x2
jax: 0.10.0
libtpu: 0.0.40
codegen_flags: <defaults>
</compile_context>

<pallas_src>
import functools
import math

import jax
import jax.numpy as jnp
from jax.experimental import pallas as pl
from jax.experimental.pallas import tpu as pltpu


# ----------------------------------------------------------------------------
# In-kernel helpers
# ----------------------------------------------------------------------------
def _leaky_relu(z, alpha):
    return jnp.where(z > 0.0, z, alpha * z)


def _elu(z):
    return jnp.where(z > 0.0, z, jnp.exp(jnp.minimum(z, 0.0)) - 1.0)


def _masked_softmax_rows(e_biased):
    m = jnp.max(e_biased, axis=1, keepdims=True)
    p = jnp.exp(e_biased - m)
    s = jnp.sum(p, axis=1, keepdims=True)
    return p * pl.reciprocal(s, approx=True)       # EUP approximate reciprocal


# ----------------------------------------------------------------------------
# Fused GAT forward kernel: all heads + output attention layer, one invocation.
# ----------------------------------------------------------------------------
def _gat_kernel(x_ref, adj_ref, rhs1_ref, rhs2_ref, o_ref, x1_ref,
                *, alpha, nheads, nhid, nclass, matmul_dtype):
    f32 = jnp.float32
    x = x_ref[...]

    # Additive adjacency bias, computed ONCE and shared by all 5 softmaxes
    # (replaces 5 redundant (N,N) compare+selects).
    neg_bias = jnp.where(adj_ref[...] > 0.0, 0.0, -9e15)

    # ---------------- layer 1: all heads, one batched projection -----------
    proj1 = jnp.dot(x.astype(matmul_dtype),
                    rhs1_ref[...].astype(matmul_dtype),
                    preferred_element_type=f32)            # (N, H*nhid + 2H)
    hv = nheads * nhid
    v_all = proj1[:, :hv]                                  # (N, H*nhid)
    scores = proj1[:, hv:]                                 # (N, 2H): [h·a1 | q·a2]
    hdot = scores[:, :nheads]                              # (N, H), used as columns
    scores_t = scores.T                                    # (2H, N): one small XLU transpose

    for k in range(nheads):
        # e[i,j] = LeakyReLU(hdot[i,k] + qdot[j,k]); (N,1)+(1,N) broadcast add.
        e = _leaky_relu(hdot[:, k:k + 1] + scores_t[nheads + k:nheads + k + 1, :],
                        alpha) + neg_bias
        att = _masked_softmax_rows(e)
        v_k = v_all[:, k * nhid:(k + 1) * nhid]
        hp = jnp.dot(att.astype(matmul_dtype), v_k.astype(matmul_dtype),
                     preferred_element_type=f32)           # (N, nhid)
        # Write straight into the x1 VMEM slab: no live concat, no relayout.
        x1_ref[:, k * nhid:(k + 1) * nhid] = _elu(hp)

    # ---------------- layer 2: output attention layer (+ final ELU) --------
    x1 = x1_ref[...]
    proj2 = jnp.dot(x1.astype(matmul_dtype),
                    rhs2_ref[...].astype(matmul_dtype),
                    preferred_element_type=f32)            # (N, nclass + 2)
    v_o = proj2[:, :nclass]
    scores_o = proj2[:, nclass:]                           # (N, 2): [h·a1 | q·a2]
    scores_o_t = scores_o.T                                # (2, N)
    e = _leaky_relu(scores_o[:, 0:1] + scores_o_t[1:2, :], alpha) + neg_bias
    att = _masked_softmax_rows(e)
    out = jnp.dot(att.astype(matmul_dtype), v_o.astype(matmul_dtype),
                  preferred_element_type=f32)
    # TODO(synk): o_ref is only nclass=8 lanes wide -> masked vst; pad to a
    # 128-lane slab (and slice in the wrapper) if nclass / N are scaled up.
    o_ref[...] = _elu(out).astype(o_ref.dtype)


def gat_forward(x, adj, rhs1, rhs2, *, alpha, nheads, nhid, nclass,
                matmul_dtype=jnp.bfloat16):
    """Single fused, grid-less pallas_call for the whole GAT forward pass."""
    n, _ = x.shape
    kernel = functools.partial(_gat_kernel, alpha=alpha, nheads=nheads,
                               nhid=nhid, nclass=nclass,
                               matmul_dtype=matmul_dtype)
    vmem = pl.BlockSpec(memory_space=pltpu.MemorySpace.VMEM)
    # No grid -> single invocation, whole arrays in VMEM, no pipeline
    # double-buffering overhead for a one-step grid.
    return pl.pallas_call(
        kernel,
        out_shape=jax.ShapeDtypeStruct((n, nclass), jnp.float32),
        in_specs=[vmem, vmem, vmem, vmem],
        out_specs=vmem,
        scratch_shapes=[pltpu.VMEM((n, nheads * nhid), jnp.float32)],  # x1 slab
    )(x, adj, rhs1, rhs2)


# ----------------------------------------------------------------------------
# Module wrapper (mirrors GAT.__init__ / GAT.forward, eval mode)
# ----------------------------------------------------------------------------
def _xavier_uniform(key, shape, gain=1.414):
    fan_in, fan_out = shape[-2], shape[-1]
    bound = gain * math.sqrt(6.0 / (fan_in + fan_out))
    return jax.random.uniform(key, shape, jnp.float32, -bound, bound)


class GATPallas:
    def __init__(self, nfeat, nhid, nclass, dropout, alpha, nheads,
                 key=jax.random.PRNGKey(0)):
        self.nfeat, self.nhid, self.nclass = nfeat, nhid, nclass
        self.alpha, self.nheads, self.dropout = alpha, nheads, dropout

        keys = jax.random.split(key, 8)
        # Per-head GraphAttentionLayer params (kept for the pure-JAX reference).
        self.w_h = _xavier_uniform(keys[0], (nheads, nfeat, nhid))
        self.q_h = _xavier_uniform(keys[1], (nheads, nfeat, nhid))
        self.v_h = _xavier_uniform(keys[2], (nheads, nfeat, nhid))
        a_h = _xavier_uniform(keys[3], (nheads, 2 * nhid, 1))[..., 0]
        self.a1_h = a_h[:, :nhid]                       # (nheads, nhid)
        self.a2_h = a_h[:, nhid:]                       # (nheads, nhid)
        # Output GraphAttentionLayer (concat=False).
        self.w_o = _xavier_uniform(keys[4], (nheads * nhid, nclass))
        self.q_o = _xavier_uniform(keys[5], (nheads * nhid, nclass))
        self.v_o = _xavier_uniform(keys[6], (nheads * nhid, nclass))
        a_o = _xavier_uniform(keys[7], (2 * nclass, 1))[:, 0]
        self.a1_o = a_o[:nclass]                        # (nclass,)
        self.a2_o = a_o[nclass:]                        # (nclass,)

        # ----- wrapper-side packing (done once, algebraically exact) --------
        # Fold the attention vectors into the projections: h·a1 = x @ (W@a1).
        a1_eff = jnp.einsum("kfo,ko->fk", self.w_h, self.a1_h)   # (nfeat, H)
        a2_eff = jnp.einsum("kfo,ko->fk", self.q_h, self.a2_h)   # (nfeat, H)
        # Batch per-head V projections into one lane-dense RHS.
        v_all = jnp.transpose(self.v_h, (1, 0, 2)).reshape(nfeat, nheads * nhid)
        self.rhs1 = jnp.concatenate([v_all, a1_eff, a2_eff], axis=1)  # (nfeat, H*nhid+2H)
        a1_eff_o = self.w_o @ self.a1_o                               # (H*nhid,)
        a2_eff_o = self.q_o @ self.a2_o                               # (H*nhid,)
        self.rhs2 = jnp.concatenate(
            [self.v_o, a1_eff_o[:, None], a2_eff_o[:, None]], axis=1)  # (H*nhid, nclass+2)

    def ref_params(self):
        return (self.w_h, self.q_h, self.v_h, self.a1_h, self.a2_h,
                self.w_o, self.q_o, self.v_o, self.a1_o, self.a2_o)

    def forward(self, x, adj, matmul_dtype=jnp.bfloat16):
        # TODO(synk): F.dropout is a training-time stochastic op; this eval-mode
        # forward treats it as identity (pltpu.prng_* would be needed otherwise).
        return gat_forward(x, adj, self.rhs1, self.rhs2, alpha=self.alpha,
                           nheads=self.nheads, nhid=self.nhid,
                           nclass=self.nclass, matmul_dtype=matmul_dtype)

    __call__ = forward


# ----------------------------------------------------------------------------
# Pure-JAX reference (mirrors the PyTorch module, for in-script validation)
# ----------------------------------------------------------------------------
def gat_reference(x, adj, params, *, alpha, nheads):
    (w_h, q_h, v_h, a1_h, a2_h, w_o, q_o, v_o, a1_o, a2_o) = params

    def layer(xin, W, Q, V, a1, a2):
        h = xin @ W
        q = xin @ Q
        v = xin @ V
        e = (h @ a1)[:, None] + (q @ a2)[None, :]
        e = jnp.where(e > 0, e, alpha * e)
        e = jnp.where(adj > 0, e, -9e15)
        att = jax.nn.softmax(e, axis=1)
        return att @ v

    heads = [jax.nn.elu(layer(x, w_h[k], q_h[k], v_h[k], a1_h[k], a2_h[k]))
             for k in range(nheads)]
    x1 = jnp.concatenate(heads, axis=1)
    return jax.nn.elu(layer(x1, w_o, q_o, v_o, a1_o, a2_o))


if __name__ == "__main__":
    jax.config.update("jax_default_matmul_precision", "highest")

    key = jax.random.PRNGKey(0)
    k_x, k_adj, k_par = jax.random.split(key, 3)

    N, NFEAT, NHID, NCLASS, NHEADS, ALPHA = 128, 16, 16, 8, 4, 0.2
    x = jax.random.normal(k_x, (N, NFEAT), jnp.float32)
    adj = (jax.random.uniform(k_adj, (N, N)) > 0.7).astype(jnp.float32)
    adj = jnp.maximum(adj, jnp.eye(N, dtype=jnp.float32))      # self-loops

    model = GATPallas(nfeat=NFEAT, nhid=NHID, nclass=NCLASS, dropout=0.6,
                      alpha=ALPHA, nheads=NHEADS, key=k_par)

    y_ref = gat_reference(x, adj, model.ref_params(), alpha=ALPHA, nheads=NHEADS)

    # Strict check: the algebraic refactor (a1/a2 fold, batched heads, additive
    # mask, scratch x1) is exact up to fp reorder + the approx reciprocal.
    y_f32 = jax.block_until_ready(model.forward(x, adj, matmul_dtype=jnp.float32))
    assert y_f32.shape == (N, NCLASS), y_f32.shape
    assert bool(jnp.all(jnp.isfinite(y_f32)))
    err_f32 = float(jnp.max(jnp.abs(y_f32 - y_ref)))
    assert jnp.allclose(y_f32, y_ref, atol=5e-3, rtol=5e-3), err_f32

    # Default perf path: bf16 MXU operands with f32 accumulation
    # (validation tolerance widened accordingly).
    y = jax.block_until_ready(model(x, adj))
    assert y.shape == (N, NCLASS), y.shape
    assert bool(jnp.all(jnp.isfinite(y)))
    err_bf16 = float(jnp.max(jnp.abs(y - y_ref)))
    assert jnp.allclose(y, y_ref, atol=3e-2, rtol=3e-2), err_bf16

    print("KERNEL_OK")
</pallas_src>

<mosaic_0001>
module attributes {stable_mosaic.version = 11 : i64} {
  func.func @_gat_kernel(%arg0: memref<128x16xf32, #tpu.memory_space<vmem>>, %arg1: memref<128x128xf32, #tpu.memory_space<vmem>>, %arg2: memref<16x72xf32, #tpu.memory_space<vmem>>, %arg3: memref<64x10xf32, #tpu.memory_space<vmem>>, %arg4: memref<128x8xf32, #tpu.memory_space<vmem>>, %arg5: memref<128x64xf32, #tpu.memory_space<vmem>>) attributes {dimension_semantics = [], scalar_prefetch = 0 : i64, scratch_operands = 1 : i64, tpu.core_type = #tpu.core_type<tc>} {
    %c0 = arith.constant 0 : index
    %c0_0 = arith.constant 0 : index
    %0 = vector.load %arg0[%c0, %c0_0] : memref<128x16xf32, #tpu.memory_space<vmem>>, vector<128x16xf32>
    %c0_1 = arith.constant 0 : index
    %c0_2 = arith.constant 0 : index
    %1 = vector.load %arg1[%c0_1, %c0_2] : memref<128x128xf32, #tpu.memory_space<vmem>>, vector<128x128xf32>
    %cst = arith.constant 0.000000e+00 : f32
    %2 = vector.broadcast %cst : f32 to vector<128x128xf32>
    %3 = arith.cmpf ogt, %1, %2 : vector<128x128xf32>
    %cst_3 = arith.constant 0.000000e+00 : f32
    %cst_4 = arith.constant -9.000000e+15 : f32
    %4 = vector.broadcast %cst_3 : f32 to vector<128x128xf32>
    %5 = vector.broadcast %cst_4 : f32 to vector<128x128xf32>
    %6 = arith.select %3, %4, %5 : vector<128x128xi1>, vector<128x128xf32>
    %c0_5 = arith.constant 0 : index
    %c0_6 = arith.constant 0 : index
    %7 = vector.load %arg2[%c0_5, %c0_6] : memref<16x72xf32, #tpu.memory_space<vmem>>, vector<16x72xf32>
    %cst_7 = arith.constant dense<0.000000e+00> : vector<128x72xf32>
    %8 = tpu.matmul %0, %7, %cst_7 {dimension_numbers = #tpu.dot_dimension_numbers<[1], [0], [0], [1], [0, 0, 1, 1], [], []>, precision = #tpu.contract_precision<fp32>} : vector<128x16xf32>, vector<16x72xf32>, vector<128x72xf32> -> vector<128x72xf32>
    %9 = vector.extract_strided_slice %8 {offsets = [0, 0], sizes = [128, 64], strides = [1, 1]} : vector<128x72xf32> to vector<128x64xf32>
    %10 = vector.extract_strided_slice %8 {offsets = [0, 64], sizes = [128, 8], strides = [1, 1]} : vector<128x72xf32> to vector<128x8xf32>
    %11 = vector.extract_strided_slice %10 {offsets = [0, 0], sizes = [128, 4], strides = [1, 1]} : vector<128x8xf32> to vector<128x4xf32>
    %12 = tpu.transpose %10, [1, 0] : vector<128x8xf32> -> vector<8x128xf32>
    %13 = vector.extract_strided_slice %11 {offsets = [0, 0], sizes = [128, 1], strides = [1, 1]} : vector<128x4xf32> to vector<128x1xf32>
    %14 = vector.extract_strided_slice %12 {offsets = [4, 0], sizes = [1, 128], strides = [1, 1]} : vector<8x128xf32> to vector<1x128xf32>
    %15 = vector.broadcast %13 : vector<128x1xf32> to vector<128x128xf32>
    %16 = vector.broadcast %14 : vector<1x128xf32> to vector<128x128xf32>
    %17 = arith.addf %15, %16 : vector<128x128xf32>
    %cst_8 = arith.constant 0.000000e+00 : f32
    %18 = vector.broadcast %cst_8 : f32 to vector<128x128xf32>
    %19 = arith.cmpf ogt, %17, %18 : vector<128x128xf32>
    %cst_9 = arith.constant 2.000000e-01 : f32
    %20 = vector.broadcast %cst_9 : f32 to vector<128x128xf32>
    %21 = arith.mulf %20, %17 : vector<128x128xf32>
    %22 = arith.select %19, %17, %21 : vector<128x128xi1>, vector<128x128xf32>
    %23 = arith.addf %22, %6 : vector<128x128xf32>
    %cst_10 = arith.constant dense<0xFF800000> : vector<128xf32>
    %24 = vector.multi_reduction <maximumf>, %23, %cst_10 [1] : vector<128x128xf32> to vector<128xf32>
    %25 = vector.shape_cast %24 : vector<128xf32> to vector<128x1xf32>
    %26 = vector.broadcast %25 : vector<128x1xf32> to vector<128x128xf32>
    %27 = arith.subf %23, %26 : vector<128x128xf32>
    %28 = math.exp %27 : vector<128x128xf32>
    %cst_11 = arith.constant dense<0.000000e+00> : vector<128xf32>
    %29 = vector.multi_reduction <add>, %28, %cst_11 [1] : vector<128x128xf32> to vector<128xf32>
    %30 = vector.shape_cast %29 : vector<128xf32> to vector<128x1xf32>
    %31 = tpu.reciprocal %30 {approx = true} : vector<128x1xf32> -> vector<128x1xf32>
    %32 = vector.broadcast %31 : vector<128x1xf32> to vector<128x128xf32>
    %33 = arith.mulf %28, %32 : vector<128x128xf32>
    %34 = vector.extract_strided_slice %9 {offsets = [0, 0], sizes = [128, 16], strides = [1, 1]} : vector<128x64xf32> to vector<128x16xf32>
    %cst_12 = arith.constant dense<0.000000e+00> : vector<128x16xf32>
    %35 = tpu.matmul %33, %34, %cst_12 {dimension_numbers = #tpu.dot_dimension_numbers<[1], [0], [0], [1], [0, 0, 1, 1], [], []>, precision = #tpu.contract_precision<fp32>} : vector<128x128xf32>, vector<128x16xf32>, vector<128x16xf32> -> vector<128x16xf32>
    %cst_13 = arith.constant 0.000000e+00 : f32
    %36 = vector.broadcast %cst_13 : f32 to vector<128x16xf32>
    %37 = arith.cmpf ogt, %35, %36 : vector<128x16xf32>
    %cst_14 = arith.constant 0.000000e+00 : f32
    %38 = vector.broadcast %cst_14 : f32 to vector<128x16xf32>
    %39 = arith.minimumf %35, %38 : vector<128x16xf32>
    %40 = math.exp %39 : vector<128x16xf32>
    %cst_15 = arith.constant 1.000000e+00 : f32
    %41 = vector.broadcast %cst_15 : f32 to vector<128x16xf32>
    %42 = arith.subf %40, %41 : vector<128x16xf32>
    %43 = arith.select %37, %35, %42 : vector<128x16xi1>, vector<128x16xf32>
    %c0_16 = arith.constant 0 : index
    %c0_17 = arith.constant 0 : index
    %44 = vector.load %arg5[%c0_16, %c0_17] : memref<128x64xf32, #tpu.memory_space<vmem>>, vector<128x16xf32>
    tpu.vector_store %arg5[%c0_16, %c0_17], %43 {strides = array<i32>} : memref<128x64xf32, #tpu.memory_space<vmem>>, vector<128x16xf32>,
    %45 = vector.extract_strided_slice %11 {offsets = [0, 1], sizes = [128, 1], strides = [1, 1]} : vector<128x4xf32> to vector<128x1xf32>
    %46 = vector.extract_strided_slice %12 {offsets = [5, 0], sizes = [1, 128], strides = [1, 1]} : vector<8x128xf32> to vector<1x128xf32>
    %47 = vector.broadcast %45 : vector<128x1xf32> to vector<128x128xf32>
    %48 = vector.broadcast %46 : vector<1x128xf32> to vector<128x128xf32>
    %49 = arith.addf %47, %48 : vector<128x128xf32>
    %cst_18 = arith.constant 0.000000e+00 : f32
    %50 = vector.broadcast %cst_18 : f32 to vector<128x128xf32>
    %51 = arith.cmpf ogt, %49, %50 : vector<128x128xf32>
    %cst_19 = arith.constant 2.000000e-01 : f32
    %52 = vector.broadcast %cst_19 : f32 to vector<128x128xf32>
    %53 = arith.mulf %52, %49 : vector<128x128xf32>
    %54 = arith.select %51, %49, %53 : vector<128x128xi1>, vector<128x128xf32>
    %55 = arith.addf %54, %6 : vector<128x128xf32>
    %cst_20 = arith.constant dense<0xFF800000> : vector<128xf32>
    %56 = vector.multi_reduction <maximumf>, %55, %cst_20 [1] : vector<128x128xf32> to vector<128xf32>
    %57 = vector.shape_cast %56 : vector<128xf32> to vector<128x1xf32>
    %58 = vector.broadcast %57 : vector<128x1xf32> to vector<128x128xf32>
    %59 = arith.subf %55, %58 : vector<128x128xf32>
    %60 = math.exp %59 : vector<128x128xf32>
    %cst_21 = arith.constant dense<0.000000e+00> : vector<128xf32>
    %61 = vector.multi_reduction <add>, %60, %cst_21 [1] : vector<128x128xf32> to vector<128xf32>
    %62 = vector.shape_cast %61 : vector<128xf32> to vector<128x1xf32>
    %63 = tpu.reciprocal %62 {approx = true} : vector<128x1xf32> -> vector<128x1xf32>
    %64 = vector.broadcast %63 : vector<128x1xf32> to vector<128x128xf32>
    %65 = arith.mulf %60, %64 : vector<128x128xf32>
    %66 = vector.extract_strided_slice %9 {offsets = [0, 16], sizes = [128, 16], strides = [1, 1]} : vector<128x64xf32> to vector<128x16xf32>
    %cst_22 = arith.constant dense<0.000000e+00> : vector<128x16xf32>
    %67 = tpu.matmul %65, %66, %cst_22 {dimension_numbers = #tpu.dot_dimension_numbers<[1], [0], [0], [1], [0, 0, 1, 1], [], []>, precision = #tpu.contract_precision<fp32>} : vector<128x128xf32>, vector<128x16xf32>, vector<128x16xf32> -> vector<128x16xf32>
    %cst_23 = arith.constant 0.000000e+00 : f32
    %68 = vector.broadcast %cst_23 : f32 to vector<128x16xf32>
    %69 = arith.cmpf ogt, %67, %68 : vector<128x16xf32>
    %cst_24 = arith.constant 0.000000e+00 : f32
    %70 = vector.broadcast %cst_24 : f32 to vector<128x16xf32>
    %71 = arith.minimumf %67, %70 : vector<128x16xf32>
    %72 = math.exp %71 : vector<128x16xf32>
    %cst_25 = arith.constant 1.000000e+00 : f32
    %73 = vector.broadcast %cst_25 : f32 to vector<128x16xf32>
    %74 = arith.subf %72, %73 : vector<128x16xf32>
    %75 = arith.select %69, %67, %74 : vector<128x16xi1>, vector<128x16xf32>
    %c0_26 = arith.constant 0 : index
    %c16 = arith.constant 16 : index
    %76 = vector.load %arg5[%c0_26, %c16] : memref<128x64xf32, #tpu.memory_space<vmem>>, vector<128x16xf32>
    tpu.vector_store %arg5[%c0_26, %c16], %75 {strides = array<i32>} : memref<128x64xf32, #tpu.memory_space<vmem>>, vector<128x16xf32>,
    %77 = vector.extract_strided_slice %11 {offsets = [0, 2], sizes = [128, 1], strides = [1, 1]} : vector<128x4xf32> to vector<128x1xf32>
    %78 = vector.extract_strided_slice %12 {offsets = [6, 0], sizes = [1, 128], strides = [1, 1]} : vector<8x128xf32> to vector<1x128xf32>
    %79 = vector.broadcast %77 : vector<128x1xf32> to vector<128x128xf32>
    %80 = vector.broadcast %78 : vector<1x128xf32> to vector<128x128xf32>
    %81 = arith.addf %79, %80 : vector<128x128xf32>
    %cst_27 = arith.constant 0.000000e+00 : f32
    %82 = vector.broadcast %cst_27 : f32 to vector<128x128xf32>
    %83 = arith.cmpf ogt, %81, %82 : vector<128x128xf32>
    %cst_28 = arith.constant 2.000000e-01 : f32
    %84 = vector.broadcast %cst_28 : f32 to vector<128x128xf32>
    %85 = arith.mulf %84, %81 : vector<128x128xf32>
    %86 = arith.select %83, %81, %85 : vector<128x128xi1>, vector<128x128xf32>
    %87 = arith.addf %86, %6 : vector<128x128xf32>
    %cst_29 = arith.constant dense<0xFF800000> : vector<128xf32>
    %88 = vector.multi_reduction <maximumf>, %87, %cst_29 [1] : vector<128x128xf32> to vector<128xf32>
    %89 = vector.shape_cast %88 : vector<128xf32> to vector<128x1xf32>
    %90 = vector.broadcast %89 : vector<128x1xf32> to vector<128x128xf32>
    %91 = arith.subf %87, %90 : vector<128x128xf32>
    %92 = math.exp %91 : vector<128x128xf32>
    %cst_30 = arith.constant dense<0.000000e+00> : vector<128xf32>
    %93 = vector.multi_reduction <add>, %92, %cst_30 [1] : vector<128x128xf32> to vector<128xf32>
    %94 = vector.shape_cast %93 : vector<128xf32> to vector<128x1xf32>
    %95 = tpu.reciprocal %94 {approx = true} : vector<128x1xf32> -> vector<128x1xf32>
    %96 = vector.broadcast %95 : vector<128x1xf32> to vector<128x128xf32>
    %97 = arith.mulf %92, %96 : vector<128x128xf32>
    %98 = vector.extract_strided_slice %9 {offsets = [0, 32], sizes = [128, 16], strides = [1, 1]} : vector<128x64xf32> to vector<128x16xf32>
    %cst_31 = arith.constant dense<0.000000e+00> : vector<128x16xf32>
    %99 = tpu.matmul %97, %98, %cst_31 {dimension_numbers = #tpu.dot_dimension_numbers<[1], [0], [0], [1], [0, 0, 1, 1], [], []>, precision = #tpu.contract_precision<fp32>} : vector<128x128xf32>, vector<128x16xf32>, vector<128x16xf32> -> vector<128x16xf32>
    %cst_32 = arith.constant 0.000000e+00 : f32
    %100 = vector.broadcast %cst_32 : f32 to vector<128x16xf32>
    %101 = arith.cmpf ogt, %99, %100 : vector<128x16xf32>
    %cst_33 = arith.constant 0.000000e+00 : f32
    %102 = vector.broadcast %cst_33 : f32 to vector<128x16xf32>
    %103 = arith.minimumf %99, %102 : vector<128x16xf32>
    %104 = math.exp %103 : vector<128x16xf32>
    %cst_34 = arith.constant 1.000000e+00 : f32
    %105 = vector.broadcast %cst_34 : f32 to vector<128x16xf32>
    %106 = arith.subf %104, %105 : vector<128x16xf32>
    %107 = arith.select %101, %99, %106 : vector<128x16xi1>, vector<128x16xf32>
    %c0_35 = arith.constant 0 : index
    %c32 = arith.constant 32 : index
    %108 = vector.load %arg5[%c0_35, %c32] : memref<128x64xf32, #tpu.memory_space<vmem>>, vector<128x16xf32>
    tpu.vector_store %arg5[%c0_35, %c32], %107 {strides = array<i32>} : memref<128x64xf32, #tpu.memory_space<vmem>>, vector<128x16xf32>,
    %109 = vector.extract_strided_slice %11 {offsets = [0, 3], sizes = [128, 1], strides = [1, 1]} : vector<128x4xf32> to vector<128x1xf32>
    %110 = vector.extract_strided_slice %12 {offsets = [7, 0], sizes = [1, 128], strides = [1, 1]} : vector<8x128xf32> to vector<1x128xf32>
    %111 = vector.broadcast %109 : vector<128x1xf32> to vector<128x128xf32>
    %112 = vector.broadcast %110 : vector<1x128xf32> to vector<128x128xf32>
    %113 = arith.addf %111, %112 : vector<128x128xf32>
    %cst_36 = arith.constant 0.000000e+00 : f32
    %114 = vector.broadcast %cst_36 : f32 to vector<128x128xf32>
    %115 = arith.cmpf ogt, %113, %114 : vector<128x128xf32>
    %cst_37 = arith.constant 2.000000e-01 : f32
    %116 = vector.broadcast %cst_37 : f32 to vector<128x128xf32>
    %117 = arith.mulf %116, %113 : vector<128x128xf32>
    %118 = arith.select %115, %113, %117 : vector<128x128xi1>, vector<128x128xf32>
    %119 = arith.addf %118, %6 : vector<128x128xf32>
    %cst_38 = arith.constant dense<0xFF800000> : vector<128xf32>
    %120 = vector.multi_reduction <maximumf>, %119, %cst_38 [1] : vector<128x128xf32> to vector<128xf32>
    %121 = vector.shape_cast %120 : vector<128xf32> to vector<128x1xf32>
    %122 = vector.broadcast %121 : vector<128x1xf32> to vector<128x128xf32>
    %123 = arith.subf %119, %122 : vector<128x128xf32>
    %124 = math.exp %123 : vector<128x128xf32>
    %cst_39 = arith.constant dense<0.000000e+00> : vector<128xf32>
    %125 = vector.multi_reduction <add>, %124, %cst_39 [1] : vector<128x128xf32> to vector<128xf32>
    %126 = vector.shape_cast %125 : vector<128xf32> to vector<128x1xf32>
    %127 = tpu.reciprocal %126 {approx = true} : vector<128x1xf32> -> vector<128x1xf32>
    %128 = vector.broadcast %127 : vector<128x1xf32> to vector<128x128xf32>
    %129 = arith.mulf %124, %128 : vector<128x128xf32>
    %130 = vector.extract_strided_slice %9 {offsets = [0, 48], sizes = [128, 16], strides = [1, 1]} : vector<128x64xf32> to vector<128x16xf32>
    %cst_40 = arith.constant dense<0.000000e+00> : vector<128x16xf32>
    %131 = tpu.matmul %129, %130, %cst_40 {dimension_numbers = #tpu.dot_dimension_numbers<[1], [0], [0], [1], [0, 0, 1, 1], [], []>, precision = #tpu.contract_precision<fp32>} : vector<128x128xf32>, vector<128x16xf32>, vector<128x16xf32> -> vector<128x16xf32>
    %cst_41 = arith.constant 0.000000e+00 : f32
    %132 = vector.broadcast %cst_41 : f32 to vector<128x16xf32>
    %133 = arith.cmpf ogt, %131, %132 : vector<128x16xf32>
    %cst_42 = arith.constant 0.000000e+00 : f32
    %134 = vector.broadcast %cst_42 : f32 to vector<128x16xf32>
    %135 = arith.minimumf %131, %134 : vector<128x16xf32>
    %136 = math.exp %135 : vector<128x16xf32>
    %cst_43 = arith.constant 1.000000e+00 : f32
    %137 = vector.broadcast %cst_43 : f32 to vector<128x16xf32>
    %138 = arith.subf %136, %137 : vector<128x16xf32>
    %139 = arith.select %133, %131, %138 : vector<128x16xi1>, vector<128x16xf32>
    %c0_44 = arith.constant 0 : index
    %c48 = arith.constant 48 : index
    %140 = vector.load %arg5[%c0_44, %c48] : memref<128x64xf32, #tpu.memory_space<vmem>>, vector<128x16xf32>
    tpu.vector_store %arg5[%c0_44, %c48], %139 {strides = array<i32>} : memref<128x64xf32, #tpu.memory_space<vmem>>, vector<128x16xf32>,
    %c0_45 = arith.constant 0 : index
    %c0_46 = arith.constant 0 : index
    %141 = vector.load %arg5[%c0_45, %c0_46] : memref<128x64xf32, #tpu.memory_space<vmem>>, vector<128x64xf32>
    %c0_47 = arith.constant 0 : index
    %c0_48 = arith.constant 0 : index
    %142 = vector.load %arg3[%c0_47, %c0_48] : memref<64x10xf32, #tpu.memory_space<vmem>>, vector<64x10xf32>
    %cst_49 = arith.constant dense<0.000000e+00> : vector<128x10xf32>
    %143 = tpu.matmul %141, %142, %cst_49 {dimension_numbers = #tpu.dot_dimension_numbers<[1], [0], [0], [1], [0, 0, 1, 1], [], []>, precision = #tpu.contract_precision<fp32>} : vector<128x64xf32>, vector<64x10xf32>, vector<128x10xf32> -> vector<128x10xf32>
    %144 = vector.extract_strided_slice %143 {offsets = [0, 0], sizes = [128, 8], strides = [1, 1]} : vector<128x10xf32> to vector<128x8xf32>
    %145 = vector.extract_strided_slice %143 {offsets = [0, 8], sizes = [128, 2], strides = [1, 1]} : vector<128x10xf32> to vector<128x2xf32>
    %146 = tpu.transpose %145, [1, 0] : vector<128x2xf32> -> vector<2x128xf32>
    %147 = vector.extract_strided_slice %145 {offsets = [0, 0], sizes = [128, 1], strides = [1, 1]} : vector<128x2xf32> to vector<128x1xf32>
    %148 = vector.extract_strided_slice %146 {offsets = [1, 0], sizes = [1, 128], strides = [1, 1]} : vector<2x128xf32> to vector<1x128xf32>
    %149 = vector.broadcast %147 : vector<128x1xf32> to vector<128x128xf32>
    %150 = vector.broadcast %148 : vector<1x128xf32> to vector<128x128xf32>
    %151 = arith.addf %149, %150 : vector<128x128xf32>
    %cst_50 = arith.constant 0.000000e+00 : f32
    %152 = vector.broadcast %cst_50 : f32 to vector<128x128xf32>
    %153 = arith.cmpf ogt, %151, %152 : vector<128x128xf32>
    %cst_51 = arith.constant 2.000000e-01 : f32
    %154 = vector.broadcast %cst_51 : f32 to vector<128x128xf32>
    %155 = arith.mulf %154, %151 : vector<128x128xf32>
    %156 = arith.select %153, %151, %155 : vector<128x128xi1>, vector<128x128xf32>
    %157 = arith.addf %156, %6 : vector<128x128xf32>
    %cst_52 = arith.constant dense<0xFF800000> : vector<128xf32>
    %158 = vector.multi_reduction <maximumf>, %157, %cst_52 [1] : vector<128x128xf32> to vector<128xf32>
    %159 = vector.shape_cast %158 : vector<128xf32> to vector<128x1xf32>
    %160 = vector.broadcast %159 : vector<128x1xf32> to vector<128x128xf32>
    %161 = arith.subf %157, %160 : vector<128x128xf32>
    %162 = math.exp %161 : vector<128x128xf32>
    %cst_53 = arith.constant dense<0.000000e+00> : vector<128xf32>
    %163 = vector.multi_reduction <add>, %162, %cst_53 [1] : vector<128x128xf32> to vector<128xf32>
    %164 = vector.shape_cast %163 : vector<128xf32> to vector<128x1xf32>
    %165 = tpu.reciprocal %164 {approx = true} : vector<128x1xf32> -> vector<128x1xf32>
    %166 = vector.broadcast %165 : vector<128x1xf32> to vector<128x128xf32>
    %167 = arith.mulf %162, %166 : vector<128x128xf32>
    %cst_54 = arith.constant dense<0.000000e+00> : vector<128x8xf32>
    %168 = tpu.matmul %167, %144, %cst_54 {dimension_numbers = #tpu.dot_dimension_numbers<[1], [0], [0], [1], [0, 0, 1, 1], [], []>, precision = #tpu.contract_precision<fp32>} : vector<128x128xf32>, vector<128x8xf32>, vector<128x8xf32> -> vector<128x8xf32>
    %cst_55 = arith.constant 0.000000e+00 : f32
    %169 = vector.broadcast %cst_55 : f32 to vector<128x8xf32>
    %170 = arith.cmpf ogt, %168, %169 : vector<128x8xf32>
    %cst_56 = arith.constant 0.000000e+00 : f32
    %171 = vector.broadcast %cst_56 : f32 to vector<128x8xf32>
    %172 = arith.minimumf %168, %171 : vector<128x8xf32>
    %173 = math.exp %172 : vector<128x8xf32>
    %cst_57 = arith.constant 1.000000e+00 : f32
    %174 = vector.broadcast %cst_57 : f32 to vector<128x8xf32>
    %175 = arith.subf %173, %174 : vector<128x8xf32>
    %176 = arith.select %170, %168, %175 : vector<128x8xi1>, vector<128x8xf32>
    %c0_58 = arith.constant 0 : index
    %c0_59 = arith.constant 0 : index
    %177 = vector.load %arg4[%c0_58, %c0_59] : memref<128x8xf32, #tpu.memory_space<vmem>>, vector<128x8xf32>
    tpu.vector_store %arg4[%c0_58, %c0_59], %176 {strides = array<i32>} : memref<128x8xf32, #tpu.memory_space<vmem>>, vector<128x8xf32>,
    return
  }
}

</mosaic_0001>

<bundles_post_ra>
// kernel: tpu_custom_call.1
= control target key start
LH: loop header
LB: loop body
LE: loop exit
PB: predicated region body
PF: predicated region fallthrough
CT: control target
= control target key end

     0   :  { %vm83_vm0 = vcmask 130048   ;;  %s8709_s24 = smov 112   ;;  %s8715_s29 = smov 16   ;;  %s13809_s2 = inlined_call_operand.vmem [shape: f32[16,72], index: 2, kind: input, shape index: {}]   ;;  %s13810_s0 = inlined_call_operand.vmem [shape: f32[128,16], index: 0, kind: input, shape index: {}]   ;;  %s13811_s1 = inlined_call_operand.vmem [shape: f32[128,128], index: 1, kind: input, shape index: {}]   ;;  %s13812_s3 = inlined_call_operand.vmem [shape: f32[64,10], index: 3, kind: input, shape index: {}]   ;;  %s13813_s4 = inlined_call_operand.vmem [shape: f32[128,8], index: 4, kind: output, shape index: {}]  }
   0x1   :  { %v82_v0 = vld [vmem:[%s13809_s2 + $0x8] sm:$0xff]  ;;  %v81_v1 = vld [vmem:[%s13809_s2] sm:$0xff]  ;;  %v27_v8 = vld [vmem:[%s13810_s0 + $0x50] sm:$0xff]  ;;  %s8716_s30 = smov 32   ;;  %s8717_s9 = smov 48  }
   0x2   :  { %v25_v2 = vld [vmem:[%s13810_s0 + $0x40] sm:$0xff]  ;;  %v8754_v3 = vand.u32 4294901760, %v82_v0  ;;  %v8756_v4 = vand.u32 4294901760, %v81_v1  ;;  %v26_v6 = vld [vmem:[%s13810_s0 + $0x48] sm:$0xff]  ;;  %v115_v18 = vsel %vm83_vm0, %v27_v8, 0  ;;  %v19_v33 = vld [vmem:[%s13810_s0 + $0x10] sm:$0xff] }
   0x3   :  { %v109_v5 = vsel %vm83_vm0, %v25_v2, 0  ;;  %v17_v7 = vld [vmem:[%s13810_s0] sm:$0xff]  ;;  %v112_v10 = vsel %vm83_vm0, %v26_v6, 0  ;;  %v18_v12 = vld [vmem:[%s13810_s0 + $0x8] sm:$0xff]  ;;  %v8804_v31 = vand.u32 4294901760, %v115_v18  ;;  %v28_v39 = vld [vmem:[%s13810_s0 + $0x58] sm:$0xff] }
   0x4   :  { %v8768_v9 = vand.u32 4294901760, %v109_v5  ;;  %v85_v11 = vsel %vm83_vm0, %v17_v7, 0  ;;  %8182 = vmatpush.msra.mxu2 %v8754_v3  ;;  %v294_v13 = vsub.f32 %v82_v0, %v8754_v3  ;;  %v300_v14 = vsub.f32 %v81_v1, %v8756_v4  ;;  %147 = vmatpush.msra.mxu0 %v8754_v3  ;;  %v20_v45 = vld [vmem:[%s13810_s0 + $0x18] sm:$0xff]  ;;  %v29_v55 = vld [vmem:[%s13810_s0 + $0x60] sm:$0xff] }
   0x5   :  { %v8779_v15 = vand.u32 4294901760, %v112_v10  ;;  %v8781_v16 = vand.u32 4294901760, %v85_v11  ;;  %v88_v19 = vsel %vm83_vm0, %v18_v12, 0  ;;  %v91_v41 = vsel %vm83_vm0, %v19_v33, 0  ;;  %v21_v59 = vld [vmem:[%s13810_s0 + $0x20] sm:$0xff] }
   0x6   :  { %v8784_v17 = vsub.f32 %v109_v5, %v8768_v9  ;;  %8183 = vmatpush.msra.mxu2 %v8756_v4  ;;  %v295_v20 = vand.u32 4294901760, %v294_v13  ;;  %v301_v21 = vand.u32 4294901760, %v300_v14  ;;  %149 = vmatpush.msra.mxu0 %v8756_v4  ;;  %v8797_v25 = vand.u32 4294901760, %v88_v19  ;;  %v30_v5 = vld [vmem:[%s13810_s0 + $0x68] sm:$0xff] }
   0x7   :  { %v8790_v22 = vsub.f32 %v112_v10, %v8779_v15  ;;  %v8794_v23 = vsub.f32 %v85_v11, %v8781_v16  ;;  %v8824_v43 = vsub.f32 %v115_v18, %v8804_v31  ;;  %v8826_v44 = vand.u32 4294901760, %v91_v41  ;;  %v22_v10 = vld [vmem:[%s13810_s0 + $0x28] sm:$0xff] }
   0x8   :  { %v216_v24 = vand.u32 4294901760, %v8784_v17  ;;  %386 = vmatpush.msrb.mxu2 %v294_v13  ;;  %v296_v26 = vsub.f32 %v294_v13, %v295_v20  ;;  %v302_v27 = vsub.f32 %v300_v14, %v301_v21  ;;  %603 = vmatpush.msrb.mxu0 %v295_v20  ;;  %v8807_v32 = vsub.f32 %v88_v19, %v8797_v25 }
   0x9   :  { %v152_v28 = vand.u32 4294901760, %v8794_v23  ;;  %v224_v30 = vand.u32 4294901760, %v8790_v22  ;;  %v118_v46 = vsel %vm83_vm0, %v28_v39, 0  ;;  %v8837_v48 = vsub.f32 %v91_v41, %v8826_v44 }
   0xa   :  { %v217_v29 = vsub.f32 %v8784_v17, %v216_v24  ;;  %389 = vmatpush.msrb.mxu2 %v300_v14  ;;  %v297_v34 = vand.u32 4294901760, %v296_v26  ;;  %v303_v35 = vand.u32 4294901760, %v302_v27  ;;  %607 = vmatpush.msrb.mxu0 %v301_v21  ;;  %v160_v38 = vand.u32 4294901760, %v8807_v32  ;;  %v31_v27 = vld [vmem:[%s13810_s0 + $0x70] sm:$0xff] }
   0xb   :  { %v153_v36 = vsub.f32 %v8794_v23, %v152_v28  ;;  %v225_v42 = vsub.f32 %v8790_v22, %v224_v30  ;;  %v94_v49 = vsel %vm83_vm0, %v20_v45, 0  ;;  %v232_v51 = vand.u32 4294901760, %v8824_v43 }
   0xc   :  { %v218_v37 = vand.u32 4294901760, %v217_v29  ;;  %8184 = vmatpush.msra.mxu3 %v297_v34  ;;  %298 = vmatpush.msra.mxu1 %v297_v34  ;;  %v161_v47 = vsub.f32 %v8807_v32, %v160_v38  ;;  %v8844_v52 = vand.u32 4294901760, %v118_v46  ;;  %v168_v54 = vand.u32 4294901760, %v8837_v48 }
   0xd   :  { %v154_v40 = vand.u32 4294901760, %v153_v36  ;;  %v226_v50 = vand.u32 4294901760, %v225_v42  ;;  %v8851_v56 = vand.u32 4294901760, %v94_v49  ;;  %v233_v57 = vsub.f32 %v8824_v43, %v232_v51 }
   0xe   :  { %219 = vmatmul.f32.vlgmr.msra.gmra.mxu2 %v218_v37  ;;  %8185 = vmatpush.msra.mxu3 %v303_v35  ;;  %v162_v53 = vand.u32 4294901760, %v161_v47  ;;  %v8858_v58 = vsub.f32 %v118_v46, %v8844_v52  ;;  %v121_v60 = vsel %vm83_vm0, %v29_v55, 0  ;;  %v169_v61 = vsub.f32 %v8837_v48, %v168_v54 }
   0xf   :  { %304 = vmatpush.msra.mxu1 %v303_v35  ;;  %338 = vmatmul.f32.vlgmr.msra.gmra.mxu3 %v8768_v9  ;;  %v8869_v62 = vsub.f32 %v94_v49, %v8851_v56  ;;  %v97_v63 = vsel %vm83_vm0, %v21_v59, 0  ;;  %v234_v0 = vand.u32 4294901760, %v233_v57  ;;  %v8874_v2 = vand.u32 4294901760, %v121_v60  ;;  %v23_v35 = vld [vmem:[%s13810_s0 + $0x30] sm:$0xff]  ;;  %v32_v49 = vld [vmem:[%s13810_s0 + $0x78] sm:$0xff] }
  0x10   :  { %155 = vmatmul.f32.vlgmr.msra.gmra.mxu0 %v154_v40  ;;  %486 = vmatpush.msrb.mxu3 %v8754_v3  ;;  %v240_v1 = vand.u32 4294901760, %v8858_v58  ;;  %v8880_v6 = vand.u32 4294901760, %v97_v63  ;;  %v124_v11 = vsel %vm83_vm0, %v30_v5, 0  ;;  %v100_v14 = vsel %vm83_vm0, %v22_v10, 0  ;;  %v24_v57 = vld [vmem:[%s13810_s0 + $0x38] sm:$0xff]  ;;  %s8708_s0 = smov 64  }
  0x11   :  { %306 = vmatmul.f32.vlgmr.msra.gmra.mxu1 %v8781_v16  ;;  %v8886_v8 = vsub.f32 %v121_v60, %v8874_v2  ;;  %v8902_v20 = vand.u32 4294901760, %v124_v11  ;;  %v8908_v29 = vand.u32 4294901760, %v100_v14  ;;  %v127_v36 = vsel %vm83_vm0, %v31_v27, 0 }
  0x12   :  { %688 = vmatpush.msrb.mxu1 %v8754_v3  ;;  %488 = vmatpush.msrb.mxu3 %v8756_v4  ;;  %v170_v3 = vand.u32 4294901760, %v169_v61  ;;  %v241_v7 = vsub.f32 %v8858_v58, %v240_v1  ;;  %v8897_v13 = vsub.f32 %v97_v63, %v8880_v6  ;;  %v103_v40 = vsel %vm83_vm0, %v23_v35, 0 }
  0x13   :  { %v248_v19 = vand.u32 4294901760, %v8886_v8  ;;  %v8914_v34 = vsub.f32 %v124_v11, %v8902_v20  ;;  %v8925_v39 = vsub.f32 %v100_v14, %v8908_v29  ;;  %v8930_v45 = vand.u32 4294901760, %v127_v36 }
  0x14   :  { %690 = vmatpush.msrb.mxu1 %v8756_v4  ;;  %v176_v4 = vand.u32 4294901760, %v8869_v62  ;;  %v242_v18 = vand.u32 4294901760, %v241_v7  ;;  %v184_v26 = vand.u32 4294901760, %v8897_v13  ;;  %v130_v59 = vsel %vm83_vm0, %v32_v49, 0 }
  0x15   :  { %v249_v33 = vsub.f32 %v8886_v8, %v248_v19  ;;  %v256_v42 = vand.u32 4294901760, %v8914_v34  ;;  %v192_v47 = vand.u32 4294901760, %v8925_v39  ;;  %v8942_v55 = vsub.f32 %v127_v36, %v8930_v45 }
  0x16   :  { %227 = vmatmul.f32.gmra.mxu2 %v226_v50  ;;  %v177_v12 = vsub.f32 %v8869_v62, %v176_v4  ;;  %v185_v37 = vsub.f32 %v8897_v13, %v184_v26  ;;  %v8936_v50 = vand.u32 4294901760, %v103_v40  ;;  %v106_v63 = vsel %vm83_vm0, %v24_v57, 0 }
  0x17   :  { %342 = vmatmul.f32.gmra.mxu3 %v8779_v15  ;;  %v250_v41 = vand.u32 4294901760, %v249_v33  ;;  %v193_v60 = vsub.f32 %v8925_v39, %v192_v47  ;;  %v8956_v5 = vand.u32 4294901760, %v130_v59  ;;  %v206_v11 = vand.u32 4294901760, %v106_v63 }
  0x18   :  { %163 = vmatmul.f32.gmra.mxu0 %v162_v53  ;;  %v178_v21 = vand.u32 4294901760, %v177_v12  ;;  %v186_v46 = vand.u32 4294901760, %v185_v37  ;;  %v257_v53 = vsub.f32 %v8914_v34, %v256_v42  ;;  %v199_v61 = vsub.f32 %v103_v40, %v8936_v50 }
  0x19   :  { %310 = vmatmul.f32.gmra.mxu1 %v8797_v25  ;;  %v194_v7 = vand.u32 4294901760, %v193_v60  ;;  %v8962_v14 = vsub.f32 %v130_v59, %v8956_v5 }
  0x1a   :  { %v200_v10 = vand.u32 4294901760, %v199_v61 }
  0x1b   :  { %v272_v33 = vand.u32 4294901760, %v8962_v14 }
  0x1d   :  { %v273_v37 = vsub.f32 %v8962_v14, %v272_v33 }
  0x1e   :  { %235 = vmatmul.f32.gmra.mxu2 %v234_v0  ;;  %v258_v0 = vand.u32 4294901760, %v257_v53 }
  0x1f   :  { %346 = vmatmul.f32.gmra.mxu3 %v8804_v31 }
  0x20   :  { %171 = vmatmul.f32.gmra.mxu0 %v170_v3  ;;  %v264_v3 = vand.u32 4294901760, %v8942_v55 }
  0x21   :  { %314 = vmatmul.f32.gmra.mxu1 %v8826_v44 }
  0x22   :  { %v265_v12 = vsub.f32 %v8942_v55, %v264_v3 }
  0x24   :  { %v266_v27 = vand.u32 4294901760, %v265_v12 }
  0x26   :  { %243 = vmatmul.f32.gmra.mxu2 %v242_v18  ;;  %v201_v18 = vsub.f32 %v199_v61, %v200_v10 }
  0x27   :  { %350 = vmatmul.f32.gmra.mxu3 %v8844_v52 }
  0x28   :  { %179 = vmatmul.f32.gmra.mxu0 %v178_v21  ;;  %v207_v21 = vsub.f32 %v106_v63, %v206_v11  ;;  %v202_v35 = vand.u32 4294901760, %v201_v18 }
  0x29   :  { %318 = vmatmul.f32.gmra.mxu1 %v8851_v56 }
  0x2a   :  { %v208_v36 = vand.u32 4294901760, %v207_v21 }
  0x2c   :  { %v209_v40 = vsub.f32 %v207_v21, %v208_v36 }
  0x2e   :  { %251 = vmatmul.f32.gmra.mxu2 %v250_v41  ;;  %v274_v41 = vand.u32 4294901760, %v273_v37 }
  0x2f   :  { %354 = vmatmul.f32.gmra.mxu3 %v8874_v2 }
  0x30   :  { %187 = vmatmul.f32.gmra.mxu0 %v186_v46  ;;  %v210_v46 = vand.u32 4294901760, %v209_v40 }
  0x31   :  { %322 = vmatmul.f32.gmra.mxu1 %v8880_v6 }
  0x36   :  { %259 = vmatmul.f32.gmra.mxu2 %v258_v0 }
  0x37   :  { %358 = vmatmul.f32.gmra.mxu3 %v8902_v20 }
  0x38   :  { %195 = vmatmul.f32.gmra.mxu0 %v194_v7 }
  0x39   :  { %326 = vmatmul.f32.gmra.mxu1 %v8908_v29 }
  0x3e   :  { %267 = vmatmul.f32.gmra.mxu2 %v266_v27 }
  0x3f   :  { %362 = vmatmul.f32.gmra.mxu3 %v8930_v45 }
  0x40   :  { %203 = vmatmul.f32.gmra.mxu0 %v202_v35 }
  0x41   :  { %330 = vmatmul.f32.gmra.mxu1 %v8936_v50 }
  0x46   :  { %275 = vmatmul.f32.gmra.mxu2 %v274_v41 }
  0x47   :  { %366 = vmatmul.f32.gmra.mxu3 %v8956_v5 }
  0x48   :  { %211 = vmatmul.f32.gmra.mxu0 %v210_v46 }
  0x49   :  { %334 = vmatmul.f32.gmra.mxu1 %v206_v11 }
  0x4e   :  { %392 = vmatmul.f32.vlgmr.msrb.gmra.mxu2 %v8794_v23 }
  0x4f   :  { %492 = vmatmul.f32.vlgmr.msrb.gmra.mxu3 %v152_v28 }
  0x50   :  { %609 = vmatmul.f32.vlgmr.msrb.gmra.mxu0 %v8781_v16 }
  0x51   :  { %692 = vmatmul.f32.vlgmr.msrb.gmra.mxu1 %v8781_v16 }
  0x56   :  { %397 = vmatmul.f32.gmra.mxu2 %v8807_v32 }
  0x57   :  { %498 = vmatmul.f32.gmra.mxu3 %v160_v38 }
  0x58   :  { %613 = vmatmul.f32.gmra.mxu0 %v8797_v25 }
  0x59   :  { %696 = vmatmul.f32.gmra.mxu1 %v8797_v25 }
  0x5e   :  { %402 = vmatmul.f32.gmra.mxu2 %v8837_v48 }
  0x5f   :  { %504 = vmatmul.f32.gmra.mxu3 %v168_v54 }
  0x60   :  { %617 = vmatmul.f32.gmra.mxu0 %v8826_v44 }
  0x61   :  { %700 = vmatmul.f32.gmra.mxu1 %v8826_v44 }
  0x66   :  { %407 = vmatmul.f32.gmra.mxu2 %v8869_v62 }
  0x67   :  { %510 = vmatmul.f32.gmra.mxu3 %v176_v4  ;;  %v8706_v4 = vmov 64  }
  0x68   :  { %621 = vmatmul.f32.gmra.mxu0 %v8851_v56  ;;  %8200 = vset.pattern.permute.xlu1 %v8706_v4 }
  0x69   :  { %704 = vmatmul.f32.gmra.mxu1 %v8851_v56  ;;  %8202 = vset.pattern.permute.xlu2 %v8706_v4 }
  0x6e   :  { %412 = vmatmul.f32.gmra.mxu2 %v8897_v13 }
  0x6f   :  { %516 = vmatmul.f32.gmra.mxu3 %v184_v26 }
  0x70   :  { %625 = vmatmul.f32.gmra.mxu0 %v8880_v6 }
  0x71   :  { %708 = vmatmul.f32.gmra.mxu1 %v8880_v6 }
  0x76   :  { %417 = vmatmul.f32.gmra.mxu2 %v8925_v39 }
  0x77   :  { %522 = vmatmul.f32.gmra.mxu3 %v192_v47 }
  0x78   :  { %629 = vmatmul.f32.gmra.mxu0 %v8908_v29 }
  0x79   :  { %712 = vmatmul.f32.gmra.mxu1 %v8908_v29 }
  0x7e   :  { %422 = vmatmul.f32.gmra.mxu2 %v199_v61 }
  0x7f   :  { %528 = vmatmul.f32.gmra.mxu3 %v200_v10 }
  0x80   :  { %633 = vmatmul.f32.gmra.mxu0 %v8936_v50 }
  0x81   :  { %716 = vmatmul.f32.gmra.mxu1 %v8936_v50 }
  0x86   :  { %427 = vmatmul.f32.gmra.mxu2 %v207_v21 }
  0x87   :  { %534 = vmatmul.f32.gmra.mxu3 %v208_v36 }
  0x88   :  { %637 = vmatmul.f32.gmra.mxu0 %v206_v11 }
  0x89   :  { %720 = vmatmul.f32.gmra.mxu1 %v206_v11 }
  0x8d   :  { %v9005_v16 = vpop.f32.mrf.mxu0 }
  0x8e   :  { %432 = vmatmul.f32.gmra.mxu2 %v8784_v17  ;;  %v9008_v23 = vpop.f32.mrf.mxu1 }
  0x8f   :  { %540 = vmatmul.f32.gmra.mxu3 %v216_v24  ;;  %v308_v47 = vadd.f32 %v9008_v23, %v9005_v16 }
  0x90   :  { %641 = vmatmul.f32.gmra.mxu0 %v8768_v9 }
  0x91   :  { %v9013_v25 = vpop.f32.mrf.mxu2  ;;  %724 = vmatmul.f32.gmra.mxu1 %v8768_v9 }
  0x92   :  { %v9016_v28 = vpop.f32.mrf.mxu3 }
  0x95   :  { %v9018_v32 = vpop.f32.mrf.mxu0 }
  0x96   :  { %437 = vmatmul.f32.gmra.mxu2 %v8790_v22  ;;  %v9021_v38 = vpop.f32.mrf.mxu1 }
  0x97   :  { %546 = vmatmul.f32.gmra.mxu3 %v224_v30  ;;  %v312_v61 = vadd.f32 %v9021_v38, %v9018_v32 }
  0x98   :  { %645 = vmatmul.f32.gmra.mxu0 %v8779_v15 }
  0x99   :  { %v9026_v17 = vpop.f32.mrf.mxu2  ;;  %728 = vmatmul.f32.gmra.mxu1 %v8779_v15 }
  0x9a   :  { %v9029_v24 = vpop.f32.mrf.mxu3 }
  0x9d   :  { %v9031_v9 = vpop.f32.mrf.mxu0 }
  0x9e   :  { %442 = vmatmul.f32.gmra.mxu2 %v8824_v43  ;;  %v9034_v44 = vpop.f32.mrf.mxu1 }
  0x9f   :  { %552 = vmatmul.f32.gmra.mxu3 %v232_v51 }
  0xa0   :  { %649 = vmatmul.f32.gmra.mxu0 %v8804_v31 }
  0xa1   :  { %v9039_v22 = vpop.f32.mrf.mxu2  ;;  %732 = vmatmul.f32.gmra.mxu1 %v8804_v31 }
  0xa2   :  { %v9042_v30 = vpop.f32.mrf.mxu3 }
  0xa5   :  { %v9044_v15 = vpop.f32.mrf.mxu0 }
  0xa6   :  { %447 = vmatmul.f32.gmra.mxu2 %v8858_v58  ;;  %v9047_v48 = vpop.f32.mrf.mxu1 }
  0xa7   :  { %558 = vmatmul.f32.gmra.mxu3 %v240_v1  ;;  %v320_v41 = vadd.f32 %v9047_v48, %v9044_v15 }
  0xa8   :  { %653 = vmatmul.f32.gmra.mxu0 %v8844_v52 }
  0xa9   :  { %v9052_v43 = vpop.f32.mrf.mxu2  ;;  %736 = vmatmul.f32.gmra.mxu1 %v8844_v52 }
  0xaa   :  { %v9055_v51 = vpop.f32.mrf.mxu3 }
  0xad   :  { %v9057_v31 = vpop.f32.mrf.mxu0 }
  0xae   :  { %452 = vmatmul.f32.gmra.mxu2 %v8886_v8  ;;  %v9060_v54 = vpop.f32.mrf.mxu1 }
  0xaf   :  { %564 = vmatmul.f32.gmra.mxu3 %v248_v19  ;;  %v13821_v19 = vmov 65  }
  0xb0   :  { %657 = vmatmul.f32.gmra.mxu0 %v8874_v2  ;;  %8201 = vset.pattern.permute.xlu0 %v13821_v19 }
  0xb1   :  { %v9065_v56 = vpop.f32.mrf.mxu2  ;;  %740 = vmatmul.f32.gmra.mxu1 %v8874_v2 }
  0xb2   :  { %v9068_v58 = vpop.f32.mrf.mxu3 }
  0xb5   :  { %v9070_v52 = vpop.f32.mrf.mxu0 }
  0xb6   :  { %457 = vmatmul.f32.gmra.mxu2 %v8914_v34  ;;  %v9073_v62 = vpop.f32.mrf.mxu1 }
  0xb7   :  { %570 = vmatmul.f32.gmra.mxu3 %v256_v42 }
  0xb8   :  { %661 = vmatmul.f32.gmra.mxu0 %v8902_v20 }
  0xb9   :  { %v9078_v1 = vpop.f32.mrf.mxu2  ;;  %744 = vmatmul.f32.gmra.mxu1 %v8902_v20 }
  0xba   :  { %v9083_v2 = vpop.f32.mrf.mxu3 }
  0xbd   :  { %v9085_v6 = vpop.f32.mrf.mxu0 }
  0xbe   :  { %462 = vmatmul.f32.gmra.mxu2 %v8942_v55  ;;  %v9088_v8 = vpop.f32.mrf.mxu1 }
  0xbf   :  { %576 = vmatmul.f32.gmra.mxu3 %v264_v3 }
  0xc0   :  { %665 = vmatmul.f32.gmra.mxu0 %v8930_v45 }
  0xc1   :  { %v9093_v13 = vpop.f32.mrf.mxu2  ;;  %748 = vmatmul.f32.gmra.mxu1 %v8930_v45 }
  0xc2   :  { %v9097_v20 = vpop.f32.mrf.mxu3 }
  0xc5   :  { %v9099_v26 = vpop.f32.mrf.mxu0 }
  0xc6   :  { %467 = vmatmul.f32.gmra.mxu2 %v8962_v14  ;;  %v9102_v29 = vpop.f32.mrf.mxu1  ;;  %v316_v14 = vadd.f32 %v9034_v44, %v9031_v9 }
  0xc7   :  { %582 = vmatmul.f32.gmra.mxu3 %v272_v33 }
  0xc8   :  { %669 = vmatmul.f32.gmra.mxu0 %v8956_v5 }
  0xc9   :  { %v9107_v34 = vpop.f32.mrf.mxu2  ;;  %752 = vmatmul.f32.gmra.mxu1 %v8956_v5 }
  0xca   :  { %v9110_v39 = vpop.f32.mrf.mxu3 }
  0xcd   :  { %v610_v42 = vpop.f32.mrf.mxu0 }
  0xce   :  { %v693_v45 = vpop.f32.mrf.mxu1 }
  0xd1   :  { %v393_v49 = vpop.f32.mrf.mxu2 }
  0xd2   :  { %v394_v50 = vadd.f32 %v393_v49, %v308_v47  ;;  %v493_v53 = vpop.f32.mrf.mxu3  ;;  %v324_v47 = vadd.f32 %v9060_v54, %v9057_v31 }
  0xd4   :  { %v494_v55 = vadd.f32 %v493_v53, %v394_v50 }
  0xd5   :  { %v614_v57 = vpop.f32.mrf.mxu0 }
  0xd6   :  { %v611_v59 = vadd.f32 %v610_v42, %v494_v55  ;;  %v697_v60 = vpop.f32.mrf.mxu1  ;;  %v328_v55 = vadd.f32 %v9073_v62, %v9070_v52 }
  0xd8   :  { %v9116_v63 = vadd.f32 %v693_v45, %v611_v59 }
  0xd9   :  { %v398_v0 = vpop.f32.mrf.mxu2 }
  0xda   :  { %14035 = vst [vmem:[#allocation3_spill] sm:$0xff] %v9116_v63  ;;  %v399_v3 = vadd.f32 %v398_v0, %v312_v61  ;;  %853 = vperm.xlu1 %8200, %v9116_v63   ;;  %772 = vrot.lane.b32.xlu0 %v9116_v63, %s8708_s0  ;;  %v499_v5 = vpop.f32.mrf.mxu3 }
  0xdc   :  { %v500_v7 = vadd.f32 %v499_v5, %v399_v3 }
  0xdd   :  { %v618_v10 = vpop.f32.mrf.mxu0 }
  0xde   :  { %v615_v11 = vadd.f32 %v614_v57, %v500_v7  ;;  %v701_v12 = vpop.f32.mrf.mxu1 }
  0xe0   :  { %v9123_v18 = vadd.f32 %v697_v60, %v615_v11 }
  0xe1   :  { %v403_v21 = vpop.f32.mrf.mxu2 }
  0xe2   :  { %14036 = vst [vmem:[#allocation4_spill] sm:$0xff] %v9123_v18  ;;  %v404_v27 = vadd.f32 %v403_v21, %v316_v14  ;;  %857 = vperm.xlu2 %8202, %v9123_v18   ;;  %8203 = vset.pattern.permute.xlu1 %v13821_v19  ;;  %v505_v33 = vpop.f32.mrf.mxu3  ;;  %v336_v14 = vadd.f32 %v9102_v29, %v9099_v26 }
  0xe3   :  { %2060 = vperm.xlu0 %8201, %v9116_v63   ;;  %2064 = vperm.xlu1 %8203, %v9123_v18  }
  0xe4   :  { %v506_v35 = vadd.f32 %v505_v33, %v404_v27  ;;  %v332_v33 = vadd.f32 %v9088_v8, %v9085_v6 }
  0xe5   :  { %v622_v36 = vpop.f32.mrf.mxu0 }
  0xe6   :  { %v619_v37 = vadd.f32 %v618_v10, %v506_v35  ;;  %v705_v40 = vpop.f32.mrf.mxu1 }
  0xe8   :  { %v9131_v46 = vadd.f32 %v701_v12, %v619_v37 }
  0xe9   :  { %v408_v16 = vpop.f32.mrf.mxu2 }
  0xea   :  { %14037 = vst [vmem:[#allocation5_spill] sm:$0xff] %v9131_v46  ;;  %v409_v23 = vadd.f32 %v408_v16, %v320_v41  ;;  %8205 = vset.pattern.permute.xlu2 %v13821_v19  ;;  %v511_v32 = vpop.f32.mrf.mxu3  ;;  %v340_v41 = vadd.f32 %v9016_v28, %v9013_v25 }
  0xeb   :  { %774 = vrot.lane.b32.xlu0 %v9123_v18, %s8708_s0  ;;  %2068 = vperm.xlu2 %8205, %v9131_v46  }
  0xec   :  { %v512_v38 = vadd.f32 %v511_v32, %v409_v23  ;;  %776 = vrot.lane.b32.xlu1 %v9131_v46, %s8708_s0  ;;  %8204 = vset.pattern.permute.xlu0 %v8706_v4 }
  0xed   :  { %v626_v9 = vpop.f32.mrf.mxu0 }
  0xee   :  { %v623_v44 = vadd.f32 %v622_v36, %v512_v38  ;;  %v709_v15 = vpop.f32.mrf.mxu1 }
  0xf0   :  { %v9140_v42 = vadd.f32 %v705_v40, %v623_v44 }
  0xf1   :  { %v413_v48 = vpop.f32.mrf.mxu2 }
  0xf2   :  { %14038 = vst [vmem:[#allocation6_spill] sm:$0xff] %v9140_v42  ;;  %v517_v45 = vpop.f32.mrf.mxu3  ;;  %v414_v50 = vadd.f32 %v413_v48, %v324_v47 }
  0xf3   :  { %861 = vperm.xlu0 %8204, %v9131_v46   ;;  %8206 = vset.pattern.permute.xlu2 %v8706_v4 }
  0xf4   :  { %2352 = vrot.lane.b32.xlu1 %v9131_v46, %s8709_s24  ;;  %865 = vperm.xlu2 %8206, %v9140_v42   ;;  %v518_v59 = vadd.f32 %v517_v45, %v414_v50 }
  0xf5   :  { %v630_v49 = vpop.f32.mrf.mxu0 }
  0xf6   :  { %v713_v53 = vpop.f32.mrf.mxu1  ;;  %v627_v54 = vadd.f32 %v626_v9, %v518_v59 }
  0xf8   :  { %v9157_v52 = vadd.f32 %v709_v15, %v627_v54  ;;  %v344_v15 = vadd.f32 %v9029_v24, %v9026_v17 }
  0xf9   :  { %v418_v57 = vpop.f32.mrf.mxu2 }
  0xfa   :  { %v419_v60 = vadd.f32 %v418_v57, %v328_v55  ;;  %v523_v61 = vpop.f32.mrf.mxu3  ;;  %14040 = vst [vmem:[#allocation8_spill] sm:$0xff] %v9157_v52 }
  0xfc   :  { %v524_v0 = vadd.f32 %v523_v61, %v419_v60  ;;  %778 = vrot.lane.b32.xlu1 %v9140_v42, %s8708_s0  ;;  %8207 = vset.pattern.permute.xlu2 %v13821_v19  ;;  %v348_v61 = vadd.f32 %v9042_v30, %v9039_v22 }
  0xfd   :  { %2072 = vperm.xlu2 %8207, %v9140_v42   ;;  %v634_v31 = vpop.f32.mrf.mxu0 }
  0xfe   :  { %v631_v3 = vadd.f32 %v630_v49, %v524_v0  ;;  %v717_v5 = vpop.f32.mrf.mxu1 }
 0x100   :  { %v9155_v7 = vadd.f32 %v713_v53, %v631_v3 }
 0x101   :  { %v423_v10 = vpop.f32.mrf.mxu2 }
 0x102   :  { %14039 = vst [vmem:[#allocation7_spill] sm:$0xff] %v9155_v7  ;;  %873 = vperm.xlu0 %8204, %v9155_v7   ;;  %v529_v62 = vpop.f32.mrf.mxu3  ;;  %v424_v37 = vadd.f32 %v423_v10, %v332_v33 }
 0x104   :  { %2076 = vperm.xlu1 %8203, %v9157_v52   ;;  %v530_v6 = vadd.f32 %v529_v62, %v424_v37  ;;  %v352_v62 = vadd.f32 %v9055_v51, %v9052_v43 }
 0x105   :  { %2354 = vrot.lane.b32.xlu2 %v9140_v42, %s8709_s24  ;;  %v638_v11 = vpop.f32.mrf.mxu0 }
 0x106   :  { %v721_v12 = vpop.f32.mrf.mxu1  ;;  %8208 = vset.pattern.permute.xlu2 %v8706_v4  ;;  %v635_v9 = vadd.f32 %v634_v31, %v530_v6 }
 0x108   :  { %v9188_v45 = vadd.f32 %v717_v5, %v635_v9 }
 0x109   :  { %v428_v21 = vpop.f32.mrf.mxu2 }
 0x10a   :  { %v429_v27 = vadd.f32 %v428_v21, %v336_v14  ;;  %8209 = vset.pattern.permute.xlu0 %v13821_v19  ;;  %v535_v35 = vpop.f32.mrf.mxu3  ;;  %14043 = vst [vmem:[#allocation11_spill] sm:$0xff] %v9188_v45 }
 0x10b   :  { %2080 = vperm.xlu0 %8209, %v9155_v7  }
 0x10c   :  { %v536_v36 = vadd.f32 %v535_v35, %v429_v27  ;;  %2356 = vrot.lane.b32.xlu1 %v9157_v52, %s8709_s24 }
 0x10d   :  { %780 = vrot.lane.b32.xlu2 %v9157_v52, %s8708_s0  ;;  %v642_v40 = vpop.f32.mrf.mxu0 }
 0x10e   :  { %v639_v26 = vadd.f32 %v638_v11, %v536_v36  ;;  %v725_v29 = vpop.f32.mrf.mxu1 }
 0x110   :  { %v9176_v16 = vadd.f32 %v721_v12, %v639_v26  ;;  %v356_v26 = vadd.f32 %v9068_v58, %v9065_v56 }
 0x111   :  { %v433_v8 = vpop.f32.mrf.mxu2 }
 0x112   :  { %14041 = vst [vmem:[#allocation9_spill] sm:$0xff] %v9176_v16  ;;  %v434_v23 = vadd.f32 %v433_v8, %v340_v41  ;;  %v541_v32 = vpop.f32.mrf.mxu3  ;;  %v360_v41 = vadd.f32 %v9083_v2, %v9078_v1  ;;  %v364_v8 = vadd.f32 %v9097_v20, %v9093_v13  ;;  %v368_v13 = vadd.f32 %v9110_v39, %v9107_v34 }
 0x113   :  { %2358 = vrot.lane.b32.xlu0 %v9155_v7, %s8709_s24 }
 0x114   :  { %v542_v38 = vadd.f32 %v541_v32, %v434_v23  ;;  %786 = vrot.lane.b32.xlu1 %v9176_v16, %s8708_s0  ;;  %8210 = vset.pattern.permute.xlu0 %v8706_v4 }
 0x115   :  { %869 = vperm.xlu2 %8208, %v9157_v52   ;;  %v646_v44 = vpop.f32.mrf.mxu0 }
 0x116   :  { %v643_v25 = vadd.f32 %v642_v40, %v542_v38  ;;  %v729_v28 = vpop.f32.mrf.mxu1 }
 0x118   :  { %v9186_v48 = vadd.f32 %v725_v29, %v643_v25 }
 0x119   :  { %v438_v47 = vpop.f32.mrf.mxu2 }
 0x11a   :  { %14042 = vst [vmem:[#allocation10_spill] sm:$0xff] %v9186_v48  ;;  %v439_v49 = vadd.f32 %v438_v47, %v344_v15  ;;  %v547_v50 = vpop.f32.mrf.mxu3 }
 0x11b   :  { %784 = vrot.lane.b32.xlu0 %v9188_v45, %s8708_s0 }
 0x11c   :  { %v548_v53 = vadd.f32 %v547_v50, %v439_v49  ;;  %2092 = vperm.xlu1 %8203, %v9186_v48  }
 0x11d   :  { %782 = vrot.lane.b32.xlu2 %v9155_v7, %s8708_s0  ;;  %v650_v55 = vpop.f32.mrf.mxu0 }
 0x11e   :  { %v647_v57 = vadd.f32 %v646_v44, %v548_v53  ;;  %v733_v59 = vpop.f32.mrf.mxu1 }
 0x120   :  { %v9195_v17 = vadd.f32 %v729_v28, %v647_v57 }
 0x121   :  { %v443_v24 = vpop.f32.mrf.mxu2 }
 0x122   :  { %14044 = vst [vmem:[#allocation12_spill] sm:$0xff] %v9195_v17  ;;  %v553_v60 = vpop.f32.mrf.mxu3  ;;  %v444_v31 = vadd.f32 %v443_v24, %v348_v61 }
 0x123   :  { %877 = vperm.xlu0 %8210, %v9188_v45  }
 0x124   :  { %2096 = vperm.xlu1 %8203, %v9195_v17   ;;  %v554_v5 = vadd.f32 %v553_v60, %v444_v31 }
 0x125   :  { %881 = vperm.xlu2 %8208, %v9176_v16   ;;  %v654_v0 = vpop.f32.mrf.mxu0 }
 0x126   :  { %v737_v54 = vpop.f32.mrf.mxu1  ;;  %v651_v30 = vadd.f32 %v650_v55, %v554_v5 }
 0x128   :  { %v9210_v21 = vadd.f32 %v733_v59, %v651_v30 }
 0x129   :  { %v448_v3 = vpop.f32.mrf.mxu2 }
 0x12a   :  { %v559_v10 = vpop.f32.mrf.mxu3  ;;  %v449_v11 = vadd.f32 %v448_v3, %v352_v62  ;;  %14045 = vst [vmem:[#allocation13_spill] sm:$0xff] %v9210_v21 }
 0x12b   :  { %8211 = vset.pattern.permute.xlu0 %v13821_v19 }
 0x12c   :  { %2366 = vrot.lane.b32.xlu1 %v9195_v17, %s8709_s24  ;;  %2084 = vperm.xlu0 %8211, %v9188_v45   ;;  %v560_v27 = vadd.f32 %v559_v10, %v449_v11 }
 0x12d   :  { %8212 = vset.pattern.permute.xlu2 %v13821_v19  ;;  %v658_v22 = vpop.f32.mrf.mxu0 }
 0x12e   :  { %2088 = vperm.xlu2 %8212, %v9176_v16   ;;  %v741_v12 = vpop.f32.mrf.mxu1  ;;  %v655_v43 = vadd.f32 %v654_v0, %v560_v27  ;;  %v9304_v27 = vand.u32 4294901760, %v9210_v21 }
 0x130   :  { %v9219_v37 = vadd.f32 %v737_v54, %v655_v43 }
 0x131   :  { %v453_v14 = vpop.f32.mrf.mxu2 }
 0x132   :  { %v565_v33 = vpop.f32.mrf.mxu3  ;;  %14046 = vst [vmem:[#allocation14_spill] sm:$0xff] %v9219_v37  ;;  %v454_v6 = vadd.f32 %v453_v14, %v356_v26 }
 0x134   :  { %792 = vrot.lane.b32.xlu1 %v9210_v21, %s8708_s0  ;;  %2360 = vrot.lane.b32.xlu0 %v9188_v45, %s8709_s24  ;;  %v566_v32 = vadd.f32 %v565_v33, %v454_v6 }
 0x135   :  { %v662_v51 = vpop.f32.mrf.mxu0 }
 0x136   :  { %2362 = vrot.lane.b32.xlu2 %v9176_v16, %s8709_s24  ;;  %v745_v36 = vpop.f32.mrf.mxu1  ;;  %v659_v2 = vadd.f32 %v658_v22, %v566_v32  ;;  %v9289_v22 = vand.u32 4294901760, %v9219_v37 }
 0x137   :  { %8213 = vset.pattern.permute.xlu2 %v8706_v4 }
 0x138   :  { %v9244_v50 = vadd.f32 %v741_v12, %v659_v2 }
 0x139   :  { %v458_v35 = vpop.f32.mrf.mxu2 }
 0x13a   :  { %v571_v40 = vpop.f32.mrf.mxu3  ;;  %v459_v23 = vadd.f32 %v458_v35, %v360_v41  ;;  %14048 = vst [vmem:[#allocation16_spill] sm:$0xff] %v9244_v50  ;;  %v9275_v5 = vand.u32 4294901760, %v9244_v50  ;;  %v9331_v41 = vsub.f32 %v9210_v21, %v9304_v27 }
 0x13c   :  { %2370 = vrot.lane.b32.xlu1 %v9219_v37, %s8709_s24  ;;  %v9225_v29 = vpop.permute.xlu2 %857  ;;  %790 = vrot.lane.b32.xlu0 %v9195_v17, %s8708_s0  ;;  %v572_v25 = vadd.f32 %v571_v40, %v459_v23  ;;  %v9301_v14 = vsub.f32 %v9244_v50, %v9275_v5  ;;  %v9325_v40 = vand.u32 4294901760, %v9195_v17 }
 0x13d   :  { %v666_v58 = vpop.f32.mrf.mxu0 }
 0x13e   :  { %788 = vrot.lane.b32.xlu2 %v9186_v48, %s8708_s0  ;;  %v749_v44 = vpop.f32.mrf.mxu1  ;;  %v663_v20 = vadd.f32 %v662_v51, %v572_v25  ;;  %v9317_v51 = vsub.f32 %v9219_v37, %v9289_v22  ;;  %v13818_v6 = vand.u32 4294901760, %v9301_v14  ;;  %v9347_v32 = vsub.f32 %v9195_v17, %v9325_v40 }
 0x13f   :  { %v13815_v25 = vand.u32 4294901760, %v9331_v41 }
 0x140   :  { %v9246_v59 = vadd.f32 %v745_v36, %v663_v20  ;;  %v9374_v20 = vand.u32 4294901760, %v9188_v45 }
 0x141   :  { %v463_v56 = vpop.f32.mrf.mxu2 }
 0x142   :  { %v464_v38 = vadd.f32 %v463_v56, %v364_v8  ;;  %v577_v9 = vpop.f32.mrf.mxu3  ;;  %14049 = vst [vmem:[#allocation17_spill] sm:$0xff] %v9246_v59  ;;  %v9265_v54 = vand.u32 4294901760, %v9246_v59  ;;  %v9336_v8 = vand.u32 4294901760, %v9186_v48  ;;  %v13816_v56 = vand.u32 4294901760, %v9317_v51 }
 0x144   :  { %v578_v28 = vadd.f32 %v577_v9, %v464_v38  ;;  %2104 = vperm.xlu1 %8203, %v9219_v37   ;;  %2100 = vperm.xlu0 %8211, %v9210_v21   ;;  %v9286_v62 = vsub.f32 %v9246_v59, %v9265_v54  ;;  %v1323_v9 = vsub.f32 %v9301_v14, %v13818_v6  ;;  %v9447_v6 = vand.u32 4294901760, %v9123_v18 }
 0x145   :  { %v9237_v1 = vpop.permute.xlu2 %2068  ;;  %v670_v57 = vpop.f32.mrf.mxu0  ;;  %v9366_v2 = vsub.f32 %v9186_v48, %v9336_v8 }
 0x146   :  { %v667_v15 = vadd.f32 %v666_v58, %v578_v28  ;;  %885 = vperm.xlu2 %8213, %v9186_v48   ;;  %v753_v34 = vpop.f32.mrf.mxu1  ;;  %v13819_v35 = vand.u32 4294901760, %v9286_v62 }
 0x148   :  { %v9242_v47 = vadd.f32 %v749_v44, %v667_v15  ;;  %v1317_v23 = vsub.f32 %v9286_v62, %v13819_v35  ;;  %v9358_v44 = vand.u32 4294901760, %v9176_v16 }
 0x149   :  { %v468_v49 = vpop.f32.mrf.mxu2 }
 0x14a   :  { %14047 = vst [vmem:[#allocation15_spill] sm:$0xff] %v9242_v47  ;;  %v469_v53 = vadd.f32 %v468_v49, %v368_v13  ;;  %v583_v55 = vpop.f32.mrf.mxu3  ;;  %v9256_v39 = vand.u32 4294901760, %v9242_v47  ;;  %v1318_v15 = vand.u32 4294901760, %v1317_v23  ;;  %v1329_v13 = vsub.f32 %v9317_v51, %v13816_v56 }
 0x14b   :  { %v13814_v49 = vand.u32 4294901760, %v9347_v32 }
 0x14c   :  { %v584_v24 = vadd.f32 %v583_v55, %v469_v53  ;;  %2372 = vrot.lane.b32.xlu1 %v9244_v50, %s8709_s24  ;;  %v9250_v60 = vpop.permute.xlu1 %853  ;;  %796 = vrot.lane.b32.xlu0 %v9244_v50, %s8708_s0  ;;  %v9269_v3 = vsub.f32 %v9242_v47, %v9256_v39  ;;  %v1324_v53 = vand.u32 4294901760, %v1323_v9  ;;  %v1335_v55 = vsub.f32 %v9331_v41, %v13815_v25 }
 0x14d   :  { %8214 = vset.pattern.permute.xlu0 %v8706_v4 }
 0x14e   :  { %v671_v61 = vadd.f32 %v670_v57, %v584_v24  ;;  %v9258_v0 = vpop.permute.xlu2 %865  ;;  %2364 = vrot.lane.b32.xlu2 %v9186_v48, %s8709_s24  ;;  %v13823_v11 = vand.u32 4294901760, %v9269_v3  ;;  %v9385_v57 = vsub.f32 %v9176_v16, %v9358_v44  ;;  %v9388_v24 = vand.u32 4294901760, %v9155_v7 }
 0x150   :  { %v9262_v31 = vadd.f32 %v753_v34, %v671_v61  ;;  %v1311_v36 = vsub.f32 %v9269_v3, %v13823_v11  ;;  %v13817_v34 = vand.u32 4294901760, %v9366_v2  ;;  %v1330_v61 = vand.u32 4294901760, %v1329_v13 }
 0x151   :  { %v9412_v9 = vsub.f32 %v9155_v7, %v9388_v24  ;;  %v13820_v13 = vand.u32 4294901760, %v9385_v57  ;;  %v9461_v11 = vand.u32 4294901760, %v9116_v63 }
 0x152   :  { %14050 = vst [vmem:[#allocation18_spill] sm:$0xff] %v9262_v31  ;;  %v9272_v4 = vand.u32 4294901760, %v9262_v31  ;;  %v1312_v58 = vand.u32 4294901760, %v1311_v36  ;;  %v9399_v36 = vand.u32 4294901760, %v9157_v52 }
 0x153   :  { %v13830_v35 = vand.u32 4294901760, %v9412_v9  ;;  %v9488_v7 = vsub.f32 %v9116_v63, %v9461_v11 }
 0x154   :  { %798 = vrot.lane.b32.xlu1 %v9246_v59, %s8708_s0  ;;  %1142 = vmatpush.msra.mxu2 %v9272_v4  ;;  %v9282_v10 = vsub.f32 %v9262_v31, %v9272_v4 }
 0x155   :  { %1593 = vmatpush.msra.mxu1 %v9272_v4  ;;  %905 = vperm.xlu0 %8214, %v9246_v59   ;;  %v9293_v30 = vpop.permute.xlu1 %2064 }
 0x156   :  { %1144 = vmatpush.msra.mxu2 %v9256_v39  ;;  %1465 = vmatpush.msra.mxu0 %v9282_v10  ;;  %v13824_v12 = vand.u32 4294901760, %v9282_v10 }
 0x157   :  { %1595 = vmatpush.msra.mxu1 %v9256_v39  ;;  %889 = vperm.xlu2 %8213, %v9195_v17   ;;  %v9308_v33 = vpop.permute.xlu2 %2072  ;;  %v9474_v17 = vsub.f32 %v9123_v18, %v9447_v6 }
 0x158   :  { %1146 = vmatpush.msra.mxu2 %v9265_v54  ;;  %1468 = vmatpush.msra.mxu0 %v9269_v3  ;;  %v1305_v43 = vsub.f32 %v9282_v10, %v13824_v12 }
 0x159   :  { %1597 = vmatpush.msra.mxu1 %v9265_v54 }
 0x15a   :  { %1148 = vmatpush.msra.mxu2 %v9275_v5  ;;  %1471 = vmatpush.msra.mxu0 %v9286_v62  ;;  %v1306_v26 = vand.u32 4294901760, %v1305_v43  ;;  %v9396_v43 = vsub.f32 %v9188_v45, %v9374_v20 }
 0x15b   :  { %1599 = vmatpush.msra.mxu1 %v9275_v5 }
 0x15c   :  { %2112 = vperm.xlu1 %8203, %v9246_v59   ;;  %1150 = vmatpush.msra.mxu2 %v9289_v22  ;;  %v13825_v25 = vand.u32 4294901760, %v9396_v43 }
 0x15d   :  { %1307 = vmatpush.msra.mxu3 %v1306_v26  ;;  %1474 = vmatpush.msra.mxu0 %v9301_v14  ;;  %v1341_v26 = vsub.f32 %v9347_v32, %v13814_v49  ;;  %v9431_v49 = vand.u32 4294901760, %v9131_v46 }
 0x15e   :  { %1601 = vmatpush.msra.mxu1 %v9289_v22  ;;  %802 = vrot.lane.b32.xlu0 %v9262_v31, %s8708_s0  ;;  %v9352_v38 = vpop.permute.xlu1 %776 }
 0x15f   :  { %1152 = vmatpush.msra.mxu2 %v9304_v27  ;;  %1313 = vmatpush.msra.mxu3 %v1312_v58  ;;  %v9362_v28 = vpop.permute.xlu2 %2354  ;;  %v1336_v58 = vand.u32 4294901760, %v1335_v55  ;;  %v9428_v55 = vsub.f32 %v9157_v52, %v9399_v36  ;;  %v1342_v56 = vand.u32 4294901760, %v1341_v26  ;;  %v9458_v19 = vsub.f32 %v9131_v46, %v9431_v49 }
 0x160   :  { %1477 = vmatpush.msra.mxu0 %v9317_v51  ;;  %1603 = vmatpush.msra.mxu1 %v9304_v27  ;;  %v14056_v46 = vmov 65  }
 0x161   :  { %893 = vperm.xlu2 %8213, %v9210_v21   ;;  %1154 = vmatpush.msra.mxu2 %v9325_v40  ;;  %v14051_v45 = vand.u32 4294901760, %v9428_v55 }
 0x162   :  { %1319 = vmatpush.msra.mxu3 %v1318_v15  ;;  %1480 = vmatpush.msra.mxu0 %v9331_v41  ;;  %v9415_v15 = vand.u32 4294901760, %v9140_v42 }
 0x163   :  { %1605 = vmatpush.msra.mxu1 %v9325_v40  ;;  %1156 = vmatpush.msra.mxu2 %v9336_v8 }
 0x164   :  { %1325 = vmatpush.msra.mxu3 %v1324_v53  ;;  %1483 = vmatpush.msra.mxu0 %v9347_v32 }
 0x165   :  { %1607 = vmatpush.msra.mxu1 %v9336_v8  ;;  %2376 = vrot.lane.b32.xlu1 %v9242_v47, %s8709_s24 }
 0x166   :  { %1331 = vmatpush.msra.mxu3 %v1330_v61  ;;  %1486 = vmatpush.msra.mxu0 %v9366_v2  ;;  %v9408_v23 = vpop.permute.xlu1 %2352  ;;  %v1347_v61 = vsub.f32 %v9366_v2, %v13817_v34  ;;  %v9444_v34 = vsub.f32 %v9140_v42, %v9415_v15  ;;  %v14057_v42 = vand.u32 4294901760, %v9286_v62  ;;  %v14061_v62 = vand.u32 4294901760, %v9347_v32 }
 0x167   :  { %913 = vperm.xlu0 %8214, %v9262_v31   ;;  %1158 = vmatpush.msra.mxu2 %v9358_v44  ;;  %v9420_v53 = vpop.permute.xlu2 %780 }
 0x168   :  { %1609 = vmatpush.msra.mxu1 %v9358_v44  ;;  %1337 = vmatpush.msra.mxu3 %v1336_v58  ;;  %v1353_v58 = vsub.f32 %v9385_v57, %v13820_v13  ;;  %v1348_v26 = vand.u32 4294901760, %v1347_v61  ;;  %v1359_v13 = vsub.f32 %v9396_v43, %v13825_v25  ;;  %v1365_v25 = vsub.f32 %v9412_v9, %v13830_v35 }
 0x169   :  { %2368 = vrot.lane.b32.xlu2 %v9210_v21, %s8709_s24  ;;  %1160 = vmatpush.msra.mxu2 %v9374_v20  ;;  %v1371_v35 = vsub.f32 %v9428_v55, %v14051_v45  ;;  %v13841_v45 = vand.u32 4294901760, %v9474_v17  ;;  %v14053_v21 = vand.u32 4294901760, %v9458_v19 }
 0x16a   :  { %1489 = vmatpush.msra.mxu0 %v9385_v57  ;;  %1611 = vmatpush.msra.mxu1 %v9374_v20 }
 0x16b   :  { %1162 = vmatpush.msra.mxu2 %v9388_v24  ;;  %1343 = vmatpush.msra.mxu3 %v1342_v56  ;;  %v1354_v56 = vand.u32 4294901760, %v1353_v58  ;;  %v1360_v58 = vand.u32 4294901760, %v1359_v13  ;;  %v14052_v13 = vand.u32 4294901760, %v9444_v34  ;;  %v1372_v12 = vand.u32 4294901760, %v1371_v35 }
 0x16c   :  { %1492 = vmatpush.msra.mxu0 %v9396_v43  ;;  %1613 = vmatpush.msra.mxu1 %v9388_v24  ;;  %v1383_v48 = vsub.f32 %v9458_v19, %v14053_v21  ;;  %v1389_v35 = vsub.f32 %v9474_v17, %v13841_v45 }
 0x16d   :  { %1164 = vmatpush.msra.mxu2 %v9399_v36  ;;  %1349 = vmatpush.msra.mxu3 %v1348_v26  ;;  %v1377_v16 = vsub.f32 %v9444_v34, %v14052_v13 }
 0x16e   :  { %1495 = vmatpush.msra.mxu0 %v9412_v9  ;;  %1615 = vmatpush.msra.mxu1 %v9399_v36  ;;  %v9467_v61 = vpop.permute.xlu1 %778  ;;  %v1384_v52 = vand.u32 4294901760, %v1383_v48  ;;  %v1390_v45 = vand.u32 4294901760, %v1389_v35  ;;  %v14058_v48 = vand.u32 4294901760, %v9301_v14 }
 0x16f   :  { %2378 = vrot.lane.b32.xlu1 %v9262_v31, %s8709_s24  ;;  %1166 = vmatpush.msra.mxu2 %v9415_v15  ;;  %v9480_v26 = vpop.permute.xlu2 %869 }
 0x170   :  { %1355 = vmatpush.msra.mxu3 %v1354_v56  ;;  %1498 = vmatpush.msra.mxu0 %v9428_v55  ;;  %v1366_v56 = vand.u32 4294901760, %v1365_v25  ;;  %v1394_v25 = vand.u32 4294901760, %v9488_v7 }
 0x171   :  { %1617 = vmatpush.msra.mxu1 %v9415_v15  ;;  %794 = vrot.lane.b32.xlu2 %v9219_v37, %s8708_s0 }
 0x172   :  { %1168 = vmatpush.msra.mxu2 %v9431_v49  ;;  %1361 = vmatpush.msra.mxu3 %v1360_v58  ;;  %v1378_v58 = vand.u32 4294901760, %v1377_v16  ;;  %v14055_v16 = vand.u32 4294901760, %v9269_v3 }
 0x173   :  { %1501 = vmatpush.msra.mxu0 %v9444_v34  ;;  %1619 = vmatpush.msra.mxu1 %v9431_v49 }
 0x174   :  { %1170 = vmatpush.msra.mxu2 %v9447_v6  ;;  %1367 = vmatpush.msra.mxu3 %v1366_v56  ;;  %v14054_v56 = vand.u32 4294901760, %v9282_v10 }
 0x175   :  { %1504 = vmatpush.msra.mxu0 %v9458_v19  ;;  %1621 = vmatpush.msra.mxu1 %v9447_v6 }
 0x176   :  { %1172 = vmatpush.msra.mxu2 %v9461_v11  ;;  %1373 = vmatpush.msra.mxu3 %v1372_v12  ;;  %v9509_v13 = vpop.permute.xlu1 %2076  ;;  %v1395_v12 = vsub.f32 %v9488_v7, %v1394_v25 }
 0x177   :  { %1507 = vmatpush.msra.mxu0 %v9474_v17  ;;  %1623 = vmatpush.msra.mxu1 %v9461_v11  ;;  %v9516_v21 = vpop.permute.xlu2 %782 }
 0x178   :  { %1724 = vmatpush.msrb.mxu2 %v14054_v56  ;;  %1379 = vmatpush.msra.mxu3 %v1378_v58  ;;  %v1396_v10 = vand.u32 4294901760, %v1395_v12 }
 0x179   :  { %1510 = vmatpush.msra.mxu0 %v9488_v7  ;;  %897 = vperm.xlu2 %8213, %v9219_v37   ;;  %v773_v7 = vpop.permute.xlu0 %772 }
 0x17a   :  { %1728 = vmatpush.msrb.mxu2 %v14055_v16  ;;  %1385 = vmatpush.msra.mxu3 %v1384_v52  ;;  %v14059_v52 = vand.u32 4294901760, %v9317_v51 }
 0x17b   :  { %8215 = vset.pattern.permute.xlu0 %v14056_v46 }
 0x17c   :  { %1732 = vmatpush.msrb.mxu2 %v14057_v42  ;;  %1391 = vmatpush.msra.mxu3 %v1390_v45  ;;  %v14060_v42 = vand.u32 4294901760, %v9331_v41 }
 0x17e   :  { %1736 = vmatpush.msrb.mxu2 %v14058_v48  ;;  %1397 = vmatpush.msra.mxu3 %v1396_v10  ;;  %v9530_v58 = vpop.permute.xlu1 %2356 }
 0x17f   :  { %v9533_v3 = vpop.permute.xlu2 %881 }
 0x180   :  { %1851 = vmatpush.msrb.mxu3 %v9272_v4  ;;  %1740 = vmatpush.msrb.mxu2 %v14059_v52  ;;  %v14062_v4 = vand.u32 4294901760, %v9366_v2 }
 0x181   :  { %901 = vperm.xlu2 %8213, %v9244_v50   ;;  %v9552_v41 = vpop.permute.xlu0 %2060 }
 0x182   :  { %1853 = vmatpush.msrb.mxu3 %v9256_v39  ;;  %1744 = vmatpush.msrb.mxu2 %v14060_v42  ;;  %v14063_v39 = vand.u32 4294901760, %v9385_v57  ;;  %v14069_v57 = vand.u32 4294901760, %v9474_v17 }
 0x184   :  { %1855 = vmatpush.msrb.mxu3 %v9265_v54  ;;  %1748 = vmatpush.msrb.mxu2 %v14061_v62  ;;  %v14064_v54 = vand.u32 4294901760, %v9396_v43 }
 0x186   :  { %1857 = vmatpush.msrb.mxu3 %v9275_v5  ;;  %1752 = vmatpush.msrb.mxu2 %v14062_v4  ;;  %v787_v14 = vpop.permute.xlu1 %786  ;;  %v14065_v5 = vand.u32 4294901760, %v9412_v9 }
 0x188   :  { %1859 = vmatpush.msrb.mxu3 %v9289_v22  ;;  %1756 = vmatpush.msrb.mxu2 %v14063_v39  ;;  %v9550_v51 = vpop.permute.xlu2 %2088  ;;  %v14066_v22 = vand.u32 4294901760, %v9428_v55 }
 0x189   :  { %2374 = vrot.lane.b32.xlu2 %v9246_v59, %s8709_s24 }
 0x18a   :  { %1861 = vmatpush.msrb.mxu3 %v9304_v27  ;;  %1760 = vmatpush.msrb.mxu2 %v14064_v54  ;;  %v14067_v27 = vand.u32 4294901760, %v9444_v34 }
 0x18c   :  { %1863 = vmatpush.msrb.mxu3 %v9325_v40  ;;  %1764 = vmatpush.msrb.mxu2 %v14065_v5  ;;  %v14068_v40 = vand.u32 4294901760, %v9458_v19 }
 0x18e   :  { %1865 = vmatpush.msrb.mxu3 %v9336_v8  ;;  %1768 = vmatpush.msrb.mxu2 %v14066_v22  ;;  %v9565_v32 = vpop.permute.xlu1 %2092  ;;  %v775_v8 = vpop.permute.xlu0 %774 }
 0x190   :  { %1867 = vmatpush.msrb.mxu3 %v9358_v44  ;;  %1772 = vmatpush.msrb.mxu2 %v14067_v27  ;;  %v9570_v2 = vpop.permute.xlu2 %2362 }
 0x191   :  { %800 = vrot.lane.b32.xlu2 %v9242_v47, %s8708_s0 }
 0x192   :  { %1869 = vmatpush.msrb.mxu3 %v9374_v20  ;;  %1776 = vmatpush.msrb.mxu2 %v14068_v40 }
 0x194   :  { %1871 = vmatpush.msrb.mxu3 %v9388_v24  ;;  %1780 = vmatpush.msrb.mxu2 %v14069_v57 }
 0x196   :  { %1873 = vmatpush.msrb.mxu3 %v9399_v36  ;;  %1784 = vmatpush.msrb.mxu2 %v1394_v25  ;;  %v9581_v44 = vpop.permute.xlu1 %2096  ;;  %v9587_v19 = vpop.permute.xlu0 %861 }
 0x198   :  { %1875 = vmatpush.msrb.mxu3 %v9415_v15  ;;  %v789_v20 = vpop.permute.xlu2 %788 }
 0x199   :  { %909 = vperm.xlu2 %8213, %v9242_v47  }
 0x19a   :  { %1877 = vmatpush.msrb.mxu3 %v9431_v49 }
 0x19c   :  { %1879 = vmatpush.msrb.mxu3 %v9447_v6 }
 0x19e   :  { %1881 = vmatpush.msrb.mxu3 %v9461_v11  ;;  %v2367_v17 = vpop.permute.xlu1 %2366  ;;  %v9593_v34 = vpop.permute.xlu0 %873 }
 0x19f   :  { %v9653_v57 = vand.u32 4294901760, %v2367_v17 }
 0x1a0   :  { %v9590_v24 = vpop.permute.xlu2 %885 }
 0x1a1   :  { %8216 = vset.pattern.permute.xlu2 %v14056_v46 }
 0x1a4   :  { %820 = vxpose.xlu1.b32.start [1/16] (narrow) %v773_v7, 8 }
 0x1a6   :  { %v9595_v43 = vpop.permute.xlu1 %792  ;;  %v9597_v9 = vpop.permute.xlu0 %2080 }
 0x1a8   :  { %v2365_v36 = vpop.permute.xlu2 %2364 }
 0x1ac   :  { %821 = vxpose.xlu1.b32.cont [2/16] (narrow) %v775_v8, 8 }
 0x1ae   :  { %v2371_v49 = vpop.permute.xlu1 %2370  ;;  %v9604_v15 = vpop.permute.xlu0 %2358 }
 0x1af   :  { %v9634_v4 = vand.u32 4294901760, %v2371_v49 }
 0x1b1   :  { %v9599_v6 = vpop.permute.xlu2 %889 }
 0x1b4   :  { %822 = vxpose.xlu1.b32.cont [3/16] (narrow) %v9352_v38, 8 }
 0x1b6   :  { %v9602_v11 = vpop.permute.xlu1 %2104  ;;  %v785_v45 = vpop.permute.xlu0 %784 }
 0x1b7   :  { %14070 = vst [vmem:[#allocation19_spill] sm:$0xff] %v9602_v11  ;;  %v9695_v11 = vand.u32 4294901760, %v9604_v15 }
 0x1b9   :  { %14082 = vst [vmem:[#allocation31_spill] sm:$0xff] %v9695_v11 }
 0x1bb   :  { %v9606_v55 = vpop.permute.xlu2 %893 }
 0x1bc   :  { %823 = vxpose.xlu1.b32.cont [4/16] (narrow) %v9467_v61, 8 }
 0x1be   :  { %v2373_v46 = vpop.permute.xlu1 %2372  ;;  %v9615_v38 = vpop.permute.xlu0 %877 }
 0x1bf   :  { %v9627_v52 = vand.u32 4294901760, %v2373_v46 }
 0x1c3   :  { %v2369_v25 = vpop.permute.xlu2 %2368 }
 0x1c4   :  { %824 = vxpose.xlu1.b32.cont [5/16] (narrow) %v9420_v53, 8  ;;  %v9645_v22 = vand.u32 4294901760, %v2369_v25 }
 0x1c6   :  { %v9610_v35 = vpop.permute.xlu1 %798  ;;  %v9621_v10 = vpop.permute.xlu0 %2084 }
 0x1cb   :  { %v9612_v56 = vpop.permute.xlu2 %794 }
 0x1cc   :  { %825 = vxpose.xlu1.b32.cont [6/16] (narrow) %v9516_v21, 8 }
 0x1ce   :  { %v9617_v12 = vpop.permute.xlu1 %2112  ;;  %v2361_v7 = vpop.permute.xlu0 %2360 }
 0x1cf   :  { %14071 = vst [vmem:[#allocation20_spill] sm:$0xff] %v9617_v12  ;;  %v9680_v12 = vsub.f32 %v2367_v17, %v9653_v57 }
 0x1d1   :  { %14079 = vst [vmem:[#allocation28_spill] sm:$0xff] %v9680_v12 }
 0x1d3   :  { %v9619_v16 = vpop.permute.xlu2 %897 }
 0x1d4   :  { %826 = vxpose.xlu1.b32.cont [7/16] (narrow) %v785_v45, 8  ;;  %v9658_v45 = vand.u32 4294901760, %v2365_v36 }
 0x1d6   :  { %14076 = vst [vmem:[#allocation25_spill] sm:$0xff] %v9658_v45 }
 0x1d7   :  { %v2377_v61 = vpop.permute.xlu1 %2376 }
 0x1d8   :  { %v9625_v53 = vand.u32 4294901760, %v2377_v61 }
 0x1da   :  { %v9630_v21 = vsub.f32 %v2377_v61, %v9625_v53 }
 0x1db   :  { %v9623_v48 = vpop.permute.xlu2 %901 }
 0x1dc   :  { %827 = vxpose.xlu1.b32.cont [8/16] (narrow) %v787_v14, 8  ;;  %v9643_v14 = vsub.f32 %v2373_v46, %v9627_v52  ;;  %v13853_v27 = vand.u32 4294901760, %v9630_v21 }
 0x1de   :  { %14073 = vst [vmem:[#allocation22_spill] sm:$0xff] %v9643_v14 }
 0x1e1   :  { %v2379_v42 = vpop.permute.xlu1 %2378 }
 0x1e2   :  { %v9632_v62 = vand.u32 4294901760, %v2379_v42 }
 0x1e3   :  { %v2375_v39 = vpop.permute.xlu2 %2374 }
 0x1e4   :  { %v9637_v54 = vsub.f32 %v2379_v42, %v9632_v62  ;;  %v9639_v5 = vand.u32 4294901760, %v2375_v39  ;;  %828 = vxpose.xlu1.b32.cont [9/16] (narrow) %v789_v20, 8  ;;  %2397 = vmatpush.msrb.mxu0 %v9632_v62  ;;  %v9656_v20 = vsub.f32 %v2371_v49, %v9634_v4  ;;  %v9666_v42 = vsub.f32 %v2369_v25, %v9645_v22  ;;  %v791_v25 = vpop.permute.xlu0 %790 }
 0x1e5   :  { %v13857_v49 = vand.u32 4294901760, %v9643_v14 }
 0x1e6   :  { %14072 = vst [vmem:[#allocation21_spill] sm:$0xff] %v9637_v54  ;;  %v13850_v40 = vand.u32 4294901760, %v9637_v54  ;;  %v9650_v8 = vsub.f32 %v2375_v39, %v9639_v5  ;;  %2399 = vmatpush.msrb.mxu0 %v9625_v53  ;;  %v2566_v39 = vsub.f32 %v9630_v21, %v13853_v27  ;;  %v9686_v27 = vsub.f32 %v2365_v36, %v9658_v45 }
 0x1e7   :  { %14075 = vst [vmem:[#allocation24_spill] sm:$0xff] %v9656_v20 }
 0x1e8   :  { %14074 = vst [vmem:[#allocation23_spill] sm:$0xff] %v9650_v8  ;;  %2401 = vmatpush.msrb.mxu0 %v9639_v5  ;;  %v2560_v46 = vsub.f32 %v9637_v54, %v13850_v40  ;;  %v13854_v61 = vand.u32 4294901760, %v9650_v8  ;;  %v9677_v40 = vand.u32 4294901760, %v9570_v2  ;;  %v9683_v54 = vand.u32 4294901760, %v2361_v7 }
 0x1e9   :  { %14077 = vst [vmem:[#allocation26_spill] sm:$0xff] %v9666_v42 }
 0x1ea   :  { %2403 = vmatpush.msrb.mxu0 %v9627_v52  ;;  %v2561_v37 = vand.u32 4294901760, %v2560_v46  ;;  %v2572_v59 = vsub.f32 %v9650_v8, %v13854_v61  ;;  %14078 = vst [vmem:[#allocation27_spill] sm:$0xff] %v9677_v40  ;;  %v2567_v46 = vand.u32 4294901760, %v2566_v39  ;;  %v2578_v8 = vsub.f32 %v9643_v14, %v13857_v49 }
 0x1eb   :  { %14080 = vst [vmem:[#allocation29_spill] sm:$0xff] %v9683_v54  ;;  %v9699_v36 = vsub.f32 %v9570_v2, %v9677_v40  ;;  %v9710_v49 = vsub.f32 %v2361_v7, %v9683_v54  ;;  %v14087_v2 = vand.u32 4294901760, %v9666_v42  ;;  %v9722_v39 = vsub.f32 %v9604_v15, %v9695_v11 }
 0x1ec   :  { %14081 = vst [vmem:[#allocation30_spill] sm:$0xff] %v9686_v27  ;;  %829 = vxpose.xlu1.b32.cont [10/16] (narrow) %v791_v25, 8  ;;  %2405 = vmatpush.msrb.mxu0 %v9634_v4  ;;  %v2573_v61 = vand.u32 4294901760, %v2572_v59  ;;  %v9706_v25 = vand.u32 4294901760, %v9530_v58  ;;  %v2579_v17 = vand.u32 4294901760, %v2578_v8 }
 0x1ed   :  { %2562 = vmatpush.msrb.mxu1 %v2561_v37  ;;  %14083 = vst [vmem:[#allocation32_spill] sm:$0xff] %v9699_v36  ;;  %v14084_v37 = vand.u32 4294901760, %v9656_v20 }
 0x1ee   :  { %2407 = vmatpush.msrb.mxu0 %v9645_v22  ;;  %14085 = vst [vmem:[#allocation33_spill] sm:$0xff] %v9706_v25  ;;  %v9735_v14 = vsub.f32 %v9530_v58, %v9706_v25 }
 0x1ef   :  { %2568 = vmatpush.msrb.mxu1 %v2567_v46  ;;  %v2584_v59 = vsub.f32 %v9656_v20, %v14084_v37  ;;  %14086 = vst [vmem:[#allocation34_spill] sm:$0xff] %v9710_v49  ;;  %v2590_v46 = vsub.f32 %v9666_v42, %v14087_v2  ;;  %v9717_v37 = vand.u32 4294901760, %v9362_v28  ;;  %v9729_v2 = vand.u32 4294901760, %v9408_v23  ;;  %v48_v42 = vld [vmem:[%s13811_s1 + $0x78] sm:$0xff] }
 0x1f0   :  { %2409 = vmatpush.msrb.mxu0 %v9653_v57  ;;  %14089 = vst [vmem:[#allocation36_spill] sm:$0xff] %v9722_v39 }
 0x1f1   :  { %2574 = vmatpush.msrb.mxu1 %v2573_v61  ;;  %14088 = vst [vmem:[#allocation35_spill] sm:$0xff] %v9717_v37  ;;  %v2585_v7 = vand.u32 4294901760, %v2584_v59  ;;  %v14090_v61 = vand.u32 4294901760, %v9680_v12  ;;  %v2591_v15 = vand.u32 4294901760, %v2590_v46  ;;  %v9744_v20 = vsub.f32 %v9362_v28, %v9717_v37 }
 0x1f2   :  { %2411 = vmatpush.msrb.mxu0 %v9658_v45  ;;  %14091 = vst [vmem:[#allocation37_spill] sm:$0xff] %v9729_v2  ;;  %v13866_v46 = vand.u32 4294901760, %v9722_v39  ;;  %v14097_v28 = vand.u32 4294901760, %v9710_v49 }
 0x1f3   :  { %2580 = vmatpush.msrb.mxu1 %v2579_v17  ;;  %v2596_v8 = vsub.f32 %v9680_v12, %v14090_v61  ;;  %14092 = vst [vmem:[#allocation38_spill] sm:$0xff] %v9735_v14  ;;  %v14093_v17 = vand.u32 4294901760, %v9686_v27  ;;  %v14095_v12 = vand.u32 4294901760, %v9699_v36 }
 0x1f4   :  { %830 = vxpose.xlu1.b32.cont [11/16] (narrow) %v9595_v43, 8  ;;  %2413 = vmatpush.msrb.mxu0 %v9677_v40  ;;  %14094 = vst [vmem:[#allocation39_spill] sm:$0xff] %v9744_v20 }
 0x1f5   :  { %2586 = vmatpush.msrb.mxu1 %v2585_v7  ;;  %v2602_v59 = vsub.f32 %v9686_v27, %v14093_v17  ;;  %v2597_v43 = vand.u32 4294901760, %v2596_v8  ;;  %v2608_v58 = vsub.f32 %v9699_v36, %v14095_v12  ;;  %v9753_v7 = vsub.f32 %v9408_v23, %v9729_v2  ;;  %v9755_v17 = vpop.permute.xlu0 %2100 }
 0x1f6   :  { %2415 = vmatpush.msrb.mxu0 %v9683_v54  ;;  %v2614_v8 = vsub.f32 %v9710_v49, %v14097_v28  ;;  %v2620_v36 = vsub.f32 %v9722_v39, %v13866_v46  ;;  %v13868_v23 = vand.u32 4294901760, %v9744_v20  ;;  %v14102_v39 = vmov -9e+15   ;;  %v44_v49 = vld [vmem:[%s13811_s1 + $0x58] sm:$0xff]  ;;  %v42_v54 = vld [vmem:[%s13811_s1 + $0x48] sm:$0xff] }
 0x1f7   :  { %2592 = vmatpush.msrb.mxu1 %v2591_v15  ;;  %14096 = vst [vmem:[#allocation40_spill] sm:$0xff] %v9753_v7  ;;  %v2603_v61 = vand.u32 4294901760, %v2602_v59  ;;  %v13867_v15 = vand.u32 4294901760, %v9735_v14  ;;  %v2609_v12 = vand.u32 4294901760, %v2608_v58  ;;  %v13869_v28 = vand.u32 4294901760, %v9753_v7 }
 0x1f8   :  { %2417 = vmatpush.msrb.mxu0 %v9695_v11  ;;  %v2615_v59 = vand.u32 4294901760, %v2614_v8  ;;  %v2632_v58 = vsub.f32 %v9744_v20, %v13868_v23  ;;  %vm60_vm15 = vcmp.gt.f32.partialorder %v44_v49, 0.0 }
 0x1f9   :  { %2598 = vmatpush.msrb.mxu1 %v2597_v43  ;;  %v2626_v43 = vsub.f32 %v9735_v14, %v13867_v15  ;;  %v2638_v8 = vsub.f32 %v9753_v7, %v13869_v28 }
 0x1fa   :  { %2419 = vmatpush.msrb.mxu0 %v9706_v25  ;;  %v2633_v46 = vand.u32 4294901760, %v2632_v58  ;;  %v45_v25 = vld [vmem:[%s13811_s1 + $0x60] sm:$0xff] }
 0x1fb   :  { %2604 = vmatpush.msrb.mxu1 %v2603_v61  ;;  %v2621_v61 = vand.u32 4294901760, %v2620_v36  ;;  %v2639_v15 = vand.u32 4294901760, %v2638_v8 }
 0x1fc   :  { %831 = vxpose.xlu1.b32.cont [12/16] (narrow) %v9612_v56, 8  ;;  %2421 = vmatpush.msrb.mxu0 %v9717_v37  ;;  %v2627_v56 = vand.u32 4294901760, %v2626_v43  ;;  %v47_v43 = vld [vmem:[%s13811_s1 + $0x70] sm:$0xff] }
 0x1fd   :  { %2610 = vmatpush.msrb.mxu1 %v2609_v12  ;;  %v797_v12 = vpop.permute.xlu0 %796  ;;  %vm63_vm1 = vcmp.gt.f32.partialorder %v47_v43, 0.0 }
 0x1fe   :  { %2423 = vmatpush.msrb.mxu0 %v9729_v2 }
 0x1ff   :  { %2616 = vmatpush.msrb.mxu1 %v2615_v59  ;;  %v801_v59 = vpop.permute.xlu2 %800 }
 0x201   :  { %2622 = vmatpush.msrb.mxu1 %v2621_v61  ;;  %v13870_v61 = vmov -9e+15  }
 0x202   :  { %v9786_v58 = vsel %vm63_vm1, 0.0, %v13870_v61 }
 0x203   :  { %2628 = vmatpush.msrb.mxu1 %v2627_v56  ;;  %14098 = vst [vmem:[#allocation41_spill] sm:$0xff] %v9786_v58 }
 0x204   :  { %832 = vxpose.xlu1.b32.cont [13/16] (narrow) %v797_v12, 8 }
 0x205   :  { %2634 = vmatpush.msrb.mxu1 %v2633_v46  ;;  %v9780_v36 = vpop.permute.xlu0 %905  ;;  %v34_v46 = vld [vmem:[%s13811_s1 + $0x8] sm:$0xff] }
 0x206   :  { %vm50_vm2 = vcmp.gt.f32.partialorder %v34_v46, 0.0 }
 0x207   :  { %2640 = vmatpush.msrb.mxu1 %v2639_v15  ;;  %v9804_v12 = vsel %vm50_vm2, 0.0, %v13870_v61 }
 0x208   :  { %14100 = vst [vmem:[#allocation43_spill] sm:$0xff] %v9804_v12 }
 0x20c   :  { %833 = vxpose.xlu1.b32.cont [14/16] (narrow) %v9610_v35, 8  ;;  %v33_v35 = vld [vmem:[%s13811_s1] sm:$0xff] }
 0x20d   :  { %v803_v23 = vpop.permute.xlu0 %802  ;;  %vm49_vm3 = vcmp.gt.f32.partialorder %v33_v35, 0.0 }
 0x214   :  { %834 = vxpose.xlu1.b32.cont [15/16] (narrow) %v801_v59, 8  ;;  %v9807_v59 = vsel %vm49_vm3, 0.0, %v13870_v61 }
 0x215   :  { %14101 = vst [vmem:[#allocation44_spill] sm:$0xff] %v9807_v59 }
 0x21c   :  { %835 = vxpose.xlu1.b32.end [16/16] (narrow) %v803_v23, 8 }
 0x248   :  { %v9794_v15 = vpop.trf.xlu1 }
 0x249   :  { %14099 = vst [vmem:[#allocation42_spill] sm:$0xff] %v9794_v15  ;;  %v9797_v23 = vperm.slane %v9794_v15, 4 }
 0x24b   :  { %v918_v56 = vadd.f32 %v9797_v23, %v9225_v29  ;;  %v917_v8 = vadd.f32 %v9797_v23, %v9250_v60  ;;  %v919_v43 = vadd.f32 %v9797_v23, %v9587_v19  ;;  %v924_v28 = vadd.f32 %v9797_v23, %v9533_v3  ;;  %v35_v29 = vld [vmem:[%s13811_s1 + $0x10] sm:$0xff]  ;;  %v40_v60 = vld [vmem:[%s13811_s1 + $0x38] sm:$0xff] }
 0x24c   :  { %vm51_vm6 = vcmp.gt.f32.partialorder %v35_v29, 0.0  ;;  %vm56_vm7 = vcmp.gt.f32.partialorder %v40_v60, 0.0  ;;  %v41_v29 = vld [vmem:[%s13811_s1 + $0x40] sm:$0xff]  ;;  %v929_v49 = vadd.f32 %v9797_v23, %v9623_v48  ;;  %v9900_v48 = vperm.slane %v9794_v15, 5  ;;  %v46_v15 = vld [vmem:[%s13811_s1 + $0x68] sm:$0xff] }
 0x24d   :  { %vm934_vm4 = vcmp.gt.f32.partialorder %v918_v56, 0.0  ;;  %v950_v46 = vmul.f32 0.2, %v918_v56  ;;  %vm933_vm5 = vcmp.gt.f32.partialorder %v917_v8, 0.0  ;;  %v949_v35 = vmul.f32 0.2, %v917_v8 }
 0x24e   :  { %v951_v3 = vmul.f32 0.2, %v919_v43  ;;  %v956_v14 = vmul.f32 0.2, %v924_v28  ;;  %vm935_vm8 = vcmp.gt.f32.partialorder %v919_v43, 0.0  ;;  %vm940_vm9 = vcmp.gt.f32.partialorder %v924_v28, 0.0 }
 0x24f   :  { %v966_v61 = vsel %vm934_vm4, %v918_v56, %v950_v46  ;;  %v965_v7 = vsel %vm933_vm5, %v917_v8, %v949_v35  ;;  %v9828_v2 = vsel %vm51_vm6, 0.0, %v14102_v39  ;;  %v9831_v56 = vsel %vm56_vm7, 0.0, %v14102_v39  ;;  %v36_v35 = vld [vmem:[%s13811_s1 + $0x18] sm:$0xff] }
 0x250   :  { %v9820_v20 = vadd.f32 %v966_v61, %v9804_v12  ;;  %v9823_v19 = vadd.f32 %v965_v7, %v9807_v59  ;;  %14103 = vst [vmem:[#allocation45_spill] sm:$0xff] %v9828_v2  ;;  %v967_v61 = vsel %vm935_vm8, %v919_v43, %v951_v3  ;;  %v972_v8 = vsel %vm940_vm9, %v924_v28, %v956_v14 }
 0x251   :  { %14104 = vst [vmem:[#allocation46_spill] sm:$0xff] %v9831_v56  ;;  %v920_v7 = vadd.f32 %v9797_v23, %v9258_v0  ;;  %v925_v46 = vadd.f32 %v9797_v23, %v9590_v24  ;;  %v9844_v60 = vadd.f32 %v967_v61, %v9828_v2  ;;  %v9847_v43 = vadd.f32 %v972_v8, %v9831_v56 }
 0x252   :  { %999 = vmax.xlane.f32.xlu0 %v9820_v20  ;;  %997 = vmax.xlane.f32.xlu2 %v9823_v19  ;;  %vm52_vm10 = vcmp.gt.f32.partialorder %v36_v35, 0.0  ;;  %vm57_vm11 = vcmp.gt.f32.partialorder %v41_v29, 0.0  ;;  %v921_v8 = vadd.f32 %v9797_v23, %v9480_v26  ;;  %v928_v35 = vadd.f32 %v9797_v23, %v9619_v16  ;;  %v37_v29 = vld [vmem:[%s13811_s1 + $0x20] sm:$0xff] }
 0x253   :  { %v952_v14 = vmul.f32 0.2, %v920_v7  ;;  %v957_v0 = vmul.f32 0.2, %v925_v46  ;;  %vm936_vm12 = vcmp.gt.f32.partialorder %v920_v7, 0.0  ;;  %vm941_vm13 = vcmp.gt.f32.partialorder %v925_v46, 0.0 }
 0x254   :  { %v9852_v24 = vsel %vm52_vm10, 0.0, %v14102_v39  ;;  %v9855_v28 = vsel %vm57_vm11, 0.0, %v14102_v39  ;;  %vm53_vm14 = vcmp.gt.f32.partialorder %v37_v29, 0.0  ;;  %v960_v26 = vmul.f32 0.2, %v928_v35  ;;  %v38_v29 = vld [vmem:[%s13811_s1 + $0x28] sm:$0xff] }
 0x255   :  { %14105 = vst [vmem:[#allocation47_spill] sm:$0xff] %v9852_v24  ;;  %v968_v3 = vsel %vm936_vm12, %v920_v7, %v952_v14  ;;  %v973_v61 = vsel %vm941_vm13, %v925_v46, %v957_v0  ;;  %v953_v46 = vmul.f32 0.2, %v921_v8  ;;  %vm937_vm1 = vcmp.gt.f32.partialorder %v921_v8, 0.0 }
 0x256   :  { %14106 = vst [vmem:[#allocation48_spill] sm:$0xff] %v9855_v28  ;;  %v9868_v37 = vadd.f32 %v968_v3, %v9852_v24  ;;  %v9871_v7 = vadd.f32 %v973_v61, %v9855_v28  ;;  %vm944_vm2 = vcmp.gt.f32.partialorder %v928_v35, 0.0  ;;  %v9876_v16 = vsel %vm53_vm14, 0.0, %v14102_v39 }
 0x257   :  { %14107 = vst [vmem:[#allocation49_spill] sm:$0xff] %v9876_v16  ;;  %v9879_v14 = vsel %vm60_vm15, 0.0, %v14102_v39  ;;  %v969_v0 = vsel %vm937_vm1, %v921_v8, %v953_v46  ;;  %v976_v3 = vsel %vm944_vm2, %v928_v35, %v960_v26  ;;  %v922_v61 = vadd.f32 %v9797_v23, %v9593_v34 }
 0x258   :  { %14108 = vst [vmem:[#allocation50_spill] sm:$0xff] %v9879_v14  ;;  %v9892_v27 = vadd.f32 %v969_v0, %v9876_v16  ;;  %v9895_v8 = vadd.f32 %v976_v3, %v9879_v14  ;;  %vm54_vm3 = vcmp.gt.f32.partialorder %v38_v29, 0.0  ;;  %vm61_vm4 = vcmp.gt.f32.partialorder %v45_v25, 0.0  ;;  %v39_v14 = vld [vmem:[%s13811_s1 + $0x30] sm:$0xff] }
 0x259   :  { %v954_v35 = vmul.f32 0.2, %v922_v61  ;;  %v961_v34 = vmul.f32 0.2, %v929_v49  ;;  %vm938_vm5 = vcmp.gt.f32.partialorder %v922_v61, 0.0  ;;  %vm945_vm6 = vcmp.gt.f32.partialorder %v929_v49, 0.0 }
 0x25a   :  { %1001 = vmax.xlane.f32.xlu0 %v9844_v60  ;;  %1011 = vmax.xlane.f32.xlu2 %v9847_v43  ;;  %v9903_v46 = vsel %vm54_vm3, 0.0, %v14102_v39  ;;  %v9906_v26 = vsel %vm61_vm4, 0.0, %v14102_v39  ;;  %v923_v25 = vadd.f32 %v9797_v23, %v9615_v38  ;;  %v930_v29 = vadd.f32 %v9797_v23, %v9780_v36 }
 0x25b   :  { %14109 = vst [vmem:[#allocation51_spill] sm:$0xff] %v9903_v46  ;;  %v970_v0 = vsel %vm938_vm5, %v922_v61, %v954_v35  ;;  %v977_v3 = vsel %vm945_vm6, %v929_v49, %v961_v34  ;;  %v2124_v11 = vadd.f32 %v9900_v48, %v9552_v41  ;;  %vm55_vm7 = vcmp.gt.f32.partialorder %v39_v14, 0.0  ;;  %v914_v34 = vpop.permute.xlu0 %913 }
 0x25c   :  { %14110 = vst [vmem:[#allocation52_spill] sm:$0xff] %v9906_v26  ;;  %v9921_v61 = vadd.f32 %v970_v0, %v9903_v46  ;;  %v9924_v49 = vadd.f32 %v977_v3, %v9906_v26  ;;  %v955_v38 = vmul.f32 0.2, %v923_v25  ;;  %vm62_vm8 = vcmp.gt.f32.partialorder %v46_v15, 0.0 }
 0x25d   :  { %v962_v36 = vmul.f32 0.2, %v930_v29  ;;  %vm939_vm9 = vcmp.gt.f32.partialorder %v923_v25, 0.0  ;;  %vm946_vm10 = vcmp.gt.f32.partialorder %v930_v29, 0.0  ;;  %v2156_v35 = vmul.f32 0.2, %v2124_v11 }
 0x25e   :  { %v9929_v41 = vsel %vm55_vm7, 0.0, %v14102_v39  ;;  %v9932_v0 = vsel %vm62_vm8, 0.0, %v14102_v39  ;;  %vm2140_vm11 = vcmp.gt.f32.partialorder %v2124_v11, 0.0  ;;  %v971_v3 = vsel %vm939_vm9, %v923_v25, %v955_v38 }
 0x25f   :  { %14111 = vst [vmem:[#allocation53_spill] sm:$0xff] %v9929_v41  ;;  %v978_v14 = vsel %vm946_vm10, %v930_v29, %v962_v36  ;;  %v926_v15 = vadd.f32 %v9797_v23, %v9599_v6  ;;  %v932_v26 = vadd.f32 %v9797_v23, %v914_v34  ;;  %v2172_v40 = vsel %vm2140_vm11, %v2124_v11, %v2156_v35 }
 0x260   :  { %14112 = vst [vmem:[#allocation54_spill] sm:$0xff] %v9932_v0  ;;  %v2126_v45 = vadd.f32 %v9900_v48, %v9237_v1  ;;  %v9946_v25 = vadd.f32 %v971_v3, %v9929_v41  ;;  %v9949_v29 = vadd.f32 %v978_v14, %v9932_v0  ;;  %vm58_vm12 = vcmp.gt.f32.partialorder %v42_v54, 0.0  ;;  %v43_v14 = vld [vmem:[%s13811_s1 + $0x50] sm:$0xff]  ;;  %s8712_s1 = smov 96  }
 0x261   :  { %v958_v6 = vmul.f32 0.2, %v926_v15  ;;  %vm64_vm13 = vcmp.gt.f32.partialorder %v48_v42, 0.0  ;;  %v964_v38 = vmul.f32 0.2, %v932_v26  ;;  %v9954_v36 = vadd.f32 %v2172_v40, %v9807_v59 }
 0x262   :  { %1003 = vmax.xlane.f32.xlu0 %v9868_v37  ;;  %1013 = vmax.xlane.f32.xlu2 %v9871_v7  ;;  %vm942_vm14 = vcmp.gt.f32.partialorder %v926_v15, 0.0  ;;  %vm948_vm15 = vcmp.gt.f32.partialorder %v932_v26, 0.0  ;;  %v2158_v1 = vmul.f32 0.2, %v2126_v45  ;;  %v9958_v11 = vsel %vm58_vm12, 0.0, %v14102_v39 }
 0x263   :  { %14113 = vst [vmem:[#allocation55_spill] sm:$0xff] %v9958_v11  ;;  %v9961_v54 = vsel %vm64_vm13, 0.0, %v14102_v39  ;;  %vm2142_vm1 = vcmp.gt.f32.partialorder %v2126_v45, 0.0  ;;  %v974_v42 = vsel %vm942_vm14, %v926_v15, %v958_v6  ;;  %v980_v35 = vsel %vm948_vm15, %v932_v26, %v964_v38 }
 0x264   :  { %14114 = vst [vmem:[#allocation56_spill] sm:$0xff] %v9961_v54  ;;  %v927_v34 = vadd.f32 %v9797_v23, %v9606_v55  ;;  %v2125_v40 = vadd.f32 %v9900_v48, %v9293_v30  ;;  %v2174_v3 = vsel %vm2142_vm1, %v2126_v45, %v2158_v1  ;;  %v2130_v59 = vadd.f32 %v9900_v48, %v9621_v10  ;;  %v910_v10 = vpop.permute.xlu2 %909 }
 0x265   :  { %v9973_v0 = vadd.f32 %v974_v42, %v9958_v11  ;;  %v9976_v15 = vadd.f32 %v980_v35, %v9961_v54  ;;  %v9981_v30 = vadd.f32 %v2174_v3, %v9828_v2  ;;  %vm59_vm2 = vcmp.gt.f32.partialorder %v43_v14, 0.0 }
 0x266   :  { %v959_v26 = vmul.f32 0.2, %v927_v34  ;;  %v2157_v6 = vmul.f32 0.2, %v2125_v40  ;;  %vm943_vm3 = vcmp.gt.f32.partialorder %v927_v34, 0.0  ;;  %vm2141_vm4 = vcmp.gt.f32.partialorder %v2125_v40, 0.0 }
 0x267   :  { %v2162_v55 = vmul.f32 0.2, %v2130_v59  ;;  %vm2146_vm5 = vcmp.gt.f32.partialorder %v2130_v59, 0.0  ;;  %v9985_v45 = vsel %vm59_vm2, 0.0, %v14102_v39  ;;  %v931_v42 = vadd.f32 %v9797_v23, %v910_v10 }
 0x268   :  { %14115 = vst [vmem:[#allocation57_spill] sm:$0xff] %v9985_v45  ;;  %v975_v38 = vsel %vm943_vm3, %v927_v34, %v959_v26  ;;  %v2173_v1 = vsel %vm2141_vm4, %v2125_v40, %v2157_v6  ;;  %v2127_v23 = vadd.f32 %v9900_v48, %v9308_v33  ;;  %v2128_v26 = vadd.f32 %v9900_v48, %v9509_v13 }
 0x269   :  { %v2178_v35 = vsel %vm2146_vm5, %v2130_v59, %v2162_v55  ;;  %v9989_v54 = vadd.f32 %v975_v38, %v9985_v45  ;;  %v9992_v3 = vadd.f32 %v2173_v1, %v9804_v12  ;;  %v963_v14 = vmul.f32 0.2, %v931_v42 }
 0x26a   :  { %1005 = vmax.xlane.f32.xlu0 %v9892_v27  ;;  %1019 = vmax.xlane.f32.xlu2 %v9895_v8  ;;  %v9997_v2 = vadd.f32 %v2178_v35, %v9929_v41  ;;  %vm947_vm6 = vcmp.gt.f32.partialorder %v931_v42, 0.0  ;;  %v2159_v34 = vmul.f32 0.2, %v2127_v23  ;;  %vm2143_vm7 = vcmp.gt.f32.partialorder %v2127_v23, 0.0 }
 0x26b   :  { %v979_v39 = vsel %vm947_vm6, %v931_v42, %v963_v14  ;;  %v2160_v55 = vmul.f32 0.2, %v2128_v26  ;;  %vm2144_vm8 = vcmp.gt.f32.partialorder %v2128_v26, 0.0  ;;  %v2129_v33 = vadd.f32 %v9900_v48, %v9597_v9 }
 0x26c   :  { %v10003_v59 = vadd.f32 %v979_v39, %v9786_v58  ;;  %v2175_v40 = vsel %vm2143_vm7, %v2127_v23, %v2159_v34  ;;  %v2131_v13 = vadd.f32 %v9900_v48, %v9550_v51 }
 0x26d   :  { %v10009_v6 = vadd.f32 %v2175_v40, %v9852_v24  ;;  %v2176_v10 = vsel %vm2144_vm8, %v2128_v26, %v2160_v55  ;;  %v2161_v1 = vmul.f32 0.2, %v2129_v33  ;;  %vm2145_vm9 = vcmp.gt.f32.partialorder %v2129_v33, 0.0 }
 0x26e   :  { %v10015_v38 = vadd.f32 %v2176_v10, %v9876_v16  ;;  %v2163_v14 = vmul.f32 0.2, %v2131_v13  ;;  %vm2147_vm10 = vcmp.gt.f32.partialorder %v2131_v13, 0.0  ;;  %v14132_v16 = vld [vmem:[#allocation28_spill] sm:$0xff] }
 0x26f   :  { %v2177_v42 = vsel %vm2145_vm9, %v2129_v33, %v2161_v1 }
 0x270   :  { %v10021_v35 = vadd.f32 %v2177_v42, %v9903_v46  ;;  %v2179_v39 = vsel %vm2147_vm10, %v2131_v13, %v2163_v14 }
 0x271   :  { %v10025_v9 = vadd.f32 %v2179_v39, %v9831_v56 }
 0x272   :  { %1007 = vmax.xlane.f32.xlu0 %v9921_v61  ;;  %1021 = vmax.xlane.f32.xlu2 %v9924_v49 }
 0x27a   :  { %1009 = vmax.xlane.f32.xlu0 %v9946_v25  ;;  %1023 = vmax.xlane.f32.xlu2 %v9949_v29 }
 0x27c   :  { %2204 = vmax.xlane.f32.xlu1 %v9954_v36 }
 0x282   :  { %1015 = vmax.xlane.f32.xlu0 %v9973_v0  ;;  %1027 = vmax.xlane.f32.xlu2 %v9976_v15 }
 0x284   :  { %2208 = vmax.xlane.f32.xlu1 %v9981_v30 }
 0x28a   :  { %1017 = vmax.xlane.f32.xlu0 %v9989_v54  ;;  %2206 = vmax.xlane.f32.xlu2 %v9992_v3 }
 0x28c   :  { %2216 = vmax.xlane.f32.xlu1 %v9997_v2 }
 0x292   :  { %1025 = vmax.xlane.f32.xlu0 %v10003_v59 }
 0x29a   :  { %2210 = vmax.xlane.f32.xlu0 %v10009_v6 }
 0x2a2   :  { %2212 = vmax.xlane.f32.xlu0 %v10015_v38 }
 0x2aa   :  { %2214 = vmax.xlane.f32.xlu0 %v10021_v35 }
 0x2b2   :  { %2218 = vmax.xlane.f32.xlu0 %v10025_v9 }
 0x2c5   :  { %v1000_v23 = vpop.xlane.xlu0 %999  ;;  %v998_v34 = vpop.xlane.xlu2 %997 }
 0x2c6   :  { %v1029_v40 = vsub.f32 %v9823_v19, %v998_v34  ;;  %v1030_v51 = vsub.f32 %v9820_v20, %v1000_v23 }
 0x2c8   :  { %v1045_v26 = vmul.f32 1.442695, %v1029_v40  ;;  %v1047_v1 = vmul.f32 1.442695, %v1030_v51 }
 0x2ca   :  { %8226 = vpow2.f32 %v1045_v26 }
 0x2cd   :  { %v1002_v55 = vpop.xlane.xlu0 %1001  ;;  %v1012_v10 = vpop.xlane.xlu2 %1011 }
 0x2ce   :  { %v1031_v33 = vsub.f32 %v9844_v60, %v1002_v55 }
 0x2d0   :  { %v1049_v42 = vmul.f32 1.442695, %v1031_v33  ;;  %v10031_v13 = vpop.eup %8226 }
 0x2d1   :  { %1077 = vadd.xlane.f32.xlu0 %v10031_v13 }
 0x2d2   :  { %8228 = vpow2.f32 %v1049_v42 }
 0x2d3   :  { %8230 = vpow2.f32 %v1047_v1 }
 0x2d5   :  { %v1004_v14 = vpop.xlane.xlu0 %1003  ;;  %v1014_v39 = vpop.xlane.xlu2 %1013 }
 0x2d6   :  { %v1032_v19 = vsub.f32 %v9868_v37, %v1004_v14  ;;  %v1037_v34 = vsub.f32 %v9871_v7, %v1014_v39 }
 0x2d8   :  { %v10036_v20 = vpop.eup %8228  ;;  %v1051_v23 = vmul.f32 1.442695, %v1032_v19  ;;  %v1061_v40 = vmul.f32 1.442695, %v1037_v34 }
 0x2d9   :  { %v10038_v26 = vpop.eup %8230  ;;  %1081 = vadd.xlane.f32.xlu1 %v10036_v20 }
 0x2da   :  { %8232 = vpow2.f32 %v1051_v23  ;;  %1079 = vadd.xlane.f32.xlu0 %v10038_v26 }
 0x2db   :  { %8234 = vpow2.f32 %v1061_v40  ;;  %v1036_v40 = vsub.f32 %v9847_v43, %v1012_v10 }
 0x2dd   :  { %v1006_v60 = vpop.xlane.xlu0 %1005  ;;  %v1020_v14 = vpop.xlane.xlu2 %1019 }
 0x2de   :  { %v1033_v51 = vsub.f32 %v9892_v27, %v1006_v60 }
 0x2e0   :  { %v10043_v55 = vpop.eup %8232  ;;  %v1053_v37 = vmul.f32 1.442695, %v1033_v51 }
 0x2e1   :  { %v10045_v33 = vpop.eup %8234  ;;  %1083 = vadd.xlane.f32.xlu2 %v10043_v55 }
 0x2e2   :  { %8236 = vpow2.f32 %v1053_v37  ;;  %1093 = vadd.xlane.f32.xlu1 %v10045_v33 }
 0x2e5   :  { %v1008_v7 = vpop.xlane.xlu0 %1007  ;;  %v1022_v60 = vpop.xlane.xlu2 %1021 }
 0x2e6   :  { %v1034_v1 = vsub.f32 %v9921_v61, %v1008_v7  ;;  %v1059_v61 = vmul.f32 1.442695, %v1036_v40  ;;  %v1041_v40 = vsub.f32 %v9924_v49, %v1022_v60 }
 0x2e8   :  { %v10050_v42 = vpop.eup %8236  ;;  %v1055_v39 = vmul.f32 1.442695, %v1034_v1 }
 0x2e9   :  { %1085 = vadd.xlane.f32.xlu2 %v10050_v42 }
 0x2ea   :  { %8238 = vpow2.f32 %v1055_v39  ;;  %v1040_v39 = vsub.f32 %v9895_v8, %v1020_v14  ;;  %v1069_v14 = vmul.f32 1.442695, %v1041_v40 }
 0x2ed   :  { %v1010_v27 = vpop.xlane.xlu0 %1009  ;;  %v1024_v43 = vpop.xlane.xlu2 %1023 }
 0x2ee   :  { %v1035_v19 = vsub.f32 %v9946_v25, %v1010_v27  ;;  %v1067_v25 = vmul.f32 1.442695, %v1040_v39  ;;  %v1042_v8 = vsub.f32 %v9949_v29, %v1024_v43 }
 0x2f0   :  { %v10054_v34 = vpop.eup %8238  ;;  %v1057_v23 = vmul.f32 1.442695, %v1035_v19 }
 0x2f1   :  { %1087 = vadd.xlane.f32.xlu2 %v10054_v34 }
 0x2f2   :  { %8240 = vpow2.f32 %v1057_v23 }
 0x2f3   :  { %8242 = vpow2.f32 %v1059_v61  ;;  %v1071_v61 = vmul.f32 1.442695, %v1042_v8  ;;  %v2132_v8 = vadd.f32 %v9900_v48, %v9565_v32 }
 0x2f5   :  { %v1016_v51 = vpop.xlane.xlu0 %1015  ;;  %vm2148_vm11 = vcmp.gt.f32.partialorder %v2132_v8, 0.0 }
 0x2f6   :  { %v1038_v37 = vsub.f32 %v9973_v0, %v1016_v51  ;;  %v1028_v51 = vpop.xlane.xlu2 %1027 }
 0x2f7   :  { %v1044_v39 = vsub.f32 %v9976_v15, %v1028_v51  ;;  %v2164_v51 = vmul.f32 0.2, %v2132_v8 }
 0x2f8   :  { %v10059_v7 = vpop.eup %8240  ;;  %v1063_v1 = vmul.f32 1.442695, %v1038_v37 }
 0x2f9   :  { %1089 = vadd.xlane.f32.xlu2 %v10059_v7  ;;  %v10066_v19 = vpop.eup %8242  ;;  %v1075_v29 = vmul.f32 1.442695, %v1044_v39 }
 0x2fa   :  { %8244 = vpow2.f32 %v1063_v1 }
 0x2fb   :  { %2350 = vrot.lane.b32.xlu1 %v9123_v18, %s8709_s24  ;;  %8246 = vpow2.f32 %v1067_v25  ;;  %v2205_v25 = vpop.xlane.xlu1 %2204 }
 0x2fc   :  { %v2236_v15 = vsub.f32 %v9954_v36, %v2205_v25 }
 0x2fd   :  { %v1018_v10 = vpop.xlane.xlu0 %1017 }
 0x2fe   :  { %v1039_v27 = vsub.f32 %v9989_v54, %v1018_v10  ;;  %v2207_v40 = vpop.xlane.xlu2 %2206 }
 0x300   :  { %v10068_v0 = vpop.eup %8244  ;;  %v1065_v23 = vmul.f32 1.442695, %v1039_v27  ;;  %v2252_v27 = vmul.f32 1.442695, %v2236_v15 }
 0x301   :  { %1095 = vadd.xlane.f32.xlu0 %v10068_v0  ;;  %1091 = vadd.xlane.f32.xlu2 %v10066_v19  ;;  %v10074_v37 = vpop.eup %8246 }
 0x302   :  { %8248 = vpow2.f32 %v1065_v23 }
 0x303   :  { %8250 = vpow2.f32 %v1069_v14  ;;  %v2237_v14 = vsub.f32 %v9992_v3, %v2207_v40 }
 0x304   :  { %8252 = vpow2.f32 %v1071_v61 }
 0x305   :  { %v1026_v54 = vpop.xlane.xlu0 %1025  ;;  %8254 = vpow2.f32 %v1075_v29  ;;  %v2254_v36 = vmul.f32 1.442695, %v2237_v14 }
 0x306   :  { %v1043_v49 = vsub.f32 %v10003_v59, %v1026_v54 }
 0x308   :  { %v10076_v1 = vpop.eup %8248  ;;  %v1073_v60 = vmul.f32 1.442695, %v1043_v49  ;;  %v2180_v49 = vsel %vm2148_vm11, %v2132_v8, %v2164_v51 }
 0x309   :  { %1097 = vadd.xlane.f32.xlu0 %v10076_v1  ;;  %1099 = vadd.xlane.f32.xlu2 %v10074_v37  ;;  %v10082_v43 = vpop.eup %8250  ;;  %v10103_v29 = vadd.f32 %v2180_v49, %v9855_v28 }
 0x30a   :  { %v10084_v10 = vpop.eup %8252  ;;  %8256 = vpow2.f32 %v1073_v60  ;;  %v2133_v60 = vadd.f32 %v9900_v48, %v9581_v44 }
 0x30b   :  { %v10089_v23 = vpop.eup %8254  ;;  %8258 = vpow2.f32 %v2252_v27 }
 0x30c   :  { %8260 = vpow2.f32 %v2254_v36  ;;  %v2165_v25 = vmul.f32 0.2, %v2133_v60  ;;  %vm2149_vm12 = vcmp.gt.f32.partialorder %v2133_v60, 0.0 }
 0x30d   :  { %v2211_v61 = vpop.xlane.xlu0 %2210 }
 0x30e   :  { %v2239_v54 = vsub.f32 %v10009_v6, %v2211_v61  ;;  %v2134_v6 = vadd.f32 %v9900_v48, %v9755_v17  ;;  %v2181_v40 = vsel %vm2149_vm12, %v2133_v60, %v2165_v25 }
 0x30f   :  { %v10120_v14 = vadd.f32 %v2181_v40, %v9958_v11 }
 0x310   :  { %v10091_v59 = vpop.eup %8256  ;;  %v2258_v32 = vmul.f32 1.442695, %v2239_v54  ;;  %v2166_v8 = vmul.f32 0.2, %v2134_v6  ;;  %vm2150_vm13 = vcmp.gt.f32.partialorder %v2134_v6, 0.0  ;;  %v2209_v54 = vpop.xlane.xlu1 %2208 }
 0x311   :  { %1101 = vadd.xlane.f32.xlu0 %v10082_v43  ;;  %1103 = vadd.xlane.f32.xlu2 %v10084_v10  ;;  %v10099_v39 = vpop.eup %8258 }
 0x312   :  { %8262 = vpow2.f32 %v2258_v32  ;;  %v10108_v3 = vpop.eup %8260  ;;  %v2182_v17 = vsel %vm2150_vm13, %v2134_v6, %v2166_v8 }
 0x313   :  { %v10124_v36 = vadd.f32 %v2182_v17, %v9985_v45 }
 0x315   :  { %v2213_v15 = vpop.xlane.xlu0 %2212 }
 0x316   :  { %v2240_v44 = vsub.f32 %v10015_v38, %v2213_v15 }
 0x318   :  { %v10113_v27 = vpop.eup %8262  ;;  %v2260_v61 = vmul.f32 1.442695, %v2240_v44  ;;  %v10133_v32 = vpop.xlane.xlu1 %2216  ;;  %v2238_v44 = vsub.f32 %v9981_v30, %v2209_v54 }
 0x319   :  { %1105 = vadd.xlane.f32.xlu0 %v10091_v59  ;;  %1107 = vadd.xlane.f32.xlu2 %v10089_v23  ;;  %14116 = vst [vmem:[#allocation58_spill] sm:$0xff] %v10113_v27 }
 0x31a   :  { %8264 = vpow2.f32 %v2260_v61 }
 0x31d   :  { %v2215_v51 = vpop.xlane.xlu0 %2214 }
 0x320   :  { %v10128_v49 = vpop.eup %8264 }
 0x321   :  { %2284 = vadd.xlane.f32.xlu2 %v10099_v39  ;;  %14117 = vst [vmem:[#allocation59_spill] sm:$0xff] %v10128_v49 }
 0x325   :  { %2220 = vmax.xlane.f32.xlu1 %v10103_v29  ;;  %v10130_v38 = vpop.xlane.xlu0 %2218 }
 0x329   :  { %2286 = vadd.xlane.f32.xlu2 %v10108_v3 }
 0x32d   :  { %2290 = vadd.xlane.f32.xlu1 %v10113_v27  ;;  %2348 = vrot.lane.b32.xlu0 %v9116_v63, %s8709_s24  ;;  %v14141_v63 = vld [vmem:[#allocation19_spill] sm:$0xff]  ;;  %s8714_s24 = smov 80  }
 0x331   :  { %2222 = vmax.xlane.f32.xlu2 %v10120_v14 }
 0x335   :  { %2224 = vmax.xlane.f32.xlu1 %v10124_v36  ;;  %2116 = vperm.xlu0 %8215, %v9242_v47   ;;  %v14138_v47 = vld [vmem:[#allocation35_spill] sm:$0xff] }
 0x33d   :  { %2292 = vadd.xlane.f32.xlu1 %v10128_v49 }
 0x344   :  { %v1078_v60 = vpop.xlane.xlu0 %1077 }
 0x345   :  { %8266 = vrcp.f32 %v1078_v60 }
 0x349   :  { %2108 = vperm.xlu2 %8216, %v9244_v50   ;;  %v14133_v50 = vld [vmem:[#allocation31_spill] sm:$0xff] }
 0x34b   :  { %v8267_v25 = vpop.eup %8266 }
 0x34c   :  { %v1082_v6 = vpop.xlane.xlu1 %1081  ;;  %v1125_v15 = vmul.f32 %v8267_v25, %v10031_v13  ;;  %v2256_v13 = vmul.f32 1.442695, %v2238_v44  ;;  %v2241_v44 = vsub.f32 %v10021_v35, %v2215_v51 }
 0x34d   :  { %8268 = vrcp.f32 %v1082_v6  ;;  %v1080_v40 = vpop.xlane.xlu0 %1079 }
 0x34e   :  { %8270 = vrcp.f32 %v1080_v40  ;;  %v10137_v8 = vand.u32 4294901760, %v1125_v15 }
 0x350   :  { %14118 = vst [vmem:[#allocation60_spill] sm:$0xff] %v10137_v8  ;;  %v1174_v17 = vsub.f32 %v1125_v15, %v10137_v8  ;;  %1399 = vmatmul.f32.vlgmr.msra.gmra.mxu3 %v10137_v8 }
 0x351   :  { %2120 = vperm.xlu2 %8216, %v9262_v31   ;;  %2848 = vmatpush.msra.mxu3 %v9632_v62 }
 0x352   :  { %1513 = vmatmul.f32.vlgmr.msra.gmra.mxu0 %v1174_v17  ;;  %v1175_v60 = vand.u32 4294901760, %v1174_v17 }
 0x353   :  { %v8269_v61 = vpop.eup %8268  ;;  %2850 = vmatpush.msra.mxu3 %v9625_v53 }
 0x354   :  { %v8271_v45 = vpop.eup %8270  ;;  %v1127_v25 = vmul.f32 %v8269_v61, %v10036_v20  ;;  %v1084_v6 = vpop.xlane.xlu2 %1083  ;;  %1627 = vmatmul.f32.vlgmr.msra.gmra.mxu1 %v1175_v60  ;;  %v1176_v54 = vsub.f32 %v1174_v17, %v1175_v60  ;;  %v14121_v20 = vld [vmem:[#allocation21_spill] sm:$0xff]  ;;  %v2262_v60 = vmul.f32 1.442695, %v2241_v44  ;;  %v14125_v44 = vld [vmem:[#allocation22_spill] sm:$0xff] }
 0x355   :  { %v1126_v30 = vmul.f32 %v8271_v45, %v10038_v26  ;;  %8272 = vrcp.f32 %v1084_v6  ;;  %2852 = vmatpush.msra.mxu3 %v9639_v5 }
 0x356   :  { %v1177_v15 = vand.u32 4294901760, %v1176_v54  ;;  %v10150_v11 = vand.u32 4294901760, %v1127_v25  ;;  %8274 = vpow2.f32 %v2256_v13 }
 0x357   :  { %v10148_v40 = vand.u32 4294901760, %v1126_v30  ;;  %2854 = vmatpush.msra.mxu3 %v9627_v52 }
 0x358   :  { %14120 = vst [vmem:[#allocation62_spill] sm:$0xff] %v10150_v11  ;;  %1178 = vmatmul.f32.vlgmr.msra.gmra.mxu2 %v1177_v15  ;;  %v1190_v61 = vsub.f32 %v1127_v25, %v10150_v11 }
 0x359   :  { %14119 = vst [vmem:[#allocation61_spill] sm:$0xff] %v10148_v40  ;;  %1403 = vmatmul.f32.gmra.mxu3 %v10148_v40  ;;  %v1182_v45 = vsub.f32 %v1126_v30, %v10148_v40  ;;  %2720 = vmatpush.msra.mxu2 %v14121_v20  ;;  %v14123_v30 = vld [vmem:[#allocation23_spill] sm:$0xff]  ;;  %v14148_v40 = vld [vmem:[#allocation40_spill] sm:$0xff] }
 0x35a   :  { %2856 = vmatpush.msra.mxu3 %v9634_v4  ;;  %v1191_v54 = vand.u32 4294901760, %v1190_v61 }
 0x35b   :  { %v8273_v26 = vpop.eup %8272  ;;  %1518 = vmatmul.f32.gmra.mxu0 %v1182_v45  ;;  %v1183_v17 = vand.u32 4294901760, %v1182_v45  ;;  %2723 = vmatpush.msra.mxu2 %v9630_v21 }
 0x35c   :  { %v1128_v13 = vmul.f32 %v8273_v26, %v10043_v55  ;;  %2858 = vmatpush.msra.mxu3 %v9645_v22  ;;  %v1086_v35 = vpop.xlane.xlu2 %1085  ;;  %v10162_v6 = vpop.eup %8274  ;;  %v2242_v55 = vsub.f32 %v9997_v2, %v10133_v32  ;;  %v14126_v26 = vld [vmem:[#allocation25_spill] sm:$0xff]  ;;  %v14129_v32 = vld [vmem:[#allocation26_spill] sm:$0xff] }
 0x35d   :  { %8276 = vrcp.f32 %v1086_v35  ;;  %1633 = vmatmul.f32.gmra.mxu1 %v1183_v17  ;;  %v1184_v51 = vsub.f32 %v1182_v45, %v1183_v17  ;;  %14122 = vst [vmem:[#allocation21_spill] sm:$0xff] %v10162_v6  ;;  %2726 = vmatpush.msra.mxu2 %v14123_v30  ;;  %v14127_v45 = vld [vmem:[#allocation24_spill] sm:$0xff]  ;;  %v14128_v17 = vld [vmem:[#allocation27_spill] sm:$0xff] }
 0x35e   :  { %2860 = vmatpush.msra.mxu3 %v9653_v57  ;;  %v10167_v15 = vand.u32 4294901760, %v1128_v13  ;;  %8278 = vpow2.f32 %v2262_v60  ;;  %v2264_v41 = vmul.f32 1.442695, %v2242_v55  ;;  %v14130_v60 = vld [vmem:[#allocation29_spill] sm:$0xff]  ;;  %v2243_v55 = vsub.f32 %v10025_v9, %v10130_v38  ;;  %v14139_v9 = vld [vmem:[#allocation34_spill] sm:$0xff] }
 0x35f   :  { %2288 = vadd.xlane.f32.xlu0 %v10162_v6  ;;  %v1185_v25 = vand.u32 4294901760, %v1184_v51  ;;  %2729 = vmatpush.msra.mxu2 %v14125_v44  ;;  %v1192_v51 = vsub.f32 %v1190_v61, %v1191_v54  ;;  %v14140_v38 = vld [vmem:[#allocation37_spill] sm:$0xff] }
 0x360   :  { %14124 = vst [vmem:[#allocation23_spill] sm:$0xff] %v10167_v15  ;;  %2862 = vmatpush.msra.mxu3 %v14126_v26  ;;  %v1198_v56 = vsub.f32 %v1128_v13, %v10167_v15 }
 0x361   :  { %1186 = vmatmul.f32.gmra.mxu2 %v1185_v25  ;;  %1407 = vmatmul.f32.gmra.mxu3 %v10150_v11  ;;  %v10180_v25 = vpop.xlane.xlu1 %1093 }
 0x362   :  { %2732 = vmatpush.msra.mxu2 %v14127_v45  ;;  %2864 = vmatpush.msra.mxu3 %v14128_v17  ;;  %v1199_v13 = vand.u32 4294901760, %v1198_v56 }
 0x363   :  { %v8277_v35 = vpop.eup %8276  ;;  %1523 = vmatmul.f32.gmra.mxu0 %v1190_v61  ;;  %v1193_v61 = vand.u32 4294901760, %v1192_v51 }
 0x364   :  { %v1129_v2 = vmul.f32 %v8277_v35, %v10050_v42  ;;  %2735 = vmatpush.msra.mxu2 %v14129_v32  ;;  %2866 = vmatpush.msra.mxu3 %v14130_v60  ;;  %v1088_v46 = vpop.xlane.xlu2 %1087  ;;  %v10182_v28 = vpop.eup %8278  ;;  %v14135_v35 = vld [vmem:[#allocation30_spill] sm:$0xff]  ;;  %v1200_v51 = vsub.f32 %v1198_v56, %v1199_v13 }
 0x365   :  { %8280 = vrcp.f32 %v1088_v46  ;;  %1639 = vmatmul.f32.gmra.mxu1 %v1191_v54  ;;  %14131 = vst [vmem:[#allocation22_spill] sm:$0xff] %v10182_v28  ;;  %v14136_v46 = vld [vmem:[#allocation33_spill] sm:$0xff]  ;;  %v14137_v54 = vld [vmem:[#allocation32_spill] sm:$0xff] }
 0x366   :  { %2738 = vmatpush.msra.mxu2 %v14132_v16  ;;  %2868 = vmatpush.msra.mxu3 %v14133_v50  ;;  %v10187_v42 = vand.u32 4294901760, %v1129_v2  ;;  %8282 = vpow2.f32 %v2264_v41  ;;  %v2266_v41 = vmul.f32 1.442695, %v2243_v55 }
 0x367   :  { %2294 = vadd.xlane.f32.xlu0 %v10182_v28 }
 0x368   :  { %14134 = vst [vmem:[#allocation25_spill] sm:$0xff] %v10187_v42  ;;  %2741 = vmatpush.msra.mxu2 %v14135_v35  ;;  %2870 = vmatpush.msra.mxu3 %v14136_v46  ;;  %v1206_v24 = vsub.f32 %v1129_v2, %v10187_v42 }
 0x369   :  { %1194 = vmatmul.f32.gmra.mxu2 %v1193_v61  ;;  %1411 = vmatmul.f32.gmra.mxu3 %v10167_v15  ;;  %v2135_v15 = vadd.f32 %v9900_v48, %v14141_v63 }
 0x36a   :  { %2744 = vmatpush.msra.mxu2 %v14137_v54  ;;  %2872 = vmatpush.msra.mxu3 %v14138_v47 }
 0x36b   :  { %v8281_v31 = vpop.eup %8280  ;;  %1528 = vmatmul.f32.gmra.mxu0 %v1198_v56  ;;  %v14144_v56 = vld [vmem:[#allocation36_spill] sm:$0xff]  ;;  %v2167_v63 = vmul.f32 0.2, %v2135_v15  ;;  %vm2151_vm14 = vcmp.gt.f32.partialorder %v2135_v15, 0.0 }
 0x36c   :  { %v1130_v12 = vmul.f32 %v8281_v31, %v10054_v34  ;;  %2747 = vmatpush.msra.mxu2 %v14139_v9  ;;  %2874 = vmatpush.msra.mxu3 %v14140_v38  ;;  %v1090_v18 = vpop.xlane.xlu2 %1089  ;;  %v10202_v28 = vpop.eup %8282  ;;  %v1201_v31 = vand.u32 4294901760, %v1200_v51  ;;  %v1207_v34 = vand.u32 4294901760, %v1206_v24 }
 0x36d   :  { %v2351_v61 = vpop.permute.xlu1 %2350  ;;  %8284 = vrcp.f32 %v1090_v18  ;;  %1645 = vmatmul.f32.gmra.mxu1 %v1199_v13  ;;  %14142 = vst [vmem:[#allocation24_spill] sm:$0xff] %v10202_v28  ;;  %v14146_v18 = vld [vmem:[#allocation38_spill] sm:$0xff]  ;;  %v14147_v13 = vld [vmem:[#allocation39_spill] sm:$0xff] }
 0x36e   :  { %v10204_v11 = vand.u32 4294901760, %v2351_v61  ;;  %2750 = vmatpush.msra.mxu2 %v14144_v56  ;;  %v10208_v2 = vand.u32 4294901760, %v1130_v12  ;;  %8286 = vpow2.f32 %v2266_v41  ;;  %v1208_v41 = vsub.f32 %v1206_v24, %v1207_v34 }
 0x36f   :  { %2296 = vadd.xlane.f32.xlu0 %v10202_v28 }
 0x370   :  { %14143 = vst [vmem:[#allocation27_spill] sm:$0xff] %v10204_v11  ;;  %v10211_v55 = vsub.f32 %v2351_v61, %v10204_v11  ;;  %2753 = vmatpush.msra.mxu2 %v14146_v18  ;;  %2425 = vmatpush.msrb.mxu0 %v10204_v11  ;;  %v1214_v61 = vsub.f32 %v1130_v12, %v10208_v2  ;;  %v1209_v12 = vand.u32 4294901760, %v1208_v41 }
 0x371   :  { %14145 = vst [vmem:[#allocation26_spill] sm:$0xff] %v10208_v2  ;;  %2876 = vmatpush.msra.mxu3 %v10204_v11  ;;  %1202 = vmatmul.f32.gmra.mxu2 %v1201_v31 }
 0x372   :  { %1415 = vmatmul.f32.gmra.mxu3 %v10187_v42  ;;  %2756 = vmatpush.msra.mxu2 %v14147_v13  ;;  %v13958_v51 = vand.u32 4294901760, %v10211_v55  ;;  %v2183_v42 = vsel %vm2151_vm14, %v2135_v15, %v2167_v63 }
 0x373   :  { %v8285_v28 = vpop.eup %8284  ;;  %1533 = vmatmul.f32.gmra.mxu0 %v1206_v24  ;;  %v1215_v24 = vand.u32 4294901760, %v1214_v61 }
 0x374   :  { %v1131_v49 = vmul.f32 %v8285_v28, %v10059_v7  ;;  %2759 = vmatpush.msra.mxu2 %v14148_v40  ;;  %v1092_v6 = vpop.xlane.xlu2 %1091  ;;  %v2644_v31 = vsub.f32 %v10211_v55, %v13958_v51  ;;  %v10225_v27 = vpop.eup %8286  ;;  %v14151_v7 = vld [vmem:[#allocation50_spill] sm:$0xff] }
 0x375   :  { %1651 = vmatmul.f32.gmra.mxu1 %v1207_v34  ;;  %14149 = vst [vmem:[#allocation29_spill] sm:$0xff] %v10225_v27  ;;  %8288 = vrcp.f32 %v1092_v6  ;;  %v10232_v11 = vadd.f32 %v2183_v42, %v14151_v7  ;;  %v1096_v38 = vpop.xlane.xlu0 %1095  ;;  %v1216_v6 = vsub.f32 %v1214_v61, %v1215_v24 }
 0x376   :  { %2762 = vmatpush.msra.mxu2 %v10211_v55  ;;  %v2645_v8 = vand.u32 4294901760, %v2644_v31  ;;  %v10229_v28 = vand.u32 4294901760, %v1131_v49  ;;  %8290 = vrcp.f32 %v10180_v25 }
 0x377   :  { %2298 = vadd.xlane.f32.xlu0 %v10225_v27  ;;  %8292 = vrcp.f32 %v1096_v38 }
 0x378   :  { %14150 = vst [vmem:[#allocation28_spill] sm:$0xff] %v10229_v28  ;;  %2646 = vmatpush.msrb.mxu1 %v2645_v8  ;;  %v1222_v15 = vsub.f32 %v1131_v49, %v10229_v28  ;;  %v1217_v8 = vand.u32 4294901760, %v1216_v6 }
 0x379   :  { %1210 = vmatmul.f32.gmra.mxu2 %v1209_v12 }
 0x37a   :  { %1419 = vmatmul.f32.gmra.mxu3 %v10208_v2  ;;  %2226 = vmax.xlane.f32.xlu2 %v10232_v11  ;;  %v1223_v42 = vand.u32 4294901760, %v1222_v15 }
 0x37b   :  { %1538 = vmatmul.f32.gmra.mxu0 %v1214_v61  ;;  %v8289_v34 = vpop.eup %8288 }
 0x37c   :  { %v1100_v63 = vpop.xlane.xlu2 %1099  ;;  %v1132_v41 = vmul.f32 %v8289_v34, %v10066_v19  ;;  %v8291_v12 = vpop.eup %8290  ;;  %v1224_v61 = vsub.f32 %v1222_v15, %v1223_v42 }
 0x37d   :  { %1657 = vmatmul.f32.gmra.mxu1 %v1215_v24  ;;  %v1133_v25 = vmul.f32 %v8291_v12, %v10045_v33  ;;  %v1098_v51 = vpop.xlane.xlu0 %1097  ;;  %v8293_v34 = vpop.eup %8292 }
 0x37e   :  { %v10239_v31 = vand.u32 4294901760, %v1132_v41  ;;  %v1225_v19 = vand.u32 4294901760, %v1224_v61  ;;  %8294 = vrcp.f32 %v1098_v51  ;;  %v1134_v38 = vmul.f32 %v8293_v34, %v10068_v0 }
 0x37f   :  { %v10244_v6 = vand.u32 4294901760, %v1133_v25  ;;  %8296 = vrcp.f32 %v1100_v63 }
 0x380   :  { %14152 = vst [vmem:[#allocation31_spill] sm:$0xff] %v10239_v31  ;;  %v1230_v49 = vsub.f32 %v1132_v41, %v10239_v31  ;;  %v10251_v61 = vand.u32 4294901760, %v1134_v38 }
 0x381   :  { %1218 = vmatmul.f32.gmra.mxu2 %v1217_v8  ;;  %14153 = vst [vmem:[#allocation30_spill] sm:$0xff] %v10244_v6  ;;  %v1238_v8 = vsub.f32 %v1133_v25, %v10244_v6 }
 0x382   :  { %1423 = vmatmul.f32.gmra.mxu3 %v10229_v28  ;;  %v1231_v24 = vand.u32 4294901760, %v1230_v49 }
 0x383   :  { %1543 = vmatmul.f32.gmra.mxu0 %v1222_v15  ;;  %v1239_v12 = vand.u32 4294901760, %v1238_v8 }
 0x384   :  { %v1104_v7 = vpop.xlane.xlu2 %1103  ;;  %v1232_v33 = vsub.f32 %v1230_v49, %v1231_v24  ;;  %v8295_v28 = vpop.eup %8294 }
 0x385   :  { %1663 = vmatmul.f32.gmra.mxu1 %v1223_v42  ;;  %v1102_v41 = vpop.xlane.xlu0 %1101  ;;  %v1135_v51 = vmul.f32 %v8295_v28, %v10076_v1  ;;  %v1240_v0 = vsub.f32 %v1238_v8, %v1239_v12 }
 0x386   :  { %v1233_v42 = vand.u32 4294901760, %v1232_v33  ;;  %8298 = vrcp.f32 %v1102_v41 }
 0x387   :  { %v10258_v33 = vand.u32 4294901760, %v1135_v51 }
 0x389   :  { %1226 = vmatmul.f32.gmra.mxu2 %v1225_v19 }
 0x38a   :  { %1427 = vmatmul.f32.gmra.mxu3 %v10239_v31  ;;  %v8297_v31 = vpop.eup %8296 }
 0x38b   :  { %1548 = vmatmul.f32.gmra.mxu0 %v1230_v49  ;;  %v1246_v49 = vsub.f32 %v1134_v38, %v10251_v61  ;;  %v1136_v1 = vmul.f32 %v8297_v31, %v10074_v37 }
 0x38c   :  { %v10249_v15 = vpop.xlane.xlu2 %1107 }
 0x38d   :  { %1669 = vmatmul.f32.gmra.mxu1 %v1231_v24  ;;  %v1106_v19 = vpop.xlane.xlu0 %1105  ;;  %v1241_v24 = vand.u32 4294901760, %v1240_v0  ;;  %v1247_v34 = vand.u32 4294901760, %v1246_v49  ;;  %v10266_v27 = vand.u32 4294901760, %v1136_v1 }
 0x38f   :  { %v1248_v38 = vsub.f32 %v1246_v49, %v1247_v34 }
 0x391   :  { %1234 = vmatmul.f32.gmra.mxu2 %v1233_v42  ;;  %v1249_v0 = vand.u32 4294901760, %v1248_v38 }
 0x392   :  { %1431 = vmatmul.f32.gmra.mxu3 %v10244_v6 }
 0x393   :  { %1553 = vmatmul.f32.gmra.mxu0 %v1238_v8  ;;  %v1254_v8 = vsub.f32 %v1135_v51, %v10258_v33 }
 0x394   :  { %v10256_v25 = vpop.xlane.xlu2 %2284 }
 0x395   :  { %1675 = vmatmul.f32.gmra.mxu1 %v1239_v12  ;;  %v1255_v6 = vand.u32 4294901760, %v1254_v8 }
 0x397   :  { %v1256_v51 = vsub.f32 %v1254_v8, %v1255_v6 }
 0x398   :  { %v2221_v2 = vpop.xlane.xlu1 %2220 }
 0x399   :  { %v2244_v63 = vsub.f32 %v10103_v29, %v2221_v2  ;;  %1242 = vmatmul.f32.gmra.mxu2 %v1241_v24  ;;  %v8299_v29 = vpop.eup %8298 }
 0x39a   :  { %1435 = vmatmul.f32.gmra.mxu3 %v10251_v61  ;;  %v1137_v41 = vmul.f32 %v8299_v29, %v10082_v43  ;;  %v14155_v43 = vand.u32 4294901760, %v9630_v21  ;;  %v14157_v21 = vand.u32 4294901760, %v14125_v44 }
 0x39b   :  { %v2268_v28 = vmul.f32 1.442695, %v2244_v63  ;;  %1558 = vmatmul.f32.gmra.mxu0 %v1246_v49  ;;  %v1262_v49 = vsub.f32 %v1136_v1, %v10266_v27 }
 0x39c   :  { %v10264_v42 = vpop.xlane.xlu2 %2286 }
 0x39d   :  { %8300 = vpow2.f32 %v2268_v28  ;;  %1681 = vmatmul.f32.gmra.mxu1 %v1247_v34 }
 0x39e   :  { %8302 = vrcp.f32 %v1104_v7  ;;  %v14154_v7 = vand.u32 4294901760, %v14121_v20  ;;  %v1263_v20 = vand.u32 4294901760, %v1262_v49 }
 0x39f   :  { %v2349_v12 = vpop.permute.xlu0 %2348 }
 0x3a0   :  { %v10268_v2 = vand.u32 4294901760, %v2349_v12  ;;  %v1264_v29 = vsub.f32 %v1262_v49, %v1263_v20 }
 0x3a1   :  { %1250 = vmatmul.f32.gmra.mxu2 %v1249_v0  ;;  %v14156_v0 = vand.u32 4294901760, %v14123_v30 }
 0x3a2   :  { %v10271_v37 = vsub.f32 %v2349_v12, %v10268_v2  ;;  %1439 = vmatmul.f32.gmra.mxu3 %v10258_v33  ;;  %2427 = vmatpush.msrb.mxu0 %v10268_v2  ;;  %v10291_v12 = vand.u32 4294901760, %v1137_v41 }
 0x3a3   :  { %v10275_v31 = vpop.eup %8300  ;;  %1563 = vmatmul.f32.gmra.mxu0 %v1254_v8  ;;  %2878 = vmatpush.msra.mxu3 %v10268_v2  ;;  %v1257_v8 = vand.u32 4294901760, %v1256_v51 }
 0x3a4   :  { %2300 = vadd.xlane.f32.xlu0 %v10275_v31  ;;  %2979 = vmatpush.msra.mxu0 %v14154_v7  ;;  %v2223_v24 = vpop.xlane.xlu2 %2222  ;;  %v2649_v34 = vand.u32 4294901760, %v10271_v37  ;;  %v8303_v28 = vpop.eup %8302  ;;  %v1270_v51 = vsub.f32 %v1137_v41, %v10291_v12  ;;  %v14158_v7 = vand.u32 4294901760, %v14127_v45 }
 0x3a5   :  { %v2245_v63 = vsub.f32 %v10120_v14, %v2223_v24  ;;  %1687 = vmatmul.f32.gmra.mxu1 %v1255_v6  ;;  %2765 = vmatpush.msra.mxu2 %v10271_v37  ;;  %v1138_v6 = vmul.f32 %v8303_v28, %v10084_v10  ;;  %v14159_v10 = vand.u32 4294901760, %v14129_v32  ;;  %v14162_v32 = vand.u32 4294901760, %v14135_v35  ;;  %v14163_v28 = vld [vmem:[#allocation52_spill] sm:$0xff] }
 0x3a6   :  { %2983 = vmatpush.msra.mxu0 %v14155_v43  ;;  %v2650_v1 = vsub.f32 %v10271_v37, %v2649_v34  ;;  %v14165_v35 = vand.u32 4294901760, %v14139_v9  ;;  %v14167_v9 = vand.u32 4294901760, %v14146_v18 }
 0x3a7   :  { %v2270_v38 = vmul.f32 1.442695, %v2245_v63  ;;  %v10307_v44 = vand.u32 4294901760, %v1138_v6  ;;  %v1265_v63 = vand.u32 4294901760, %v1264_v29  ;;  %v14166_v29 = vand.u32 4294901760, %v14144_v56 }
 0x3a8   :  { %2987 = vmatpush.msra.mxu0 %v14156_v0  ;;  %v2651_v14 = vand.u32 4294901760, %v2650_v1  ;;  %v14161_v1 = vand.u32 4294901760, %v14132_v16  ;;  %v14164_v0 = vand.u32 4294901760, %v14137_v54 }
 0x3a9   :  { %8304 = vpow2.f32 %v2270_v38  ;;  %1258 = vmatmul.f32.gmra.mxu2 %v1257_v8  ;;  %v1278_v8 = vsub.f32 %v1138_v6, %v10307_v44 }
 0x3aa   :  { %8306 = vrcp.f32 %v1106_v19  ;;  %1443 = vmatmul.f32.gmra.mxu3 %v10266_v27  ;;  %2991 = vmatpush.msra.mxu0 %v14157_v21  ;;  %v14160_v19 = vld [vmem:[#allocation20_spill] sm:$0xff]  ;;  %v10338_v21 = vpop.xlane.xlu1 %2290 }
 0x3ab   :  { %1568 = vmatmul.f32.gmra.mxu0 %v1262_v49  ;;  %2652 = vmatpush.msrb.mxu1 %v2651_v14  ;;  %v2137_v49 = vadd.f32 %v9900_v48, %v14160_v19  ;;  %8308 = vrcp.f32 %v10249_v15  ;;  %v2117_v15 = vpop.permute.xlu0 %2116 }
 0x3ac   :  { %2995 = vmatpush.msra.mxu0 %v14158_v7  ;;  %v2109_v30 = vpop.permute.xlu2 %2108  ;;  %8310 = vrcp.f32 %v10256_v25 }
 0x3ad   :  { %3106 = vmatpush.msra.mxu1 %v9632_v62  ;;  %v2136_v24 = vadd.f32 %v9900_v48, %v2109_v30  ;;  %v1271_v62 = vand.u32 4294901760, %v1270_v51  ;;  %vm2153_vm1 = vcmp.gt.f32.partialorder %v2137_v49, 0.0  ;;  %8312 = vrcp.f32 %v10264_v42 }
 0x3ae   :  { %1693 = vmatmul.f32.gmra.mxu1 %v1263_v20  ;;  %2999 = vmatpush.msra.mxu0 %v14159_v10  ;;  %v2169_v20 = vmul.f32 0.2, %v2137_v49  ;;  %v14169_v10 = vand.u32 4294901760, %v14147_v13 }
 0x3af   :  { %3108 = vmatpush.msra.mxu1 %v9625_v53  ;;  %v10311_v41 = vpop.eup %8304  ;;  %v2168_v45 = vmul.f32 0.2, %v2136_v24  ;;  %vm2152_vm15 = vcmp.gt.f32.partialorder %v2136_v24, 0.0 }
 0x3b0   :  { %v8307_v43 = vpop.eup %8306  ;;  %3003 = vmatpush.msra.mxu0 %v14161_v1  ;;  %2302 = vadd.xlane.f32.xlu0 %v10311_v41  ;;  %v2185_v25 = vsel %vm2153_vm1, %v2137_v49, %v2169_v20 }
 0x3b1   :  { %3110 = vmatpush.msra.mxu1 %v9639_v5  ;;  %1266 = vmatmul.f32.gmra.mxu2 %v1265_v63  ;;  %v2184_v53 = vsel %vm2152_vm15, %v2136_v24, %v2168_v45  ;;  %v1139_v16 = vmul.f32 %v8307_v43, %v10091_v59  ;;  %v1272_v5 = vsub.f32 %v1270_v51, %v1271_v62  ;;  %v1279_v59 = vand.u32 4294901760, %v1278_v8  ;;  %v8309_v54 = vpop.eup %8308 }
 0x3b2   :  { %1447 = vmatmul.f32.gmra.mxu3 %v10291_v12  ;;  %3007 = vmatpush.msra.mxu0 %v14162_v32  ;;  %v10322_v38 = vadd.f32 %v2184_v53, %v14163_v28  ;;  %v1140_v30 = vmul.f32 %v8309_v54, %v10089_v23  ;;  %v14170_v23 = vand.u32 4294901760, %v14148_v40  ;;  %v14171_v45 = vand.u32 4294901760, %v10211_v55  ;;  %v2225_v40 = vpop.xlane.xlu1 %2224 }
 0x3b3   :  { %3112 = vmatpush.msra.mxu1 %v9627_v52  ;;  %1573 = vmatmul.f32.gmra.mxu0 %v1270_v51  ;;  %v2138_v52 = vadd.f32 %v9900_v48, %v2117_v15  ;;  %v1273_v14 = vand.u32 4294901760, %v1272_v5  ;;  %v10336_v6 = vand.u32 4294901760, %v1139_v16  ;;  %v1280_v7 = vsub.f32 %v1278_v8, %v1279_v59 }
 0x3b4   :  { %3011 = vmatpush.msra.mxu0 %v14164_v0  ;;  %2228 = vmax.xlane.f32.xlu1 %v10322_v38  ;;  %v10362_v13 = vand.u32 4294901760, %v1140_v30  ;;  %v2246_v37 = vsub.f32 %v10124_v36, %v2225_v40 }
 0x3b5   :  { %3114 = vmatpush.msra.mxu1 %v9634_v4  ;;  %v8311_v4 = vpop.eup %8310  ;;  %v2170_v24 = vmul.f32 0.2, %v2138_v52  ;;  %v1286_v56 = vsub.f32 %v1139_v16, %v10336_v6  ;;  %vm2154_vm2 = vcmp.gt.f32.partialorder %v2138_v52, 0.0 }
 0x3b6   :  { %1699 = vmatmul.f32.gmra.mxu1 %v1271_v62  ;;  %3015 = vmatpush.msra.mxu0 %v14165_v35  ;;  %v2332_v18 = vmul.f32 %v8311_v4, %v10099_v39  ;;  %v8313_v39 = vpop.eup %8312  ;;  %v1294_v55 = vsub.f32 %v1140_v30, %v10362_v13  ;;  %v2272_v32 = vmul.f32 1.442695, %v2246_v37  ;;  %v14175_v35 = vld [vmem:[#allocation60_spill] sm:$0xff]  ;;  %v14177_v30 = vld [vmem:[#allocation21_spill] sm:$0xff] }
 0x3b7   :  { %3116 = vmatpush.msra.mxu1 %v9645_v22  ;;  %v14168_v22 = vld [vmem:[#allocation54_spill] sm:$0xff]  ;;  %v2186_v42 = vsel %vm2154_vm2, %v2138_v52, %v2170_v24  ;;  %v1287_v49 = vand.u32 4294901760, %v1286_v56  ;;  %v2333_v62 = vmul.f32 %v8313_v39, %v10108_v3  ;;  %v14174_v3 = vld [vmem:[#allocation56_spill] sm:$0xff] }
 0x3b8   :  { %3019 = vmatpush.msra.mxu0 %v14166_v29  ;;  %v10347_v51 = vadd.f32 %v2185_v25, %v14168_v22  ;;  %v10366_v63 = vand.u32 4294901760, %v2332_v18  ;;  %v1295_v1 = vand.u32 4294901760, %v1294_v55  ;;  %8314 = vpow2.f32 %v2272_v32  ;;  %v14176_v29 = vld [vmem:[#allocation58_spill] sm:$0xff] }
 0x3b9   :  { %3118 = vmatpush.msra.mxu1 %v9653_v57  ;;  %1274 = vmatmul.f32.gmra.mxu2 %v1273_v14  ;;  %v2121_v57 = vpop.permute.xlu2 %2120  ;;  %v10385_v53 = vand.u32 4294901760, %v2333_v62  ;;  %8316 = vrcp.f32 %v10338_v21 }
 0x3ba   :  { %1451 = vmatmul.f32.gmra.mxu3 %v10307_v44  ;;  %3023 = vmatpush.msra.mxu0 %v14167_v9  ;;  %v2139_v19 = vadd.f32 %v9900_v48, %v2121_v57  ;;  %v10373_v48 = vadd.f32 %v2186_v42, %v9786_v58  ;;  %v2293_v14 = vpop.xlane.xlu1 %2292 }
 0x3bb   :  { %3120 = vmatpush.msra.mxu1 %v14126_v26  ;;  %1578 = vmatmul.f32.gmra.mxu0 %v1278_v8  ;;  %v1281_v26 = vand.u32 4294901760, %v1280_v7  ;;  %v14173_v8 = vld [vmem:[#allocation27_spill] sm:$0xff]  ;;  %v10399_v20 = vsub.f32 %v2333_v62, %v10385_v53 }
 0x3bc   :  { %3027 = vmatpush.msra.mxu0 %v14169_v10  ;;  %2230 = vmax.xlane.f32.xlu1 %v10347_v51  ;;  %vm2155_vm3 = vcmp.gt.f32.partialorder %v2139_v19, 0.0 }
 0x3bd   :  { %3122 = vmatpush.msra.mxu1 %v14128_v17  ;;  %v2171_v17 = vmul.f32 0.2, %v2139_v19  ;;  %v14192_v28 = vand.u32 4294901760, %v10399_v20 }
 0x3be   :  { %1705 = vmatmul.f32.gmra.mxu1 %v1279_v59  ;;  %3031 = vmatpush.msra.mxu0 %v14170_v23  ;;  %v10404_v52 = vpop.eup %8314 }
 0x3bf   :  { %3124 = vmatpush.msra.mxu1 %v14130_v60  ;;  %v1288_v60 = vsub.f32 %v1286_v56, %v1287_v49  ;;  %v2187_v43 = vsel %vm2155_vm3, %v2139_v19, %v2171_v17  ;;  %v8317_v54 = vpop.eup %8316 }
 0x3c0   :  { %3035 = vmatpush.msra.mxu0 %v14171_v45  ;;  %v10391_v36 = vadd.f32 %v2187_v43, %v14174_v3  ;;  %v2335_v4 = vmul.f32 %v8317_v54, %v14176_v29  ;;  %v14179_v45 = vld [vmem:[#allocation59_spill] sm:$0xff]  ;;  %v14193_v3 = vld [vmem:[#allocation6_spill] sm:$0xff] }
 0x3c1   :  { %3126 = vmatpush.msra.mxu1 %v14133_v50  ;;  %1282 = vmatmul.f32.gmra.mxu2 %v1281_v26  ;;  %v10379_v50 = vsub.f32 %v2332_v18, %v10366_v63 }
 0x3c2   :  { %1455 = vmatmul.f32.gmra.mxu3 %v10336_v6  ;;  %3039 = vmatpush.msra.mxu0 %v2649_v34  ;;  %v14172_v34 = vld [vmem:[#allocation37_spill] sm:$0xff]  ;;  %v10417_v26 = vand.u32 4294901760, %v2335_v4 }
 0x3c3   :  { %3128 = vmatpush.msra.mxu1 %v14136_v46  ;;  %1583 = vmatmul.f32.gmra.mxu0 %v1286_v56  ;;  %v1289_v46 = vand.u32 4294901760, %v1288_v60  ;;  %v2430_v16 = vand.u32 4294901760, %v10379_v50  ;;  %v14178_v56 = vld [vmem:[#allocation61_spill] sm:$0xff]  ;;  %v14180_v60 = vld [vmem:[#allocation62_spill] sm:$0xff] }
 0x3c4   :  { %2232 = vmax.xlane.f32.xlu1 %v10373_v48  ;;  %v10428_v17 = vsub.f32 %v2335_v4, %v10417_v26 }
 0x3c5   :  { %3130 = vmatpush.msra.mxu1 %v14138_v47  ;;  %v1296_v47 = vsub.f32 %v1294_v55, %v1295_v1  ;;  %v2431_v5 = vsub.f32 %v10379_v50, %v2430_v16 }
 0x3c6   :  { %1711 = vmatmul.f32.gmra.mxu1 %v1287_v49  ;;  %v13974_v43 = vand.u32 4294901760, %v10428_v17 }
 0x3c7   :  { %3132 = vmatpush.msra.mxu1 %v14172_v34  ;;  %v1297_v15 = vand.u32 4294901760, %v1296_v47  ;;  %v2432_v0 = vand.u32 4294901760, %v2431_v5  ;;  %v14181_v47 = vld [vmem:[#allocation22_spill] sm:$0xff] }
 0x3c9   :  { %3134 = vmatpush.msra.mxu1 %v14173_v8  ;;  %1290 = vmatmul.f32.gmra.mxu2 %v1289_v46 }
 0x3ca   :  { %1459 = vmatmul.f32.gmra.mxu3 %v10362_v13 }
 0x3cb   :  { %3136 = vmatpush.msra.mxu1 %v10268_v2  ;;  %1588 = vmatmul.f32.gmra.mxu0 %v1294_v55  ;;  %v13976_v2 = vand.u32 4294901760, %v10399_v20 }
 0x3cc   :  { %2234 = vmax.xlane.f32.xlu1 %v10391_v36 }
 0x3cd   :  { %v2439_v21 = vsub.f32 %v10399_v20, %v13976_v2 }
 0x3ce   :  { %1717 = vmatmul.f32.gmra.mxu1 %v1295_v1 }
 0x3cf   :  { %v2440_v7 = vand.u32 4294901760, %v2439_v21 }
 0x3d1   :  { %1298 = vmatmul.f32.gmra.mxu2 %v1297_v15  ;;  %v2455_v15 = vsub.f32 %v10428_v17, %v13974_v43 }
 0x3d2   :  { %1883 = vmatmul.f32.vlgmr.msrb.gmra.mxu3 %v14175_v35  ;;  %v2289_v59 = vpop.xlane.xlu0 %2288 }
 0x3d3   :  { %8318 = vrcp.f32 %v2289_v59  ;;  %2433 = vmatmul.f32.vlgmr.msrb.gmra.mxu0 %v2432_v0  ;;  %v1400_v25 = vpop.f32.mrf.mxu3  ;;  %v2456_v54 = vand.u32 4294901760, %v2455_v15  ;;  %v14186_v15 = vld [vmem:[#allocation26_spill] sm:$0xff] }
 0x3d4   :  { %2304 = vadd.xlane.f32.xlu1 %v10404_v52  ;;  %8320 = vrcp.f32 %v2293_v14 }
 0x3d6   :  { %2654 = vmatmul.f32.vlgmr.msrb.gmra.mxu1 %v10366_v63 }
 0x3d9   :  { %v8319_v9 = vpop.eup %8318  ;;  %1786 = vmatmul.f32.vlgmr.msrb.gmra.mxu2 %v14175_v35  ;;  %v14182_v35 = vld [vmem:[#allocation23_spill] sm:$0xff] }
 0x3da   :  { %v2334_v24 = vmul.f32 %v8319_v9, %v14177_v30  ;;  %1887 = vmatmul.f32.gmra.mxu3 %v14178_v56  ;;  %v2295_v57 = vpop.xlane.xlu0 %2294  ;;  %v8321_v19 = vpop.eup %8320 }
 0x3db   :  { %2441 = vmatmul.f32.gmra.mxu0 %v2440_v7  ;;  %v1179_v10 = vpop.f32.mrf.mxu2  ;;  %8322 = vrcp.f32 %v2295_v57  ;;  %v2336_v39 = vmul.f32 %v8321_v19, %v14179_v45  ;;  %v14184_v19 = vld [vmem:[#allocation25_spill] sm:$0xff] }
 0x3dc   :  { %v1404_v18 = vpop.f32.mrf.mxu3  ;;  %v10415_v23 = vand.u32 4294901760, %v2334_v24  ;;  %v10419_v42 = vadd.f32 %v1400_v25, %v1179_v10 }
 0x3dd   :  { %v10436_v1 = vand.u32 4294901760, %v2336_v39 }
 0x3de   :  { %2658 = vmatmul.f32.gmra.mxu1 %v10385_v53  ;;  %v10423_v49 = vsub.f32 %v2334_v24, %v10415_v23  ;;  %v14183_v24 = vld [vmem:[#allocation24_spill] sm:$0xff] }
 0x3df   :  { %v10446_v0 = vsub.f32 %v2336_v39, %v10436_v1 }
 0x3e0   :  { %v13975_v40 = vand.u32 4294901760, %v10423_v49 }
 0x3e1   :  { %1790 = vmatmul.f32.gmra.mxu2 %v14178_v56  ;;  %v8323_v32 = vpop.eup %8322  ;;  %v13972_v21 = vand.u32 4294901760, %v10446_v0 }
 0x3e2   :  { %1891 = vmatmul.f32.gmra.mxu3 %v14180_v60  ;;  %v2297_v55 = vpop.xlane.xlu0 %2296  ;;  %v2447_v62 = vsub.f32 %v10423_v49, %v13975_v40  ;;  %v2337_v5 = vmul.f32 %v8323_v32, %v14181_v47  ;;  %v14191_v40 = vld [vmem:[#allocation4_spill] sm:$0xff] }
 0x3e3   :  { %8324 = vrcp.f32 %v2297_v55  ;;  %v2463_v10 = vsub.f32 %v10446_v0, %v13972_v21 }
 0x3e4   :  { %v1187_v37 = vpop.f32.mrf.mxu2  ;;  %v1408_v34 = vpop.f32.mrf.mxu3  ;;  %v2448_v46 = vand.u32 4294901760, %v2447_v62  ;;  %v10451_v29 = vand.u32 4294901760, %v2337_v5 }
 0x3e5   :  { %v10438_v8 = vadd.f32 %v1404_v18, %v1187_v37  ;;  %v2464_v39 = vand.u32 4294901760, %v2463_v10 }
 0x3e6   :  { %2662 = vmatmul.f32.gmra.mxu1 %v10415_v23  ;;  %2449 = vmatmul.f32.gmra.mxu0 %v2448_v46  ;;  %v10462_v18 = vsub.f32 %v2337_v5, %v10451_v29  ;;  %v14185_v46 = vld [vmem:[#allocation29_spill] sm:$0xff] }
 0x3e9   :  { %1794 = vmatmul.f32.gmra.mxu2 %v14180_v60  ;;  %v8325_v4 = vpop.eup %8324 }
 0x3ea   :  { %1895 = vmatmul.f32.gmra.mxu3 %v14182_v35  ;;  %v2299_v59 = vpop.xlane.xlu0 %2298  ;;  %v2338_v56 = vmul.f32 %v8325_v4, %v14183_v24  ;;  %v14187_v24 = vld [vmem:[#allocation28_spill] sm:$0xff] }
 0x3eb   :  { %8326 = vrcp.f32 %v2299_v59 }
 0x3ec   :  { %v1195_v14 = vpop.f32.mrf.mxu2  ;;  %v1412_v25 = vpop.f32.mrf.mxu3  ;;  %v10467_v60 = vand.u32 4294901760, %v2338_v56 }
 0x3ed   :  { %v10453_v9 = vadd.f32 %v1408_v34, %v1195_v14  ;;  %v2227_v7 = vpop.xlane.xlu2 %2226 }
 0x3ee   :  { %2666 = vmatmul.f32.gmra.mxu1 %v10417_v26  ;;  %v2247_v30 = vsub.f32 %v10232_v11, %v2227_v7  ;;  %2457 = vmatmul.f32.gmra.mxu0 %v2456_v54  ;;  %v13970_v11 = vand.u32 4294901760, %v10462_v18  ;;  %v10479_v5 = vsub.f32 %v2338_v56, %v10467_v60 }
 0x3f0   :  { %v2274_v57 = vmul.f32 1.442695, %v2247_v30  ;;  %v2471_v47 = vsub.f32 %v10462_v18, %v13970_v11  ;;  %v13969_v14 = vand.u32 4294901760, %v10479_v5 }
 0x3f1   :  { %1798 = vmatmul.f32.gmra.mxu2 %v14182_v35  ;;  %v8327_v55 = vpop.eup %8326 }
 0x3f2   :  { %8328 = vpow2.f32 %v2274_v57  ;;  %1899 = vmatmul.f32.gmra.mxu3 %v14184_v19  ;;  %v2339_v32 = vmul.f32 %v8327_v55, %v14185_v46  ;;  %v2472_v59 = vand.u32 4294901760, %v2471_v47  ;;  %v2479_v7 = vsub.f32 %v10479_v5, %v13969_v14  ;;  %v14188_v55 = vld [vmem:[#allocation31_spill] sm:$0xff] }
 0x3f4   :  { %v1203_v45 = vpop.f32.mrf.mxu2  ;;  %v2480_v57 = vand.u32 4294901760, %v2479_v7 }
 0x3f5   :  { %v10469_v62 = vadd.f32 %v1412_v25, %v1203_v45  ;;  %v1416_v37 = vpop.f32.mrf.mxu3  ;;  %v10485_v25 = vand.u32 4294901760, %v2339_v32 }
 0x3f6   :  { %2670 = vmatmul.f32.gmra.mxu1 %v10436_v1  ;;  %2465 = vmatmul.f32.gmra.mxu0 %v2464_v39 }
 0x3f7   :  { %v10494_v30 = vsub.f32 %v2339_v32, %v10485_v25 }
 0x3f8   :  { %v10472_v34 = vpop.eup %8328 }
 0x3f9   :  { %1802 = vmatmul.f32.gmra.mxu2 %v14184_v19  ;;  %2306 = vadd.xlane.f32.xlu0 %v10472_v34  ;;  %v13968_v10 = vand.u32 4294901760, %v10494_v30 }
 0x3fa   :  { %1903 = vmatmul.f32.gmra.mxu3 %v14186_v15 }
 0x3fb   :  { %v2487_v39 = vsub.f32 %v10494_v30, %v13968_v10 }
 0x3fc   :  { %v1211_v35 = vpop.f32.mrf.mxu2 }
 0x3fd   :  { %v10487_v54 = vadd.f32 %v1416_v37, %v1211_v35  ;;  %v1420_v4 = vpop.f32.mrf.mxu3  ;;  %v2488_v46 = vand.u32 4294901760, %v2487_v39 }
 0x3fe   :  { %2674 = vmatmul.f32.gmra.mxu1 %v10451_v29  ;;  %2473 = vmatmul.f32.gmra.mxu0 %v2472_v59 }
 0x401   :  { %1806 = vmatmul.f32.gmra.mxu2 %v14186_v15  ;;  %v14189_v15 = vld [vmem:[#allocation30_spill] sm:$0xff] }
 0x402   :  { %1907 = vmatmul.f32.gmra.mxu3 %v14187_v24 }
 0x404   :  { %v1219_v56 = vpop.f32.mrf.mxu2 }
 0x405   :  { %v10499_v19 = vadd.f32 %v1420_v4, %v1219_v56  ;;  %v1424_v45 = vpop.f32.mrf.mxu3 }
 0x406   :  { %2678 = vmatmul.f32.gmra.mxu1 %v10467_v60  ;;  %2481 = vmatmul.f32.gmra.mxu0 %v2480_v57 }
 0x409   :  { %1810 = vmatmul.f32.gmra.mxu2 %v14187_v24 }
 0x40a   :  { %1911 = vmatmul.f32.gmra.mxu3 %v14188_v55 }
 0x40c   :  { %v1227_v37 = vpop.f32.mrf.mxu2 }
 0x40d   :  { %v10507_v32 = vadd.f32 %v1424_v45, %v1227_v37  ;;  %v1428_v47 = vpop.f32.mrf.mxu3  ;;  %v10523_v37 = vpop.f32.mrf.mxu1 }
 0x40e   :  { %2682 = vmatmul.f32.gmra.mxu1 %v10485_v25  ;;  %2489 = vmatmul.f32.gmra.mxu0 %v2488_v46 }
 0x411   :  { %1814 = vmatmul.f32.gmra.mxu2 %v14188_v55 }
 0x412   :  { %1915 = vmatmul.f32.gmra.mxu3 %v14189_v15 }
 0x414   :  { %v1235_v35 = vpop.f32.mrf.mxu2 }
 0x415   :  { %v10512_v59 = vadd.f32 %v1428_v47, %v1235_v35  ;;  %v1432_v4 = vpop.f32.mrf.mxu3 }
 0x417   :  { %v2301_v7 = vpop.xlane.xlu0 %2300 }
 0x418   :  { %8330 = vrcp.f32 %v2301_v7 }
 0x419   :  { %1818 = vmatmul.f32.gmra.mxu2 %v14189_v15 }
 0x41a   :  { %1919 = vmatmul.f32.gmra.mxu3 %v10251_v61 }
 0x41c   :  { %v1243_v24 = vpop.f32.mrf.mxu2 }
 0x41d   :  { %v10516_v56 = vadd.f32 %v1432_v4, %v1243_v24  ;;  %v1436_v57 = vpop.f32.mrf.mxu3 }
 0x41e   :  { %v8331_v45 = vpop.eup %8330 }
 0x41f   :  { %v2340_v39 = vmul.f32 %v8331_v45, %v10275_v31 }
 0x421   :  { %1822 = vmatmul.f32.gmra.mxu2 %v10251_v61  ;;  %v10520_v55 = vand.u32 4294901760, %v2340_v39 }
 0x422   :  { %1923 = vmatmul.f32.gmra.mxu3 %v10258_v33 }
 0x423   :  { %2686 = vmatmul.f32.gmra.mxu1 %v10520_v55  ;;  %v10527_v46 = vsub.f32 %v2340_v39, %v10520_v55  ;;  %v2303_v47 = vpop.xlane.xlu0 %2302 }
 0x424   :  { %v1251_v15 = vpop.f32.mrf.mxu2  ;;  %8332 = vrcp.f32 %v2303_v47  ;;  %v10538_v47 = vpop.f32.mrf.mxu0 }
 0x425   :  { %v10529_v35 = vadd.f32 %v1436_v57, %v1251_v15  ;;  %v1440_v4 = vpop.f32.mrf.mxu3  ;;  %v13971_v31 = vand.u32 4294901760, %v10527_v46 }
 0x427   :  { %v2229_v61 = vpop.xlane.xlu1 %2228  ;;  %v2495_v7 = vsub.f32 %v10527_v46, %v13971_v31 }
 0x428   :  { %v2248_v24 = vsub.f32 %v10322_v38, %v2229_v61  ;;  %v10545_v61 = vpop.f32.mrf.mxu1 }
 0x429   :  { %1826 = vmatmul.f32.gmra.mxu2 %v10258_v33  ;;  %v2496_v45 = vand.u32 4294901760, %v2495_v7 }
 0x42a   :  { %v2276_v39 = vmul.f32 1.442695, %v2248_v24  ;;  %1927 = vmatmul.f32.gmra.mxu3 %v10266_v27  ;;  %v8333_v10 = vpop.eup %8332 }
 0x42b   :  { %2497 = vmatmul.f32.gmra.mxu0 %v2496_v45  ;;  %v2341_v57 = vmul.f32 %v8333_v10, %v10311_v41 }
 0x42c   :  { %8334 = vpow2.f32 %v2276_v39  ;;  %v1259_v15 = vpop.f32.mrf.mxu2 }
 0x42d   :  { %v10541_v14 = vadd.f32 %v1440_v4, %v1259_v15  ;;  %v1444_v11 = vpop.f32.mrf.mxu3  ;;  %v10543_v31 = vand.u32 4294901760, %v2341_v57 }
 0x42f   :  { %v2231_v38 = vpop.xlane.xlu1 %2230  ;;  %2690 = vmatmul.f32.gmra.mxu1 %v10543_v31  ;;  %v10550_v7 = vsub.f32 %v2341_v57, %v10543_v31  ;;  %v8711_v57 = vmov 66  }
 0x430   :  { %v2249_v33 = vsub.f32 %v10347_v51, %v2231_v38  ;;  %8217 = vset.pattern.permute.xlu1 %v8711_v57  ;;  %8218 = vset.pattern.permute.xlu0 %v8711_v57  ;;  %v1519_v38 = vpop.f32.mrf.mxu0 }
 0x431   :  { %1830 = vmatmul.f32.gmra.mxu2 %v10266_v27  ;;  %v13973_v4 = vand.u32 4294901760, %v10550_v7  ;;  %8219 = vset.pattern.permute.xlu2 %v8711_v57  ;;  %v1520_v58 = vadd.f32 %v1519_v38, %v10438_v8 }
 0x432   :  { %v10553_v41 = vpop.eup %8334  ;;  %v2278_v10 = vmul.f32 1.442695, %v2249_v33  ;;  %1931 = vmatmul.f32.gmra.mxu3 %v10291_v12 }
 0x433   :  { %2308 = vadd.xlane.f32.xlu2 %v10553_v41  ;;  %v2503_v51 = vsub.f32 %v10550_v7, %v13973_v4 }
 0x434   :  { %8336 = vpow2.f32 %v2278_v10  ;;  %v1267_v24 = vpop.f32.mrf.mxu2 }
 0x435   :  { %v10561_v45 = vadd.f32 %v1444_v11, %v1267_v24  ;;  %v1448_v39 = vpop.f32.mrf.mxu3  ;;  %v2504_v27 = vand.u32 4294901760, %v2503_v51 }
 0x437   :  { %v2233_v15 = vpop.xlane.xlu1 %2232  ;;  %2505 = vmatmul.f32.gmra.mxu0 %v2504_v27 }
 0x438   :  { %v2250_v33 = vsub.f32 %v10373_v48, %v2233_v15 }
 0x439   :  { %1834 = vmatmul.f32.gmra.mxu2 %v10291_v12 }
 0x43a   :  { %v10565_v10 = vpop.eup %8336  ;;  %v2280_v21 = vmul.f32 1.442695, %v2250_v33  ;;  %1935 = vmatmul.f32.gmra.mxu3 %v10307_v44 }
 0x43b   :  { %2310 = vadd.xlane.f32.xlu1 %v10565_v10 }
 0x43c   :  { %8338 = vpow2.f32 %v2280_v21  ;;  %v1275_v11 = vpop.f32.mrf.mxu2 }
 0x43d   :  { %v10569_v24 = vadd.f32 %v1448_v39, %v1275_v11  ;;  %v1452_v51 = vpop.f32.mrf.mxu3 }
 0x43f   :  { %v2235_v57 = vpop.xlane.xlu1 %2234 }
 0x440   :  { %v2251_v4 = vsub.f32 %v10391_v36, %v2235_v57 }
 0x441   :  { %1838 = vmatmul.f32.gmra.mxu2 %v10307_v44  ;;  %v1524_v44 = vpop.f32.mrf.mxu0 }
 0x442   :  { %v10573_v48 = vpop.eup %8338  ;;  %v2282_v12 = vmul.f32 1.442695, %v2251_v4  ;;  %1939 = vmatmul.f32.gmra.mxu3 %v10336_v6 }
 0x443   :  { %2312 = vadd.xlane.f32.xlu0 %v10573_v48 }
 0x444   :  { %8340 = vpow2.f32 %v2282_v12  ;;  %v1283_v27 = vpop.f32.mrf.mxu2  ;;  %v1640_v12 = vpop.f32.mrf.mxu1 }
 0x445   :  { %v10577_v15 = vadd.f32 %v1452_v51, %v1283_v27  ;;  %v1456_v21 = vpop.f32.mrf.mxu3 }
 0x447   :  { %v2305_v39 = vpop.xlane.xlu1 %2304 }
 0x448   :  { %8342 = vrcp.f32 %v2305_v39 }
 0x449   :  { %1842 = vmatmul.f32.gmra.mxu2 %v10336_v6 }
 0x44a   :  { %v10580_v33 = vpop.eup %8340  ;;  %1943 = vmatmul.f32.gmra.mxu3 %v10362_v13 }
 0x44b   :  { %2314 = vadd.xlane.f32.xlu2 %v10580_v33 }
 0x44c   :  { %v1291_v36 = vpop.f32.mrf.mxu2  ;;  %v1646_v2 = vpop.f32.mrf.mxu1 }
 0x44d   :  { %v10584_v4 = vadd.f32 %v1456_v21, %v1291_v36  ;;  %v1460_v11 = vpop.f32.mrf.mxu3  ;;  %v14190_v21 = vld [vmem:[#allocation3_spill] sm:$0xff]  ;;  %v1529_v36 = vpop.f32.mrf.mxu0 }
 0x44e   :  { %v8343_v57 = vpop.eup %8342 }
 0x44f   :  { %v2342_v51 = vmul.f32 %v8343_v57, %v10404_v52 }
 0x451   :  { %1846 = vmatmul.f32.gmra.mxu2 %v10362_v13  ;;  %v10588_v27 = vand.u32 4294901760, %v2342_v51  ;;  %v1515_v13 = vadd.f32 %v10538_v47, %v10419_v42 }
 0x452   :  { %2882 = vmatmul.f32.vlgmr.msra.gmra.mxu3 %v2430_v16 }
 0x453   :  { %2694 = vmatmul.f32.gmra.mxu1 %v10588_v27  ;;  %v10594_v6 = vsub.f32 %v2342_v51, %v10588_v27 }
 0x454   :  { %v1299_v39 = vpop.f32.mrf.mxu2  ;;  %3380 = vperm.xlu1 %8217, %v14190_v21  }
 0x455   :  { %v10597_v43 = vadd.f32 %v1460_v11, %v1299_v39  ;;  %v1884_v52 = vpop.f32.mrf.mxu3  ;;  %v13979_v57 = vand.u32 4294901760, %v10594_v6  ;;  %v1629_v11 = vadd.f32 %v10523_v37, %v1515_v13  ;;  %v1534_v22 = vpop.f32.mrf.mxu0 }
 0x456   :  { %v1652_v37 = vpop.f32.mrf.mxu1 }
 0x457   :  { %3384 = vperm.xlu0 %8218, %v14191_v40   ;;  %v2511_v16 = vsub.f32 %v10594_v6, %v13979_v57 }
 0x459   :  { %2768 = vmatmul.f32.vlgmr.msra.gmra.mxu2 %v10379_v50  ;;  %v2512_v51 = vand.u32 4294901760, %v2511_v16  ;;  %v14194_v50 = vand.u32 4294901760, %v10423_v49 }
 0x45a   :  { %2888 = vmatmul.f32.gmra.mxu3 %v14192_v28  ;;  %v1635_v28 = vadd.f32 %v10545_v61, %v1520_v58 }
 0x45b   :  { %2513 = vmatmul.f32.gmra.mxu0 %v2512_v51 }
 0x45c   :  { %v1787_v39 = vpop.f32.mrf.mxu2  ;;  %3392 = vperm.xlu1 %8217, %v14193_v3  }
 0x45d   :  { %v1788_v42 = vadd.f32 %v1787_v39, %v1629_v11  ;;  %v1888_v47 = vpop.f32.mrf.mxu3  ;;  %v1525_v11 = vadd.f32 %v1524_v44, %v10453_v9  ;;  %v1539_v8 = vpop.f32.mrf.mxu0  ;;  %v1530_v44 = vadd.f32 %v1529_v36, %v10469_v62 }
 0x45f   :  { %v1885_v21 = vadd.f32 %v1884_v52, %v1788_v42 }
 0x461   :  { %v1963_v57 = vmin.f32 %v1885_v21, 0.0  ;;  %2773 = vmatmul.f32.gmra.mxu2 %v10399_v20  ;;  %v14195_v20 = vand.u32 4294901760, %v10428_v17  ;;  %vm1947_vm4 = vcmp.gt.f32.partialorder %v1885_v21, 0.0 }
 0x462   :  { %2894 = vmatmul.f32.gmra.mxu3 %v14194_v50 }
 0x463   :  { %v1979_v16 = vmul.f32 1.442695, %v1963_v57  ;;  %v1641_v57 = vadd.f32 %v1640_v12, %v1525_v11  ;;  %v14196_v12 = vand.u32 4294901760, %v10446_v0 }
 0x464   :  { %v1791_v13 = vpop.f32.mrf.mxu2 }
 0x465   :  { %8344 = vpow2.f32 %v1979_v16  ;;  %v1792_v51 = vadd.f32 %v1791_v13, %v1635_v28  ;;  %v1892_v40 = vpop.f32.mrf.mxu3  ;;  %v1658_v13 = vpop.f32.mrf.mxu1 }
 0x466   :  { %v1544_v11 = vpop.f32.mrf.mxu0 }
 0x467   :  { %v1889_v39 = vadd.f32 %v1888_v47, %v1792_v51 }
 0x469   :  { %v1964_v38 = vmin.f32 %v1889_v39, 0.0  ;;  %2778 = vmatmul.f32.gmra.mxu2 %v10423_v49  ;;  %vm1948_vm5 = vcmp.gt.f32.partialorder %v1889_v39, 0.0 }
 0x46a   :  { %2900 = vmatmul.f32.gmra.mxu3 %v14195_v20  ;;  %v1647_v20 = vadd.f32 %v1646_v2, %v1530_v44 }
 0x46b   :  { %v8345_v52 = vpop.eup %8344  ;;  %v1981_v42 = vmul.f32 1.442695, %v1964_v38 }
 0x46c   :  { %v1795_v50 = vpop.f32.mrf.mxu2  ;;  %v2307_v58 = vpop.xlane.xlu0 %2306  ;;  %v8102_v61 = vadd.f32 -1.0, %v8345_v52 }
 0x46d   :  { %8346 = vpow2.f32 %v1981_v42  ;;  %v1796_v16 = vadd.f32 %v1795_v50, %v1641_v57  ;;  %v1896_v28 = vpop.f32.mrf.mxu3  ;;  %v1535_v50 = vadd.f32 %v1534_v22, %v10487_v54 }
 0x46e   :  { %8348 = vrcp.f32 %v2307_v58  ;;  %v2027_v9 = vsel %vm1947_vm4, %v1885_v21, %v8102_v61  ;;  %v1664_v61 = vpop.f32.mrf.mxu1 }
 0x46f   :  { %v1893_v47 = vadd.f32 %v1892_v40, %v1796_v16  ;;  %2043 = vst.msk [vmem:[#allocation2] sm:$0xff] %vm83_vm0, %v2027_v9  ;;  %v1653_v22 = vadd.f32 %v1652_v37, %v1535_v50 }
 0x471   :  { %v1965_v49 = vmin.f32 %v1893_v47, 0.0  ;;  %2783 = vmatmul.f32.gmra.mxu2 %v10428_v17  ;;  %vm1949_vm6 = vcmp.gt.f32.partialorder %v1893_v47, 0.0 }
 0x472   :  { %2906 = vmatmul.f32.gmra.mxu3 %v14196_v12 }
 0x473   :  { %v8347_v51 = vpop.eup %8346  ;;  %v1983_v38 = vmul.f32 1.442695, %v1965_v49  ;;  %v1549_v49 = vpop.f32.mrf.mxu0 }
 0x474   :  { %v8349_v52 = vpop.eup %8348  ;;  %v1799_v42 = vpop.f32.mrf.mxu2  ;;  %v8103_v57 = vadd.f32 -1.0, %v8347_v51 }
 0x475   :  { %8350 = vpow2.f32 %v1983_v38  ;;  %v2343_v21 = vmul.f32 %v8349_v52, %v10472_v34  ;;  %v1800_v62 = vadd.f32 %v1799_v42, %v1647_v20  ;;  %v1900_v40 = vpop.f32.mrf.mxu3  ;;  %v14197_v34 = vand.u32 4294901760, %v10462_v18 }
 0x476   :  { %v2028_v36 = vsel %vm1948_vm5, %v1889_v39, %v8103_v57  ;;  %v1540_v20 = vadd.f32 %v1539_v8, %v10499_v19  ;;  %v1670_v57 = vpop.f32.mrf.mxu1 }
 0x477   :  { %v1897_v17 = vadd.f32 %v1896_v28, %v1800_v62  ;;  %v10627_v58 = vand.u32 4294901760, %v2343_v21  ;;  %2044 = vst.msk [vmem:[#allocation2 + $0x8] sm:$0xff] %vm83_vm0, %v2028_v36 }
 0x478   :  { %v1659_v50 = vadd.f32 %v1658_v13, %v1540_v20 }
 0x479   :  { %v1966_v16 = vmin.f32 %v1897_v17, 0.0  ;;  %2698 = vmatmul.f32.gmra.mxu1 %v10627_v58  ;;  %2788 = vmatmul.f32.gmra.mxu2 %v10446_v0  ;;  %v10633_v2 = vsub.f32 %v2343_v21, %v10627_v58  ;;  %v14198_v21 = vand.u32 4294901760, %v10479_v5  ;;  %vm1950_vm7 = vcmp.gt.f32.partialorder %v1897_v17, 0.0 }
 0x47a   :  { %2912 = vmatmul.f32.gmra.mxu3 %v14197_v34 }
 0x47b   :  { %v8351_v39 = vpop.eup %8350  ;;  %v1985_v9 = vmul.f32 1.442695, %v1966_v16  ;;  %v2518_v54 = vand.u32 4294901760, %v10633_v2 }
 0x47c   :  { %v1803_v28 = vpop.f32.mrf.mxu2  ;;  %v8104_v44 = vadd.f32 -1.0, %v8351_v39  ;;  %v1554_v39 = vpop.f32.mrf.mxu0 }
 0x47d   :  { %8352 = vpow2.f32 %v1985_v9  ;;  %v1804_v12 = vadd.f32 %v1803_v28, %v1653_v22  ;;  %v1904_v51 = vpop.f32.mrf.mxu3  ;;  %v2519_v0 = vsub.f32 %v10633_v2, %v2518_v54  ;;  %v14199_v22 = vand.u32 4294901760, %v10494_v30 }
 0x47e   :  { %v2029_v38 = vsel %vm1949_vm6, %v1893_v47, %v8104_v44 }
 0x47f   :  { %v1901_v52 = vadd.f32 %v1900_v40, %v1804_v12  ;;  %v2520_v42 = vand.u32 4294901760, %v2519_v0  ;;  %2045 = vst.msk [vmem:[#allocation2 + $0x10] sm:$0xff] %vm83_vm0, %v2029_v38  ;;  %v1545_v40 = vadd.f32 %v1544_v11, %v10507_v32  ;;  %v1676_v12 = vpop.f32.mrf.mxu1  ;;  %v1550_v11 = vadd.f32 %v1549_v49, %v10512_v59 }
 0x481   :  { %v1967_v37 = vmin.f32 %v1901_v52, 0.0  ;;  %2521 = vmatmul.f32.gmra.mxu0 %v2520_v42  ;;  %2793 = vmatmul.f32.gmra.mxu2 %v10462_v18  ;;  %v1665_v44 = vadd.f32 %v1664_v61, %v1545_v40  ;;  %vm1951_vm8 = vcmp.gt.f32.partialorder %v1901_v52, 0.0 }
 0x482   :  { %2918 = vmatmul.f32.gmra.mxu3 %v14198_v21 }
 0x483   :  { %v8353_v62 = vpop.eup %8352  ;;  %v1987_v36 = vmul.f32 1.442695, %v1967_v37  ;;  %v14200_v37 = vand.u32 4294901760, %v10527_v46 }
 0x484   :  { %v1807_v16 = vpop.f32.mrf.mxu2  ;;  %v8105_v34 = vadd.f32 -1.0, %v8353_v62  ;;  %v1671_v62 = vadd.f32 %v1670_v57, %v1550_v11 }
 0x485   :  { %8354 = vpow2.f32 %v1987_v36  ;;  %v1808_v47 = vadd.f32 %v1807_v16, %v1659_v50  ;;  %v1908_v19 = vpop.f32.mrf.mxu3 }
 0x486   :  { %v2030_v8 = vsel %vm1950_vm7, %v1897_v17, %v8105_v34  ;;  %v1555_v34 = vadd.f32 %v1554_v39, %v10516_v56 }
 0x487   :  { %v1905_v9 = vadd.f32 %v1904_v51, %v1808_v47  ;;  %2046 = vst.msk [vmem:[#allocation2 + $0x18] sm:$0xff] %vm83_vm0, %v2030_v8  ;;  %v1682_v59 = vpop.f32.mrf.mxu1 }
 0x489   :  { %v1968_v18 = vmin.f32 %v1905_v9, 0.0  ;;  %2798 = vmatmul.f32.gmra.mxu2 %v10479_v5  ;;  %v1559_v5 = vpop.f32.mrf.mxu0  ;;  %vm1952_vm9 = vcmp.gt.f32.partialorder %v1905_v9, 0.0 }
 0x48a   :  { %2924 = vmatmul.f32.gmra.mxu3 %v14199_v22  ;;  %v1560_v39 = vadd.f32 %v1559_v5, %v10529_v35 }
 0x48b   :  { %v8355_v13 = vpop.eup %8354  ;;  %v1989_v28 = vmul.f32 1.442695, %v1968_v18  ;;  %v1677_v18 = vadd.f32 %v1676_v12, %v1555_v34 }
 0x48c   :  { %v1811_v0 = vpop.f32.mrf.mxu2  ;;  %v8106_v38 = vadd.f32 -1.0, %v8355_v13 }
 0x48d   :  { %8356 = vpow2.f32 %v1989_v28  ;;  %v1812_v17 = vadd.f32 %v1811_v0, %v1665_v44  ;;  %v1912_v20 = vpop.f32.mrf.mxu3 }
 0x48e   :  { %v2031_v32 = vsel %vm1951_vm8, %v1901_v52, %v8106_v38  ;;  %v14202_v38 = vand.u32 4294901760, %v10594_v6 }
 0x48f   :  { %v1909_v51 = vadd.f32 %v1908_v19, %v1812_v17  ;;  %2047 = vst.msk [vmem:[#allocation2 + $0x20] sm:$0xff] %vm83_vm0, %v2031_v32  ;;  %v14201_v19 = vand.u32 4294901760, %v10550_v7 }
 0x491   :  { %v1969_v42 = vmin.f32 %v1909_v51, 0.0  ;;  %2803 = vmatmul.f32.gmra.mxu2 %v10494_v30  ;;  %v1564_v8 = vpop.f32.mrf.mxu0  ;;  %vm1953_vm10 = vcmp.gt.f32.partialorder %v1909_v51, 0.0 }
 0x492   :  { %2930 = vmatmul.f32.gmra.mxu3 %v14200_v37 }
 0x493   :  { %v8357_v61 = vpop.eup %8356  ;;  %v1991_v21 = vmul.f32 1.442695, %v1969_v42 }
 0x494   :  { %v1815_v36 = vpop.f32.mrf.mxu2  ;;  %v8107_v50 = vadd.f32 -1.0, %v8357_v61  ;;  %v1565_v61 = vadd.f32 %v1564_v8, %v10541_v14 }
 0x495   :  { %8358 = vpow2.f32 %v1991_v21  ;;  %v1816_v16 = vadd.f32 %v1815_v36, %v1671_v62  ;;  %v1916_v52 = vpop.f32.mrf.mxu3 }
 0x496   :  { %v2032_v49 = vsel %vm1952_vm9, %v1905_v9, %v8107_v50 }
 0x497   :  { %v1913_v47 = vadd.f32 %v1912_v20, %v1816_v16  ;;  %2048 = vst.msk [vmem:[#allocation2 + $0x28] sm:$0xff] %vm83_vm0, %v2032_v49  ;;  %v1683_v20 = vadd.f32 %v1682_v59, %v1560_v39 }
 0x499   :  { %v1970_v30 = vmin.f32 %v1913_v47, 0.0  ;;  %2808 = vmatmul.f32.gmra.mxu2 %v10527_v46  ;;  %v1688_v46 = vpop.f32.mrf.mxu1  ;;  %v1569_v42 = vpop.f32.mrf.mxu0  ;;  %vm1954_vm11 = vcmp.gt.f32.partialorder %v1913_v47, 0.0 }
 0x49a   :  { %2936 = vmatmul.f32.gmra.mxu3 %v14201_v19  ;;  %v1689_v16 = vadd.f32 %v1688_v46, %v1565_v61 }
 0x49b   :  { %v8359_v57 = vpop.eup %8358  ;;  %v1993_v40 = vmul.f32 1.442695, %v1970_v30 }
 0x49c   :  { %v1819_v22 = vpop.f32.mrf.mxu2  ;;  %v8108_v13 = vadd.f32 -1.0, %v8359_v57 }
 0x49d   :  { %8360 = vpow2.f32 %v1993_v40  ;;  %v1820_v28 = vadd.f32 %v1819_v22, %v1677_v18  ;;  %v1920_v9 = vpop.f32.mrf.mxu3 }
 0x49e   :  { %v2033_v56 = vsel %vm1953_vm10, %v1909_v51, %v8108_v13 }
 0x49f   :  { %v1917_v44 = vadd.f32 %v1916_v52, %v1820_v28  ;;  %2049 = vst.msk [vmem:[#allocation2 + $0x30] sm:$0xff] %vm83_vm0, %v2033_v56 }
 0x4a1   :  { %v1971_v0 = vmin.f32 %v1917_v44, 0.0  ;;  %2813 = vmatmul.f32.gmra.mxu2 %v10550_v7  ;;  %v1694_v62 = vpop.f32.mrf.mxu1  ;;  %vm1955_vm12 = vcmp.gt.f32.partialorder %v1917_v44, 0.0  ;;  %v1574_v57 = vpop.f32.mrf.mxu0 }
 0x4a2   :  { %2942 = vmatmul.f32.gmra.mxu3 %v14202_v38 }
 0x4a3   :  { %v8361_v12 = vpop.eup %8360  ;;  %v1995_v17 = vmul.f32 1.442695, %v1971_v0 }
 0x4a4   :  { %v1823_v32 = vpop.f32.mrf.mxu2  ;;  %v8109_v11 = vadd.f32 -1.0, %v8361_v12  ;;  %v1575_v12 = vadd.f32 %v1574_v57, %v10569_v24 }
 0x4a5   :  { %8362 = vpow2.f32 %v1995_v17  ;;  %v1824_v51 = vadd.f32 %v1823_v32, %v1683_v20  ;;  %v1924_v37 = vpop.f32.mrf.mxu3 }
 0x4a6   :  { %v2309_v35 = vpop.xlane.xlu2 %2308  ;;  %v2034_v5 = vsel %vm1954_vm11, %v1913_v47, %v8109_v11 }
 0x4a7   :  { %v1921_v21 = vadd.f32 %v1920_v9, %v1824_v51  ;;  %8364 = vrcp.f32 %v2309_v35  ;;  %2050 = vst.msk [vmem:[#allocation2 + $0x38] sm:$0xff] %vm83_vm0, %v2034_v5 }
 0x4a9   :  { %v1972_v7 = vmin.f32 %v1921_v21, 0.0  ;;  %2818 = vmatmul.f32.gmra.mxu2 %v10594_v6  ;;  %v1570_v6 = vadd.f32 %v1569_v42, %v10561_v45  ;;  %v1700_v28 = vpop.f32.mrf.mxu1  ;;  %vm1956_vm13 = vcmp.gt.f32.partialorder %v1921_v21, 0.0  ;;  %v1579_v42 = vpop.f32.mrf.mxu0 }
 0x4aa   :  { %2948 = vmatmul.f32.gmra.mxu3 %v2518_v54  ;;  %v1701_v5 = vadd.f32 %v1700_v28, %v1575_v12 }
 0x4ab   :  { %v8363_v36 = vpop.eup %8362  ;;  %v1997_v50 = vmul.f32 1.442695, %v1972_v7  ;;  %v1695_v13 = vadd.f32 %v1694_v62, %v1570_v6 }
 0x4ac   :  { %v1827_v52 = vpop.f32.mrf.mxu2  ;;  %v8110_v59 = vadd.f32 -1.0, %v8363_v36 }
 0x4ad   :  { %v8365_v49 = vpop.eup %8364  ;;  %8366 = vpow2.f32 %v1997_v50  ;;  %v1828_v34 = vadd.f32 %v1827_v52, %v1689_v16  ;;  %v1928_v47 = vpop.f32.mrf.mxu3 }
 0x4ae   :  { %v2344_v14 = vmul.f32 %v8365_v49, %v10553_v41  ;;  %v2311_v30 = vpop.xlane.xlu1 %2310  ;;  %v2035_v19 = vsel %vm1955_vm12, %v1917_v44, %v8110_v59  ;;  %v1580_v49 = vadd.f32 %v1579_v42, %v10577_v15 }
 0x4af   :  { %v1925_v8 = vadd.f32 %v1924_v37, %v1828_v34  ;;  %8368 = vrcp.f32 %v2311_v30  ;;  %2051 = vst.msk [vmem:[#allocation2 + $0x40] sm:$0xff] %vm83_vm0, %v2035_v19 }
 0x4b0   :  { %v10674_v54 = vand.u32 4294901760, %v2344_v14 }
 0x4b1   :  { %v1973_v40 = vmin.f32 %v1925_v8, 0.0  ;;  %2823 = vmatmul.f32.gmra.mxu2 %v10633_v2  ;;  %vm1957_vm14 = vcmp.gt.f32.partialorder %v1925_v8, 0.0  ;;  %v1706_v36 = vpop.f32.mrf.mxu1  ;;  %v1584_v6 = vpop.f32.mrf.mxu0 }
 0x4b2   :  { %2702 = vmatmul.f32.gmra.mxu1 %v10674_v54  ;;  %v2525_v18 = vsub.f32 %v2344_v14, %v10674_v54 }
 0x4b3   :  { %v8367_v41 = vpop.eup %8366  ;;  %v1999_v22 = vmul.f32 1.442695, %v1973_v40 }
 0x4b4   :  { %v1831_v9 = vpop.f32.mrf.mxu2  ;;  %v2526_v56 = vand.u32 4294901760, %v2525_v18  ;;  %v8111_v45 = vadd.f32 -1.0, %v8367_v41 }
 0x4b5   :  { %v8369_v39 = vpop.eup %8368  ;;  %8370 = vpow2.f32 %v1999_v22  ;;  %v1832_v44 = vadd.f32 %v1831_v9, %v1695_v13  ;;  %v1932_v20 = vpop.f32.mrf.mxu3  ;;  %v14203_v13 = vld [vmem:[#allocation42_spill] sm:$0xff] }
 0x4b6   :  { %v2345_v46 = vmul.f32 %v8369_v39, %v10565_v10  ;;  %v2313_v0 = vpop.xlane.xlu0 %2312  ;;  %2954 = vmatmul.f32.gmra.mxu3 %v2526_v56  ;;  %v2527_v2 = vsub.f32 %v2525_v18, %v2526_v56  ;;  %v2036_v38 = vsel %vm1956_vm13, %v1921_v21, %v8111_v45  ;;  %v10697_v28 = vperm.slane %v14203_v13, 6 }
 0x4b7   :  { %v1929_v17 = vadd.f32 %v1928_v47, %v1832_v44  ;;  %8372 = vrcp.f32 %v2313_v0  ;;  %2052 = vst.msk [vmem:[#allocation2 + $0x48] sm:$0xff] %vm83_vm0, %v2036_v38 }
 0x4b8   :  { %v2528_v32 = vand.u32 4294901760, %v2527_v2  ;;  %v10682_v11 = vand.u32 4294901760, %v2345_v46 }
 0x4b9   :  { %v1974_v51 = vmin.f32 %v1929_v17, 0.0  ;;  %2828 = vmatmul.f32.gmra.mxu2 %v2525_v18  ;;  %vm1958_vm15 = vcmp.gt.f32.partialorder %v1929_v17, 0.0  ;;  %v1712_v38 = vpop.f32.mrf.mxu1 }
 0x4ba   :  { %2529 = vmatmul.f32.gmra.mxu0 %v2528_v32  ;;  %2706 = vmatmul.f32.gmra.mxu1 %v10682_v11  ;;  %v2533_v10 = vsub.f32 %v2345_v46, %v10682_v11  ;;  %v1585_v46 = vadd.f32 %v1584_v6, %v10584_v4 }
 0x4bb   :  { %v8371_v37 = vpop.eup %8370  ;;  %v2001_v35 = vmul.f32 1.442695, %v1974_v51 }
 0x4bc   :  { %v1835_v24 = vpop.f32.mrf.mxu2  ;;  %v2534_v61 = vand.u32 4294901760, %v2533_v10  ;;  %v8112_v21 = vadd.f32 -1.0, %v8371_v37  ;;  %v1713_v37 = vadd.f32 %v1712_v38, %v1585_v46 }
 0x4bd   :  { %v8373_v7 = vpop.eup %8372  ;;  %8374 = vpow2.f32 %v2001_v35  ;;  %v1836_v62 = vadd.f32 %v1835_v24, %v1701_v5  ;;  %v1936_v19 = vpop.f32.mrf.mxu3 }
 0x4be   :  { %v2346_v50 = vmul.f32 %v8373_v7, %v10573_v48  ;;  %v2315_v16 = vpop.xlane.xlu2 %2314  ;;  %2960 = vmatmul.f32.gmra.mxu3 %v2534_v61  ;;  %v2535_v52 = vsub.f32 %v2533_v10, %v2534_v61  ;;  %v2037_v59 = vsel %vm1957_vm14, %v1925_v8, %v8112_v21  ;;  %v1707_v8 = vadd.f32 %v1706_v36, %v1580_v49  ;;  %v14204_v21 = vld [vmem:[#allocation44_spill] sm:$0xff]  ;;  %v1589_v36 = vpop.f32.mrf.mxu0 }
 0x4bf   :  { %v10688_v34 = vadd.f32 %v1932_v20, %v1836_v62  ;;  %8376 = vrcp.f32 %v2315_v16  ;;  %2053 = vst.msk [vmem:[#allocation2 + $0x50] sm:$0xff] %vm83_vm0, %v2037_v59 }
 0x4c0   :  { %v2536_v14 = vand.u32 4294901760, %v2535_v52  ;;  %v10691_v47 = vand.u32 4294901760, %v2346_v50  ;;  %v1590_v52 = vadd.f32 %v1589_v36, %v10597_v43 }
 0x4c1   :  { %v1975_v30 = vmin.f32 %v10688_v34, 0.0  ;;  %2833 = vmatmul.f32.gmra.mxu2 %v2533_v10  ;;  %vm1959_vm3 = vcmp.gt.f32.partialorder %v10688_v34, 0.0 }
 0x4c2   :  { %2537 = vmatmul.f32.gmra.mxu0 %v2536_v14  ;;  %2710 = vmatmul.f32.gmra.mxu1 %v10691_v47  ;;  %v2541_v48 = vsub.f32 %v2346_v50, %v10691_v47 }
 0x4c3   :  { %v8375_v57 = vpop.eup %8374  ;;  %v2003_v15 = vmul.f32 1.442695, %v1975_v30 }
 0x4c4   :  { %v1839_v40 = vpop.f32.mrf.mxu2  ;;  %v2542_v18 = vand.u32 4294901760, %v2541_v48  ;;  %v8113_v41 = vadd.f32 -1.0, %v8375_v57 }
 0x4c5   :  { %v8377_v22 = vpop.eup %8376  ;;  %8378 = vpow2.f32 %v2003_v15  ;;  %v1840_v9 = vadd.f32 %v1839_v40, %v1707_v8  ;;  %v1940_v5 = vpop.f32.mrf.mxu3 }
 0x4c6   :  { %v2347_v56 = vmul.f32 %v8377_v22, %v10580_v33  ;;  %v3381_v45 = vpop.permute.xlu1 %3380  ;;  %2966 = vmatmul.f32.gmra.mxu3 %v2542_v18  ;;  %v2543_v39 = vsub.f32 %v2541_v48, %v2542_v18  ;;  %v2038_v44 = vsel %vm1958_vm15, %v1929_v17, %v8113_v41  ;;  %v1718_v40 = vpop.f32.mrf.mxu1 }
 0x4c7   :  { %v1937_v0 = vadd.f32 %v1936_v19, %v1840_v9  ;;  %v3444_v2 = vadd.f32 %v10697_v28, %v3381_v45  ;;  %2054 = vst.msk [vmem:[#allocation2 + $0x58] sm:$0xff] %vm83_vm0, %v2038_v44  ;;  %v1719_v22 = vadd.f32 %v1718_v40, %v1590_v52 }
 0x4c8   :  { %v2544_v12 = vand.u32 4294901760, %v2543_v39  ;;  %v10703_v20 = vand.u32 4294901760, %v2347_v56 }
 0x4c9   :  { %v1976_v32 = vmin.f32 %v1937_v0, 0.0  ;;  %v3476_v42 = vmul.f32 0.2, %v3444_v2  ;;  %2838 = vmatmul.f32.gmra.mxu2 %v2541_v48  ;;  %v3385_v51 = vpop.permute.xlu0 %3384  ;;  %vm3460_vm1 = vcmp.gt.f32.partialorder %v3444_v2, 0.0  ;;  %v14205_v48 = vld [vmem:[#allocation43_spill] sm:$0xff]  ;;  %vm1960_vm5 = vcmp.gt.f32.partialorder %v1937_v0, 0.0 }
 0x4ca   :  { %v3445_v33 = vadd.f32 %v10697_v28, %v3385_v51  ;;  %2545 = vmatmul.f32.gmra.mxu0 %v2544_v12  ;;  %2714 = vmatmul.f32.gmra.mxu1 %v10703_v20  ;;  %v2549_v4 = vsub.f32 %v2347_v56, %v10703_v20 }
 0x4cb   :  { %v8379_v17 = vpop.eup %8378  ;;  %v2005_v10 = vmul.f32 1.442695, %v1976_v32  ;;  %v3492_v35 = vsel %vm3460_vm1, %v3444_v2, %v3476_v42  ;;  %v14206_v2 = vld [vmem:[#allocation47_spill] sm:$0xff] }
 0x4cc   :  { %v3477_v24 = vmul.f32 0.2, %v3445_v33  ;;  %v1843_v61 = vpop.f32.mrf.mxu2  ;;  %v10709_v7 = vadd.f32 %v3492_v35, %v14204_v21  ;;  %v2550_v62 = vand.u32 4294901760, %v2549_v4  ;;  %vm3461_vm2 = vcmp.gt.f32.partialorder %v3445_v33, 0.0 }
 0x4cd   :  { %8380 = vpow2.f32 %v2005_v10  ;;  %v1844_v50 = vadd.f32 %v1843_v61, %v1713_v37  ;;  %v8114_v16 = vadd.f32 -1.0, %v8379_v17  ;;  %v1944_v39 = vpop.f32.mrf.mxu3  ;;  %v14207_v17 = vld [vmem:[#allocation5_spill] sm:$0xff]  ;;  %v14209_v37 = vld [vmem:[#allocation8_spill] sm:$0xff] }
 0x4ce   :  { %3524 = vmax.xlane.f32.xlu2 %v10709_v7  ;;  %v3393_v59 = vpop.permute.xlu1 %3392  ;;  %2972 = vmatmul.f32.gmra.mxu3 %v2550_v62  ;;  %v3493_v49 = vsel %vm3461_vm2, %v3445_v33, %v3477_v24  ;;  %v2551_v14 = vsub.f32 %v2549_v4, %v2550_v62  ;;  %v14208_v10 = vld [vmem:[#allocation17_spill] sm:$0xff]  ;;  %v10748_v35 = vpop.f32.mrf.mxu1  ;;  %v14216_v24 = vld [vmem:[#allocation16_spill] sm:$0xff] }
 0x4cf   :  { %v1941_v30 = vadd.f32 %v1940_v5, %v1844_v50  ;;  %v3447_v19 = vadd.f32 %v10697_v28, %v3393_v59  ;;  %v10716_v57 = vadd.f32 %v3493_v49, %v14205_v48  ;;  %v2039_v6 = vsel %vm1959_vm3, %v10688_v34, %v8114_v16  ;;  %14212 = vst [vmem:[#allocation33_spill] sm:$0xff] %v10748_v35  ;;  %v14213_v5 = vld [vmem:[#allocation15_spill] sm:$0xff]  ;;  %v14225_v16 = vld [vmem:[#allocation9_spill] sm:$0xff] }
 0x4d0   :  { %v2552_v15 = vand.u32 4294901760, %v2551_v14  ;;  %2055 = vst.msk [vmem:[#allocation2 + $0x60] sm:$0xff] %vm83_vm0, %v2039_v6 }
 0x4d1   :  { %v1977_v43 = vmin.f32 %v1941_v30, 0.0  ;;  %v3479_v8 = vmul.f32 0.2, %v3447_v19  ;;  %2843 = vmatmul.f32.gmra.mxu2 %v2549_v4  ;;  %3526 = vmax.xlane.f32.xlu0 %v10716_v57  ;;  %vm3463_vm4 = vcmp.gt.f32.partialorder %v3447_v19, 0.0  ;;  %vm1961_vm6 = vcmp.gt.f32.partialorder %v1941_v30, 0.0 }
 0x4d2   :  { %2553 = vmatmul.f32.gmra.mxu0 %v2552_v15  ;;  %3138 = vmatmul.f32.vlgmr.msra.gmra.mxu1 %v10366_v63 }
 0x4d3   :  { %v8381_v18 = vpop.eup %8380  ;;  %v2007_v41 = vmul.f32 1.442695, %v1977_v43  ;;  %v3495_v56 = vsel %vm3463_vm4, %v3447_v19, %v3479_v8  ;;  %v14232_v43 = vld [vmem:[#allocation45_spill] sm:$0xff] }
 0x4d4   :  { %v1847_v9 = vpop.f32.mrf.mxu2  ;;  %v8115_v45 = vadd.f32 -1.0, %v8381_v18  ;;  %v10723_v38 = vadd.f32 %v3495_v56, %v14206_v2  ;;  %v14234_v56 = vld [vmem:[#allocation49_spill] sm:$0xff] }
 0x4d5   :  { %8382 = vpow2.f32 %v2007_v41  ;;  %v1848_v34 = vadd.f32 %v1847_v9, %v1719_v22 }
 0x4d6   :  { %v2040_v44 = vsel %vm1960_vm5, %v1937_v0, %v8115_v45 }
 0x4d7   :  { %v1945_v46 = vadd.f32 %v1944_v39, %v1848_v34  ;;  %2056 = vst.msk [vmem:[#allocation2 + $0x68] sm:$0xff] %vm83_vm0, %v2040_v44 }
 0x4d9   :  { %v1978_v12 = vmin.f32 %v1945_v46, 0.0  ;;  %3530 = vmax.xlane.f32.xlu0 %v10723_v38  ;;  %vm1962_vm7 = vcmp.gt.f32.partialorder %v1945_v46, 0.0 }
 0x4da   :  { %3041 = vmatmul.f32.vlgmr.msra.gmra.mxu0 %v10366_v63  ;;  %3142 = vmatmul.f32.gmra.mxu1 %v10385_v53 }
 0x4db   :  { %v8383_v32 = vpop.eup %8382  ;;  %v2009_v42 = vmul.f32 1.442695, %v1978_v12 }
 0x4dc   :  { %v8116_v51 = vadd.f32 -1.0, %v8383_v32 }
 0x4dd   :  { %8384 = vpow2.f32 %v2009_v42 }
 0x4de   :  { %v2041_v33 = vsel %vm1961_vm6, %v1941_v30, %v8116_v51 }
 0x4df   :  { %2057 = vst.msk [vmem:[#allocation2 + $0x70] sm:$0xff] %vm83_vm0, %v2041_v33 }
 0x4e2   :  { %3045 = vmatmul.f32.gmra.mxu0 %v10385_v53  ;;  %3146 = vmatmul.f32.gmra.mxu1 %v10415_v23  ;;  %v14210_v53 = vld [vmem:[#allocation10_spill] sm:$0xff] }
 0x4e3   :  { %v8385_v0 = vpop.eup %8384 }
 0x4e4   :  { %v8117_v4 = vadd.f32 -1.0, %v8385_v0 }
 0x4e6   :  { %3388 = vperm.xlu2 %8219, %v14207_v17   ;;  %v2042_v63 = vsel %vm1962_vm7, %v1945_v46, %v8117_v4 }
 0x4e7   :  { %2058 = vst.msk [vmem:[#allocation2 + $0x78] sm:$0xff] %vm83_vm0, %v2042_v63 }
 0x4ea   :  { %3049 = vmatmul.f32.gmra.mxu0 %v10415_v23  ;;  %3150 = vmatmul.f32.gmra.mxu1 %v10417_v26  ;;  %v14211_v23 = vld [vmem:[#allocation18_spill] sm:$0xff] }
 0x4ed   :  { %3694 = vrot.lane.b32.xlu0 %v14208_v10, %s8712_s1 }
 0x4ee   :  { %3396 = vperm.xlu2 %8219, %v14209_v37  }
 0x4f2   :  { %3053 = vmatmul.f32.gmra.mxu0 %v10417_v26  ;;  %3154 = vmatmul.f32.gmra.mxu1 %v10436_v1  ;;  %v10754_v26 = vpop.f32.mrf.mxu0 }
 0x4f3   :  { %14214 = vst [vmem:[#allocation32_spill] sm:$0xff] %v10754_v26 }
 0x4f6   :  { %3412 = vperm.xlu2 %8219, %v14210_v53  }
 0x4fa   :  { %3057 = vmatmul.f32.gmra.mxu0 %v10436_v1  ;;  %3158 = vmatmul.f32.gmra.mxu1 %v10451_v29  ;;  %v10756_v1 = vpop.f32.mrf.mxu1  ;;  %v10764_v61 = vpop.f32.mrf.mxu0 }
 0x4fb   :  { %14215 = vst [vmem:[#allocation35_spill] sm:$0xff] %v10756_v1 }
 0x4fc   :  { %14218 = vst [vmem:[#allocation34_spill] sm:$0xff] %v10764_v61 }
 0x4fe   :  { %3698 = vrot.lane.b32.xlu2 %v14211_v23, %s8712_s1 }
 0x502   :  { %3061 = vmatmul.f32.gmra.mxu0 %v10451_v29  ;;  %3162 = vmatmul.f32.gmra.mxu1 %v10467_v60  ;;  %v14217_v29 = vld [vmem:[#allocation14_spill] sm:$0xff]  ;;  %v10766_v62 = vpop.f32.mrf.mxu1  ;;  %v10772_v36 = vpop.f32.mrf.mxu0 }
 0x503   :  { %14219 = vst [vmem:[#allocation19_spill] sm:$0xff] %v10766_v62 }
 0x504   :  { %14221 = vst [vmem:[#allocation36_spill] sm:$0xff] %v10772_v36 }
 0x506   :  { %3696 = vrot.lane.b32.xlu2 %v14213_v5, %s8712_s1 }
 0x50a   :  { %3065 = vmatmul.f32.gmra.mxu0 %v10467_v60  ;;  %3166 = vmatmul.f32.gmra.mxu1 %v10485_v25  ;;  %v14220_v60 = vld [vmem:[#allocation13_spill] sm:$0xff]  ;;  %v10774_v50 = vpop.f32.mrf.mxu1 }
 0x50b   :  { %14222 = vst [vmem:[#allocation38_spill] sm:$0xff] %v10774_v50 }
 0x50e   :  { %3692 = vrot.lane.b32.xlu2 %v14216_v24, %s8712_s1 }
 0x512   :  { %3069 = vmatmul.f32.gmra.mxu0 %v10485_v25  ;;  %3170 = vmatmul.f32.gmra.mxu1 %v10520_v55  ;;  %v10780_v25 = vpop.f32.mrf.mxu0 }
 0x513   :  { %14223 = vst [vmem:[#allocation39_spill] sm:$0xff] %v10780_v25 }
 0x516   :  { %3690 = vrot.lane.b32.xlu2 %v14217_v29, %s8712_s1 }
 0x51a   :  { %3073 = vmatmul.f32.gmra.mxu0 %v10520_v55  ;;  %3174 = vmatmul.f32.gmra.mxu1 %v10543_v31  ;;  %v10784_v55 = vpop.f32.mrf.mxu1 }
 0x51b   :  { %14224 = vst [vmem:[#allocation40_spill] sm:$0xff] %v10784_v55 }
 0x51e   :  { %3688 = vrot.lane.b32.xlu2 %v14220_v60, %s8712_s1 }
 0x522   :  { %3077 = vmatmul.f32.gmra.mxu0 %v10543_v31  ;;  %3178 = vmatmul.f32.gmra.mxu1 %v10588_v27  ;;  %v10790_v31 = vpop.f32.mrf.mxu0  ;;  %v10792_v52 = vpop.f32.mrf.mxu1 }
 0x523   :  { %14226 = vst [vmem:[#allocation20_spill] sm:$0xff] %v10790_v31 }
 0x524   :  { %14227 = vst [vmem:[#allocation37_spill] sm:$0xff] %v10792_v52 }
 0x526   :  { %3684 = vrot.lane.b32.xlu2 %v14210_v53, %s8712_s1 }
 0x52a   :  { %3081 = vmatmul.f32.gmra.mxu0 %v10588_v27  ;;  %3182 = vmatmul.f32.gmra.mxu1 %v10627_v58  ;;  %v10797_v27 = vpop.f32.mrf.mxu0  ;;  %v10799_v59 = vpop.f32.mrf.mxu1 }
 0x52b   :  { %14228 = vst [vmem:[#allocation27_spill] sm:$0xff] %v10797_v27 }
 0x52c   :  { %14229 = vst [vmem:[#allocation60_spill] sm:$0xff] %v10799_v59  ;;  %v14239_v59 = vld [vmem:[#allocation48_spill] sm:$0xff] }
 0x52e   :  { %3682 = vrot.lane.b32.xlu2 %v14225_v16, %s8712_s1 }
 0x532   :  { %3085 = vmatmul.f32.gmra.mxu0 %v10627_v58  ;;  %3186 = vmatmul.f32.gmra.mxu1 %v10674_v54  ;;  %v10803_v58 = vpop.f32.mrf.mxu0  ;;  %v10805_v30 = vpop.f32.mrf.mxu1 }
 0x533   :  { %14230 = vst [vmem:[#allocation58_spill] sm:$0xff] %v10803_v58 }
 0x534   :  { %14231 = vst [vmem:[#allocation21_spill] sm:$0xff] %v10805_v30 }
 0x536   :  { %3428 = vperm.xlu2 %8219, %v14216_v24  }
 0x53a   :  { %3089 = vmatmul.f32.gmra.mxu0 %v10674_v54  ;;  %3190 = vmatmul.f32.gmra.mxu1 %v10682_v11  ;;  %v10817_v18 = vpop.f32.mrf.mxu0 }
 0x53b   :  { %14233 = vst [vmem:[#allocation61_spill] sm:$0xff] %v10817_v18 }
 0x541   :  { %v3525_v49 = vpop.xlane.xlu2 %3524 }
 0x542   :  { %3093 = vmatmul.f32.gmra.mxu0 %v10682_v11  ;;  %3194 = vmatmul.f32.gmra.mxu1 %v10691_v47  ;;  %v3556_v8 = vsub.f32 %v10709_v7, %v3525_v49 }
 0x544   :  { %v10810_v15 = vpop.xlane.xlu0 %3526 }
 0x549   :  { %v3389_v14 = vpop.permute.xlu2 %3388 }
 0x54a   :  { %v3446_v19 = vadd.f32 %v10697_v28, %v3389_v14  ;;  %3097 = vmatmul.f32.gmra.mxu0 %v10691_v47  ;;  %3198 = vmatmul.f32.gmra.mxu1 %v10703_v20  ;;  %v3572_v47 = vmul.f32 1.442695, %v3556_v8 }
 0x54c   :  { %v3478_v54 = vmul.f32 0.2, %v3446_v19  ;;  %vm3462_vm0 = vcmp.gt.f32.partialorder %v3446_v19, 0.0  ;;  %8386 = vpow2.f32 %v3572_v47  ;;  %v10824_v34 = vpop.xlane.xlu0 %3530 }
 0x54e   :  { %v3494_v6 = vsel %vm3462_vm0, %v3446_v19, %v3478_v54 }
 0x54f   :  { %v10813_v11 = vadd.f32 %v3494_v6, %v14232_v43 }
 0x551   :  { %3528 = vmax.xlane.f32.xlu1 %v10813_v11  ;;  %v3397_v40 = vpop.permute.xlu2 %3396 }
 0x552   :  { %v3448_v41 = vadd.f32 %v10697_v28, %v3397_v40  ;;  %3101 = vmatmul.f32.gmra.mxu0 %v10703_v20  ;;  %v10829_v39 = vpop.eup %8386 }
 0x554   :  { %v3480_v22 = vmul.f32 0.2, %v3448_v41  ;;  %vm3464_vm8 = vcmp.gt.f32.partialorder %v3448_v41, 0.0 }
 0x556   :  { %v3496_v9 = vsel %vm3464_vm8, %v3448_v41, %v3480_v22  ;;  %v14235_v41 = vld [vmem:[#allocation7_spill] sm:$0xff] }
 0x557   :  { %v10822_v45 = vadd.f32 %v3496_v9, %v14234_v56 }
 0x559   :  { %3532 = vmax.xlane.f32.xlu1 %v10822_v45  ;;  %v10827_v7 = vpop.permute.xlu2 %3412 }
 0x55f   :  { %3604 = vadd.xlane.f32.xlu2 %v10829_v39  ;;  %v3695_v44 = vpop.permute.xlu0 %3694 }
 0x560   :  { %v10834_v12 = vand.u32 4294901760, %v3695_v44 }
 0x561   :  { %v3699_v20 = vpop.permute.xlu2 %3698 }
 0x562   :  { %v10832_v46 = vand.u32 4294901760, %v3699_v20  ;;  %v10844_v51 = vsub.f32 %v3695_v44, %v10834_v12 }
 0x564   :  { %v10837_v32 = vsub.f32 %v3699_v20, %v10832_v46  ;;  %3717 = vmatpush.msrb.mxu2 %v10832_v46  ;;  %4168 = vmatpush.msrb.mxu1 %v10832_v46  ;;  %v13981_v14 = vand.u32 4294901760, %v10844_v51 }
 0x566   :  { %v13984_v42 = vand.u32 4294901760, %v10837_v32  ;;  %4040 = vmatpush.msrb.mxu0 %v10837_v32  ;;  %v3892_v6 = vsub.f32 %v10844_v51, %v13981_v14 }
 0x568   :  { %v3880_v33 = vsub.f32 %v10837_v32, %v13984_v42  ;;  %v3893_v9 = vand.u32 4294901760, %v3892_v6 }
 0x569   :  { %v3697_v0 = vpop.permute.xlu2 %3696 }
 0x56a   :  { %v10849_v4 = vand.u32 4294901760, %v3697_v0  ;;  %v3881_v63 = vand.u32 4294901760, %v3880_v33 }
 0x56c   :  { %v10852_v49 = vsub.f32 %v3697_v0, %v10849_v4  ;;  %3719 = vmatpush.msrb.mxu2 %v10849_v4  ;;  %3882 = vmatpush.msrb.mxu3 %v3881_v63  ;;  %v14236_v63 = vld [vmem:[#allocation11_spill] sm:$0xff] }
 0x56d   :  { %4170 = vmatpush.msrb.mxu1 %v10849_v4 }
 0x56e   :  { %3721 = vmatpush.msrb.mxu2 %v10834_v12  ;;  %4043 = vmatpush.msrb.mxu0 %v10852_v49  ;;  %v13982_v19 = vand.u32 4294901760, %v10852_v49 }
 0x56f   :  { %4172 = vmatpush.msrb.mxu1 %v10834_v12 }
 0x570   :  { %4046 = vmatpush.msrb.mxu0 %v10844_v51  ;;  %v3886_v54 = vsub.f32 %v10852_v49, %v13982_v19 }
 0x571   :  { %v3693_v8 = vpop.permute.xlu2 %3692 }
 0x572   :  { %v10868_v40 = vand.u32 4294901760, %v3693_v8  ;;  %3400 = vperm.xlu1 %8217, %v14235_v41   ;;  %v3887_v47 = vand.u32 4294901760, %v3886_v54 }
 0x574   :  { %v10872_v22 = vsub.f32 %v3693_v8, %v10868_v40  ;;  %3723 = vmatpush.msrb.mxu2 %v10868_v40  ;;  %3888 = vmatpush.msrb.mxu3 %v3887_v47  ;;  %v14237_v47 = vld [vmem:[#allocation4_spill] sm:$0xff] }
 0x575   :  { %4174 = vmatpush.msrb.mxu1 %v10868_v40 }
 0x576   :  { %3894 = vmatpush.msrb.mxu3 %v3893_v9  ;;  %4049 = vmatpush.msrb.mxu0 %v10872_v22  ;;  %v13980_v44 = vand.u32 4294901760, %v10872_v22 }
 0x577   :  { %3674 = vrot.lane.b32.xlu2 %v14193_v3, %s8712_s1 }
 0x578   :  { %v3898_v20 = vsub.f32 %v10872_v22, %v13980_v44 }
 0x579   :  { %v3691_v33 = vpop.permute.xlu2 %3690 }
 0x57a   :  { %v10883_v0 = vand.u32 4294901760, %v3691_v33  ;;  %3404 = vperm.xlu1 %8217, %v14236_v63   ;;  %v3899_v54 = vand.u32 4294901760, %v3898_v20 }
 0x57c   :  { %v10887_v6 = vsub.f32 %v3691_v33, %v10883_v0  ;;  %3725 = vmatpush.msrb.mxu2 %v10883_v0  ;;  %3900 = vmatpush.msrb.mxu3 %v3899_v54  ;;  %v14238_v33 = vld [vmem:[#allocation12_spill] sm:$0xff] }
 0x57d   :  { %4176 = vmatpush.msrb.mxu1 %v10883_v0 }
 0x57e   :  { %4052 = vmatpush.msrb.mxu0 %v10887_v6  ;;  %v13983_v8 = vand.u32 4294901760, %v10887_v6 }
 0x57f   :  { %3670 = vrot.lane.b32.xlu2 %v14237_v47, %s8712_s1  ;;  %v14245_v47 = vld [vmem:[#allocation55_spill] sm:$0xff] }
 0x580   :  { %v3904_v9 = vsub.f32 %v10887_v6, %v13983_v8 }
 0x581   :  { %v3689_v20 = vpop.permute.xlu2 %3688 }
 0x582   :  { %v10898_v44 = vand.u32 4294901760, %v3689_v20  ;;  %3686 = vrot.lane.b32.xlu1 %v14238_v33, %s8712_s1  ;;  %v3905_v54 = vand.u32 4294901760, %v3904_v9  ;;  %v3452_v9 = vadd.f32 %v10697_v28, %v10827_v7 }
 0x584   :  { %v10903_v14 = vsub.f32 %v3689_v20, %v10898_v44  ;;  %3727 = vmatpush.msrb.mxu2 %v10898_v44  ;;  %3906 = vmatpush.msrb.mxu3 %v3905_v54  ;;  %v3484_v20 = vmul.f32 0.2, %v3452_v9  ;;  %vm3468_vm9 = vcmp.gt.f32.partialorder %v3452_v9, 0.0  ;;  %v3559_v54 = vsub.f32 %v10723_v38, %v10824_v34 }
 0x585   :  { %4178 = vmatpush.msrb.mxu1 %v10898_v44 }
 0x586   :  { %4055 = vmatpush.msrb.mxu0 %v10903_v14  ;;  %v13985_v19 = vand.u32 4294901760, %v10903_v14  ;;  %v3500_v30 = vsel %vm3468_vm9, %v3452_v9, %v3484_v20  ;;  %v3578_v18 = vmul.f32 1.442695, %v3559_v54 }
 0x587   :  { %v10917_v58 = vadd.f32 %v3500_v30, %v14239_v59  ;;  %v14241_v30 = vld [vmem:[#allocation51_spill] sm:$0xff] }
 0x588   :  { %v3910_v8 = vsub.f32 %v10903_v14, %v13985_v19  ;;  %8388 = vpow2.f32 %v3578_v18 }
 0x589   :  { %14240 = vst [vmem:[#allocation59_spill] sm:$0xff] %v10917_v58 }
 0x58a   :  { %v3911_v42 = vand.u32 4294901760, %v3910_v8  ;;  %v3685_v8 = vpop.permute.xlu2 %3684 }
 0x58b   :  { %v10933_v55 = vand.u32 4294901760, %v3685_v8 }
 0x58c   :  { %3912 = vmatpush.msrb.mxu3 %v3911_v42 }
 0x58e   :  { %v10920_v52 = vpop.eup %8388 }
 0x592   :  { %v3683_v27 = vpop.permute.xlu2 %3682 }
 0x593   :  { %v10935_v50 = vand.u32 4294901760, %v3683_v27 }
 0x5a8   :  { %3540 = vmax.xlane.f32.xlu2 %v10917_v58 }
 0x5b0   :  { %3610 = vadd.xlane.f32.xlu2 %v10920_v52 }
 0x5c4   :  { %v10923_v42 = vpop.xlane.xlu1 %3528 }
 0x5cc   :  { %v10925_v7 = vpop.xlane.xlu1 %3532 }
 0x5e4   :  { %v3401_v19 = vpop.permute.xlu1 %3400 }
 0x5e5   :  { %v3449_v38 = vadd.f32 %v10697_v28, %v3401_v19  ;;  %v14242_v19 = vld [vmem:[#allocation53_spill] sm:$0xff] }
 0x5e7   :  { %vm3465_vm10 = vcmp.gt.f32.partialorder %v3449_v38, 0.0  ;;  %v3481_v34 = vmul.f32 0.2, %v3449_v38 }
 0x5e9   :  { %v3497_v9 = vsel %vm3465_vm10, %v3449_v38, %v3481_v34  ;;  %v10941_v38 = vsub.f32 %v3685_v8, %v10933_v55 }
 0x5ea   :  { %v10929_v20 = vadd.f32 %v3497_v9, %v14241_v30  ;;  %v10945_v9 = vsub.f32 %v3683_v27, %v10935_v50 }
 0x5ec   :  { %3534 = vmax.xlane.f32.xlu0 %v10929_v20  ;;  %v3405_v18 = vpop.permute.xlu1 %3404  ;;  %v13987_v27 = vand.u32 4294901760, %v10945_v9 }
 0x5ed   :  { %v3450_v54 = vadd.f32 %v10697_v28, %v3405_v18 }
 0x5ee   :  { %v3928_v1 = vsub.f32 %v10945_v9, %v13987_v27 }
 0x5ef   :  { %v3482_v31 = vmul.f32 0.2, %v3450_v54  ;;  %vm3466_vm11 = vcmp.gt.f32.partialorder %v3450_v54, 0.0 }
 0x5f1   :  { %v3498_v25 = vsel %vm3466_vm11, %v3450_v54, %v3482_v31 }
 0x5f2   :  { %v10938_v62 = vadd.f32 %v3498_v25, %v14242_v19  ;;  %v13988_v25 = vand.u32 4294901760, %v10941_v38 }
 0x5f4   :  { %3536 = vmax.xlane.f32.xlu1 %v10938_v62  ;;  %v3687_v34 = vpop.permute.xlu1 %3686  ;;  %v3922_v54 = vsub.f32 %v10941_v38, %v13988_v25 }
 0x5f5   :  { %v10947_v18 = vand.u32 4294901760, %v3687_v34 }
 0x5f6   :  { %v3923_v61 = vand.u32 4294901760, %v3922_v54 }
 0x5f7   :  { %v10950_v36 = vsub.f32 %v3687_v34, %v10947_v18  ;;  %3729 = vmatpush.msrb.mxu2 %v10947_v18  ;;  %4180 = vmatpush.msrb.mxu1 %v10947_v18 }
 0x5f9   :  { %3731 = vmatpush.msrb.mxu2 %v10933_v55  ;;  %4058 = vmatpush.msrb.mxu0 %v10950_v36  ;;  %v13986_v31 = vand.u32 4294901760, %v10950_v36 }
 0x5fa   :  { %4182 = vmatpush.msrb.mxu1 %v10933_v55 }
 0x5fb   :  { %3733 = vmatpush.msrb.mxu2 %v10935_v50  ;;  %4061 = vmatpush.msrb.mxu0 %v10941_v38  ;;  %v3916_v8 = vsub.f32 %v10950_v36, %v13986_v31  ;;  %v3929_v31 = vand.u32 4294901760, %v3928_v1 }
 0x5fc   :  { %4184 = vmatpush.msrb.mxu1 %v10935_v50 }
 0x5fd   :  { %4064 = vmatpush.msrb.mxu0 %v10945_v9  ;;  %v3917_v34 = vand.u32 4294901760, %v3916_v8  ;;  %v3557_v8 = vsub.f32 %v10716_v57, %v10810_v15 }
 0x5ff   :  { %3918 = vmatpush.msrb.mxu3 %v3917_v34  ;;  %v3574_v54 = vmul.f32 1.442695, %v3557_v8 }
 0x600   :  { %3680 = vrot.lane.b32.xlu0 %v14236_v63, %s8712_s1 }
 0x601   :  { %3924 = vmatpush.msrb.mxu3 %v3923_v61  ;;  %8390 = vpow2.f32 %v3574_v54  ;;  %v10989_v61 = vpop.permute.xlu2 %3428 }
 0x603   :  { %3930 = vmatpush.msrb.mxu3 %v3929_v31 }
 0x607   :  { %v10984_v34 = vpop.eup %8390 }
 0x608   :  { %3678 = vrot.lane.b32.xlu0 %v14235_v41, %s8712_s1 }
 0x609   :  { %v10991_v27 = vpop.xlane.xlu2 %3604 }
 0x60d   :  { %3408 = vperm.xlu1 %8217, %v14225_v16  }
 0x615   :  { %3676 = vrot.lane.b32.xlu1 %v14209_v37, %s8712_s1 }
 0x61d   :  { %3672 = vrot.lane.b32.xlu1 %v14207_v17, %s8712_s1 }
 0x647   :  { %3606 = vadd.xlane.f32.xlu1 %v10984_v34 }
 0x65f   :  { %v10987_v1 = vpop.xlane.xlu0 %3534 }
 0x667   :  { %v11000_v57 = vpop.xlane.xlu1 %3536 }
 0x672   :  { %v3681_v31 = vpop.permute.xlu0 %3680 }
 0x673   :  { %v10993_v25 = vand.u32 4294901760, %v3681_v31 }
 0x675   :  { %v10996_v35 = vsub.f32 %v3681_v31, %v10993_v25  ;;  %3735 = vmatpush.msrb.mxu2 %v10993_v25  ;;  %4186 = vmatpush.msrb.mxu1 %v10993_v25  ;;  %v3675_v31 = vpop.permute.xlu2 %3674 }
 0x676   :  { %v11020_v16 = vand.u32 4294901760, %v3675_v31 }
 0x677   :  { %4067 = vmatpush.msrb.mxu0 %v10996_v35  ;;  %v13990_v15 = vand.u32 4294901760, %v10996_v35 }
 0x678   :  { %v11026_v2 = vsub.f32 %v3675_v31, %v11020_v16 }
 0x679   :  { %v3934_v8 = vsub.f32 %v10996_v35, %v13990_v15 }
 0x67a   :  { %v3679_v54 = vpop.permute.xlu0 %3678 }
 0x67b   :  { %v11007_v26 = vand.u32 4294901760, %v3679_v54  ;;  %v3935_v59 = vand.u32 4294901760, %v3934_v8 }
 0x67d   :  { %v11010_v19 = vsub.f32 %v3679_v54, %v11007_v26  ;;  %3737 = vmatpush.msrb.mxu2 %v11007_v26  ;;  %3936 = vmatpush.msrb.mxu3 %v3935_v59  ;;  %v14243_v59 = vld [vmem:[#allocation46_spill] sm:$0xff]  ;;  %v3671_v43 = vpop.permute.xlu2 %3670 }
 0x67e   :  { %4188 = vmatpush.msrb.mxu1 %v11007_v26 }
 0x67f   :  { %v3409_v63 = vpop.permute.xlu1 %3408  ;;  %4070 = vmatpush.msrb.mxu0 %v11010_v19  ;;  %v13995_v30 = vand.u32 4294901760, %v11010_v19 }
 0x680   :  { %v3451_v15 = vadd.f32 %v10697_v28, %v3409_v63 }
 0x681   :  { %v3940_v8 = vsub.f32 %v11010_v19, %v13995_v30  ;;  %v11031_v30 = vand.u32 4294901760, %v3671_v43 }
 0x682   :  { %vm3467_vm12 = vcmp.gt.f32.partialorder %v3451_v15, 0.0  ;;  %v3483_v54 = vmul.f32 0.2, %v3451_v15 }
 0x683   :  { %v3941_v53 = vand.u32 4294901760, %v3940_v8 }
 0x684   :  { %v3499_v24 = vsel %vm3467_vm12, %v3451_v15, %v3483_v54  ;;  %v11044_v15 = vsub.f32 %v3671_v43, %v11031_v30 }
 0x685   :  { %3942 = vmatpush.msrb.mxu3 %v3941_v53  ;;  %v11023_v41 = vadd.f32 %v3499_v24, %v14243_v59  ;;  %v13996_v53 = vand.u32 4294901760, %v11026_v2 }
 0x686   :  { %v14000_v13 = vand.u32 4294901760, %v11044_v15 }
 0x687   :  { %3538 = vmax.xlane.f32.xlu0 %v11023_v41  ;;  %v3677_v63 = vpop.permute.xlu1 %3676  ;;  %v3952_v8 = vsub.f32 %v11026_v2, %v13996_v53 }
 0x688   :  { %v11029_v56 = vand.u32 4294901760, %v3677_v63 }
 0x689   :  { %v3953_v43 = vand.u32 4294901760, %v3952_v8 }
 0x68a   :  { %v11034_v21 = vsub.f32 %v3677_v63, %v11029_v56  ;;  %3739 = vmatpush.msrb.mxu2 %v11029_v56  ;;  %4190 = vmatpush.msrb.mxu1 %v11029_v56 }
 0x68c   :  { %3741 = vmatpush.msrb.mxu2 %v11020_v16  ;;  %4073 = vmatpush.msrb.mxu0 %v11034_v21  ;;  %v13998_v24 = vand.u32 4294901760, %v11034_v21 }
 0x68d   :  { %4192 = vmatpush.msrb.mxu1 %v11020_v16 }
 0x68e   :  { %4076 = vmatpush.msrb.mxu0 %v11026_v2  ;;  %v3946_v31 = vsub.f32 %v11034_v21, %v13998_v24 }
 0x68f   :  { %v3673_v54 = vpop.permute.xlu1 %3672 }
 0x690   :  { %v11053_v63 = vand.u32 4294901760, %v3673_v54  ;;  %v3947_v59 = vand.u32 4294901760, %v3946_v31 }
 0x692   :  { %v11056_v48 = vsub.f32 %v3673_v54, %v11053_v63  ;;  %3743 = vmatpush.msrb.mxu2 %v11053_v63  ;;  %3948 = vmatpush.msrb.mxu3 %v3947_v59  ;;  %v3964_v59 = vsub.f32 %v11044_v15, %v14000_v13 }
 0x693   :  { %4194 = vmatpush.msrb.mxu1 %v11053_v63 }
 0x694   :  { %3745 = vmatpush.msrb.mxu2 %v11031_v30  ;;  %3954 = vmatpush.msrb.mxu3 %v3953_v43  ;;  %v13997_v53 = vand.u32 4294901760, %v11056_v48  ;;  %v3965_v54 = vand.u32 4294901760, %v3964_v59  ;;  %v14244_v43 = vld [vmem:[#allocation3_spill] sm:$0xff] }
 0x695   :  { %4079 = vmatpush.msrb.mxu0 %v11056_v48  ;;  %4196 = vmatpush.msrb.mxu1 %v11031_v30 }
 0x696   :  { %v3958_v31 = vsub.f32 %v11056_v48, %v13997_v53  ;;  %v3558_v53 = vsub.f32 %v10813_v11, %v10923_v42 }
 0x697   :  { %4082 = vmatpush.msrb.mxu0 %v11044_v15 }
 0x698   :  { %v3959_v8 = vand.u32 4294901760, %v3958_v31  ;;  %v3576_v24 = vmul.f32 1.442695, %v3558_v53 }
 0x69a   :  { %3960 = vmatpush.msrb.mxu3 %v3959_v8  ;;  %8392 = vpow2.f32 %v3576_v24 }
 0x69b   :  { %3416 = vperm.xlu0 %8218, %v14238_v33   ;;  %8394 = vrcp.f32 %v10991_v27 }
 0x69c   :  { %3966 = vmatpush.msrb.mxu3 %v3965_v54 }
 0x6a0   :  { %v11078_v58 = vpop.eup %8392 }
 0x6a1   :  { %v8395_v59 = vpop.eup %8394 }
 0x6a2   :  { %v3652_v8 = vmul.f32 %v8395_v59, %v10829_v39 }
 0x6a3   :  { %3668 = vrot.lane.b32.xlu0 %v14244_v43, %s8712_s1 }
 0x6a4   :  { %v11085_v13 = vand.u32 4294901760, %v3652_v8 }
 0x6a6   :  { %v3749_v11 = vsub.f32 %v3652_v8, %v11085_v13 }
 0x6a8   :  { %v3750_v27 = vand.u32 4294901760, %v3749_v11 }
 0x6aa   :  { %v3751_v59 = vsub.f32 %v3749_v11, %v3750_v27 }
 0x6ab   :  { %3436 = vperm.xlu0 %8218, %v14213_v5  }
 0x6ba   :  { %v3607_v31 = vpop.xlane.xlu1 %3606 }
 0x6bb   :  { %8396 = vrcp.f32 %v3607_v31 }
 0x6c1   :  { %v8397_v33 = vpop.eup %8396 }
 0x6c2   :  { %v3653_v42 = vmul.f32 %v8397_v33, %v10984_v34  ;;  %v3752_v33 = vand.u32 4294901760, %v3751_v59 }
 0x6c4   :  { %v11090_v5 = vand.u32 4294901760, %v3653_v42 }
 0x6c6   :  { %v3757_v37 = vsub.f32 %v3653_v42, %v11090_v5 }
 0x6c8   :  { %v3758_v34 = vand.u32 4294901760, %v3757_v37 }
 0x6ca   :  { %v3759_v42 = vsub.f32 %v3757_v37, %v3758_v34 }
 0x6d5   :  { %3608 = vadd.xlane.f32.xlu0 %v11078_v58 }
 0x6fa   :  { %v11083_v54 = vpop.xlane.xlu0 %3538 }
 0x70d   :  { %v3417_v53 = vpop.permute.xlu0 %3416 }
 0x70e   :  { %v3453_v24 = vadd.f32 %v10697_v28, %v3417_v53  ;;  %v11097_v53 = vpop.f32.mrf.mxu1 }
 0x70f   :  { %14247 = vst [vmem:[#allocation22_spill] sm:$0xff] %v11097_v53  ;;  %v3760_v53 = vand.u32 4294901760, %v3759_v42 }
 0x710   :  { %v3485_v17 = vmul.f32 0.2, %v3453_v24  ;;  %vm3469_vm13 = vcmp.gt.f32.partialorder %v3453_v24, 0.0 }
 0x712   :  { %v3501_v31 = vsel %vm3469_vm13, %v3453_v24, %v3485_v17  ;;  %v14248_v17 = vand.u32 4294901760, %v10837_v32 }
 0x713   :  { %v11093_v39 = vadd.f32 %v3501_v31, %v14245_v47  ;;  %v11101_v31 = vpop.f32.mrf.mxu0  ;;  %v14250_v47 = vand.u32 4294901760, %v10852_v49 }
 0x714   :  { %14249 = vst [vmem:[#allocation23_spill] sm:$0xff] %v11101_v31 }
 0x715   :  { %14246 = vst [vmem:[#allocation62_spill] sm:$0xff] %v11093_v39  ;;  %3542 = vmax.xlane.f32.xlu1 %v11093_v39  ;;  %v3669_v8 = vpop.permute.xlu0 %3668 }
 0x716   :  { %v3746_v3 = vand.u32 4294901760, %v3669_v8  ;;  %v11110_v32 = vpop.f32.mrf.mxu1 }
 0x717   :  { %14253 = vst [vmem:[#allocation24_spill] sm:$0xff] %v11110_v32 }
 0x718   :  { %v3968_v43 = vsub.f32 %v3669_v8, %v3746_v3  ;;  %3747 = vmatpush.msrb.mxu2 %v3746_v3  ;;  %4198 = vmatpush.msrb.mxu1 %v3746_v3  ;;  %v14251_v8 = vand.u32 4294901760, %v10844_v51  ;;  %v14256_v51 = vand.u32 4294901760, %v10903_v14  ;;  %v14265_v14 = vand.u32 4294901760, %v11044_v15 }
 0x719   :  { %3753 = vmatmul.f32.vlgmr.msrb.gmra.mxu2 %v3752_v33  ;;  %4202 = vmatmul.f32.vlgmr.msrb.gmra.mxu1 %v3750_v27  ;;  %v14252_v27 = vand.u32 4294901760, %v10872_v22  ;;  %v14257_v22 = vand.u32 4294901760, %v10950_v36  ;;  %v14261_v36 = vand.u32 4294901760, %v11010_v19 }
 0x71a   :  { %4299 = vmatpush.msra.mxu2 %v14248_v17  ;;  %4085 = vmatpush.msrb.mxu0 %v3968_v43  ;;  %v3969_v24 = vand.u32 4294901760, %v3968_v43 }
 0x71b   :  { %4088 = vmatmul.f32.vlgmr.msrb.gmra.mxu0 %v3749_v11  ;;  %v14254_v11 = vand.u32 4294901760, %v10887_v6  ;;  %v11114_v49 = vpop.f32.mrf.mxu0 }
 0x71c   :  { %4303 = vmatpush.msra.mxu2 %v14250_v47  ;;  %v3970_v59 = vsub.f32 %v3968_v43, %v3969_v24  ;;  %14255 = vst [vmem:[#allocation25_spill] sm:$0xff] %v11114_v49  ;;  %v14258_v47 = vand.u32 4294901760, %v10941_v38 }
 0x71e   :  { %4307 = vmatpush.msra.mxu2 %v14251_v8  ;;  %v3971_v39 = vand.u32 4294901760, %v3970_v59  ;;  %v11171_v19 = vpop.f32.mrf.mxu1  ;;  %v3563_v8 = vsub.f32 %v11023_v41, %v11083_v54 }
 0x71f   :  { %14267 = vst [vmem:[#allocation26_spill] sm:$0xff] %v11171_v19 }
 0x720   :  { %4311 = vmatpush.msra.mxu2 %v14252_v27  ;;  %3972 = vmatpush.msrb.mxu3 %v3971_v39  ;;  %v3560_v39 = vsub.f32 %v10822_v45, %v10925_v7  ;;  %v3561_v45 = vsub.f32 %v10929_v20, %v10987_v1  ;;  %v8713_v7 = vmov 67  }
 0x721   :  { %3761 = vmatmul.f32.gmra.mxu2 %v3760_v53  ;;  %3974 = vmatmul.f32.vlgmr.msrb.gmra.mxu3 %v11085_v13 }
 0x722   :  { %4208 = vmatmul.f32.gmra.mxu1 %v3758_v34  ;;  %4315 = vmatpush.msra.mxu2 %v14254_v11  ;;  %v3580_v53 = vmul.f32 1.442695, %v3560_v39 }
 0x723   :  { %4426 = vmatpush.msra.mxu3 %v10832_v46  ;;  %4093 = vmatmul.f32.gmra.mxu0 %v3757_v37  ;;  %v14259_v46 = vand.u32 4294901760, %v10945_v9  ;;  %v14260_v37 = vand.u32 4294901760, %v10996_v35  ;;  %v14264_v35 = vand.u32 4294901760, %v11056_v48  ;;  %v11157_v48 = vpop.permute.xlu0 %3436 }
 0x724   :  { %4319 = vmatpush.msra.mxu2 %v14256_v51  ;;  %8222 = vset.pattern.permute.xlu0 %v8713_v7  ;;  %v3586_v51 = vmul.f32 1.442695, %v3563_v8  ;;  %v3458_v1 = vadd.f32 %v10697_v28, %v11157_v48 }
 0x725   :  { %4428 = vmatpush.msra.mxu3 %v10849_v4  ;;  %v14263_v4 = vand.u32 4294901760, %v11026_v2  ;;  %8220 = vset.pattern.permute.xlu2 %v8713_v7 }
 0x726   :  { %4323 = vmatpush.msra.mxu2 %v14257_v22  ;;  %vm3474_vm2 = vcmp.gt.f32.partialorder %v3458_v1, 0.0 }
 0x727   :  { %4430 = vmatpush.msra.mxu3 %v10834_v12  ;;  %v14262_v12 = vand.u32 4294901760, %v11034_v21  ;;  %v11150_v21 = vpop.xlane.xlu2 %3540 }
 0x728   :  { %4327 = vmatpush.msra.mxu2 %v14258_v47  ;;  %v3582_v47 = vmul.f32 1.442695, %v3561_v45  ;;  %v14282_v45 = vld [vmem:[#allocation59_spill] sm:$0xff] }
 0x729   :  { %4432 = vmatpush.msra.mxu3 %v10868_v40 }
 0x72a   :  { %3978 = vmatmul.f32.gmra.mxu3 %v11090_v5  ;;  %4331 = vmatpush.msra.mxu2 %v14259_v46  ;;  %v14271_v46 = vld [vmem:[#allocation50_spill] sm:$0xff] }
 0x72b   :  { %4434 = vmatpush.msra.mxu3 %v10883_v0  ;;  %v11168_v0 = vpop.f32.mrf.mxu0 }
 0x72c   :  { %4335 = vmatpush.msra.mxu2 %v14260_v37  ;;  %14266 = vst [vmem:[#allocation29_spill] sm:$0xff] %v11168_v0 }
 0x72d   :  { %4436 = vmatpush.msra.mxu3 %v10898_v44 }
 0x72e   :  { %4339 = vmatpush.msra.mxu2 %v14261_v36  ;;  %3420 = vperm.xlu1 %8217, %v14220_v60  }
 0x72f   :  { %4438 = vmatpush.msra.mxu3 %v10947_v18  ;;  %v3611_v2 = vpop.xlane.xlu2 %3610 }
 0x730   :  { %4343 = vmatpush.msra.mxu2 %v14262_v12  ;;  %8398 = vrcp.f32 %v3611_v2  ;;  %v3456_v12 = vadd.f32 %v10697_v28, %v10989_v61  ;;  %v3562_v61 = vsub.f32 %v10938_v62, %v11000_v57  ;;  %v14276_v62 = vld [vmem:[#allocation3_spill] sm:$0xff]  ;;  %v14277_v57 = vld [vmem:[#allocation6_spill] sm:$0xff] }
 0x731   :  { %4440 = vmatpush.msra.mxu3 %v10933_v55 }
 0x732   :  { %4347 = vmatpush.msra.mxu2 %v14263_v4  ;;  %vm3472_vm3 = vcmp.gt.f32.partialorder %v3456_v12, 0.0 }
 0x733   :  { %4442 = vmatpush.msra.mxu3 %v10935_v50  ;;  %v11174_v9 = vpop.f32.mrf.mxu0 }
 0x734   :  { %4351 = vmatpush.msra.mxu2 %v14264_v35  ;;  %14268 = vst [vmem:[#allocation28_spill] sm:$0xff] %v11174_v9  ;;  %v14272_v35 = vld [vmem:[#allocation54_spill] sm:$0xff] }
 0x735   :  { %4444 = vmatpush.msra.mxu3 %v10993_v25  ;;  %v11176_v25 = vpop.f32.mrf.mxu1 }
 0x736   :  { %4355 = vmatpush.msra.mxu2 %v14265_v14  ;;  %3424 = vperm.xlu1 %8217, %v14217_v29   ;;  %v8399_v50 = vpop.eup %8398  ;;  %14269 = vst [vmem:[#allocation31_spill] sm:$0xff] %v11176_v25 }
 0x737   :  { %4446 = vmatpush.msra.mxu3 %v11007_v26  ;;  %v3655_v55 = vmul.f32 %v8399_v50, %v10920_v52 }
 0x738   :  { %4359 = vmatpush.msra.mxu2 %v3969_v24  ;;  %v14270_v24 = vld [vmem:[#allocation57_spill] sm:$0xff] }
 0x739   :  { %4448 = vmatpush.msra.mxu3 %v11029_v56  ;;  %v11164_v44 = vand.u32 4294901760, %v3655_v55 }
 0x73b   :  { %4450 = vmatpush.msra.mxu3 %v11020_v16 }
 0x73d   :  { %4452 = vmatpush.msra.mxu3 %v11053_v63 }
 0x73e   :  { %3432 = vperm.xlu1 %8217, %v14208_v10  }
 0x73f   :  { %4454 = vmatpush.msra.mxu3 %v11031_v30  ;;  %v3773_v30 = vsub.f32 %v3655_v55, %v11164_v44  ;;  %v3488_v55 = vmul.f32 0.2, %v3456_v12 }
 0x741   :  { %4456 = vmatpush.msra.mxu3 %v3746_v3 }
 0x746   :  { %3440 = vperm.xlu1 %8217, %v14211_v23  }
 0x748   :  { %v3609_v26 = vpop.xlane.xlu0 %3608 }
 0x749   :  { %8400 = vrcp.f32 %v3609_v26  ;;  %v3490_v26 = vmul.f32 0.2, %v3458_v1 }
 0x74a   :  { %8402 = vpow2.f32 %v3580_v53  ;;  %v14280_v53 = vld [vmem:[#allocation5_spill] sm:$0xff] }
 0x74b   :  { %8404 = vpow2.f32 %v3586_v51 }
 0x74c   :  { %8406 = vpow2.f32 %v3582_v47 }
 0x74e   :  { %8221 = vset.pattern.permute.xlu1 %v8713_v7  ;;  %v3564_v7 = vsub.f32 %v14282_v45, %v11150_v21 }
 0x74f   :  { %v8401_v56 = vpop.eup %8400 }
 0x750   :  { %v3654_v16 = vmul.f32 %v8401_v56, %v11078_v58  ;;  %v3774_v58 = vand.u32 4294901760, %v3773_v30  ;;  %v11195_v36 = vpop.eup %8402 }
 0x751   :  { %v11207_v2 = vpop.eup %8404 }
 0x752   :  { %v11162_v40 = vand.u32 4294901760, %v3654_v16  ;;  %v3775_v18 = vsub.f32 %v3773_v30, %v3774_v58  ;;  %v11209_v50 = vpop.eup %8406 }
 0x754   :  { %3982 = vmatmul.f32.gmra.mxu3 %v11162_v40  ;;  %v3765_v3 = vsub.f32 %v3654_v16, %v11162_v40  ;;  %v3776_v15 = vand.u32 4294901760, %v3775_v18  ;;  %v14274_v18 = vld [vmem:[#allocation56_spill] sm:$0xff] }
 0x756   :  { %4098 = vmatmul.f32.gmra.mxu0 %v3765_v3  ;;  %v3766_v6 = vand.u32 4294901760, %v3765_v3 }
 0x758   :  { %4214 = vmatmul.f32.gmra.mxu1 %v3766_v6  ;;  %v3767_v52 = vsub.f32 %v3765_v3, %v3766_v6  ;;  %v3506_v3 = vsel %vm3474_vm2, %v3458_v1, %v3490_v26  ;;  %v3504_v6 = vsel %vm3472_vm3, %v3456_v12, %v3488_v55 }
 0x75a   :  { %v3768_v38 = vand.u32 4294901760, %v3767_v52  ;;  %v3584_v52 = vmul.f32 1.442695, %v3562_v61  ;;  %v11259_v61 = vpop.f32.mrf.mxu1 }
 0x75b   :  { %14284 = vst [vmem:[#allocation17_spill] sm:$0xff] %v11259_v61 }
 0x75c   :  { %3769 = vmatmul.f32.gmra.mxu2 %v3768_v38  ;;  %3986 = vmatmul.f32.gmra.mxu3 %v11164_v44  ;;  %v14273_v38 = vld [vmem:[#allocation41_spill] sm:$0xff]  ;;  %8408 = vpow2.f32 %v3584_v52 }
 0x75e   :  { %4103 = vmatmul.f32.gmra.mxu0 %v3773_v30 }
 0x760   :  { %4220 = vmatmul.f32.gmra.mxu1 %v3774_v58  ;;  %v11218_v58 = vadd.f32 %v3506_v3, %v14273_v38 }
 0x764   :  { %3777 = vmatmul.f32.gmra.mxu2 %v3776_v15 }
 0x788   :  { %v11178_v63 = vpop.xlane.xlu1 %3542 }
 0x7a0   :  { %v3421_v43 = vpop.permute.xlu1 %3420 }
 0x7a1   :  { %v3454_v33 = vadd.f32 %v10697_v28, %v3421_v43  ;;  %v14275_v43 = vld [vmem:[#allocation52_spill] sm:$0xff] }
 0x7a2   :  { %v3520_v39 = vadd.f32 %v3504_v6, %v14275_v43 }
 0x7a3   :  { %vm3470_vm14 = vcmp.gt.f32.partialorder %v3454_v33, 0.0  ;;  %v3486_v34 = vmul.f32 0.2, %v3454_v33 }
 0x7a5   :  { %v3502_v17 = vsel %vm3470_vm14, %v3454_v33, %v3486_v34  ;;  %v14278_v33 = vld [vmem:[#allocation8_spill] sm:$0xff] }
 0x7a6   :  { %v11184_v42 = vadd.f32 %v3502_v17, %v14270_v24  ;;  %v14279_v34 = vld [vmem:[#allocation4_spill] sm:$0xff]  ;;  %v14281_v17 = vld [vmem:[#allocation62_spill] sm:$0xff] }
 0x7a8   :  { %v3425_v59 = vpop.permute.xlu1 %3424  ;;  %3544 = vmax.xlane.f32.xlu2 %v11184_v42 }
 0x7a9   :  { %v3455_v27 = vadd.f32 %v10697_v28, %v3425_v59  ;;  %v3565_v59 = vsub.f32 %v14281_v17, %v11178_v63 }
 0x7ab   :  { %vm3471_vm15 = vcmp.gt.f32.partialorder %v3455_v27, 0.0  ;;  %v3487_v11 = vmul.f32 0.2, %v3455_v27  ;;  %v3590_v8 = vmul.f32 1.442695, %v3565_v59 }
 0x7ad   :  { %v3503_v22 = vsel %vm3471_vm15, %v3455_v27, %v3487_v11  ;;  %8410 = vpow2.f32 %v3590_v8  ;;  %v3588_v11 = vmul.f32 1.442695, %v3564_v7 }
 0x7ae   :  { %v11193_v37 = vadd.f32 %v3503_v22, %v14271_v46 }
 0x7af   :  { %8412 = vpow2.f32 %v3588_v11 }
 0x7b0   :  { %3546 = vmax.xlane.f32.xlu1 %v11193_v37  ;;  %v3433_v41 = vpop.permute.xlu1 %3432  ;;  %3612 = vadd.xlane.f32.xlu2 %v11195_v36 }
 0x7b1   :  { %v3457_v20 = vadd.f32 %v10697_v28, %v3433_v41 }
 0x7b3   :  { %vm3473_vm1 = vcmp.gt.f32.partialorder %v3457_v20, 0.0  ;;  %v3489_v54 = vmul.f32 0.2, %v3457_v20 }
 0x7b5   :  { %v3505_v4 = vsel %vm3473_vm1, %v3457_v20, %v3489_v54 }
 0x7b6   :  { %v11205_v14 = vadd.f32 %v3505_v4, %v14272_v35 }
 0x7b8   :  { %3618 = vadd.xlane.f32.xlu1 %v11207_v2  ;;  %3550 = vmax.xlane.f32.xlu0 %v11205_v14  ;;  %v3441_v48 = vpop.permute.xlu1 %3440 }
 0x7b9   :  { %v3459_v56 = vadd.f32 %v10697_v28, %v3441_v48  ;;  %3614 = vadd.xlane.f32.xlu2 %v11209_v50  ;;  %v11226_v28 = vpop.eup %8408  ;;  %v11257_v48 = vpop.f32.mrf.mxu0 }
 0x7ba   :  { %v11236_v27 = vpop.eup %8410  ;;  %14283 = vst [vmem:[#allocation30_spill] sm:$0xff] %v11257_v48 }
 0x7bb   :  { %vm3475_vm4 = vcmp.gt.f32.partialorder %v3459_v56, 0.0  ;;  %v3491_v16 = vmul.f32 0.2, %v3459_v56  ;;  %v11241_v51 = vpop.eup %8412 }
 0x7bd   :  { %v3507_v30 = vsel %vm3475_vm4, %v3459_v56, %v3491_v16 }
 0x7be   :  { %v11221_v15 = vadd.f32 %v3507_v30, %v14274_v18 }
 0x7c0   :  { %3552 = vmax.xlane.f32.xlu1 %v11218_v58  ;;  %3554 = vmax.xlane.f32.xlu0 %v11221_v15 }
 0x7c1   :  { %3548 = vmax.xlane.f32.xlu2 %v3520_v39  ;;  %v11268_v11 = vpop.f32.mrf.mxu0 }
 0x7c2   :  { %14285 = vst [vmem:[#allocation18_spill] sm:$0xff] %v11268_v11 }
 0x7c9   :  { %3616 = vadd.xlane.f32.xlu2 %v11226_v28 }
 0x7d4   :  { %4700 = vperm.xlu0 %8222, %v14276_v62  }
 0x7d9   :  { %4712 = vperm.xlu1 %8221, %v14277_v57  }
 0x7dc   :  { %4716 = vperm.xlu0 %8222, %v14278_v33  }
 0x7e1   :  { %4704 = vperm.xlu2 %8220, %v14279_v34  }
 0x7e9   :  { %4708 = vperm.xlu2 %8220, %v14280_v53  }
 0x803   :  { %3622 = vadd.xlane.f32.xlu1 %v11236_v27 }
 0x812   :  { %3620 = vadd.xlane.f32.xlu2 %v11241_v51 }
 0x81b   :  { %v3545_v22 = vpop.xlane.xlu2 %3544 }
 0x81c   :  { %v3566_v47 = vsub.f32 %v11184_v42, %v3545_v22 }
 0x81e   :  { %v3592_v41 = vmul.f32 1.442695, %v3566_v47  ;;  %v11270_v47 = vpop.f32.mrf.mxu1 }
 0x81f   :  { %14286 = vst [vmem:[#allocation14_spill] sm:$0xff] %v11270_v47 }
 0x820   :  { %8414 = vpow2.f32 %v3592_v41 }
 0x823   :  { %v3547_v63 = vpop.xlane.xlu1 %3546  ;;  %v3613_v20 = vpop.xlane.xlu2 %3612 }
 0x824   :  { %v3567_v1 = vsub.f32 %v11193_v37, %v3547_v63  ;;  %8416 = vrcp.f32 %v3613_v20 }
 0x826   :  { %v11246_v54 = vpop.eup %8414  ;;  %v3594_v21 = vmul.f32 1.442695, %v3567_v1 }
 0x827   :  { %3624 = vadd.xlane.f32.xlu2 %v11246_v54 }
 0x828   :  { %8418 = vpow2.f32 %v3594_v21 }
 0x82a   :  { %v8417_v12 = vpop.eup %8416 }
 0x82b   :  { %v3656_v4 = vmul.f32 %v8417_v12, %v11195_v36  ;;  %v11261_v3 = vpop.xlane.xlu0 %3550  ;;  %v3619_v59 = vpop.xlane.xlu1 %3618 }
 0x82c   :  { %v3615_v26 = vpop.xlane.xlu2 %3614 }
 0x82d   :  { %8420 = vrcp.f32 %v3615_v26  ;;  %v11250_v55 = vand.u32 4294901760, %v3656_v4  ;;  %v14287_v26 = vld [vmem:[#allocation42_spill] sm:$0xff] }
 0x82e   :  { %v11252_v42 = vpop.eup %8418  ;;  %8422 = vrcp.f32 %v3619_v59 }
 0x82f   :  { %3626 = vadd.xlane.f32.xlu1 %v11252_v42  ;;  %3990 = vmatmul.f32.gmra.mxu3 %v11250_v55  ;;  %v3781_v37 = vsub.f32 %v3656_v4, %v11250_v55 }
 0x831   :  { %4108 = vmatmul.f32.gmra.mxu0 %v3781_v37  ;;  %v3782_v56 = vand.u32 4294901760, %v3781_v37 }
 0x833   :  { %v8421_v16 = vpop.eup %8420  ;;  %4226 = vmatmul.f32.gmra.mxu1 %v3782_v56  ;;  %v3783_v36 = vsub.f32 %v3781_v37, %v3782_v56  ;;  %v11272_v41 = vpop.xlane.xlu0 %3554  ;;  %v11279_v37 = vperm.slane %v14287_v26, 7 }
 0x834   :  { %v3657_v6 = vmul.f32 %v8421_v16, %v11209_v50  ;;  %v3549_v30 = vpop.xlane.xlu2 %3548  ;;  %v8423_v20 = vpop.eup %8422 }
 0x835   :  { %v3568_v52 = vsub.f32 %v3520_v39, %v3549_v30  ;;  %v3784_v17 = vand.u32 4294901760, %v3783_v36  ;;  %v3659_v21 = vmul.f32 %v8423_v20, %v11207_v2  ;;  %v3553_v12 = vpop.xlane.xlu1 %3552 }
 0x836   :  { %v11264_v8 = vand.u32 4294901760, %v3657_v6  ;;  %v3570_v36 = vsub.f32 %v11218_v58, %v3553_v12 }
 0x837   :  { %v3596_v45 = vmul.f32 1.442695, %v3568_v52  ;;  %3785 = vmatmul.f32.gmra.mxu2 %v3784_v17  ;;  %v11286_v17 = vand.u32 4294901760, %v3659_v21 }
 0x838   :  { %3994 = vmatmul.f32.gmra.mxu3 %v11264_v8  ;;  %v3789_v7 = vsub.f32 %v3657_v6, %v11264_v8 }
 0x839   :  { %8424 = vpow2.f32 %v3596_v45  ;;  %v11289_v45 = vpop.f32.mrf.mxu0  ;;  %v3805_v12 = vsub.f32 %v3659_v21, %v11286_v17  ;;  %v3569_v21 = vsub.f32 %v11205_v14, %v11261_v3  ;;  %v14294_v14 = vld [vmem:[#allocation49_spill] sm:$0xff] }
 0x83a   :  { %4113 = vmatmul.f32.gmra.mxu0 %v3789_v7  ;;  %v3790_v22 = vand.u32 4294901760, %v3789_v7  ;;  %14288 = vst [vmem:[#allocation13_spill] sm:$0xff] %v11289_v45 }
 0x83c   :  { %v3617_v50 = vpop.xlane.xlu2 %3616  ;;  %4232 = vmatmul.f32.gmra.mxu1 %v3790_v22  ;;  %v3791_v39 = vsub.f32 %v3789_v7, %v3790_v22  ;;  %v3600_v7 = vmul.f32 1.442695, %v3570_v36 }
 0x83d   :  { %8426 = vrcp.f32 %v3617_v50  ;;  %v11293_v50 = vpop.f32.mrf.mxu1 }
 0x83e   :  { %v3792_v63 = vand.u32 4294901760, %v3791_v39  ;;  %14289 = vst [vmem:[#allocation3_spill] sm:$0xff] %v11293_v50  ;;  %v14290_v39 = vld [vmem:[#allocation43_spill] sm:$0xff]  ;;  %8428 = vpow2.f32 %v3600_v7  ;;  %v14304_v50 = vld [vmem:[#allocation9_spill] sm:$0xff] }
 0x83f   :  { %v11274_v1 = vpop.eup %8424 }
 0x840   :  { %3793 = vmatmul.f32.gmra.mxu2 %v3792_v63  ;;  %3628 = vadd.xlane.f32.xlu2 %v11274_v1 }
 0x843   :  { %v8427_v4 = vpop.eup %8426 }
 0x844   :  { %v3658_v56 = vmul.f32 %v8427_v4, %v11226_v28  ;;  %v4705_v16 = vpop.permute.xlu2 %4704 }
 0x845   :  { %v4765_v6 = vadd.f32 %v11279_v37, %v4705_v16  ;;  %v14291_v16 = vld [vmem:[#allocation44_spill] sm:$0xff] }
 0x846   :  { %v4701_v30 = vpop.permute.xlu0 %4700  ;;  %v11284_v52 = vand.u32 4294901760, %v3658_v56 }
 0x847   :  { %vm4781_vm5 = vcmp.gt.f32.partialorder %v4765_v6, 0.0  ;;  %v4797_v59 = vmul.f32 0.2, %v4765_v6  ;;  %v4764_v2 = vadd.f32 %v11279_v37, %v4701_v30 }
 0x848   :  { %3998 = vmatmul.f32.gmra.mxu3 %v11284_v52  ;;  %v3797_v28 = vsub.f32 %v3658_v56, %v11284_v52 }
 0x849   :  { %vm4780_vm6 = vcmp.gt.f32.partialorder %v4764_v2, 0.0  ;;  %v4796_v58 = vmul.f32 0.2, %v4764_v2  ;;  %v4813_v22 = vsel %vm4781_vm5, %v4765_v6, %v4797_v59 }
 0x84a   :  { %4118 = vmatmul.f32.gmra.mxu0 %v3797_v28  ;;  %v11296_v63 = vadd.f32 %v4813_v22, %v14290_v39  ;;  %v3798_v20 = vand.u32 4294901760, %v3797_v28  ;;  %v3806_v22 = vand.u32 4294901760, %v3805_v12  ;;  %v11313_v39 = vpop.f32.mrf.mxu1 }
 0x84b   :  { %v4812_v4 = vsel %vm4780_vm6, %v4764_v2, %v4796_v58  ;;  %14293 = vst [vmem:[#allocation8_spill] sm:$0xff] %v11313_v39 }
 0x84c   :  { %4846 = vmax.xlane.f32.xlu1 %v11296_v63  ;;  %v4709_v26 = vpop.permute.xlu2 %4708  ;;  %4238 = vmatmul.f32.gmra.mxu1 %v3798_v20  ;;  %v11301_v56 = vadd.f32 %v4812_v4, %v14291_v16  ;;  %v3799_v36 = vsub.f32 %v3797_v28, %v3798_v20  ;;  %v11309_v20 = vpop.f32.mrf.mxu0  ;;  %v3807_v4 = vsub.f32 %v3805_v12, %v3806_v22 }
 0x84d   :  { %v4766_v6 = vadd.f32 %v11279_v37, %v4709_v26  ;;  %14292 = vst [vmem:[#allocation6_spill] sm:$0xff] %v11309_v20  ;;  %v11311_v26 = vpop.eup %8428 }
 0x84e   :  { %4844 = vmax.xlane.f32.xlu0 %v11301_v56  ;;  %v4717_v30 = vpop.permute.xlu0 %4716  ;;  %v3800_v59 = vand.u32 4294901760, %v3799_v36  ;;  %v3598_v36 = vmul.f32 1.442695, %v3569_v21 }
 0x84f   :  { %vm4782_vm7 = vcmp.gt.f32.partialorder %v4766_v6, 0.0  ;;  %v4798_v2 = vmul.f32 0.2, %v4766_v6  ;;  %v4768_v58 = vadd.f32 %v11279_v37, %v4717_v30  ;;  %v14295_v30 = vld [vmem:[#allocation45_spill] sm:$0xff] }
 0x850   :  { %3801 = vmatmul.f32.gmra.mxu2 %v3800_v59  ;;  %4002 = vmatmul.f32.gmra.mxu3 %v11286_v17  ;;  %8430 = vpow2.f32 %v3598_v36  ;;  %v14297_v36 = vld [vmem:[#allocation15_spill] sm:$0xff] }
 0x851   :  { %vm4784_vm0 = vcmp.gt.f32.partialorder %v4768_v58, 0.0  ;;  %v4800_v28 = vmul.f32 0.2, %v4768_v58  ;;  %v4814_v7 = vsel %vm4782_vm7, %v4766_v6, %v4798_v2  ;;  %v4713_v6 = vpop.permute.xlu1 %4712 }
 0x852   :  { %4123 = vmatmul.f32.gmra.mxu0 %v3805_v12  ;;  %v11320_v59 = vadd.f32 %v4814_v7, %v14295_v30  ;;  %v3808_v12 = vand.u32 4294901760, %v3807_v4  ;;  %v4767_v21 = vadd.f32 %v11279_v37, %v4713_v6  ;;  %v14296_v7 = vld [vmem:[#allocation47_spill] sm:$0xff]  ;;  %v11356_v30 = vpop.f32.mrf.mxu3  ;;  %v11368_v45 = vpop.f32.mrf.mxu1 }
 0x853   :  { %v4816_v16 = vsel %vm4784_vm0, %v4768_v58, %v4800_v28  ;;  %v14298_v6 = vld [vmem:[#allocation7_spill] sm:$0xff]  ;;  %14302 = vst [vmem:[#allocation4_spill] sm:$0xff] %v11356_v30 }
 0x854   :  { %3632 = vadd.xlane.f32.xlu1 %v11311_v26  ;;  %4244 = vmatmul.f32.gmra.mxu1 %v3806_v22  ;;  %v11317_v3 = vadd.f32 %v4816_v16, %v14294_v14  ;;  %v4799_v58 = vmul.f32 0.2, %v4767_v21  ;;  %vm4783_vm8 = vcmp.gt.f32.partialorder %v4767_v21, 0.0  ;;  %v3571_v16 = vsub.f32 %v11221_v15, %v11272_v41  ;;  %v14299_v15 = vld [vmem:[#allocation12_spill] sm:$0xff]  ;;  %v11362_v20 = vpop.f32.mrf.mxu0  ;;  %14305 = vst [vmem:[#allocation62_spill] sm:$0xff] %v11368_v45 }
 0x855   :  { %14303 = vst [vmem:[#allocation5_spill] sm:$0xff] %v11362_v20 }
 0x856   :  { %4852 = vmax.xlane.f32.xlu2 %v11317_v3  ;;  %4848 = vmax.xlane.f32.xlu0 %v11320_v59  ;;  %v11325_v2 = vpop.eup %8430  ;;  %v4815_v22 = vsel %vm4783_vm8, %v4767_v21, %v4799_v58  ;;  %v3602_v28 = vmul.f32 1.442695, %v3571_v16  ;;  %v14300_v21 = vld [vmem:[#allocation16_spill] sm:$0xff]  ;;  %v14301_v16 = vld [vmem:[#allocation10_spill] sm:$0xff] }
 0x857   :  { %v11331_v14 = vadd.f32 %v4815_v22, %v14296_v7 }
 0x858   :  { %3809 = vmatmul.f32.gmra.mxu2 %v3808_v12  ;;  %8432 = vpow2.f32 %v3602_v28 }
 0x85a   :  { %v11373_v61 = vpop.f32.mrf.mxu3  ;;  %v11378_v9 = vpop.f32.mrf.mxu1 }
 0x85b   :  { %14307 = vst [vmem:[#allocation42_spill] sm:$0xff] %v11373_v61 }
 0x85c   :  { %v11376_v48 = vpop.f32.mrf.mxu0  ;;  %14309 = vst [vmem:[#allocation7_spill] sm:$0xff] %v11378_v9 }
 0x85d   :  { %14308 = vst [vmem:[#allocation15_spill] sm:$0xff] %v11376_v48  ;;  %v14327_v48 = vld [vmem:[#allocation51_spill] sm:$0xff] }
 0x85e   :  { %3630 = vadd.xlane.f32.xlu0 %v11325_v2  ;;  %v11334_v4 = vpop.eup %8432 }
 0x864   :  { %v11387_v32 = vpop.f32.mrf.mxu0 }
 0x865   :  { %14312 = vst [vmem:[#allocation10_spill] sm:$0xff] %v11387_v32 }
 0x866   :  { %4850 = vmax.xlane.f32.xlu0 %v11331_v14 }
 0x86d   :  { %5016 = vrot.lane.b32.xlu1 %v14297_v36, %s8714_s24 }
 0x86e   :  { %4720 = vperm.xlu2 %8220, %v14298_v6   ;;  %3634 = vadd.xlane.f32.xlu0 %v11334_v4 }
 0x875   :  { %5008 = vrot.lane.b32.xlu1 %v14220_v60, %s8714_s24 }
 0x876   :  { %5018 = vrot.lane.b32.xlu2 %v14211_v23, %s8714_s24  ;;  %v3623_v41 = vpop.xlane.xlu1 %3622 }
 0x877   :  { %8434 = vrcp.f32 %v3623_v41 }
 0x87d   :  { %5006 = vrot.lane.b32.xlu1 %v14299_v15, %s8714_s24  ;;  %v8435_v58 = vpop.eup %8434 }
 0x87e   :  { %5014 = vrot.lane.b32.xlu2 %v14208_v10, %s8714_s24  ;;  %v3661_v22 = vmul.f32 %v8435_v58, %v11236_v27 }
 0x880   :  { %v11360_v39 = vand.u32 4294901760, %v3661_v22 }
 0x882   :  { %5010 = vrot.lane.b32.xlu0 %v14217_v29, %s8714_s24 }
 0x885   :  { %v3621_v12 = vpop.xlane.xlu2 %3620 }
 0x886   :  { %8436 = vrcp.f32 %v3621_v12  ;;  %5012 = vrot.lane.b32.xlu2 %v14300_v21, %s8714_s24 }
 0x88a   :  { %5004 = vrot.lane.b32.xlu0 %v14301_v16, %s8714_s24 }
 0x88c   :  { %v8437_v28 = vpop.eup %8436 }
 0x88d   :  { %v3660_v7 = vmul.f32 %v8437_v28, %v11241_v51  ;;  %v3821_v51 = vsub.f32 %v3661_v22, %v11360_v39  ;;  %v11371_v28 = vpop.f32.mrf.mxu2 }
 0x88e   :  { %14306 = vst [vmem:[#allocation59_spill] sm:$0xff] %v11371_v28 }
 0x88f   :  { %v11358_v41 = vand.u32 4294901760, %v3660_v7  ;;  %v3822_v11 = vand.u32 4294901760, %v3821_v51 }
 0x891   :  { %4006 = vmatmul.f32.gmra.mxu3 %v11358_v41  ;;  %v3813_v12 = vsub.f32 %v3660_v7, %v11358_v41  ;;  %v3823_v25 = vsub.f32 %v3821_v51, %v3822_v11 }
 0x892   :  { %5002 = vrot.lane.b32.xlu0 %v14304_v50, %s8714_s24 }
 0x893   :  { %4128 = vmatmul.f32.gmra.mxu0 %v3813_v12  ;;  %v3814_v27 = vand.u32 4294901760, %v3813_v12  ;;  %v3824_v22 = vand.u32 4294901760, %v3823_v25 }
 0x895   :  { %4250 = vmatmul.f32.gmra.mxu1 %v3814_v27  ;;  %v3815_v58 = vsub.f32 %v3813_v12, %v3814_v27  ;;  %v11380_v27 = vpop.f32.mrf.mxu2 }
 0x896   :  { %14310 = vst [vmem:[#allocation12_spill] sm:$0xff] %v11380_v27 }
 0x897   :  { %v3816_v47 = vand.u32 4294901760, %v3815_v58 }
 0x899   :  { %3817 = vmatmul.f32.gmra.mxu2 %v3816_v47  ;;  %4010 = vmatmul.f32.gmra.mxu3 %v11360_v39  ;;  %v11383_v47 = vpop.f32.mrf.mxu3 }
 0x89a   :  { %v3625_v7 = vpop.xlane.xlu2 %3624  ;;  %14311 = vst [vmem:[#allocation16_spill] sm:$0xff] %v11383_v47 }
 0x89b   :  { %8438 = vrcp.f32 %v3625_v7  ;;  %4133 = vmatmul.f32.gmra.mxu0 %v3821_v51 }
 0x89d   :  { %4256 = vmatmul.f32.gmra.mxu1 %v3822_v11  ;;  %v11391_v11 = vpop.f32.mrf.mxu1 }
 0x89e   :  { %14313 = vst [vmem:[#allocation9_spill] sm:$0xff] %v11391_v11  ;;  %v11402_v11 = vpop.f32.mrf.mxu0 }
 0x89f   :  { %14316 = vst [vmem:[#allocation65_spill] sm:$0xff] %v11402_v11 }
 0x8a1   :  { %v8439_v12 = vpop.eup %8438  ;;  %3825 = vmatmul.f32.gmra.mxu2 %v3824_v22  ;;  %v11398_v31 = vpop.f32.mrf.mxu3 }
 0x8a2   :  { %v3662_v58 = vmul.f32 %v8439_v12, %v11246_v54  ;;  %v3627_v19 = vpop.xlane.xlu1 %3626  ;;  %14315 = vst [vmem:[#allocation64_spill] sm:$0xff] %v11398_v31 }
 0x8a3   :  { %8440 = vrcp.f32 %v3627_v19  ;;  %v11394_v19 = vpop.f32.mrf.mxu2 }
 0x8a4   :  { %v11385_v0 = vand.u32 4294901760, %v3662_v58  ;;  %14314 = vst [vmem:[#allocation63_spill] sm:$0xff] %v11394_v19 }
 0x8a5   :  { %v11404_v47 = vpop.f32.mrf.mxu1 }
 0x8a6   :  { %4014 = vmatmul.f32.gmra.mxu3 %v11385_v0  ;;  %v3829_v51 = vsub.f32 %v3662_v58, %v11385_v0  ;;  %14317 = vst [vmem:[#allocation66_spill] sm:$0xff] %v11404_v47 }
 0x8a8   :  { %4138 = vmatmul.f32.gmra.mxu0 %v3829_v51  ;;  %v3830_v25 = vand.u32 4294901760, %v3829_v51 }
 0x8a9   :  { %v8441_v7 = vpop.eup %8440 }
 0x8aa   :  { %v3663_v22 = vmul.f32 %v8441_v7, %v11252_v42  ;;  %4262 = vmatmul.f32.gmra.mxu1 %v3830_v25  ;;  %v3831_v54 = vsub.f32 %v3829_v51, %v3830_v25 }
 0x8ab   :  { %v11406_v7 = vpop.f32.mrf.mxu2 }
 0x8ac   :  { %v3832_v12 = vand.u32 4294901760, %v3831_v54  ;;  %v11396_v49 = vand.u32 4294901760, %v3663_v22  ;;  %14318 = vst [vmem:[#allocation67_spill] sm:$0xff] %v11406_v7 }
 0x8ae   :  { %3833 = vmatmul.f32.gmra.mxu2 %v3832_v12  ;;  %4018 = vmatmul.f32.gmra.mxu3 %v11396_v49  ;;  %v3837_v58 = vsub.f32 %v3663_v22, %v11396_v49  ;;  %v11408_v12 = vpop.f32.mrf.mxu3 }
 0x8af   :  { %14319 = vst [vmem:[#allocation68_spill] sm:$0xff] %v11408_v12  ;;  %v11422_v12 = vpop.f32.mrf.mxu1 }
 0x8b0   :  { %4143 = vmatmul.f32.gmra.mxu0 %v3837_v58  ;;  %v3838_v32 = vand.u32 4294901760, %v3837_v58  ;;  %14322 = vst [vmem:[#allocation71_spill] sm:$0xff] %v11422_v12 }
 0x8b2   :  { %4268 = vmatmul.f32.gmra.mxu1 %v3838_v32  ;;  %v3839_v42 = vsub.f32 %v3837_v58, %v3838_v32  ;;  %v11417_v58 = vpop.f32.mrf.mxu0 }
 0x8b3   :  { %v3629_v51 = vpop.xlane.xlu2 %3628  ;;  %v11413_v11 = vpop.f32.mrf.mxu2  ;;  %14321 = vst [vmem:[#allocation70_spill] sm:$0xff] %v11417_v58 }
 0x8b4   :  { %v3840_v25 = vand.u32 4294901760, %v3839_v42  ;;  %8442 = vrcp.f32 %v3629_v51  ;;  %14320 = vst [vmem:[#allocation69_spill] sm:$0xff] %v11413_v11 }
 0x8b6   :  { %3841 = vmatmul.f32.gmra.mxu2 %v3840_v25  ;;  %v11424_v7 = vpop.f32.mrf.mxu3 }
 0x8b7   :  { %14323 = vst [vmem:[#allocation72_spill] sm:$0xff] %v11424_v7 }
 0x8ba   :  { %v8443_v54 = vpop.eup %8442 }
 0x8bb   :  { %v3664_v31 = vmul.f32 %v8443_v54, %v11274_v1  ;;  %v11428_v19 = vpop.f32.mrf.mxu2 }
 0x8bc   :  { %14324 = vst [vmem:[#allocation73_spill] sm:$0xff] %v11428_v19 }
 0x8bd   :  { %v11411_v22 = vand.u32 4294901760, %v3664_v31 }
 0x8bf   :  { %4022 = vmatmul.f32.gmra.mxu3 %v11411_v22  ;;  %v3845_v47 = vsub.f32 %v3664_v31, %v11411_v22  ;;  %v11419_v42 = vpop.xlane.xlu1 %4846 }
 0x8c1   :  { %v4845_v32 = vpop.xlane.xlu0 %4844  ;;  %4148 = vmatmul.f32.gmra.mxu0 %v3845_v47  ;;  %v3846_v25 = vand.u32 4294901760, %v3845_v47 }
 0x8c2   :  { %v4876_v51 = vsub.f32 %v11301_v56, %v4845_v32  ;;  %v11435_v32 = vpop.f32.mrf.mxu3 }
 0x8c3   :  { %4274 = vmatmul.f32.gmra.mxu1 %v3846_v25  ;;  %v3847_v54 = vsub.f32 %v3845_v47, %v3846_v25  ;;  %14325 = vst [vmem:[#allocation74_spill] sm:$0xff] %v11435_v32 }
 0x8c4   :  { %v4892_v1 = vmul.f32 1.442695, %v4876_v51 }
 0x8c5   :  { %v3848_v11 = vand.u32 4294901760, %v3847_v54 }
 0x8c6   :  { %8444 = vpow2.f32 %v4892_v1 }
 0x8c7   :  { %3849 = vmatmul.f32.gmra.mxu2 %v3848_v11  ;;  %v3633_v56 = vpop.xlane.xlu1 %3632  ;;  %v11438_v11 = vpop.f32.mrf.mxu2 }
 0x8c8   :  { %8446 = vrcp.f32 %v3633_v56  ;;  %14326 = vst [vmem:[#allocation75_spill] sm:$0xff] %v11438_v11 }
 0x8c9   :  { %v11426_v31 = vpop.xlane.xlu0 %4848  ;;  %v11430_v58 = vpop.xlane.xlu2 %4852 }
 0x8ca   :  { %v11444_v27 = vpop.f32.mrf.mxu3 }
 0x8cb   :  { %14328 = vst [vmem:[#allocation76_spill] sm:$0xff] %v11444_v27 }
 0x8cc   :  { %v11432_v9 = vpop.eup %8444 }
 0x8cd   :  { %4924 = vadd.xlane.f32.xlu0 %v11432_v9 }
 0x8ce   :  { %v8447_v1 = vpop.eup %8446 }
 0x8cf   :  { %v3666_v19 = vmul.f32 %v8447_v1, %v11311_v26  ;;  %v11458_v26 = vpop.f32.mrf.mxu1 }
 0x8d0   :  { %14331 = vst [vmem:[#allocation79_spill] sm:$0xff] %v11458_v26 }
 0x8d1   :  { %v3631_v47 = vpop.xlane.xlu0 %3630  ;;  %v4721_v51 = vpop.permute.xlu2 %4720 }
 0x8d2   :  { %8448 = vrcp.f32 %v3631_v47  ;;  %v4769_v25 = vadd.f32 %v11279_v37, %v4721_v51  ;;  %v11483_v30 = vpop.f32.mrf.mxu3 }
 0x8d3   :  { %14334 = vst [vmem:[#allocation82_spill] sm:$0xff] %v11483_v30 }
 0x8d4   :  { %vm4785_vm9 = vcmp.gt.f32.partialorder %v4769_v25, 0.0  ;;  %v4801_v54 = vmul.f32 0.2, %v4769_v25 }
 0x8d6   :  { %v4817_v7 = vsel %vm4785_vm9, %v4769_v25, %v4801_v54  ;;  %v11454_v25 = vpop.f32.mrf.mxu0  ;;  %v11456_v54 = vand.u32 4294901760, %v3666_v19 }
 0x8d7   :  { %v11442_v61 = vadd.f32 %v4817_v7, %v14327_v48  ;;  %14330 = vst [vmem:[#allocation78_spill] sm:$0xff] %v11454_v25 }
 0x8d8   :  { %v8449_v12 = vpop.eup %8448 }
 0x8d9   :  { %v3665_v56 = vmul.f32 %v8449_v12, %v11325_v2  ;;  %v11447_v47 = vpop.xlane.xlu0 %4850  ;;  %4854 = vmax.xlane.f32.xlu2 %v11442_v61  ;;  %v5019_v51 = vpop.permute.xlu2 %5018 }
 0x8da   :  { %v11450_v32 = vand.u32 4294901760, %v5019_v51  ;;  %v11466_v12 = vpop.f32.mrf.mxu2 }
 0x8db   :  { %v11452_v11 = vand.u32 4294901760, %v3665_v56  ;;  %14332 = vst [vmem:[#allocation80_spill] sm:$0xff] %v11466_v12 }
 0x8dc   :  { %14329 = vst [vmem:[#allocation77_spill] sm:$0xff] %v11450_v32  ;;  %v11461_v7 = vsub.f32 %v5019_v51, %v11450_v32  ;;  %5037 = vmatpush.msra.mxu0 %v11450_v32  ;;  %5488 = vmatpush.msrb.mxu3 %v11450_v32  ;;  %v3861_v51 = vsub.f32 %v3666_v19, %v11456_v54 }
 0x8dd   :  { %v3853_v2 = vsub.f32 %v3665_v56, %v11452_v11  ;;  %4026 = vmatmul.f32.gmra.mxu3 %v11452_v11 }
 0x8de   :  { %v14007_v1 = vand.u32 4294901760, %v11461_v7  ;;  %5360 = vmatpush.msrb.mxu2 %v11461_v7  ;;  %v3862_v18 = vand.u32 4294901760, %v3861_v51 }
 0x8df   :  { %v5017_v48 = vpop.permute.xlu1 %5016  ;;  %4153 = vmatmul.f32.gmra.mxu0 %v3853_v2  ;;  %v3854_v27 = vand.u32 4294901760, %v3853_v2 }
 0x8e0   :  { %v11471_v26 = vand.u32 4294901760, %v5017_v48  ;;  %v5200_v56 = vsub.f32 %v11461_v7, %v14007_v1 }
 0x8e1   :  { %4736 = vperm.xlu0 %8222, %v14299_v15   ;;  %v3635_v25 = vpop.xlane.xlu0 %3634  ;;  %4280 = vmatmul.f32.gmra.mxu1 %v3854_v27  ;;  %v3855_v12 = vsub.f32 %v3853_v2, %v3854_v27  ;;  %v5015_v20 = vpop.permute.xlu2 %5014 }
 0x8e2   :  { %14333 = vst [vmem:[#allocation81_spill] sm:$0xff] %v11471_v26  ;;  %v11479_v45 = vsub.f32 %v5017_v48, %v11471_v26  ;;  %8450 = vrcp.f32 %v3635_v25  ;;  %5039 = vmatpush.msra.mxu0 %v11471_v26  ;;  %5490 = vmatpush.msrb.mxu3 %v11471_v26  ;;  %v11485_v19 = vand.u32 4294901760, %v5015_v20  ;;  %v5201_v15 = vand.u32 4294901760, %v5200_v56  ;;  %v11493_v25 = vpop.f32.mrf.mxu0 }
 0x8e3   :  { %v3856_v28 = vand.u32 4294901760, %v3855_v12  ;;  %14336 = vst [vmem:[#allocation84_spill] sm:$0xff] %v11493_v25  ;;  %v11499_v12 = vpop.f32.mrf.mxu1  ;;  %v3863_v25 = vsub.f32 %v3861_v51, %v3862_v18 }
 0x8e4   :  { %14335 = vst [vmem:[#allocation83_spill] sm:$0xff] %v11485_v19  ;;  %5363 = vmatpush.msrb.mxu2 %v11479_v45  ;;  %v14008_v27 = vand.u32 4294901760, %v11479_v45  ;;  %v11490_v48 = vsub.f32 %v5015_v20, %v11485_v19  ;;  %5041 = vmatpush.msra.mxu0 %v11485_v19 }
 0x8e5   :  { %5202 = vmatpush.msra.mxu1 %v5201_v15  ;;  %5492 = vmatpush.msrb.mxu3 %v11485_v19  ;;  %14337 = vst [vmem:[#allocation85_spill] sm:$0xff] %v11499_v12  ;;  %v11504_v15 = vpop.f32.mrf.mxu2 }
 0x8e6   :  { %3857 = vmatmul.f32.gmra.mxu2 %v3856_v28  ;;  %v5206_v2 = vsub.f32 %v11479_v45, %v14008_v27  ;;  %4030 = vmatmul.f32.gmra.mxu3 %v11456_v54  ;;  %v14010_v20 = vand.u32 4294901760, %v11490_v48  ;;  %14338 = vst [vmem:[#allocation86_spill] sm:$0xff] %v11504_v15  ;;  %v3864_v15 = vand.u32 4294901760, %v3863_v25 }
 0x8e7   :  { %v5009_v56 = vpop.permute.xlu1 %5008  ;;  %5366 = vmatpush.msrb.mxu2 %v11490_v48  ;;  %4158 = vmatmul.f32.gmra.mxu0 %v3861_v51 }
 0x8e8   :  { %v8451_v1 = vpop.eup %8450  ;;  %v5207_v30 = vand.u32 4294901760, %v5206_v2  ;;  %v5212_v27 = vsub.f32 %v11490_v48, %v14010_v20  ;;  %v11516_v2 = vpop.f32.mrf.mxu3  ;;  %v14344_v20 = vld [vmem:[#allocation11_spill] sm:$0xff] }
 0x8e9   :  { %v3667_v28 = vmul.f32 %v8451_v1, %v11334_v4  ;;  %4994 = vrot.lane.b32.xlu0 %v14277_v57, %s8714_s24  ;;  %4286 = vmatmul.f32.gmra.mxu1 %v3862_v18  ;;  %v5013_v12 = vpop.permute.xlu2 %5012  ;;  %14340 = vst [vmem:[#allocation88_spill] sm:$0xff] %v11516_v2 }
 0x8ea   :  { %5208 = vmatpush.msra.mxu1 %v5207_v30  ;;  %v11512_v38 = vand.u32 4294901760, %v5013_v12  ;;  %v5213_v35 = vand.u32 4294901760, %v5212_v27  ;;  %v11527_v51 = vpop.f32.mrf.mxu0  ;;  %v11529_v27 = vand.u32 4294901760, %v5009_v56 }
 0x8eb   :  { %v11514_v19 = vand.u32 4294901760, %v3667_v28  ;;  %14341 = vst [vmem:[#allocation89_spill] sm:$0xff] %v11527_v51  ;;  %v11531_v25 = vpop.f32.mrf.mxu1 }
 0x8ec   :  { %14339 = vst [vmem:[#allocation87_spill] sm:$0xff] %v11512_v38  ;;  %v11519_v4 = vsub.f32 %v5013_v12, %v11512_v38  ;;  %5043 = vmatpush.msra.mxu0 %v11512_v38  ;;  %5214 = vmatpush.msra.mxu1 %v5213_v35  ;;  %v11542_v51 = vsub.f32 %v5009_v56, %v11529_v27 }
 0x8ed   :  { %v3869_v18 = vsub.f32 %v3667_v28, %v11514_v19  ;;  %5494 = vmatpush.msrb.mxu3 %v11512_v38  ;;  %14342 = vst [vmem:[#allocation90_spill] sm:$0xff] %v11531_v25 }
 0x8ee   :  { %3865 = vmatmul.f32.gmra.mxu2 %v3864_v15  ;;  %4034 = vmatmul.f32.gmra.mxu3 %v11514_v19  ;;  %v14014_v1 = vand.u32 4294901760, %v11519_v4  ;;  %v11536_v15 = vpop.f32.mrf.mxu2  ;;  %v14016_v56 = vand.u32 4294901760, %v11542_v51 }
 0x8ef   :  { %v5007_v57 = vpop.permute.xlu1 %5006  ;;  %5369 = vmatpush.msrb.mxu2 %v11519_v4  ;;  %v3870_v30 = vand.u32 4294901760, %v3869_v18  ;;  %4163 = vmatmul.f32.gmra.mxu0 %v3869_v18  ;;  %14343 = vst [vmem:[#allocation91_spill] sm:$0xff] %v11536_v15 }
 0x8f0   :  { %v5218_v35 = vsub.f32 %v11519_v4, %v14014_v1  ;;  %v11538_v28 = vand.u32 4294901760, %v5007_v57 }
 0x8f1   :  { %4292 = vmatmul.f32.gmra.mxu1 %v3870_v30  ;;  %v3871_v12 = vsub.f32 %v3869_v18, %v3870_v30  ;;  %4724 = vperm.xlu2 %8220, %v14344_v20   ;;  %v11549_v18 = vpop.f32.mrf.mxu3 }
 0x8f2   :  { %v5219_v2 = vand.u32 4294901760, %v5218_v35  ;;  %v11547_v25 = vsub.f32 %v5007_v57, %v11538_v28  ;;  %14345 = vst [vmem:[#allocation11_spill] sm:$0xff] %v11549_v18 }
 0x8f3   :  { %v3872_v38 = vand.u32 4294901760, %v3871_v12 }
 0x8f4   :  { %v5011_v26 = vpop.permute.xlu0 %5010  ;;  %5220 = vmatpush.msra.mxu1 %v5219_v2 }
 0x8f5   :  { %v11544_v32 = vand.u32 4294901760, %v5011_v26 }
 0x8f6   :  { %3873 = vmatmul.f32.gmra.mxu2 %v3872_v38  ;;  %4458 = vmatmul.f32.vlgmr.msra.gmra.mxu3 %v11085_v13  ;;  %v14017_v38 = vand.u32 4294901760, %v11547_v25  ;;  %v11570_v57 = vpop.f32.mrf.mxu2 }
 0x8f7   :  { %v11552_v30 = vsub.f32 %v5011_v26, %v11544_v32  ;;  %5045 = vmatpush.msra.mxu0 %v11544_v32  ;;  %5496 = vmatpush.msrb.mxu3 %v11544_v32  ;;  %14346 = vst [vmem:[#allocation92_spill] sm:$0xff] %v11570_v57 }
 0x8f9   :  { %5047 = vmatpush.msra.mxu0 %v11529_v27  ;;  %5372 = vmatpush.msrb.mxu2 %v11552_v30  ;;  %v14015_v2 = vand.u32 4294901760, %v11552_v30  ;;  %v11589_v57 = vpop.f32.mrf.mxu3 }
 0x8fa   :  { %5000 = vrot.lane.b32.xlu2 %v14344_v20, %s8714_s24  ;;  %5498 = vmatpush.msrb.mxu3 %v11529_v27  ;;  %v5230_v20 = vsub.f32 %v11542_v51, %v14016_v56  ;;  %14347 = vst [vmem:[#allocation93_spill] sm:$0xff] %v11589_v57 }
 0x8fb   :  { %5049 = vmatpush.msra.mxu0 %v11538_v28  ;;  %5375 = vmatpush.msrb.mxu2 %v11542_v51  ;;  %v5224_v26 = vsub.f32 %v11552_v30, %v14015_v2  ;;  %v5236_v2 = vsub.f32 %v11547_v25, %v14017_v38 }
 0x8fc   :  { %5500 = vmatpush.msrb.mxu3 %v11538_v28  ;;  %v5005_v35 = vpop.permute.xlu0 %5004  ;;  %v5231_v56 = vand.u32 4294901760, %v5230_v20 }
 0x8fd   :  { %v11576_v12 = vand.u32 4294901760, %v5005_v35  ;;  %5378 = vmatpush.msrb.mxu2 %v11547_v25  ;;  %v5225_v1 = vand.u32 4294901760, %v5224_v26 }
 0x8fe   :  { %4361 = vmatmul.f32.vlgmr.msra.gmra.mxu2 %v11085_v13  ;;  %4462 = vmatmul.f32.gmra.mxu3 %v11090_v5  ;;  %v5237_v13 = vand.u32 4294901760, %v5236_v2  ;;  %v11602_v15 = vpop.f32.mrf.mxu2 }
 0x8ff   :  { %v11584_v18 = vsub.f32 %v5005_v35, %v11576_v12  ;;  %5051 = vmatpush.msra.mxu0 %v11576_v12  ;;  %5226 = vmatpush.msra.mxu1 %v5225_v1  ;;  %v4877_v1 = vsub.f32 %v11296_v63, %v11419_v42  ;;  %14348 = vst [vmem:[#allocation94_spill] sm:$0xff] %v11602_v15 }
 0x900   :  { %5502 = vmatpush.msrb.mxu3 %v11576_v12 }
 0x901   :  { %v14019_v26 = vand.u32 4294901760, %v11584_v18  ;;  %5381 = vmatpush.msrb.mxu2 %v11584_v18  ;;  %5232 = vmatpush.msra.mxu1 %v5231_v56  ;;  %v4894_v56 = vmul.f32 1.442695, %v4877_v1  ;;  %v11611_v63 = vpop.f32.mrf.mxu3 }
 0x902   :  { %4998 = vrot.lane.b32.xlu2 %v14298_v6, %s8714_s24  ;;  %14349 = vst [vmem:[#allocation95_spill] sm:$0xff] %v11611_v63 }
 0x903   :  { %v5242_v35 = vsub.f32 %v11584_v18, %v14019_v26  ;;  %5238 = vmatpush.msra.mxu1 %v5237_v13  ;;  %8452 = vpow2.f32 %v4894_v56 }
 0x904   :  { %v5003_v20 = vpop.permute.xlu0 %5002 }
 0x905   :  { %v11600_v38 = vand.u32 4294901760, %v5003_v20  ;;  %v5243_v57 = vand.u32 4294901760, %v5242_v35 }
 0x906   :  { %4365 = vmatmul.f32.gmra.mxu2 %v11090_v5  ;;  %4466 = vmatmul.f32.gmra.mxu3 %v11162_v40 }
 0x907   :  { %v11606_v6 = vsub.f32 %v5003_v20, %v11600_v38  ;;  %5053 = vmatpush.msra.mxu0 %v11600_v38  ;;  %5244 = vmatpush.msra.mxu1 %v5243_v57  ;;  %v11620_v57 = vpop.f32.mrf.mxu2 }
 0x908   :  { %5504 = vmatpush.msrb.mxu3 %v11600_v38  ;;  %14350 = vst [vmem:[#allocation96_spill] sm:$0xff] %v11620_v57  ;;  %v14362_v57 = vld [vmem:[#allocation55_spill] sm:$0xff] }
 0x909   :  { %v14018_v42 = vand.u32 4294901760, %v11606_v6  ;;  %5384 = vmatpush.msrb.mxu2 %v11606_v6  ;;  %v11622_v13 = vpop.eup %8452  ;;  %v11624_v35 = vpop.f32.mrf.mxu3 }
 0x90a   :  { %14351 = vst [vmem:[#allocation97_spill] sm:$0xff] %v11624_v35 }
 0x90b   :  { %v5248_v5 = vsub.f32 %v11606_v6, %v14018_v42 }
 0x90d   :  { %v5249_v2 = vand.u32 4294901760, %v5248_v5 }
 0x90e   :  { %4369 = vmatmul.f32.gmra.mxu2 %v11162_v40  ;;  %4470 = vmatmul.f32.gmra.mxu3 %v11164_v44 }
 0x90f   :  { %5250 = vmatpush.msra.mxu1 %v5249_v2  ;;  %v11629_v1 = vpop.f32.mrf.mxu2 }
 0x910   :  { %14352 = vst [vmem:[#allocation98_spill] sm:$0xff] %v11629_v1 }
 0x911   :  { %v11631_v20 = vpop.f32.mrf.mxu3 }
 0x912   :  { %14353 = vst [vmem:[#allocation99_spill] sm:$0xff] %v11631_v20 }
 0x913   :  { %4926 = vadd.xlane.f32.xlu0 %v11622_v13 }
 0x916   :  { %4373 = vmatmul.f32.gmra.mxu2 %v11164_v44  ;;  %4474 = vmatmul.f32.gmra.mxu3 %v11250_v55 }
 0x917   :  { %v11635_v40 = vpop.f32.mrf.mxu2 }
 0x918   :  { %14354 = vst [vmem:[#allocation100_spill] sm:$0xff] %v11635_v40 }
 0x919   :  { %v11638_v56 = vpop.f32.mrf.mxu3 }
 0x91a   :  { %14355 = vst [vmem:[#allocation101_spill] sm:$0xff] %v11638_v56 }
 0x91e   :  { %4377 = vmatmul.f32.gmra.mxu2 %v11250_v55  ;;  %4478 = vmatmul.f32.gmra.mxu3 %v11264_v8 }
 0x91f   :  { %v11641_v5 = vpop.f32.mrf.mxu2 }
 0x920   :  { %14356 = vst [vmem:[#allocation102_spill] sm:$0xff] %v11641_v5 }
 0x921   :  { %v11644_v44 = vpop.f32.mrf.mxu3 }
 0x926   :  { %4381 = vmatmul.f32.gmra.mxu2 %v11264_v8  ;;  %4482 = vmatmul.f32.gmra.mxu3 %v11284_v52 }
 0x927   :  { %v11647_v2 = vpop.f32.mrf.mxu2 }
 0x929   :  { %v11651_v55 = vpop.f32.mrf.mxu3 }
 0x92e   :  { %4385 = vmatmul.f32.gmra.mxu2 %v11284_v52  ;;  %4486 = vmatmul.f32.gmra.mxu3 %v11286_v17 }
 0x92f   :  { %v11655_v8 = vpop.f32.mrf.mxu2 }
 0x931   :  { %v11657_v42 = vpop.f32.mrf.mxu3 }
 0x932   :  { %14357 = vst [vmem:[#allocation103_spill] sm:$0xff] %v11657_v42 }
 0x936   :  { %4389 = vmatmul.f32.gmra.mxu2 %v11286_v17  ;;  %4490 = vmatmul.f32.gmra.mxu3 %v11358_v41 }
 0x937   :  { %v11661_v52 = vpop.f32.mrf.mxu2 }
 0x938   :  { %14358 = vst [vmem:[#allocation104_spill] sm:$0xff] %v11661_v52 }
 0x939   :  { %v11663_v26 = vpop.f32.mrf.mxu3 }
 0x93a   :  { %14359 = vst [vmem:[#allocation105_spill] sm:$0xff] %v11663_v26 }
 0x93e   :  { %4393 = vmatmul.f32.gmra.mxu2 %v11358_v41  ;;  %4494 = vmatmul.f32.gmra.mxu3 %v11360_v39 }
 0x93f   :  { %v11671_v41 = vpop.f32.mrf.mxu2 }
 0x940   :  { %v11665_v17 = vpop.xlane.xlu0 %4924  ;;  %14360 = vst [vmem:[#allocation106_spill] sm:$0xff] %v11671_v41 }
 0x941   :  { %v11673_v5 = vpop.f32.mrf.mxu3 }
 0x942   :  { %14361 = vst [vmem:[#allocation107_spill] sm:$0xff] %v11673_v5 }
 0x946   :  { %4397 = vmatmul.f32.gmra.mxu2 %v11360_v39  ;;  %4498 = vmatmul.f32.gmra.mxu3 %v11385_v0 }
 0x947   :  { %v11682_v26 = vpop.f32.mrf.mxu2 }
 0x948   :  { %14363 = vst [vmem:[#allocation108_spill] sm:$0xff] %v11682_v26 }
 0x949   :  { %v11688_v42 = vpop.f32.mrf.mxu3 }
 0x94a   :  { %14365 = vst [vmem:[#allocation109_spill] sm:$0xff] %v11688_v42 }
 0x94c   :  { %v11667_v56 = vpop.xlane.xlu2 %4854 }
 0x94e   :  { %4401 = vmatmul.f32.gmra.mxu2 %v11385_v0  ;;  %4502 = vmatmul.f32.gmra.mxu3 %v11396_v49 }
 0x953   :  { %v4737_v20 = vpop.permute.xlu0 %4736 }
 0x954   :  { %v4773_v39 = vadd.f32 %v11279_v37, %v4737_v20  ;;  %v4725_v40 = vpop.permute.xlu2 %4724  ;;  %v14364_v20 = vld [vmem:[#allocation53_spill] sm:$0xff] }
 0x955   :  { %v4770_v1 = vadd.f32 %v11279_v37, %v4725_v40 }
 0x956   :  { %vm4789_vm10 = vcmp.gt.f32.partialorder %v4773_v39, 0.0  ;;  %v4805_v35 = vmul.f32 0.2, %v4773_v39  ;;  %4405 = vmatmul.f32.gmra.mxu2 %v11396_v49  ;;  %4506 = vmatmul.f32.gmra.mxu3 %v11411_v22 }
 0x957   :  { %vm4786_vm11 = vcmp.gt.f32.partialorder %v4770_v1, 0.0  ;;  %v4802_v0 = vmul.f32 0.2, %v4770_v1 }
 0x958   :  { %v4821_v63 = vsel %vm4789_vm10, %v4773_v39, %v4805_v35 }
 0x959   :  { %v11680_v15 = vadd.f32 %v4821_v63, %v14362_v57  ;;  %v4818_v5 = vsel %vm4786_vm11, %v4770_v1, %v4802_v0  ;;  %v11702_v1 = vpop.f32.mrf.mxu2 }
 0x95a   :  { %v11686_v41 = vadd.f32 %v4818_v5, %v14364_v20  ;;  %14366 = vst [vmem:[#allocation110_spill] sm:$0xff] %v11702_v1 }
 0x95b   :  { %4862 = vmax.xlane.f32.xlu0 %v11680_v15 }
 0x95c   :  { %4856 = vmax.xlane.f32.xlu1 %v11686_v41  ;;  %v5001_v49 = vpop.permute.xlu2 %5000 }
 0x95d   :  { %v11691_v40 = vand.u32 4294901760, %v5001_v49 }
 0x95e   :  { %4409 = vmatmul.f32.gmra.mxu2 %v11411_v22  ;;  %4510 = vmatmul.f32.gmra.mxu3 %v11452_v11  ;;  %v11707_v22 = vpop.f32.mrf.mxu3 }
 0x95f   :  { %v11696_v63 = vsub.f32 %v5001_v49, %v11691_v40  ;;  %5055 = vmatpush.msra.mxu0 %v11691_v40  ;;  %5506 = vmatpush.msrb.mxu3 %v11691_v40  ;;  %14367 = vst [vmem:[#allocation111_spill] sm:$0xff] %v11707_v22 }
 0x961   :  { %5387 = vmatpush.msrb.mxu2 %v11696_v63  ;;  %v14020_v35 = vand.u32 4294901760, %v11696_v63  ;;  %v11720_v20 = vpop.f32.mrf.mxu2 }
 0x962   :  { %14368 = vst [vmem:[#allocation112_spill] sm:$0xff] %v11720_v20 }
 0x963   :  { %v5254_v5 = vsub.f32 %v11696_v63, %v14020_v35 }
 0x964   :  { %v4999_v39 = vpop.permute.xlu2 %4998 }
 0x965   :  { %v11709_v0 = vand.u32 4294901760, %v4999_v39  ;;  %v5255_v49 = vand.u32 4294901760, %v5254_v5 }
 0x966   :  { %4413 = vmatmul.f32.gmra.mxu2 %v11452_v11  ;;  %4514 = vmatmul.f32.gmra.mxu3 %v11456_v54 }
 0x967   :  { %v11714_v57 = vsub.f32 %v4999_v39, %v11709_v0  ;;  %5057 = vmatpush.msra.mxu0 %v11709_v0  ;;  %5256 = vmatpush.msra.mxu1 %v5255_v49  ;;  %v11726_v39 = vpop.f32.mrf.mxu3 }
 0x968   :  { %5508 = vmatpush.msrb.mxu3 %v11709_v0  ;;  %14369 = vst [vmem:[#allocation113_spill] sm:$0xff] %v11726_v39  ;;  %v4995_v39 = vpop.permute.xlu0 %4994 }
 0x969   :  { %5390 = vmatpush.msrb.mxu2 %v11714_v57  ;;  %v14021_v35 = vand.u32 4294901760, %v11714_v57  ;;  %v11730_v49 = vpop.f32.mrf.mxu2 }
 0x96a   :  { %14370 = vst [vmem:[#allocation114_spill] sm:$0xff] %v11730_v49 }
 0x96b   :  { %v5260_v11 = vsub.f32 %v11714_v57, %v14021_v35  ;;  %v14372_v35 = vld [vmem:[#allocation48_spill] sm:$0xff] }
 0x96d   :  { %v5261_v5 = vand.u32 4294901760, %v5260_v11 }
 0x96e   :  { %4417 = vmatmul.f32.gmra.mxu2 %v11456_v54  ;;  %4518 = vmatmul.f32.gmra.mxu3 %v11514_v19 }
 0x96f   :  { %4748 = vperm.xlu0 %8222, %v14300_v21   ;;  %5262 = vmatpush.msra.mxu1 %v5261_v5 }
 0x975   :  { %4728 = vperm.xlu1 %8221, %v14304_v50  }
 0x976   :  { %4421 = vmatmul.f32.gmra.mxu2 %v11514_v19 }
 0x977   :  { %4760 = vperm.xlu0 %8222, %v14211_v23  }
 0x97d   :  { %4732 = vperm.xlu1 %8221, %v14301_v16  }
 0x985   :  { %4744 = vperm.xlu1 %8221, %v14217_v29   ;;  %v14371_v29 = vld [vmem:[#allocation46_spill] sm:$0xff] }
 0x98d   :  { %4996 = vrot.lane.b32.xlu1 %v14278_v33, %s8714_s24  ;;  %v4879_v33 = vsub.f32 %v11331_v14, %v11447_v47 }
 0x98f   :  { %v4898_v11 = vmul.f32 1.442695, %v4879_v33 }
 0x991   :  { %8454 = vpow2.f32 %v4898_v11 }
 0x995   :  { %4752 = vperm.xlu1 %8221, %v14208_v10  }
 0x997   :  { %v11764_v33 = vpop.eup %8454 }
 0x99d   :  { %4992 = vrot.lane.b32.xlu1 %v14280_v53, %s8714_s24 }
 0x9a5   :  { %4990 = vrot.lane.b32.xlu1 %v14279_v34, %s8714_s24 }
 0x9cf   :  { %v11744_v50 = vpop.xlane.xlu1 %4856 }
 0x9d0   :  { %v4882_v22 = vsub.f32 %v11686_v41, %v11744_v50 }
 0x9e7   :  { %v4729_v21 = vpop.permute.xlu1 %4728 }
 0x9e8   :  { %v4771_v23 = vadd.f32 %v11279_v37, %v4729_v21 }
 0x9ea   :  { %vm4787_vm12 = vcmp.gt.f32.partialorder %v4771_v23, 0.0  ;;  %v4803_v16 = vmul.f32 0.2, %v4771_v23 }
 0x9ec   :  { %v4819_v54 = vsel %vm4787_vm12, %v4771_v23, %v4803_v16 }
 0x9ed   :  { %v11748_v19 = vadd.f32 %v4819_v54, %v14371_v29  ;;  %v11759_v54 = vand.u32 4294901760, %v4995_v39 }
 0x9ef   :  { %4858 = vmax.xlane.f32.xlu2 %v11748_v19  ;;  %v4733_v10 = vpop.permute.xlu1 %4732 }
 0x9f0   :  { %v4772_v53 = vadd.f32 %v11279_v37, %v4733_v10 }
 0x9f2   :  { %vm4788_vm13 = vcmp.gt.f32.partialorder %v4772_v53, 0.0  ;;  %v4804_v34 = vmul.f32 0.2, %v4772_v53 }
 0x9f4   :  { %v4820_v5 = vsel %vm4788_vm13, %v4772_v53, %v4804_v34  ;;  %v11767_v53 = vsub.f32 %v4995_v39, %v11759_v54 }
 0x9f5   :  { %v11755_v21 = vadd.f32 %v4820_v5, %v14372_v35 }
 0x9f6   :  { %v14025_v5 = vand.u32 4294901760, %v11767_v53 }
 0x9f7   :  { %4860 = vmax.xlane.f32.xlu1 %v11755_v21  ;;  %v4745_v23 = vpop.permute.xlu1 %4744 }
 0x9f8   :  { %v4775_v16 = vadd.f32 %v11279_v37, %v4745_v23 }
 0x9fa   :  { %vm4791_vm14 = vcmp.gt.f32.partialorder %v4775_v16, 0.0  ;;  %v4807_v14 = vmul.f32 0.2, %v4775_v16 }
 0x9fc   :  { %v4823_v47 = vsel %vm4791_vm14, %v4775_v16, %v4807_v14  ;;  %v5272_v14 = vsub.f32 %v11767_v53, %v14025_v5 }
 0x9fd   :  { %v11762_v10 = vadd.f32 %v4823_v47, %v14271_v46 }
 0x9fe   :  { %v5273_v46 = vand.u32 4294901760, %v5272_v14 }
 0x9ff   :  { %4930 = vadd.xlane.f32.xlu1 %v11764_v33  ;;  %4866 = vmax.xlane.f32.xlu0 %v11762_v10  ;;  %v4997_v34 = vpop.permute.xlu1 %4996 }
 0xa00   :  { %v11771_v11 = vand.u32 4294901760, %v4997_v34 }
 0xa02   :  { %v11775_v23 = vsub.f32 %v4997_v34, %v11771_v11  ;;  %5059 = vmatpush.msra.mxu0 %v11771_v11  ;;  %5510 = vmatpush.msrb.mxu3 %v11771_v11 }
 0xa04   :  { %v14023_v16 = vand.u32 4294901760, %v11775_v23  ;;  %5061 = vmatpush.msra.mxu0 %v11759_v54  ;;  %5393 = vmatpush.msrb.mxu2 %v11775_v23 }
 0xa05   :  { %5512 = vmatpush.msrb.mxu3 %v11759_v54 }
 0xa06   :  { %5396 = vmatpush.msrb.mxu2 %v11767_v53  ;;  %v5266_v39 = vsub.f32 %v11775_v23, %v14023_v16 }
 0xa07   :  { %4740 = vperm.xlu2 %8220, %v14220_v60   ;;  %v11791_v47 = vpop.permute.xlu1 %4752 }
 0xa08   :  { %v5267_v34 = vand.u32 4294901760, %v5266_v39 }
 0xa0a   :  { %5268 = vmatpush.msra.mxu1 %v5267_v34 }
 0xa0c   :  { %5274 = vmatpush.msra.mxu1 %v5273_v46 }
 0xa0f   :  { %4988 = vrot.lane.b32.xlu2 %v14276_v62, %s8714_s24  ;;  %v4993_v35 = vpop.permute.xlu1 %4992 }
 0xa10   :  { %v11795_v29 = vand.u32 4294901760, %v4993_v35 }
 0xa12   :  { %v11798_v16 = vsub.f32 %v4993_v35, %v11795_v29  ;;  %5063 = vmatpush.msra.mxu0 %v11795_v29  ;;  %5514 = vmatpush.msrb.mxu3 %v11795_v29 }
 0xa14   :  { %v14024_v60 = vand.u32 4294901760, %v11798_v16  ;;  %5399 = vmatpush.msrb.mxu2 %v11798_v16 }
 0xa16   :  { %v5278_v46 = vsub.f32 %v11798_v16, %v14024_v60 }
 0xa17   :  { %4756 = vperm.xlu2 %8220, %v14297_v36   ;;  %v4991_v62 = vpop.permute.xlu1 %4990 }
 0xa18   :  { %v11808_v39 = vand.u32 4294901760, %v4991_v62  ;;  %v5279_v14 = vand.u32 4294901760, %v5278_v46  ;;  %v4878_v46 = vsub.f32 %v11320_v59, %v11426_v31  ;;  %v4927_v31 = vpop.xlane.xlu0 %4926 }
 0xa1a   :  { %v11811_v35 = vsub.f32 %v4991_v62, %v11808_v39  ;;  %5065 = vmatpush.msra.mxu0 %v11808_v39  ;;  %5280 = vmatpush.msra.mxu1 %v5279_v14  ;;  %v4896_v62 = vmul.f32 1.442695, %v4878_v46  ;;  %v4881_v14 = vsub.f32 %v11442_v61, %v11667_v56 }
 0xa1b   :  { %5516 = vmatpush.msrb.mxu3 %v11808_v39 }
 0xa1c   :  { %v14026_v34 = vand.u32 4294901760, %v11811_v35  ;;  %5402 = vmatpush.msrb.mxu2 %v11811_v35  ;;  %8456 = vpow2.f32 %v4896_v62  ;;  %v4902_v5 = vmul.f32 1.442695, %v4881_v14 }
 0xa1e   :  { %v5284_v36 = vsub.f32 %v11811_v35, %v14026_v34  ;;  %8458 = vpow2.f32 %v4902_v5  ;;  %v4904_v34 = vmul.f32 1.442695, %v4882_v22 }
 0xa20   :  { %v5285_v60 = vand.u32 4294901760, %v5284_v36  ;;  %8460 = vpow2.f32 %v4904_v34  ;;  %v4863_v61 = vpop.xlane.xlu0 %4862 }
 0xa21   :  { %8462 = vrcp.f32 %v11665_v17 }
 0xa22   :  { %5286 = vmatpush.msra.mxu1 %v5285_v60  ;;  %v11824_v49 = vpop.eup %8456  ;;  %8464 = vrcp.f32 %v4927_v31 }
 0xa24   :  { %v11829_v36 = vpop.eup %8458 }
 0xa26   :  { %v11832_v59 = vpop.eup %8460 }
 0xa27   :  { %v8463_v56 = vpop.eup %8462 }
 0xa28   :  { %v4749_v60 = vpop.permute.xlu0 %4748  ;;  %v4972_v5 = vmul.f32 %v8463_v56, %v11432_v9  ;;  %v8465_v34 = vpop.eup %8464 }
 0xa29   :  { %v4973_v20 = vmul.f32 %v8465_v34, %v11622_v13 }
 0xa2a   :  { %v11838_v50 = vand.u32 4294901760, %v4972_v5 }
 0xa2c   :  { %v5069_v62 = vsub.f32 %v4972_v5, %v11838_v50  ;;  %v11850_v5 = vand.u32 4294901760, %v4973_v20 }
 0xa2e   :  { %v5070_v56 = vand.u32 4294901760, %v5069_v62 }
 0xa30   :  { %v11841_v14 = vpop.permute.xlu0 %4760  ;;  %v5071_v34 = vsub.f32 %v5069_v62, %v5070_v56 }
 0xa40   :  { %4928 = vadd.xlane.f32.xlu2 %v11824_v49 }
 0xa48   :  { %4934 = vadd.xlane.f32.xlu2 %v11829_v36 }
 0xa50   :  { %4936 = vadd.xlane.f32.xlu2 %v11832_v59 }
 0xa62   :  { %v4859_v41 = vpop.xlane.xlu2 %4858 }
 0xa63   :  { %v4883_v22 = vsub.f32 %v11748_v19, %v4859_v41  ;;  %v4880_v19 = vsub.f32 %v11317_v3, %v11430_v58  ;;  %v5077_v58 = vsub.f32 %v4973_v20, %v11850_v5 }
 0xa65   :  { %v4906_v46 = vmul.f32 1.442695, %v4883_v22  ;;  %v5078_v20 = vand.u32 4294901760, %v5077_v58 }
 0xa67   :  { %8466 = vpow2.f32 %v4906_v46  ;;  %v4900_v46 = vmul.f32 1.442695, %v4880_v19 }
 0xa6a   :  { %v4861_v17 = vpop.xlane.xlu1 %4860  ;;  %v4741_v42 = vpop.permute.xlu2 %4740 }
 0xa6b   :  { %v4884_v1 = vsub.f32 %v11755_v21, %v4861_v17  ;;  %v4774_v9 = vadd.f32 %v11279_v37, %v4741_v42  ;;  %v4885_v21 = vsub.f32 %v11680_v15, %v4863_v61  ;;  %v5072_v15 = vand.u32 4294901760, %v5071_v34  ;;  %v11864_v61 = vpop.f32.mrf.mxu0 }
 0xa6c   :  { %14373 = vst [vmem:[#allocation115_spill] sm:$0xff] %v11864_v61 }
 0xa6d   :  { %v11848_v31 = vpop.eup %8466  ;;  %v4908_v41 = vmul.f32 1.442695, %v4884_v1  ;;  %vm4790_vm15 = vcmp.gt.f32.partialorder %v4774_v9, 0.0  ;;  %v4806_v22 = vmul.f32 0.2, %v4774_v9 }
 0xa6e   :  { %4938 = vadd.xlane.f32.xlu2 %v11848_v31  ;;  %v4910_v26 = vmul.f32 1.442695, %v4885_v21 }
 0xa6f   :  { %8468 = vpow2.f32 %v4908_v41  ;;  %v4822_v13 = vsel %vm4790_vm15, %v4774_v9, %v4806_v22  ;;  %v4776_v41 = vadd.f32 %v11279_v37, %v4749_v60  ;;  %v14374_v60 = vand.u32 4294901760, %v11461_v7 }
 0xa70   :  { %v11855_v42 = vadd.f32 %v4822_v13, %v14270_v24  ;;  %8470 = vpow2.f32 %v4900_v46  ;;  %v11875_v13 = vpop.f32.mrf.mxu2  ;;  %v14376_v7 = vand.u32 4294901760, %v11490_v48 }
 0xa71   :  { %v4808_v34 = vmul.f32 0.2, %v4776_v41  ;;  %vm4792_vm1 = vcmp.gt.f32.partialorder %v4776_v41, 0.0 }
 0xa72   :  { %v4867_v3 = vpop.xlane.xlu0 %4866  ;;  %4864 = vmax.xlane.f32.xlu1 %v11855_v42  ;;  %v4989_v17 = vpop.permute.xlu2 %4988 }
 0xa73   :  { %v4887_v1 = vsub.f32 %v11762_v10, %v4867_v3  ;;  %v11860_v52 = vand.u32 4294901760, %v4989_v17  ;;  %v11872_v10 = vpop.f32.mrf.mxu3  ;;  %v14375_v3 = vand.u32 4294901760, %v11479_v45  ;;  %v4777_v45 = vadd.f32 %v11279_v37, %v11791_v47  ;;  %v11903_v48 = vpop.f32.mrf.mxu0 }
 0xa74   :  { %14379 = vst [vmem:[#allocation117_spill] sm:$0xff] %v11903_v48 }
 0xa75   :  { %v11862_v9 = vpop.eup %8468  ;;  %v4914_v19 = vmul.f32 1.442695, %v4887_v1  ;;  %v11868_v22 = vsub.f32 %v4989_v17, %v11860_v52  ;;  %5067 = vmatpush.msra.mxu0 %v11860_v52  ;;  %5518 = vmatpush.msrb.mxu3 %v11860_v52  ;;  %vm4793_vm2 = vcmp.gt.f32.partialorder %v4777_v45, 0.0 }
 0xa76   :  { %4940 = vadd.xlane.f32.xlu2 %v11862_v9  ;;  %5073 = vmatmul.f32.vlgmr.msra.gmra.mxu0 %v5072_v15  ;;  %v11881_v21 = vpop.eup %8470 }
 0xa77   :  { %8472 = vpow2.f32 %v4914_v19  ;;  %5522 = vmatmul.f32.vlgmr.msrb.gmra.mxu3 %v5070_v56  ;;  %5619 = vmatpush.msrb.mxu0 %v14374_v60  ;;  %v5289_v46 = vand.u32 4294901760, %v11868_v22  ;;  %v4824_v60 = vsel %vm4792_vm1, %v4776_v41, %v4808_v34  ;;  %v4809_v34 = vmul.f32 0.2, %v4777_v45 }
 0xa78   :  { %8474 = vpow2.f32 %v4910_v26  ;;  %5405 = vmatpush.msrb.mxu2 %v11868_v22  ;;  %v5079_v26 = vsub.f32 %v5077_v58, %v5078_v20  ;;  %v11911_v47 = vadd.f32 %v4824_v60, %v14275_v43  ;;  %v11913_v41 = vpop.f32.mrf.mxu2 }
 0xa79   :  { %5408 = vmatmul.f32.vlgmr.msrb.gmra.mxu2 %v5069_v62  ;;  %5623 = vmatpush.msrb.mxu0 %v14375_v3  ;;  %v5290_v1 = vsub.f32 %v11868_v22, %v5289_v46  ;;  %v14377_v62 = vand.u32 4294901760, %v11519_v4  ;;  %v11899_v3 = vpop.f32.mrf.mxu1  ;;  %v14380_v4 = vand.u32 4294901760, %v11552_v30  ;;  %v14384_v30 = vand.u32 4294901760, %v11547_v25 }
 0xa7a   :  { %4932 = vadd.xlane.f32.xlu1 %v11881_v21  ;;  %v5080_v15 = vand.u32 4294901760, %v5079_v26  ;;  %14378 = vst [vmem:[#allocation116_spill] sm:$0xff] %v11899_v3  ;;  %v14381_v26 = vld [vmem:[#allocation77_spill] sm:$0xff]  ;;  %v4825_v60 = vsel %vm4793_vm2, %v4777_v45, %v4809_v34  ;;  %v14391_v45 = vand.u32 4294901760, %v11696_v63 }
 0xa7b   :  { %5627 = vmatpush.msrb.mxu0 %v14376_v7  ;;  %v5291_v56 = vand.u32 4294901760, %v5290_v1  ;;  %v11906_v1 = vpop.f32.mrf.mxu3  ;;  %v4757_v7 = vpop.permute.xlu2 %4756  ;;  %v14395_v63 = vld [vmem:[#allocation41_spill] sm:$0xff] }
 0xa7d   :  { %v11891_v17 = vpop.eup %8472  ;;  %5631 = vmatpush.msrb.mxu0 %v14377_v62  ;;  %5292 = vmatpush.msra.mxu1 %v5291_v56  ;;  %v14382_v56 = vand.u32 4294901760, %v11542_v51  ;;  %v4778_v62 = vadd.f32 %v11279_v37, %v4757_v7  ;;  %v14389_v51 = vand.u32 4294901760, %v11606_v6  ;;  %v4779_v6 = vadd.f32 %v11279_v37, %v11841_v14 }
 0xa7e   :  { %v11893_v19 = vpop.eup %8474  ;;  %4946 = vadd.xlane.f32.xlu0 %v11891_v17  ;;  %5081 = vmatmul.f32.gmra.mxu0 %v5080_v15  ;;  %v14385_v15 = vld [vmem:[#allocation83_spill] sm:$0xff]  ;;  %v14393_v7 = vand.u32 4294901760, %v11775_v23  ;;  %v14396_v37 = vand.u32 4294901760, %v11798_v16 }
 0xa7f   :  { %4942 = vadd.xlane.f32.xlu2 %v11893_v19  ;;  %5294 = vmatmul.f32.vlgmr.msra.gmra.mxu1 %v11838_v50  ;;  %vm4794_vm3 = vcmp.gt.f32.partialorder %v4778_v62, 0.0  ;;  %vm4795_vm4 = vcmp.gt.f32.partialorder %v4779_v6, 0.0 }
 0xa80   :  { %5528 = vmatmul.f32.gmra.mxu3 %v5078_v20  ;;  %5635 = vmatpush.msrb.mxu0 %v14380_v4  ;;  %v14383_v20 = vld [vmem:[#allocation81_spill] sm:$0xff]  ;;  %v14386_v4 = vand.u32 4294901760, %v11584_v18  ;;  %v14392_v18 = vand.u32 4294901760, %v11714_v57 }
 0xa81   :  { %5746 = vmatpush.msrb.mxu1 %v14381_v26  ;;  %5413 = vmatmul.f32.gmra.mxu2 %v5077_v58  ;;  %v14387_v58 = vld [vmem:[#allocation87_spill] sm:$0xff]  ;;  %v11927_v26 = vpop.f32.mrf.mxu1 }
 0xa82   :  { %5639 = vmatpush.msrb.mxu0 %v14382_v56  ;;  %4868 = vmax.xlane.f32.xlu1 %v11911_v47  ;;  %14388 = vst [vmem:[#allocation77_spill] sm:$0xff] %v11927_v26  ;;  %v14390_v56 = vld [vmem:[#allocation54_spill] sm:$0xff] }
 0xa83   :  { %5748 = vmatpush.msrb.mxu1 %v14383_v20  ;;  %v11933_v25 = vadd.f32 %v4825_v60, %v14390_v56  ;;  %v4810_v20 = vmul.f32 0.2, %v4778_v62 }
 0xa84   :  { %5643 = vmatpush.msrb.mxu0 %v14384_v30 }
 0xa85   :  { %5750 = vmatpush.msrb.mxu1 %v14385_v15  ;;  %v4826_v34 = vsel %vm4794_vm3, %v4778_v62, %v4810_v20 }
 0xa86   :  { %5647 = vmatpush.msrb.mxu0 %v14386_v4  ;;  %v11951_v30 = vadd.f32 %v4826_v34, %v14395_v63 }
 0xa87   :  { %5752 = vmatpush.msrb.mxu1 %v14387_v58 }
 0xa88   :  { %5298 = vmatmul.f32.gmra.mxu1 %v11850_v5  ;;  %5651 = vmatpush.msrb.mxu0 %v14389_v51 }
 0xa89   :  { %5754 = vmatpush.msrb.mxu1 %v11544_v32  ;;  %v14394_v32 = vand.u32 4294901760, %v11767_v53  ;;  %v11974_v53 = vpop.f32.mrf.mxu3 }
 0xa8a   :  { %5655 = vmatpush.msrb.mxu0 %v14391_v45  ;;  %4870 = vmax.xlane.f32.xlu1 %v11933_v25 }
 0xa8b   :  { %5756 = vmatpush.msrb.mxu1 %v11529_v27  ;;  %v4811_v27 = vmul.f32 0.2, %v4779_v6 }
 0xa8c   :  { %5659 = vmatpush.msrb.mxu0 %v14392_v18 }
 0xa8d   :  { %5758 = vmatpush.msrb.mxu1 %v11538_v28  ;;  %v14397_v28 = vand.u32 4294901760, %v11811_v35  ;;  %v11980_v35 = vpop.f32.mrf.mxu1 }
 0xa8e   :  { %5663 = vmatpush.msrb.mxu0 %v14393_v7  ;;  %14400 = vst [vmem:[#allocation83_spill] sm:$0xff] %v11980_v35 }
 0xa8f   :  { %5760 = vmatpush.msrb.mxu1 %v11576_v12  ;;  %v4827_v12 = vsel %vm4795_vm4, %v4779_v6, %v4811_v27 }
 0xa90   :  { %5667 = vmatpush.msrb.mxu0 %v14394_v32 }
 0xa91   :  { %5762 = vmatpush.msrb.mxu1 %v11600_v38  ;;  %v14398_v38 = vld [vmem:[#allocation56_spill] sm:$0xff]  ;;  %v11983_v14 = vpop.f32.mrf.mxu3 }
 0xa92   :  { %5671 = vmatpush.msrb.mxu0 %v14396_v37  ;;  %4872 = vmax.xlane.f32.xlu1 %v11951_v30  ;;  %v11965_v57 = vadd.f32 %v4827_v12, %v14398_v38 }
 0xa93   :  { %5764 = vmatpush.msrb.mxu1 %v11691_v40  ;;  %v11972_v40 = vpop.f32.mrf.mxu2 }
 0xa94   :  { %5675 = vmatpush.msrb.mxu0 %v14397_v28 }
 0xa95   :  { %5766 = vmatpush.msrb.mxu1 %v11709_v0  ;;  %v4931_v0 = vpop.xlane.xlu1 %4930  ;;  %v11997_v58 = vpop.f32.mrf.mxu1 }
 0xa96   :  { %5679 = vmatpush.msrb.mxu0 %v5289_v46  ;;  %8476 = vrcp.f32 %v4931_v0  ;;  %14402 = vst [vmem:[#allocation118_spill] sm:$0xff] %v11997_v58 }
 0xa97   :  { %5768 = vmatpush.msrb.mxu1 %v11771_v11  ;;  %v11976_v11 = vpop.f32.mrf.mxu0 }
 0xa98   :  { %14399 = vst [vmem:[#allocation81_spill] sm:$0xff] %v11976_v11 }
 0xa99   :  { %5770 = vmatpush.msrb.mxu1 %v11759_v54  ;;  %v11999_v51 = vpop.f32.mrf.mxu3 }
 0xa9a   :  { %4874 = vmax.xlane.f32.xlu1 %v11965_v57 }
 0xa9b   :  { %5772 = vmatpush.msrb.mxu1 %v11795_v29  ;;  %v11978_v54 = vpop.f32.mrf.mxu2 }
 0xa9c   :  { %v8477_v16 = vpop.eup %8476 }
 0xa9d   :  { %5774 = vmatpush.msrb.mxu1 %v11808_v39  ;;  %v4975_v29 = vmul.f32 %v8477_v16, %v11764_v33  ;;  %v12008_v32 = vpop.f32.mrf.mxu1 }
 0xa9e   :  { %14404 = vst [vmem:[#allocation120_spill] sm:$0xff] %v12008_v32 }
 0xa9f   :  { %5776 = vmatpush.msrb.mxu1 %v11860_v52  ;;  %v11986_v22 = vpop.f32.mrf.mxu0  ;;  %v11990_v62 = vand.u32 4294901760, %v4975_v29 }
 0xaa0   :  { %14401 = vst [vmem:[#allocation87_spill] sm:$0xff] %v11986_v22  ;;  %v14414_v22 = vld [vmem:[#allocation59_spill] sm:$0xff] }
 0xaa1   :  { %v5093_v33 = vsub.f32 %v4975_v29, %v11990_v62  ;;  %v12006_v7 = vpop.f32.mrf.mxu3 }
 0xaa3   :  { %v11992_v15 = vpop.f32.mrf.mxu2  ;;  %v5094_v45 = vand.u32 4294901760, %v5093_v33 }
 0xaa5   :  { %v5095_v34 = vsub.f32 %v5093_v33, %v5094_v45  ;;  %v12016_v0 = vpop.f32.mrf.mxu1 }
 0xaa6   :  { %14406 = vst [vmem:[#allocation122_spill] sm:$0xff] %v12016_v0 }
 0xaa7   :  { %v12003_v6 = vpop.f32.mrf.mxu0  ;;  %v5096_v27 = vand.u32 4294901760, %v5095_v34 }
 0xaa8   :  { %14403 = vst [vmem:[#allocation119_spill] sm:$0xff] %v12003_v6 }
 0xaa9   :  { %v12014_v12 = vpop.f32.mrf.mxu3 }
 0xaab   :  { %v12001_v18 = vpop.f32.mrf.mxu2 }
 0xaaf   :  { %v12012_v28 = vpop.f32.mrf.mxu0 }
 0xab0   :  { %14405 = vst [vmem:[#allocation121_spill] sm:$0xff] %v12012_v28 }
 0xab1   :  { %v12022_v29 = vpop.f32.mrf.mxu3 }
 0xab3   :  { %v4929_v23 = vpop.xlane.xlu2 %4928  ;;  %v12010_v37 = vpop.f32.mrf.mxu2 }
 0xab4   :  { %8478 = vrcp.f32 %v4929_v23 }
 0xab7   :  { %v12020_v16 = vpop.f32.mrf.mxu0 }
 0xab8   :  { %14407 = vst [vmem:[#allocation123_spill] sm:$0xff] %v12020_v16 }
 0xaba   :  { %v8479_v39 = vpop.eup %8478 }
 0xabb   :  { %v4974_v52 = vmul.f32 %v8479_v39, %v11824_v49  ;;  %v12018_v23 = vpop.f32.mrf.mxu2  ;;  %v12024_v39 = vpop.f32.mrf.mxu1 }
 0xabc   :  { %14408 = vst [vmem:[#allocation124_spill] sm:$0xff] %v12024_v39 }
 0xabd   :  { %v11988_v46 = vand.u32 4294901760, %v4974_v52 }
 0xabf   :  { %5302 = vmatmul.f32.gmra.mxu1 %v11988_v46  ;;  %v5085_v60 = vsub.f32 %v4974_v52, %v11988_v46  ;;  %v4935_v52 = vpop.xlane.xlu2 %4934 }
 0xac1   :  { %5418 = vmatmul.f32.gmra.mxu2 %v5085_v60  ;;  %v5086_v4 = vand.u32 4294901760, %v5085_v60 }
 0xac3   :  { %5534 = vmatmul.f32.gmra.mxu3 %v5086_v4  ;;  %v5087_v49 = vsub.f32 %v5085_v60, %v5086_v4  ;;  %v12026_v60 = vpop.f32.mrf.mxu2  ;;  %v12028_v4 = vpop.f32.mrf.mxu0 }
 0xac4   :  { %14409 = vst [vmem:[#allocation125_spill] sm:$0xff] %v12028_v4  ;;  %v12033_v34 = vpop.f32.mrf.mxu1 }
 0xac5   :  { %v5088_v20 = vand.u32 4294901760, %v5087_v49  ;;  %14410 = vst [vmem:[#allocation126_spill] sm:$0xff] %v12033_v34 }
 0xac7   :  { %5089 = vmatmul.f32.gmra.mxu0 %v5088_v20  ;;  %5306 = vmatmul.f32.gmra.mxu1 %v11990_v62 }
 0xac9   :  { %5423 = vmatmul.f32.gmra.mxu2 %v5093_v33 }
 0xacb   :  { %5540 = vmatmul.f32.gmra.mxu3 %v5094_v45  ;;  %v12031_v45 = vpop.f32.mrf.mxu3  ;;  %v4089_v38 = vpop.f32.mrf.mxu0 }
 0xacc   :  { %v12035_v63 = vpop.f32.mrf.mxu2  ;;  %v4203_v4 = vpop.f32.mrf.mxu1 }
 0xacf   :  { %5097 = vmatmul.f32.gmra.mxu0 %v5096_v27  ;;  %v4937_v27 = vpop.xlane.xlu2 %4936 }
 0xad3   :  { %v4094_v16 = vpop.f32.mrf.mxu0 }
 0xae5   :  { %v4865_v33 = vpop.xlane.xlu1 %4864 }
 0xae6   :  { %v4886_v49 = vsub.f32 %v11855_v42, %v4865_v33  ;;  %v12040_v42 = vpop.f32.mrf.mxu3 }
 0xae8   :  { %v4912_v20 = vmul.f32 1.442695, %v4886_v49  ;;  %v4939_v49 = vpop.xlane.xlu2 %4938 }
 0xaea   :  { %8480 = vpow2.f32 %v4912_v20 }
 0xaeb   :  { %8482 = vrcp.f32 %v4935_v52 }
 0xaed   :  { %v4933_v56 = vpop.xlane.xlu1 %4932 }
 0xaee   :  { %8484 = vrcp.f32 %v4933_v56  ;;  %v12045_v56 = vpop.f32.mrf.mxu2  ;;  %v12058_v11 = vpop.f32.mrf.mxu3 }
 0xaef   :  { %8486 = vrcp.f32 %v4937_v27  ;;  %v14413_v27 = vld [vmem:[#allocation33_spill] sm:$0xff] }
 0xaf0   :  { %v12037_v24 = vpop.eup %8480  ;;  %8488 = vrcp.f32 %v4939_v49 }
 0xaf1   :  { %v8483_v43 = vpop.eup %8482  ;;  %4944 = vadd.xlane.f32.xlu1 %v12037_v24 }
 0xaf2   :  { %v4977_v33 = vmul.f32 %v8483_v43, %v11829_v36  ;;  %v14412_v36 = vld [vmem:[#allocation32_spill] sm:$0xff] }
 0xaf4   :  { %v8485_v20 = vpop.eup %8484  ;;  %v12049_v28 = vand.u32 4294901760, %v4977_v33 }
 0xaf5   :  { %v4976_v52 = vmul.f32 %v8485_v20, %v11881_v21  ;;  %v4869_v34 = vpop.xlane.xlu1 %4868  ;;  %v8487_v32 = vpop.eup %8486  ;;  %v2656_v21 = vadd.f32 %v14413_v27, %v14412_v36 }
 0xaf6   :  { %v4888_v39 = vsub.f32 %v11911_v47, %v4869_v34  ;;  %14411 = vst [vmem:[#allocation127_spill] sm:$0xff] %v12049_v28  ;;  %v4209_v20 = vpop.f32.mrf.mxu1  ;;  %v4978_v47 = vmul.f32 %v8487_v32, %v11832_v59  ;;  %v5109_v58 = vsub.f32 %v4977_v33, %v12049_v28  ;;  %v8489_v36 = vpop.eup %8488 }
 0xaf7   :  { %v12047_v0 = vand.u32 4294901760, %v4976_v52  ;;  %v2770_v35 = vadd.f32 %v14414_v22, %v2656_v21  ;;  %v4099_v27 = vpop.f32.mrf.mxu0  ;;  %v14416_v22 = vld [vmem:[#allocation4_spill] sm:$0xff]  ;;  %v12068_v61 = vpop.f32.mrf.mxu2 }
 0xaf8   :  { %v4916_v6 = vmul.f32 1.442695, %v4888_v39  ;;  %v4941_v39 = vpop.xlane.xlu2 %4940  ;;  %v5110_v32 = vand.u32 4294901760, %v5109_v58  ;;  %v12063_v48 = vand.u32 4294901760, %v4978_v47 }
 0xaf9   :  { %5310 = vmatmul.f32.gmra.mxu1 %v12047_v0  ;;  %v5101_v43 = vsub.f32 %v4976_v52, %v12047_v0  ;;  %v3976_v52 = vadd.f32 %v11644_v44, %v11647_v2  ;;  %v2884_v21 = vadd.f32 %v14416_v22, %v2770_v35  ;;  %v14417_v44 = vld [vmem:[#allocation5_spill] sm:$0xff]  ;;  %v14420_v22 = vld [vmem:[#allocation62_spill] sm:$0xff] }
 0xafa   :  { %8490 = vpow2.f32 %v4916_v6  ;;  %14415 = vst [vmem:[#allocation32_spill] sm:$0xff] %v12063_v48  ;;  %v5111_v35 = vsub.f32 %v5109_v58, %v5110_v32 }
 0xafb   :  { %5428 = vmatmul.f32.gmra.mxu2 %v5101_v43  ;;  %v5102_v34 = vand.u32 4294901760, %v5101_v43  ;;  %8492 = vrcp.f32 %v4941_v39  ;;  %v3043_v2 = vadd.f32 %v14417_v44, %v2884_v21  ;;  %v14418_v39 = vld [vmem:[#allocation34_spill] sm:$0xff] }
 0xafd   :  { %v4871_v49 = vpop.xlane.xlu1 %4870  ;;  %5546 = vmatmul.f32.gmra.mxu3 %v5102_v34  ;;  %v5103_v26 = vsub.f32 %v5101_v43, %v5102_v34  ;;  %v4979_v34 = vmul.f32 %v8489_v36, %v11848_v31  ;;  %v12080_v21 = vadd.f32 %v14420_v22, %v3043_v2  ;;  %v5112_v36 = vand.u32 4294901760, %v5111_v35 }
 0xafe   :  { %v4889_v6 = vsub.f32 %v11933_v25, %v4871_v49  ;;  %v4090_v25 = vadd.f32 %v4089_v38, %v3976_v52  ;;  %v4215_v43 = vpop.f32.mrf.mxu1  ;;  %v5117_v49 = vsub.f32 %v4978_v47, %v12063_v48 }
 0xaff   :  { %v5104_v59 = vand.u32 4294901760, %v5103_v26  ;;  %v3980_v26 = vadd.f32 %v11651_v55, %v11655_v8  ;;  %v12096_v22 = vpop.f32.mrf.mxu2  ;;  %vm3202_vm5 = vcmp.gt.f32.partialorder %v12080_v21, 0.0 }
 0xb00   :  { %v12065_v33 = vpop.eup %8490  ;;  %v4918_v3 = vmul.f32 1.442695, %v4889_v6  ;;  %v14419_v6 = vld [vmem:[#allocation35_spill] sm:$0xff]  ;;  %v4204_v52 = vadd.f32 %v4203_v4, %v4090_v25  ;;  %v4943_v44 = vpop.xlane.xlu2 %4942  ;;  %v3218_v4 = vmin.f32 %v12080_v21, 0.0  ;;  %v14422_v25 = vld [vmem:[#allocation104_spill] sm:$0xff] }
 0xb01   :  { %4948 = vadd.xlane.f32.xlu2 %v12065_v33  ;;  %5105 = vmatmul.f32.gmra.mxu0 %v5104_v59  ;;  %v2660_v59 = vadd.f32 %v14419_v6, %v14418_v39  ;;  %v4095_v38 = vadd.f32 %v4094_v16, %v3980_v26  ;;  %v8493_v8 = vpop.eup %8492  ;;  %v14421_v39 = vld [vmem:[#allocation12_spill] sm:$0xff]  ;;  %v4104_v6 = vpop.f32.mrf.mxu0  ;;  %v14423_v26 = vld [vmem:[#allocation103_spill] sm:$0xff] }
 0xb02   :  { %8494 = vpow2.f32 %v4918_v3  ;;  %5314 = vmatmul.f32.gmra.mxu1 %v12049_v28  ;;  %v12082_v3 = vpop.f32.mrf.mxu3  ;;  %v12085_v28 = vand.u32 4294901760, %v4979_v34 }
 0xb03   :  { %5433 = vmatmul.f32.gmra.mxu2 %v5109_v58  ;;  %v5118_v58 = vand.u32 4294901760, %v5117_v49  ;;  %v2775_v2 = vadd.f32 %v14421_v39, %v2660_v59  ;;  %v4210_v35 = vadd.f32 %v4209_v20, %v4095_v38  ;;  %8496 = vrcp.f32 %v4943_v44  ;;  %v14424_v38 = vld [vmem:[#allocation42_spill] sm:$0xff] }
 0xb04   :  { %v3234_v20 = vmul.f32 1.442695, %v3218_v4  ;;  %v14428_v4 = vld [vmem:[#allocation105_spill] sm:$0xff] }
 0xb05   :  { %5552 = vmatmul.f32.gmra.mxu3 %v5110_v32  ;;  %v4873_v55 = vpop.xlane.xlu1 %4872  ;;  %v4363_v32 = vadd.f32 %v12026_v60, %v4204_v52  ;;  %v4980_v60 = vmul.f32 %v8493_v8, %v11862_v9  ;;  %v5119_v59 = vsub.f32 %v5117_v49, %v5118_v58  ;;  %v5125_v52 = vsub.f32 %v4979_v34, %v12085_v28  ;;  %v14426_v34 = vld [vmem:[#allocation15_spill] sm:$0xff] }
 0xb06   :  { %v4890_v31 = vsub.f32 %v11951_v30, %v4873_v55  ;;  %v3984_v30 = vadd.f32 %v14423_v26, %v14422_v25  ;;  %v2890_v44 = vadd.f32 %v14424_v38, %v2775_v2  ;;  %v14429_v38 = vld [vmem:[#allocation7_spill] sm:$0xff] }
 0xb07   :  { %v12101_v55 = vadd.f32 %v12031_v45, %v4363_v32  ;;  %v5120_v9 = vand.u32 4294901760, %v5119_v59  ;;  %v5126_v8 = vand.u32 4294901760, %v5125_v52 }
 0xb08   :  { %v12087_v47 = vpop.eup %8494  ;;  %v4920_v16 = vmul.f32 1.442695, %v4890_v31  ;;  %v4367_v31 = vadd.f32 %v12035_v63, %v4210_v35  ;;  %v4100_v39 = vadd.f32 %v4099_v27, %v3984_v30 }
 0xb09   :  { %4950 = vadd.xlane.f32.xlu1 %v12087_v47  ;;  %5113 = vmatmul.f32.gmra.mxu0 %v5112_v36  ;;  %v4221_v36 = vpop.f32.mrf.mxu1  ;;  %v4538_v45 = vmin.f32 %v12101_v55, 0.0  ;;  %v4109_v32 = vpop.f32.mrf.mxu0  ;;  %vm4522_vm6 = vcmp.gt.f32.partialorder %v12101_v55, 0.0 }
 0xb0a   :  { %5318 = vmatmul.f32.gmra.mxu1 %v12063_v48  ;;  %8498 = vpow2.f32 %v4920_v16  ;;  %v12106_v16 = vand.u32 4294901760, %v4980_v60  ;;  %v3047_v48 = vadd.f32 %v14426_v34, %v2890_v44  ;;  %v12111_v63 = vadd.f32 %v12040_v42, %v4367_v31  ;;  %v12115_v2 = vpop.f32.mrf.mxu3 }
 0xb0b   :  { %5438 = vmatmul.f32.gmra.mxu2 %v5117_v49  ;;  %v8497_v49 = vpop.eup %8496  ;;  %8500 = vpow2.f32 %v3234_v20  ;;  %v4216_v35 = vadd.f32 %v4215_v43, %v4100_v39  ;;  %v5127_v42 = vsub.f32 %v5125_v52, %v5126_v8  ;;  %v12128_v39 = vpop.f32.mrf.mxu2 }
 0xb0c   :  { %14425 = vst [vmem:[#allocation33_spill] sm:$0xff] %v12106_v16  ;;  %v4981_v59 = vmul.f32 %v8497_v49, %v11893_v19  ;;  %v5133_v31 = vsub.f32 %v4980_v60, %v12106_v16  ;;  %v12124_v44 = vadd.f32 %v14429_v38, %v3047_v48  ;;  %v4539_v20 = vmin.f32 %v12111_v63, 0.0 }
 0xb0d   :  { %5558 = vmatmul.f32.gmra.mxu3 %v5118_v58  ;;  %v4875_v25 = vpop.xlane.xlu1 %4874  ;;  %v5128_v34 = vand.u32 4294901760, %v5127_v42  ;;  %vm4523_vm7 = vcmp.gt.f32.partialorder %v12111_v63, 0.0 }
 0xb0e   :  { %v4891_v26 = vsub.f32 %v11965_v57, %v4875_v25  ;;  %v14427_v57 = vld [vmem:[#allocation106_spill] sm:$0xff]  ;;  %v4554_v25 = vmul.f32 1.442695, %v4538_v45  ;;  %v5134_v19 = vand.u32 4294901760, %v5133_v31  ;;  %v12130_v49 = vand.u32 4294901760, %v4981_v59 }
 0xb0f   :  { %v3988_v30 = vadd.f32 %v14428_v4, %v14427_v57  ;;  %v3219_v60 = vmin.f32 %v12124_v44, 0.0  ;;  %v4556_v48 = vmul.f32 1.442695, %v4539_v20  ;;  %v14431_v57 = vld [vmem:[#allocation107_spill] sm:$0xff]  ;;  %vm3203_vm0 = vcmp.gt.f32.partialorder %v12124_v44, 0.0 }
 0xb10   :  { %v12113_v58 = vpop.eup %8498  ;;  %v4922_v27 = vmul.f32 1.442695, %v4891_v26  ;;  %v4371_v26 = vadd.f32 %v12045_v56, %v4216_v35  ;;  %v14430_v56 = vld [vmem:[#allocation108_spill] sm:$0xff]  ;;  %v5135_v35 = vsub.f32 %v5133_v31, %v5134_v19  ;;  %v5141_v42 = vsub.f32 %v4981_v59, %v12130_v49 }
 0xb11   :  { %5121 = vmatmul.f32.gmra.mxu0 %v5120_v9  ;;  %4952 = vadd.xlane.f32.xlu0 %v12113_v58  ;;  %v4227_v43 = vpop.f32.mrf.mxu1  ;;  %v4105_v9 = vadd.f32 %v4104_v6, %v3988_v30  ;;  %v3992_v4 = vadd.f32 %v14431_v57, %v14430_v56  ;;  %v4114_v6 = vpop.f32.mrf.mxu0 }
 0xb12   :  { %5322 = vmatmul.f32.gmra.mxu1 %v12085_v28  ;;  %8502 = vpow2.f32 %v4922_v27  ;;  %v12134_v45 = vadd.f32 %v12058_v11, %v4371_v26  ;;  %v12142_v30 = vpop.f32.mrf.mxu3  ;;  %v3236_v11 = vmul.f32 1.442695, %v3219_v60  ;;  %v5136_v56 = vand.u32 4294901760, %v5135_v35  ;;  %v14433_v60 = vld [vmem:[#allocation109_spill] sm:$0xff] }
 0xb13   :  { %5443 = vmatmul.f32.gmra.mxu2 %v5125_v52  ;;  %v8501_v52 = vpop.eup %8500  ;;  %8504 = vpow2.f32 %v4554_v25  ;;  %v4110_v26 = vadd.f32 %v4109_v32, %v3992_v4  ;;  %v5142_v57 = vand.u32 4294901760, %v5141_v42 }
 0xb14   :  { %8506 = vpow2.f32 %v4556_v48  ;;  %v4540_v38 = vmin.f32 %v12134_v45, 0.0  ;;  %v8118_v20 = vadd.f32 -1.0, %v8501_v52  ;;  %v14432_v52 = vld [vmem:[#allocation110_spill] sm:$0xff]  ;;  %vm4524_vm8 = vcmp.gt.f32.partialorder %v12134_v45, 0.0 }
 0xb15   :  { %5564 = vmatmul.f32.gmra.mxu3 %v5126_v8  ;;  %v4222_v8 = vadd.f32 %v4221_v36, %v4105_v9  ;;  %8508 = vpow2.f32 %v3236_v11  ;;  %v3996_v32 = vadd.f32 %v14433_v60, %v14432_v52  ;;  %v4228_v48 = vadd.f32 %v4227_v43, %v4110_v26 }
 0xb16   :  { %v3282_v59 = vsel %vm3202_vm5, %v12080_v21, %v8118_v20 }
 0xb17   :  { %v4375_v25 = vadd.f32 %v12068_v61, %v4222_v8  ;;  %v4379_v35 = vadd.f32 %v12096_v22, %v4228_v48 }
 0xb18   :  { %v12136_v27 = vpop.eup %8502 }
 0xb19   :  { %5129 = vmatmul.f32.gmra.mxu0 %v5128_v34  ;;  %4954 = vadd.xlane.f32.xlu2 %v12136_v27  ;;  %v8505_v36 = vpop.eup %8504  ;;  %v4233_v9 = vpop.f32.mrf.mxu1 }
 0xb1a   :  { %5326 = vmatmul.f32.gmra.mxu1 %v12106_v16  ;;  %v12147_v34 = vpop.f32.mrf.mxu2  ;;  %v4558_v16 = vmul.f32 1.442695, %v4540_v38  ;;  %v8134_v61 = vadd.f32 -1.0, %v8505_v36  ;;  %v4119_v4 = vpop.f32.mrf.mxu0 }
 0xb1b   :  { %5448 = vmatmul.f32.gmra.mxu2 %v5133_v31  ;;  %v12150_v31 = vadd.f32 %v12082_v3, %v4375_v25  ;;  %v5143_v3 = vsub.f32 %v5141_v42, %v5142_v57  ;;  %v4483_v21 = vpop.f32.mrf.mxu3  ;;  %v4115_v25 = vadd.f32 %v4114_v6, %v3996_v32 }
 0xb1c   :  { %8510 = vpow2.f32 %v4558_v16  ;;  %v4602_v11 = vsel %vm4522_vm6, %v12101_v55, %v8134_v61  ;;  %v4476_v16 = vadd.f32 %v12115_v2, %v4379_v35  ;;  %v14434_v55 = vld [vmem:[#allocation112_spill] sm:$0xff]  ;;  %vm3362_vm6 = vcmask 261248  }
 0xb1d   :  { %5570 = vmatmul.f32.gmra.mxu3 %v5134_v19  ;;  %v8507_v19 = vpop.eup %8506  ;;  %v4541_v8 = vmin.f32 %v12150_v31, 0.0  ;;  %v5144_v36 = vand.u32 4294901760, %v5143_v3  ;;  %v4234_v6 = vadd.f32 %v4233_v9, %v4115_v25  ;;  %vm4525_vm9 = vcmp.gt.f32.partialorder %v12150_v31, 0.0 }
 0xb1e   :  { %v8135_v43 = vadd.f32 -1.0, %v8507_v19  ;;  %v8509_v38 = vpop.eup %8508  ;;  %v4542_v19 = vmin.f32 %v4476_v16, 0.0  ;;  %vm4526_vm10 = vcmp.gt.f32.partialorder %v4476_v16, 0.0 }
 0xb1f   :  { %v4383_v52 = vadd.f32 %v12128_v39, %v4234_v6  ;;  %v14436_v39 = vld [vmem:[#allocation114_spill] sm:$0xff] }
 0xb20   :  { %v4603_v26 = vsel %vm4523_vm7, %v12111_v63, %v8135_v43  ;;  %v4562_v3 = vmul.f32 1.442695, %v4542_v19  ;;  %v14437_v43 = vld [vmem:[#allocation113_spill] sm:$0xff]  ;;  %vm4682_vm7 = vcmask 392448  }
 0xb21   :  { %5137 = vmatmul.f32.gmra.mxu0 %v5136_v56  ;;  %v4239_v20 = vpop.f32.mrf.mxu1  ;;  %v8119_v56 = vadd.f32 -1.0, %v8509_v38  ;;  %v4004_v38 = vadd.f32 %v14437_v43, %v14436_v39 }
 0xb22   :  { %5330 = vmatmul.f32.gmra.mxu1 %v12130_v49  ;;  %3314 = vrot.lane.b32.xlu1 %v3282_v59, %s8715_s29  ;;  %v4390_v22 = vpop.f32.mrf.mxu2  ;;  %v14435_v59 = vld [vmem:[#allocation111_spill] sm:$0xff]  ;;  %v4124_v2 = vpop.f32.mrf.mxu0 }
 0xb23   :  { %5453 = vmatmul.f32.gmra.mxu2 %v5141_v42  ;;  %v4560_v42 = vmul.f32 1.442695, %v4541_v8  ;;  %v4000_v61 = vadd.f32 %v14435_v59, %v14434_v55  ;;  %v3283_v60 = vsel %vm3203_vm0, %v12124_v44, %v8119_v56  ;;  %v4487_v63 = vpop.f32.mrf.mxu3  ;;  %v4480_v8 = vadd.f32 %v12142_v30, %v4383_v52 }
 0xb24   :  { %v4125_v30 = vadd.f32 %v4124_v2, %v4004_v38 }
 0xb25   :  { %5576 = vmatmul.f32.gmra.mxu3 %v5142_v57  ;;  %4634 = vrot.lane.b32.xlu0 %v4602_v11, %s8716_s30  ;;  %v8511_v57 = vpop.eup %8510  ;;  %8512 = vpow2.f32 %v4560_v42  ;;  %v4120_v48 = vadd.f32 %v4119_v4, %v4000_v61  ;;  %v4543_v4 = vmin.f32 %v4480_v8, 0.0  ;;  %vm4527_vm11 = vcmp.gt.f32.partialorder %v4480_v8, 0.0 }
 0xb26   :  { %v8136_v32 = vadd.f32 -1.0, %v8511_v57  ;;  %8514 = vpow2.f32 %v4562_v3 }
 0xb27   :  { %v4240_v25 = vadd.f32 %v4239_v20, %v4120_v48  ;;  %v4564_v56 = vmul.f32 1.442695, %v4543_v4  ;;  %v4008_v20 = vadd.f32 %v11872_v10, %v11875_v13 }
 0xb28   :  { %v4604_v35 = vsel %vm4524_vm8, %v12134_v45, %v8136_v32 }
 0xb29   :  { %5145 = vmatmul.f32.gmra.mxu0 %v5144_v36  ;;  %v4245_v9 = vpop.f32.mrf.mxu1  ;;  %v4387_v36 = vadd.f32 %v12147_v34, %v4240_v25  ;;  %8516 = vpow2.f32 %v4564_v56 }
 0xb2a   :  { %4636 = vrot.lane.b32.xlu1 %v4603_v26, %s8716_s30  ;;  %v4394_v44 = vpop.f32.mrf.mxu2  ;;  %v4129_v42 = vpop.f32.mrf.mxu0  ;;  %v4246_v6 = vadd.f32 %v4245_v9, %v4125_v30 }
 0xb2b   :  { %v8513_v11 = vpop.eup %8512  ;;  %v4484_v57 = vadd.f32 %v4483_v21, %v4387_v36  ;;  %v4491_v55 = vpop.f32.mrf.mxu3 }
 0xb2c   :  { %v8137_v26 = vadd.f32 -1.0, %v8513_v11  ;;  %v8515_v61 = vpop.eup %8514  ;;  %v4391_v19 = vadd.f32 %v4390_v22, %v4246_v6 }
 0xb2d   :  { %3316 = vrot.lane.b32.xlu0 %v3283_v60, %s8715_s29  ;;  %v4544_v34 = vmin.f32 %v4484_v57, 0.0  ;;  %v8138_v2 = vadd.f32 -1.0, %v8515_v61  ;;  %v4130_v60 = vadd.f32 %v4129_v42, %v4008_v20  ;;  %vm4528_vm12 = vcmp.gt.f32.partialorder %v4484_v57, 0.0 }
 0xb2e   :  { %v4605_v59 = vsel %vm4525_vm9, %v12150_v31, %v8137_v26  ;;  %v4488_v48 = vadd.f32 %v4487_v63, %v4391_v19  ;;  %v4012_v31 = vadd.f32 %v11906_v1, %v11913_v41 }
 0xb2f   :  { %v4566_v32 = vmul.f32 1.442695, %v4544_v34  ;;  %v4606_v3 = vsel %vm4526_vm10, %v4476_v16, %v8138_v2  ;;  %v4016_v16 = vadd.f32 %v11974_v53, %v11972_v40  ;;  %v4020_v53 = vadd.f32 %v11983_v14, %v11978_v54 }
 0xb30   :  { %v4545_v9 = vmin.f32 %v4488_v48, 0.0  ;;  %vm4529_vm13 = vcmp.gt.f32.partialorder %v4488_v48, 0.0 }
 0xb31   :  { %v4251_v45 = vpop.f32.mrf.mxu1  ;;  %8518 = vpow2.f32 %v4566_v32 }
 0xb32   :  { %4638 = vrot.lane.b32.xlu1 %v4604_v35, %s8716_s30  ;;  %v4398_v52 = vpop.f32.mrf.mxu2  ;;  %v4134_v21 = vpop.f32.mrf.mxu0  ;;  %v4252_v11 = vadd.f32 %v4251_v45, %v4130_v60  ;;  %v4568_v4 = vmul.f32 1.442695, %v4545_v9 }
 0xb33   :  { %v8517_v35 = vpop.eup %8516  ;;  %v4495_v13 = vpop.f32.mrf.mxu3  ;;  %v4135_v43 = vadd.f32 %v4134_v21, %v4012_v31 }
 0xb34   :  { %v4395_v22 = vadd.f32 %v4394_v44, %v4252_v11  ;;  %v8139_v39 = vadd.f32 -1.0, %v8517_v35  ;;  %8520 = vpow2.f32 %v4568_v4  ;;  %v4024_v11 = vadd.f32 %v11999_v51, %v11992_v15 }
 0xb36   :  { %v4492_v63 = vadd.f32 %v4491_v55, %v4395_v22  ;;  %v4607_v36 = vsel %vm4527_vm11, %v4480_v8, %v8139_v39  ;;  %v4947_v22 = vpop.xlane.xlu0 %4946 }
 0xb37   :  { %v8519_v1 = vpop.eup %8518 }
 0xb38   :  { %v4546_v26 = vmin.f32 %v4492_v63, 0.0  ;;  %v8140_v45 = vadd.f32 -1.0, %v8519_v1  ;;  %vm4530_vm14 = vcmp.gt.f32.partialorder %v4492_v63, 0.0 }
 0xb39   :  { %v4257_v10 = vpop.f32.mrf.mxu1 }
 0xb3a   :  { %4640 = vrot.lane.b32.xlu1 %v4605_v59, %s8716_s30  ;;  %v4139_v38 = vpop.f32.mrf.mxu0  ;;  %v4402_v25 = vpop.f32.mrf.mxu2  ;;  %v4258_v41 = vadd.f32 %v4257_v10, %v4135_v43  ;;  %v4570_v59 = vmul.f32 1.442695, %v4546_v26  ;;  %v4608_v34 = vsel %vm4528_vm12, %v4484_v57, %v8140_v45 }
 0xb3b   :  { %v4140_v44 = vadd.f32 %v4139_v38, %v4016_v16  ;;  %v4499_v56 = vpop.f32.mrf.mxu3  ;;  %v8521_v40 = vpop.eup %8520  ;;  %v4028_v16 = vadd.f32 %v12006_v7, %v12001_v18 }
 0xb3c   :  { %v4399_v30 = vadd.f32 %v4398_v52, %v4258_v41  ;;  %8522 = vpow2.f32 %v4570_v59  ;;  %v8141_v2 = vadd.f32 -1.0, %v8521_v40 }
 0xb3e   :  { %v4496_v61 = vadd.f32 %v4495_v13, %v4399_v30  ;;  %v4609_v31 = vsel %vm4529_vm13, %v4488_v48, %v8141_v2 }
 0xb40   :  { %v4547_v19 = vmin.f32 %v4496_v61, 0.0  ;;  %vm4531_vm15 = vcmp.gt.f32.partialorder %v4496_v61, 0.0 }
 0xb41   :  { %v4263_v42 = vpop.f32.mrf.mxu1 }
 0xb42   :  { %4642 = vrot.lane.b32.xlu1 %v4606_v3, %s8716_s30  ;;  %v4144_v55 = vpop.f32.mrf.mxu0  ;;  %v4264_v20 = vadd.f32 %v4263_v42, %v4140_v44  ;;  %v4406_v6 = vpop.f32.mrf.mxu2  ;;  %v4572_v3 = vmul.f32 1.442695, %v4547_v19 }
 0xb43   :  { %v4145_v60 = vadd.f32 %v4144_v55, %v4020_v53  ;;  %v4503_v32 = vpop.f32.mrf.mxu3  ;;  %v8523_v57 = vpop.eup %8522 }
 0xb44   :  { %v4403_v8 = vadd.f32 %v4402_v25, %v4264_v20  ;;  %8524 = vpow2.f32 %v4572_v3  ;;  %v8142_v39 = vadd.f32 -1.0, %v8523_v57 }
 0xb45   :  { %8526 = vrcp.f32 %v4947_v22 }
 0xb46   :  { %v12194_v21 = vadd.f32 %v4499_v56, %v4403_v8  ;;  %v4610_v15 = vsel %vm4530_vm14, %v4492_v63, %v8142_v39 }
 0xb48   :  { %v4548_v14 = vmin.f32 %v12194_v21, 0.0  ;;  %vm4532_vm1 = vcmp.gt.f32.partialorder %v12194_v21, 0.0 }
 0xb49   :  { %v4269_v52 = vpop.f32.mrf.mxu1 }
 0xb4a   :  { %4644 = vrot.lane.b32.xlu1 %v4607_v36, %s8716_s30  ;;  %v4149_v35 = vpop.f32.mrf.mxu0  ;;  %v4270_v54 = vadd.f32 %v4269_v52, %v4145_v60  ;;  %v4410_v10 = vpop.f32.mrf.mxu2  ;;  %v4574_v38 = vmul.f32 1.442695, %v4548_v14 }
 0xb4b   :  { %v4150_v43 = vadd.f32 %v4149_v35, %v4024_v11  ;;  %v4507_v4 = vpop.f32.mrf.mxu3  ;;  %v8525_v51 = vpop.eup %8524 }
 0xb4c   :  { %v4407_v13 = vadd.f32 %v4406_v6, %v4270_v54  ;;  %8528 = vpow2.f32 %v4574_v38  ;;  %v8143_v44 = vadd.f32 -1.0, %v8525_v51  ;;  %v8527_v56 = vpop.eup %8526  ;;  %v4032_v6 = vadd.f32 %v12014_v12, %v12010_v37 }
 0xb4d   :  { %v4983_v18 = vmul.f32 %v8527_v56, %v11891_v17  ;;  %v4036_v54 = vadd.f32 %v12022_v29, %v12018_v23 }
 0xb4e   :  { %v12200_v25 = vadd.f32 %v4503_v32, %v4407_v13  ;;  %v4611_v7 = vsel %vm4531_vm15, %v4496_v61, %v8143_v44 }
 0xb4f   :  { %v12216_v17 = vand.u32 4294901760, %v4983_v18 }
 0xb50   :  { %v4549_v41 = vmin.f32 %v12200_v25, 0.0  ;;  %vm4533_vm2 = vcmp.gt.f32.partialorder %v12200_v25, 0.0 }
 0xb51   :  { %v4275_v9 = vpop.f32.mrf.mxu1  ;;  %v5157_v57 = vsub.f32 %v4983_v18, %v12216_v17 }
 0xb52   :  { %4646 = vrot.lane.b32.xlu1 %v4608_v34, %s8716_s30  ;;  %v4154_v48 = vpop.f32.mrf.mxu0  ;;  %v4276_v36 = vadd.f32 %v4275_v9, %v4150_v43  ;;  %v4414_v30 = vpop.f32.mrf.mxu2  ;;  %v4576_v59 = vmul.f32 1.442695, %v4549_v41 }
 0xb53   :  { %v4155_v45 = vadd.f32 %v4154_v48, %v4028_v16  ;;  %v8529_v55 = vpop.eup %8528  ;;  %v4511_v53 = vpop.f32.mrf.mxu3  ;;  %v5158_v48 = vand.u32 4294901760, %v5157_v57 }
 0xb54   :  { %v4411_v42 = vadd.f32 %v4410_v10, %v4276_v36  ;;  %v8144_v60 = vadd.f32 -1.0, %v8529_v55 }
 0xb55   :  { %v5159_v36 = vsub.f32 %v5157_v57, %v5158_v48 }
 0xb56   :  { %v12206_v63 = vadd.f32 %v4507_v4, %v4411_v42 }
 0xb58   :  { %v4550_v19 = vmin.f32 %v12206_v63, 0.0  ;;  %vm4534_vm3 = vcmp.gt.f32.partialorder %v12206_v63, 0.0 }
 0xb59   :  { %v4281_v26 = vpop.f32.mrf.mxu1 }
 0xb5a   :  { %4648 = vrot.lane.b32.xlu1 %v4609_v31, %s8716_s30  ;;  %v4282_v34 = vadd.f32 %v4281_v26, %v4155_v45  ;;  %v4159_v40 = vpop.f32.mrf.mxu0  ;;  %v4418_v3 = vpop.f32.mrf.mxu2  ;;  %v4578_v12 = vmul.f32 1.442695, %v4550_v19  ;;  %v5160_v45 = vand.u32 4294901760, %v5159_v36 }
 0xb5b   :  { %v4160_v61 = vadd.f32 %v4159_v40, %v4032_v6  ;;  %v4515_v43 = vpop.f32.mrf.mxu3 }
 0xb5c   :  { %v4415_v52 = vadd.f32 %v4414_v30, %v4282_v34 }
 0xb5e   :  { %v12220_v35 = vadd.f32 %v4511_v53, %v4415_v52 }
 0xb60   :  { %v4551_v13 = vmin.f32 %v12220_v35, 0.0  ;;  %vm4535_vm4 = vcmp.gt.f32.partialorder %v12220_v35, 0.0 }
 0xb61   :  { %v4287_v32 = vpop.f32.mrf.mxu1 }
 0xb62   :  { %4650 = vrot.lane.b32.xlu1 %v4610_v15, %s8716_s30  ;;  %v4288_v14 = vadd.f32 %v4287_v32, %v4160_v61  ;;  %v4164_v39 = vpop.f32.mrf.mxu0  ;;  %v4580_v23 = vmul.f32 1.442695, %v4551_v13  ;;  %v4422_v51 = vpop.f32.mrf.mxu2 }
 0xb63   :  { %v4165_v4 = vadd.f32 %v4164_v39, %v4036_v54 }
 0xb64   :  { %v4945_v1 = vpop.xlane.xlu1 %4944  ;;  %v4419_v9 = vadd.f32 %v4418_v3, %v4288_v14 }
 0xb65   :  { %8530 = vrcp.f32 %v4945_v1 }
 0xb66   :  { %8532 = vpow2.f32 %v4576_v59  ;;  %v12230_v29 = vadd.f32 %v4515_v43, %v4419_v9 }
 0xb67   :  { %8534 = vpow2.f32 %v4578_v12 }
 0xb68   :  { %v4552_v26 = vmin.f32 %v12230_v29, 0.0  ;;  %vm4536_vm5 = vcmp.gt.f32.partialorder %v12230_v29, 0.0 }
 0xb69   :  { %v4293_v15 = vpop.f32.mrf.mxu1 }
 0xb6a   :  { %4652 = vrot.lane.b32.xlu1 %v4611_v7, %s8716_s30  ;;  %v4294_v41 = vadd.f32 %v4293_v15, %v4165_v4  ;;  %v4582_v18 = vmul.f32 1.442695, %v4552_v26 }
 0xb6b   :  { %v8531_v20 = vpop.eup %8530 }
 0xb6c   :  { %v4982_v8 = vmul.f32 %v8531_v20, %v12037_v24  ;;  %v4612_v24 = vsel %vm4532_vm1, %v12194_v21, %v8144_v60  ;;  %v8533_v11 = vpop.eup %8532  ;;  %v4423_v30 = vadd.f32 %v4422_v51, %v4294_v41 }
 0xb6d   :  { %v8145_v38 = vadd.f32 -1.0, %v8533_v11  ;;  %v8535_v1 = vpop.eup %8534 }
 0xb6e   :  { %v12214_v2 = vand.u32 4294901760, %v4982_v8  ;;  %v8146_v59 = vadd.f32 -1.0, %v8535_v1 }
 0xb6f   :  { %v4613_v16 = vsel %vm4533_vm2, %v12200_v25, %v8145_v38  ;;  %v4519_v25 = vpop.f32.mrf.mxu3 }
 0xb70   :  { %5334 = vmatmul.f32.gmra.mxu1 %v12214_v2  ;;  %v5149_v37 = vsub.f32 %v4982_v8, %v12214_v2  ;;  %v12239_v7 = vadd.f32 %v4519_v25, %v4423_v30  ;;  %v4614_v6 = vsel %vm4534_vm3, %v12206_v63, %v8146_v59 }
 0xb71   :  { %v12256_v14 = vpop.f32.mrf.mxu1 }
 0xb72   :  { %5458 = vmatmul.f32.gmra.mxu2 %v5149_v37  ;;  %v5150_v31 = vand.u32 4294901760, %v5149_v37  ;;  %4654 = vrot.lane.b32.xlu1 %v4612_v24, %s8716_s30  ;;  %v4553_v53 = vmin.f32 %v12239_v7, 0.0  ;;  %vm4537_vm0 = vcmp.gt.f32.partialorder %v12239_v7, 0.0 }
 0xb74   :  { %5582 = vmatmul.f32.gmra.mxu3 %v5150_v31  ;;  %v5151_v10 = vsub.f32 %v5149_v37, %v5150_v31  ;;  %v4949_v22 = vpop.xlane.xlu2 %4948  ;;  %v4584_v63 = vmul.f32 1.442695, %v4553_v53 }
 0xb75   :  { %8536 = vrcp.f32 %v4949_v22 }
 0xb76   :  { %v5152_v21 = vand.u32 4294901760, %v5151_v10  ;;  %8538 = vpow2.f32 %v4580_v23 }
 0xb78   :  { %5153 = vmatmul.f32.gmra.mxu0 %v5152_v21  ;;  %5338 = vmatmul.f32.gmra.mxu1 %v12216_v17  ;;  %v12265_v21 = vpop.f32.mrf.mxu0 }
 0xb79   :  { %v12271_v15 = vpop.f32.mrf.mxu1 }
 0xb7a   :  { %5463 = vmatmul.f32.gmra.mxu2 %v5157_v57  ;;  %4656 = vrot.lane.b32.xlu1 %v4613_v16, %s8716_s30 }
 0xb7b   :  { %v8537_v42 = vpop.eup %8536 }
 0xb7c   :  { %5588 = vmatmul.f32.gmra.mxu3 %v5158_v48  ;;  %v4984_v44 = vmul.f32 %v8537_v42, %v12065_v33  ;;  %v4951_v56 = vpop.xlane.xlu1 %4950  ;;  %v8539_v33 = vpop.eup %8538 }
 0xb7d   :  { %8540 = vrcp.f32 %v4951_v56  ;;  %v8147_v60 = vadd.f32 -1.0, %v8539_v33  ;;  %v14439_v33 = vld [vmem:[#allocation32_spill] sm:$0xff] }
 0xb7e   :  { %v12237_v55 = vand.u32 4294901760, %v4984_v44  ;;  %8542 = vpow2.f32 %v4582_v18 }
 0xb7f   :  { %v4615_v37 = vsel %vm4535_vm4, %v12220_v35, %v8147_v60 }
 0xb80   :  { %5161 = vmatmul.f32.gmra.mxu0 %v5160_v45  ;;  %5342 = vmatmul.f32.gmra.mxu1 %v12237_v55  ;;  %v5165_v20 = vsub.f32 %v4984_v44, %v12237_v55  ;;  %v12279_v41 = vpop.f32.mrf.mxu0 }
 0xb81   :  { %v12281_v26 = vpop.f32.mrf.mxu1 }
 0xb82   :  { %5468 = vmatmul.f32.gmra.mxu2 %v5165_v20  ;;  %4658 = vrot.lane.b32.xlu1 %v4614_v6, %s8716_s30  ;;  %v5166_v34 = vand.u32 4294901760, %v5165_v20 }
 0xb83   :  { %v8541_v40 = vpop.eup %8540 }
 0xb84   :  { %v4985_v8 = vmul.f32 %v8541_v40, %v12087_v47  ;;  %5594 = vmatmul.f32.gmra.mxu3 %v5166_v34  ;;  %v5167_v19 = vsub.f32 %v5165_v20, %v5166_v34  ;;  %v4953_v52 = vpop.xlane.xlu0 %4952  ;;  %v8543_v12 = vpop.eup %8542  ;;  %v14438_v20 = vld [vmem:[#allocation127_spill] sm:$0xff] }
 0xb85   :  { %8544 = vrcp.f32 %v4953_v52  ;;  %v8148_v54 = vadd.f32 -1.0, %v8543_v12 }
 0xb86   :  { %v5168_v61 = vand.u32 4294901760, %v5167_v19  ;;  %v12248_v32 = vand.u32 4294901760, %v4985_v8  ;;  %8546 = vpow2.f32 %v4584_v63 }
 0xb87   :  { %v4616_v9 = vsel %vm4536_vm5, %v12230_v29, %v8148_v54 }
 0xb88   :  { %5169 = vmatmul.f32.gmra.mxu0 %v5168_v61  ;;  %5346 = vmatmul.f32.gmra.mxu1 %v12248_v32  ;;  %v5173_v3 = vsub.f32 %v4985_v8, %v12248_v32  ;;  %v12286_v56 = vpop.f32.mrf.mxu0 }
 0xb89   :  { %v12290_v45 = vpop.f32.mrf.mxu1 }
 0xb8a   :  { %5473 = vmatmul.f32.gmra.mxu2 %v5173_v3  ;;  %4660 = vrot.lane.b32.xlu1 %v4615_v37, %s8716_s30  ;;  %v5174_v47 = vand.u32 4294901760, %v5173_v3 }
 0xb8b   :  { %v8545_v24 = vpop.eup %8544 }
 0xb8c   :  { %5600 = vmatmul.f32.gmra.mxu3 %v5174_v47  ;;  %v5175_v31 = vsub.f32 %v5173_v3, %v5174_v47  ;;  %v4986_v57 = vmul.f32 %v8545_v24, %v12113_v58  ;;  %v4955_v11 = vpop.xlane.xlu2 %4954  ;;  %v8547_v22 = vpop.eup %8546 }
 0xb8d   :  { %8548 = vrcp.f32 %v4955_v11  ;;  %v8149_v4 = vadd.f32 -1.0, %v8547_v22  ;;  %v5409_v3 = vpop.f32.mrf.mxu2  ;;  %v14442_v11 = vld [vmem:[#allocation19_spill] sm:$0xff] }
 0xb8e   :  { %v5176_v10 = vand.u32 4294901760, %v5175_v31  ;;  %v12258_v13 = vand.u32 4294901760, %v4986_v57 }
 0xb8f   :  { %v4617_v16 = vsel %vm4537_vm0, %v12239_v7, %v8149_v4 }
 0xb90   :  { %5177 = vmatmul.f32.gmra.mxu0 %v5176_v10  ;;  %5350 = vmatmul.f32.gmra.mxu1 %v12258_v13  ;;  %v5181_v35 = vsub.f32 %v4986_v57, %v12258_v13  ;;  %v12294_v59 = vpop.f32.mrf.mxu0  ;;  %v14443_v10 = vld [vmem:[#allocation63_spill] sm:$0xff] }
 0xb91   :  { %v12296_v25 = vpop.f32.mrf.mxu1 }
 0xb92   :  { %4662 = vrot.lane.b32.xlu1 %v4616_v9, %s8716_s30  ;;  %5478 = vmatmul.f32.gmra.mxu2 %v5181_v35  ;;  %v5182_v58 = vand.u32 4294901760, %v5181_v35 }
 0xb93   :  { %v8549_v39 = vpop.eup %8548 }
 0xb94   :  { %v3315_v43 = vpop.permute.xlu1 %3314  ;;  %v4987_v38 = vmul.f32 %v8549_v39, %v12136_v27  ;;  %5606 = vmatmul.f32.gmra.mxu3 %v5182_v58  ;;  %v5183_v48 = vsub.f32 %v5181_v35, %v5182_v58  ;;  %v14444_v39 = vld [vmem:[#allocation16_spill] sm:$0xff] }
 0xb95   :  { %3363 = vst.msk [vmem:[#allocation2] sm:$0xff] %vm3362_vm6, %v3315_v43  ;;  %v5414_v47 = vpop.f32.mrf.mxu2 }
 0xb96   :  { %v5184_v23 = vand.u32 4294901760, %v5183_v48  ;;  %v12269_v29 = vand.u32 4294901760, %v4987_v38  ;;  %v14446_v48 = vld [vmem:[#allocation38_spill] sm:$0xff] }
 0xb97   :  { %v4635_v51 = vpop.permute.xlu0 %4634 }
 0xb98   :  { %4683 = vst.msk [vmem:[#allocation2] sm:$0xff] %vm4682_vm7, %v4635_v51  ;;  %5185 = vmatmul.f32.gmra.mxu0 %v5184_v23  ;;  %5354 = vmatmul.f32.gmra.mxu1 %v12269_v29  ;;  %v5189_v27 = vsub.f32 %v4987_v38, %v12269_v29  ;;  %v12300_v18 = vpop.f32.mrf.mxu0  ;;  %v14447_v23 = vld [vmem:[#allocation10_spill] sm:$0xff] }
 0xb99   :  { %v12302_v7 = vpop.f32.mrf.mxu1 }
 0xb9a   :  { %4664 = vrot.lane.b32.xlu1 %v4617_v16, %s8716_s30  ;;  %5483 = vmatmul.f32.gmra.mxu2 %v5189_v27  ;;  %v5190_v36 = vand.u32 4294901760, %v5189_v27  ;;  %v14448_v16 = vld [vmem:[#allocation67_spill] sm:$0xff] }
 0xb9c   :  { %5612 = vmatmul.f32.gmra.mxu3 %v5190_v36  ;;  %v5191_v1 = vsub.f32 %v5189_v27, %v5190_v36  ;;  %v4637_v44 = vpop.permute.xlu1 %4636 }
 0xb9d   :  { %v5419_v57 = vpop.f32.mrf.mxu2 }
 0xb9e   :  { %v5192_v42 = vand.u32 4294901760, %v5191_v1 }
 0xb9f   :  { %v3317_v30 = vpop.permute.xlu0 %3316 }
 0xba0   :  { %3364 = vst.msk [vmem:[#allocation2 + $0x8] sm:$0xff] %vm3362_vm6, %v3317_v30  ;;  %5193 = vmatmul.f32.gmra.mxu0 %v5192_v42  ;;  %5778 = vmatmul.f32.vlgmr.msrb.gmra.mxu1 %v11838_v50  ;;  %v14449_v30 = vld [vmem:[#allocation9_spill] sm:$0xff] }
 0xba1   :  { %4684 = vst.msk [vmem:[#allocation2 + $0x8] sm:$0xff] %vm4682_vm7, %v4637_v44 }
 0xba5   :  { %v12380_v27 = vpop.f32.mrf.mxu2 }
 0xba8   :  { %5681 = vmatmul.f32.vlgmr.msrb.gmra.mxu0 %v11838_v50  ;;  %5782 = vmatmul.f32.gmra.mxu1 %v11850_v5  ;;  %v12306_v50 = vpop.f32.mrf.mxu0 }
 0xbb0   :  { %5685 = vmatmul.f32.gmra.mxu0 %v11850_v5  ;;  %5786 = vmatmul.f32.gmra.mxu1 %v11988_v46  ;;  %v12308_v5 = vpop.f32.mrf.mxu1  ;;  %v12312_v6 = vpop.f32.mrf.mxu0 }
 0xbb8   :  { %5689 = vmatmul.f32.gmra.mxu0 %v11988_v46  ;;  %5790 = vmatmul.f32.gmra.mxu1 %v11990_v62  ;;  %v12314_v46 = vpop.f32.mrf.mxu1  ;;  %v12318_v34 = vpop.f32.mrf.mxu0 }
 0xbc0   :  { %5693 = vmatmul.f32.gmra.mxu0 %v11990_v62  ;;  %5794 = vmatmul.f32.gmra.mxu1 %v12047_v0  ;;  %v12322_v62 = vpop.f32.mrf.mxu1  ;;  %v12326_v40 = vpop.f32.mrf.mxu0 }
 0xbc8   :  { %5697 = vmatmul.f32.gmra.mxu0 %v12047_v0  ;;  %5798 = vmatmul.f32.gmra.mxu1 %v14438_v20  ;;  %v14440_v0 = vld [vmem:[#allocation33_spill] sm:$0xff]  ;;  %v12328_v53 = vpop.f32.mrf.mxu1  ;;  %v12332_v8 = vpop.f32.mrf.mxu0 }
 0xbd0   :  { %5701 = vmatmul.f32.gmra.mxu0 %v14438_v20  ;;  %5802 = vmatmul.f32.gmra.mxu1 %v14439_v33 }
 0xbd8   :  { %5705 = vmatmul.f32.gmra.mxu0 %v14439_v33  ;;  %5806 = vmatmul.f32.gmra.mxu1 %v12085_v28  ;;  %v6042_v33 = vld [vmem:[%s13812_s3 + $0x38] sm:$0xff] }
 0xbe0   :  { %5709 = vmatmul.f32.gmra.mxu0 %v12085_v28  ;;  %5810 = vmatmul.f32.gmra.mxu1 %v14440_v0 }
 0xbe8   :  { %5713 = vmatmul.f32.gmra.mxu0 %v14440_v0  ;;  %5814 = vmatmul.f32.gmra.mxu1 %v12130_v49  ;;  %v12393_v0 = vand.u32 4294901760, %v6042_v33 }
 0xbea   :  { %6101 = vmatpush.msra.mxu2 %v12393_v0  ;;  %6488 = vmatpush.msra.mxu1 %v12393_v0 }
 0xbed   :  { %v12334_v19 = vpop.f32.mrf.mxu1 }
 0xbf0   :  { %5717 = vmatmul.f32.gmra.mxu0 %v12130_v49  ;;  %5818 = vmatmul.f32.gmra.mxu1 %v12214_v2 }
 0xbf5   :  { %v12338_v52 = vpop.f32.mrf.mxu0  ;;  %v12340_v28 = vpop.f32.mrf.mxu1 }
 0xbf8   :  { %5721 = vmatmul.f32.gmra.mxu0 %v12214_v2  ;;  %5822 = vmatmul.f32.gmra.mxu1 %v12216_v17  ;;  %v5523_v2 = vpop.f32.mrf.mxu3 }
 0xbfd   :  { %v12344_v60 = vpop.f32.mrf.mxu0  ;;  %v12346_v61 = vpop.f32.mrf.mxu1 }
 0xc00   :  { %5725 = vmatmul.f32.gmra.mxu0 %v12216_v17  ;;  %5826 = vmatmul.f32.gmra.mxu1 %v12237_v55  ;;  %v5529_v17 = vpop.f32.mrf.mxu3 }
 0xc05   :  { %v12350_v63 = vpop.f32.mrf.mxu0  ;;  %v12352_v49 = vpop.f32.mrf.mxu1 }
 0xc08   :  { %5729 = vmatmul.f32.gmra.mxu0 %v12237_v55  ;;  %5830 = vmatmul.f32.gmra.mxu1 %v12248_v32  ;;  %v14441_v55 = vld [vmem:[#allocation36_spill] sm:$0xff]  ;;  %v5535_v9 = vpop.f32.mrf.mxu3 }
 0xc09   :  { %v2664_v54 = vadd.f32 %v14442_v11, %v14441_v55 }
 0xc0b   :  { %v2780_v35 = vadd.f32 %v14443_v10, %v2664_v54  ;;  %v12400_v10 = vsub.f32 %v6042_v33, %v12393_v0  ;;  %v14456_v33 = vld [vmem:[#allocation68_spill] sm:$0xff] }
 0xc0d   :  { %v12356_v37 = vpop.f32.mrf.mxu0  ;;  %v12358_v12 = vpop.f32.mrf.mxu1  ;;  %v2896_v43 = vadd.f32 %v14444_v39, %v2780_v35  ;;  %6376 = vmatpush.msra.mxu0 %v12400_v10 }
 0xc0f   :  { %v3051_v51 = vadd.f32 %v14447_v23, %v2896_v43  ;;  %v12405_v43 = vpop.f32.mrf.mxu2 }
 0xc10   :  { %5733 = vmatmul.f32.gmra.mxu0 %v12248_v32  ;;  %5834 = vmatmul.f32.gmra.mxu1 %v12258_v13  ;;  %v5296_v32 = vadd.f32 %v12256_v14, %v12265_v21  ;;  %v5300_v14 = vadd.f32 %v12271_v15, %v12279_v41  ;;  %v12388_v20 = vpop.f32.mrf.mxu3  ;;  %v14451_v15 = vld [vmem:[#allocation20_spill] sm:$0xff] }
 0xc11   :  { %v12386_v44 = vadd.f32 %v14449_v30, %v3051_v51  ;;  %v14452_v41 = vld [vmem:[#allocation40_spill] sm:$0xff] }
 0xc12   :  { %v5410_v38 = vadd.f32 %v5409_v3, %v5296_v32  ;;  %v14450_v3 = vld [vmem:[#allocation64_spill] sm:$0xff]  ;;  %v5415_v11 = vadd.f32 %v5414_v47, %v5300_v14  ;;  %v14453_v32 = vld [vmem:[#allocation65_spill] sm:$0xff] }
 0xc13   :  { %v3220_v35 = vmin.f32 %v12386_v44, 0.0  ;;  %vm3204_vm9 = vcmp.gt.f32.partialorder %v12386_v44, 0.0 }
 0xc14   :  { %v5524_v21 = vadd.f32 %v5523_v2, %v5410_v38  ;;  %v2672_v2 = vadd.f32 %v14452_v41, %v14451_v15  ;;  %v5530_v23 = vadd.f32 %v5529_v17, %v5415_v11  ;;  %v14457_v17 = vld [vmem:[#allocation70_spill] sm:$0xff]  ;;  %v14458_v15 = vld [vmem:[#allocation27_spill] sm:$0xff]  ;;  %v14459_v41 = vld [vmem:[#allocation37_spill] sm:$0xff] }
 0xc15   :  { %v12362_v24 = vpop.f32.mrf.mxu0  ;;  %v12364_v31 = vpop.f32.mrf.mxu1  ;;  %v3238_v14 = vmul.f32 1.442695, %v3220_v35 }
 0xc18   :  { %5737 = vmatmul.f32.gmra.mxu0 %v12258_v13  ;;  %5838 = vmatmul.f32.gmra.mxu1 %v12269_v29  ;;  %v14445_v13 = vld [vmem:[#allocation39_spill] sm:$0xff]  ;;  %v12418_v30 = vpop.f32.mrf.mxu3 }
 0xc19   :  { %v2668_v4 = vadd.f32 %v14446_v48, %v14445_v13  ;;  %v14454_v13 = vld [vmem:[#allocation69_spill] sm:$0xff]  ;;  %v5304_v48 = vadd.f32 %v12281_v26, %v12286_v56 }
 0xc1a   :  { %v2790_v47 = vadd.f32 %v14454_v13, %v2672_v2  ;;  %v2676_v2 = vadd.f32 %v14459_v41, %v14458_v15  ;;  %v14463_v15 = vld [vmem:[#allocation58_spill] sm:$0xff]  ;;  %v14464_v41 = vld [vmem:[#allocation60_spill] sm:$0xff] }
 0xc1b   :  { %v2785_v36 = vadd.f32 %v14448_v16, %v2668_v4  ;;  %v5420_v26 = vadd.f32 %v5419_v57, %v5304_v48 }
 0xc1d   :  { %v12373_v22 = vpop.f32.mrf.mxu0  ;;  %v5779_v58 = vpop.f32.mrf.mxu1  ;;  %v2902_v55 = vadd.f32 %v14450_v3, %v2785_v36  ;;  %v2908_v3 = vadd.f32 %v14456_v33, %v2790_v47  ;;  %v5308_v47 = vadd.f32 %v12290_v45, %v12294_v59  ;;  %v14462_v59 = vld [vmem:[#allocation72_spill] sm:$0xff] }
 0xc1f   :  { %v3055_v39 = vadd.f32 %v14453_v32, %v2902_v55  ;;  %v3059_v11 = vadd.f32 %v14457_v17, %v2908_v3 }
 0xc20   :  { %5741 = vmatmul.f32.gmra.mxu0 %v12269_v29  ;;  %v12440_v17 = vpop.f32.mrf.mxu3 }
 0xc25   :  { %v5682_v1 = vpop.f32.mrf.mxu0  ;;  %v5783_v42 = vpop.f32.mrf.mxu1 }
 0xc26   :  { %v5683_v29 = vadd.f32 %v5682_v1, %v5524_v21  ;;  %v14455_v21 = vld [vmem:[#allocation66_spill] sm:$0xff] }
 0xc27   :  { %v12416_v1 = vadd.f32 %v14455_v21, %v3055_v39 }
 0xc28   :  { %v5780_v54 = vadd.f32 %v5779_v58, %v5683_v29  ;;  %v6255_v58 = vand.u32 4294901760, %v12400_v10 }
 0xc29   :  { %v3221_v35 = vmin.f32 %v12416_v1, 0.0  ;;  %vm3205_vm11 = vcmp.gt.f32.partialorder %v12416_v1, 0.0 }
 0xc2a   :  { %v5858_v38 = vmin.f32 %v5780_v54, 0.0  ;;  %v6256_v36 = vsub.f32 %v12400_v10, %v6255_v58  ;;  %vm5842_vm8 = vcmp.gt.f32.partialorder %v5780_v54, 0.0  ;;  %v14524_v10 = vld [vmem:[#allocation126_spill] sm:$0xff] }
 0xc2c   :  { %v5874_v4 = vmul.f32 1.442695, %v5858_v38  ;;  %v6257_v55 = vand.u32 4294901760, %v6256_v36  ;;  %v14460_v38 = vld [vmem:[#allocation73_spill] sm:$0xff] }
 0xc2d   :  { %v5686_v51 = vpop.f32.mrf.mxu0  ;;  %v5787_v16 = vpop.f32.mrf.mxu1  ;;  %v2795_v13 = vadd.f32 %v14460_v38, %v2676_v2  ;;  %v2680_v2 = vadd.f32 %v14464_v41, %v14463_v15 }
 0xc2e   :  { %8550 = vpow2.f32 %v5874_v4  ;;  %v5687_v29 = vadd.f32 %v5686_v51, %v5530_v23  ;;  %6258 = vmatpush.msra.mxu3 %v6257_v55  ;;  %v5536_v4 = vadd.f32 %v5535_v9, %v5420_v26  ;;  %v12428_v23 = vpop.f32.mrf.mxu2  ;;  %v6041_v9 = vld [vmem:[%s13812_s3 + $0x30] sm:$0xff]  ;;  %v5425_v26 = vadd.f32 %v12380_v27, %v5308_v47  ;;  %v14465_v27 = vld [vmem:[#allocation78_spill] sm:$0xff] }
 0xc2f   :  { %8552 = vpow2.f32 %v3238_v14  ;;  %v3240_v14 = vmul.f32 1.442695, %v3221_v35  ;;  %v12436_v3 = vand.u32 4294901760, %v6041_v9  ;;  %v2914_v55 = vadd.f32 %v14462_v59, %v2795_v13 }
 0xc30   :  { %v5784_v56 = vadd.f32 %v5783_v42, %v5687_v29  ;;  %v14461_v42 = vld [vmem:[#allocation71_spill] sm:$0xff] }
 0xc31   :  { %v12431_v48 = vadd.f32 %v14461_v42, %v3059_v11  ;;  %6103 = vmatpush.msra.mxu2 %v12436_v3  ;;  %6490 = vmatpush.msra.mxu1 %v12436_v3  ;;  %v5312_v42 = vadd.f32 %v12296_v25, %v12300_v18  ;;  %v14468_v25 = vld [vmem:[#allocation74_spill] sm:$0xff] }
 0xc32   :  { %v5859_v32 = vmin.f32 %v5784_v56, 0.0  ;;  %vm5843_vm10 = vcmp.gt.f32.partialorder %v5784_v56, 0.0 }
 0xc33   :  { %v3222_v35 = vmin.f32 %v12431_v48, 0.0  ;;  %vm3206_vm13 = vcmp.gt.f32.partialorder %v12431_v48, 0.0 }
 0xc34   :  { %v8551_v39 = vpop.eup %8550  ;;  %v5876_v57 = vmul.f32 1.442695, %v5859_v32  ;;  %v3063_v32 = vadd.f32 %v14465_v27, %v2914_v55 }
 0xc35   :  { %v5690_v51 = vpop.f32.mrf.mxu0  ;;  %v5791_v36 = vpop.f32.mrf.mxu1  ;;  %v8150_v21 = vadd.f32 -1.0, %v8551_v39  ;;  %v14466_v39 = vld [vmem:[#allocation75_spill] sm:$0xff] }
 0xc36   :  { %8554 = vpow2.f32 %v5876_v57  ;;  %v5691_v29 = vadd.f32 %v5690_v51, %v5536_v4  ;;  %v8553_v45 = vpop.eup %8552  ;;  %v2800_v38 = vadd.f32 %v14466_v39, %v2680_v2  ;;  %v5542_v57 = vadd.f32 %v12388_v20, %v5425_v26  ;;  %v12468_v55 = vpop.f32.mrf.mxu2  ;;  %v14470_v39 = vld [vmem:[#allocation61_spill] sm:$0xff] }
 0xc37   :  { %v5922_v33 = vsel %vm5842_vm8, %v5780_v54, %v8150_v21  ;;  %v12450_v54 = vsub.f32 %v6041_v9, %v12436_v3  ;;  %8556 = vpow2.f32 %v3240_v14  ;;  %v8120_v13 = vadd.f32 -1.0, %v8553_v45  ;;  %v14467_v45 = vld [vmem:[#allocation79_spill] sm:$0xff] }
 0xc38   :  { %v12442_v11 = vadd.f32 %v5787_v16, %v5691_v29  ;;  %5954 = vrot.lane.b32.xlu2 %v5922_v33, %s8717_s9  ;;  %v3242_v21 = vmul.f32 1.442695, %v3222_v35  ;;  %v12466_v59 = vadd.f32 %v14467_v45, %v3063_v32  ;;  %v2920_v18 = vadd.f32 %v14468_v25, %v2800_v38  ;;  %v14469_v32 = vld [vmem:[#allocation84_spill] sm:$0xff] }
 0xc39   :  { %v6261_v4 = vand.u32 4294901760, %v12450_v54  ;;  %6379 = vmatpush.msra.mxu0 %v12450_v54  ;;  %v3284_v26 = vsel %vm3204_vm9, %v12386_v44, %v8120_v13  ;;  %v5430_v35 = vadd.f32 %v12405_v43, %v5312_v42  ;;  %v14472_v13 = vld [vmem:[#allocation80_spill] sm:$0xff] }
 0xc3a   :  { %v5860_v16 = vmin.f32 %v12442_v11, 0.0  ;;  %v3223_v44 = vmin.f32 %v12466_v59, 0.0  ;;  %vm5844_vm12 = vcmp.gt.f32.partialorder %v12442_v11, 0.0  ;;  %vm3207_vm15 = vcmp.gt.f32.partialorder %v12466_v59, 0.0 }
 0xc3b   :  { %v6262_v33 = vsub.f32 %v12450_v54, %v6261_v4 }
 0xc3c   :  { %v8555_v47 = vpop.eup %8554  ;;  %v5878_v51 = vmul.f32 1.442695, %v5860_v16  ;;  %v3067_v16 = vadd.f32 %v14469_v32, %v2920_v18  ;;  %v3244_v18 = vmul.f32 1.442695, %v3223_v44 }
 0xc3d   :  { %v5694_v14 = vpop.f32.mrf.mxu0  ;;  %v5795_v29 = vpop.f32.mrf.mxu1  ;;  %v8151_v9 = vadd.f32 -1.0, %v8555_v47  ;;  %v6263_v41 = vand.u32 4294901760, %v6262_v33  ;;  %v14471_v47 = vld [vmem:[#allocation21_spill] sm:$0xff] }
 0xc3e   :  { %8558 = vpow2.f32 %v5878_v51  ;;  %v5695_v20 = vadd.f32 %v5694_v14, %v5542_v57  ;;  %v8557_v2 = vpop.eup %8556  ;;  %v2684_v57 = vadd.f32 %v14471_v47, %v14470_v39  ;;  %v5548_v51 = vadd.f32 %v12418_v30, %v5430_v35  ;;  %v14473_v33 = vld [vmem:[#allocation85_spill] sm:$0xff]  ;;  %v6040_v30 = vld [vmem:[%s13812_s3 + $0x28] sm:$0xff]  ;;  %v14475_v47 = vld [vmem:[#allocation23_spill] sm:$0xff] }
 0xc3f   :  { %v5923_v15 = vsel %vm5843_vm10, %v5784_v56, %v8151_v9  ;;  %6264 = vmatpush.msra.mxu3 %v6263_v41  ;;  %8560 = vpow2.f32 %v3242_v21  ;;  %v12481_v56 = vpop.f32.mrf.mxu3  ;;  %v8121_v43 = vadd.f32 -1.0, %v8557_v2  ;;  %v5316_v14 = vadd.f32 %v12302_v7, %v12306_v50  ;;  %v14474_v2 = vld [vmem:[#allocation76_spill] sm:$0xff] }
 0xc40   :  { %v12473_v27 = vadd.f32 %v5791_v36, %v5695_v20  ;;  %3318 = vrot.lane.b32.xlu2 %v3284_v26, %s8715_s29  ;;  %5956 = vrot.lane.b32.xlu0 %v5923_v15, %s8717_s9  ;;  %v2805_v42 = vadd.f32 %v14472_v13, %v2684_v57  ;;  %v12489_v45 = vadd.f32 %v14473_v33, %v3067_v16  ;;  %v12498_v15 = vand.u32 4294901760, %v6040_v30  ;;  %v12502_v16 = vpop.f32.mrf.mxu2  ;;  %v14476_v57 = vld [vmem:[#allocation22_spill] sm:$0xff] }
 0xc41   :  { %v3285_v7 = vsel %vm3205_vm11, %v12416_v1, %v8121_v43  ;;  %v5435_v32 = vadd.f32 %v12428_v23, %v5316_v14  ;;  %v2688_v1 = vadd.f32 %v14476_v57, %v14475_v47  ;;  %v14477_v23 = vld [vmem:[#allocation89_spill] sm:$0xff]  ;;  %v14478_v43 = vld [vmem:[#allocation86_spill] sm:$0xff] }
 0xc42   :  { %v5861_v38 = vmin.f32 %v12473_v27, 0.0  ;;  %v2926_v35 = vadd.f32 %v14474_v2, %v2805_v42  ;;  %6105 = vmatpush.msra.mxu2 %v12498_v15  ;;  %v12513_v44 = vsub.f32 %v6040_v30, %v12498_v15  ;;  %6492 = vmatpush.msra.mxu1 %v12498_v15  ;;  %vm5845_vm14 = vcmp.gt.f32.partialorder %v12473_v27, 0.0 }
 0xc43   :  { %v5554_v14 = vadd.f32 %v12440_v17, %v5435_v32  ;;  %vm3208_vm2 = vcmp.gt.f32.partialorder %v12489_v45, 0.0 }
 0xc44   :  { %v8559_v36 = vpop.eup %8558  ;;  %v5880_v9 = vmul.f32 1.442695, %v5861_v38  ;;  %v6267_v42 = vand.u32 4294901760, %v12513_v44  ;;  %6382 = vmatpush.msra.mxu0 %v12513_v44 }
 0xc45   :  { %v5698_v21 = vpop.f32.mrf.mxu0  ;;  %v5799_v20 = vpop.f32.mrf.mxu1  ;;  %v8152_v25 = vadd.f32 -1.0, %v8559_v36  ;;  %v2810_v36 = vadd.f32 %v14478_v43, %v2688_v1 }
 0xc46   :  { %8562 = vpow2.f32 %v5880_v9  ;;  %v5699_v26 = vadd.f32 %v5698_v21, %v5548_v51  ;;  %v8561_v41 = vpop.eup %8560  ;;  %v5320_v9 = vadd.f32 %v12308_v5, %v12312_v6  ;;  %v14480_v5 = vld [vmem:[#allocation82_spill] sm:$0xff] }
 0xc47   :  { %v5924_v50 = vsel %vm5844_vm12, %v12442_v11, %v8152_v25  ;;  %v3224_v11 = vmin.f32 %v12489_v45, 0.0  ;;  %8564 = vpow2.f32 %v3244_v18  ;;  %v8122_v13 = vadd.f32 -1.0, %v8561_v41  ;;  %v12524_v33 = vpop.f32.mrf.mxu3 }
 0xc48   :  { %v12504_v39 = vadd.f32 %v5795_v29, %v5699_v26  ;;  %3320 = vrot.lane.b32.xlu2 %v3285_v7, %s8715_s29  ;;  %5958 = vrot.lane.b32.xlu0 %v5924_v50, %s8717_s9  ;;  %v3071_v29 = vadd.f32 %v14477_v23, %v2926_v35  ;;  %v6268_v7 = vsub.f32 %v12513_v44, %v6267_v42  ;;  %v14479_v50 = vld [vmem:[#allocation90_spill] sm:$0xff] }
 0xc49   :  { %v3246_v25 = vmul.f32 1.442695, %v3224_v11  ;;  %v2932_v6 = vadd.f32 %v14480_v5, %v2810_v36  ;;  %v3286_v2 = vsel %vm3206_vm13, %v12431_v48, %v8122_v13  ;;  %v5440_v57 = vadd.f32 %v12468_v55, %v5320_v9  ;;  %v14481_v11 = vld [vmem:[#allocation115_spill] sm:$0xff] }
 0xc4a   :  { %v5862_v38 = vmin.f32 %v12504_v39, 0.0  ;;  %v12531_v41 = vadd.f32 %v14479_v50, %v3071_v29  ;;  %v6269_v32 = vand.u32 4294901760, %v6268_v7  ;;  %v14482_v29 = vld [vmem:[#allocation25_spill] sm:$0xff]  ;;  %v5324_v9 = vadd.f32 %v12314_v46, %v12318_v34 }
 0xc4b   :  { %v3075_v23 = vadd.f32 %v14481_v11, %v2932_v6  ;;  %vm5846_vm1 = vcmp.gt.f32.partialorder %v12504_v39, 0.0 }
 0xc4c   :  { %v8563_v51 = vpop.eup %8562  ;;  %v5882_v21 = vmul.f32 1.442695, %v5862_v38  ;;  %6270 = vmatpush.msra.mxu3 %v6269_v32  ;;  %v14483_v38 = vld [vmem:[#allocation24_spill] sm:$0xff]  ;;  %v3225_v48 = vmin.f32 %v12531_v41, 0.0  ;;  %vm3209_vm4 = vcmp.gt.f32.partialorder %v12531_v41, 0.0 }
 0xc4d   :  { %v5702_v18 = vpop.f32.mrf.mxu0  ;;  %v5803_v26 = vpop.f32.mrf.mxu1  ;;  %v8153_v30 = vadd.f32 -1.0, %v8563_v51  ;;  %v2692_v43 = vadd.f32 %v14483_v38, %v14482_v29  ;;  %v14486_v32 = vld [vmem:[#allocation88_spill] sm:$0xff]  ;;  %v14488_v29 = vld [vmem:[#allocation26_spill] sm:$0xff] }
 0xc4e   :  { %8566 = vpow2.f32 %v5882_v21  ;;  %v5703_v17 = vadd.f32 %v5702_v18, %v5554_v14  ;;  %v8565_v47 = vpop.eup %8564  ;;  %v5560_v14 = vadd.f32 %v12481_v56, %v5440_v57  ;;  %v14485_v18 = vld [vmem:[#allocation116_spill] sm:$0xff]  ;;  %v6039_v56 = vld [vmem:[%s13812_s3 + $0x20] sm:$0xff]  ;;  %v5445_v57 = vadd.f32 %v12502_v16, %v5324_v9  ;;  %v14489_v16 = vld [vmem:[#allocation117_spill] sm:$0xff] }
 0xc4f   :  { %v5925_v35 = vsel %vm5845_vm14, %v12473_v27, %v8153_v30  ;;  %8568 = vpow2.f32 %v3246_v25  ;;  %v5449_v27 = vpop.f32.mrf.mxu2  ;;  %v8123_v13 = vadd.f32 -1.0, %v8565_v47  ;;  %v12552_v30 = vadd.f32 %v14485_v18, %v3075_v23  ;;  %v5571_v6 = vpop.f32.mrf.mxu3  ;;  %v14487_v23 = vld [vmem:[#allocation29_spill] sm:$0xff] }
 0xc50   :  { %v12538_v1 = vadd.f32 %v5799_v20, %v5703_v17  ;;  %3322 = vrot.lane.b32.xlu2 %v3286_v2, %s8715_s29  ;;  %5960 = vrot.lane.b32.xlu0 %v5925_v35, %s8717_s9  ;;  %v14484_v20 = vld [vmem:[#allocation91_spill] sm:$0xff]  ;;  %v3248_v17 = vmul.f32 1.442695, %v3225_v48  ;;  %v12561_v2 = vand.u32 4294901760, %v6039_v56  ;;  %v2696_v38 = vadd.f32 %v14488_v29, %v14487_v23  ;;  %v14490_v48 = vld [vmem:[#allocation92_spill] sm:$0xff]  ;;  %v14493_v29 = vld [vmem:[#allocation81_spill] sm:$0xff] }
 0xc51   :  { %v2815_v51 = vadd.f32 %v14484_v20, %v2692_v43  ;;  %v3287_v46 = vsel %vm3207_vm15, %v12466_v59, %v8123_v13  ;;  %v3226_v59 = vmin.f32 %v12552_v30, 0.0  ;;  %vm3210_vm0 = vcmp.gt.f32.partialorder %v12552_v30, 0.0 }
 0xc52   :  { %v5863_v36 = vmin.f32 %v12538_v1, 0.0  ;;  %6107 = vmatpush.msra.mxu2 %v12561_v2  ;;  %6494 = vmatpush.msra.mxu1 %v12561_v2  ;;  %vm5847_vm3 = vcmp.gt.f32.partialorder %v12538_v1, 0.0 }
 0xc53   :  { %v2938_v47 = vadd.f32 %v14486_v32, %v2815_v51  ;;  %v5566_v51 = vadd.f32 %v12524_v33, %v5445_v57  ;;  %v3250_v18 = vmul.f32 1.442695, %v3226_v59 }
 0xc54   :  { %v8567_v55 = vpop.eup %8566  ;;  %v5884_v21 = vmul.f32 1.442695, %v5863_v36  ;;  %v2820_v36 = vadd.f32 %v14490_v48, %v2696_v38 }
 0xc55   :  { %v5706_v7 = vpop.f32.mrf.mxu0  ;;  %v5807_v25 = vpop.f32.mrf.mxu1  ;;  %v8154_v50 = vadd.f32 -1.0, %v8567_v55 }
 0xc56   :  { %8570 = vpow2.f32 %v5884_v21  ;;  %v5707_v5 = vadd.f32 %v5706_v7, %v5560_v14  ;;  %v8569_v35 = vpop.eup %8568  ;;  %v5328_v14 = vadd.f32 %v12322_v62, %v12326_v40  ;;  %v14492_v62 = vld [vmem:[#allocation11_spill] sm:$0xff] }
 0xc57   :  { %v5926_v34 = vsel %vm5846_vm1, %v12504_v39, %v8154_v50  ;;  %v12574_v39 = vsub.f32 %v6039_v56, %v12561_v2  ;;  %8572 = vpow2.f32 %v3248_v17  ;;  %v8124_v13 = vadd.f32 -1.0, %v8569_v35  ;;  %v5454_v9 = vpop.f32.mrf.mxu2  ;;  %v14491_v56 = vld [vmem:[#allocation77_spill] sm:$0xff]  ;;  %v5577_v59 = vpop.f32.mrf.mxu3 }
 0xc58   :  { %v12565_v11 = vadd.f32 %v5803_v26, %v5707_v5  ;;  %3324 = vrot.lane.b32.xlu2 %v3287_v46, %s8715_s29  ;;  %5962 = vrot.lane.b32.xlu0 %v5926_v34, %s8717_s9  ;;  %v3079_v26 = vadd.f32 %v14489_v16, %v2938_v47  ;;  %v2944_v40 = vadd.f32 %v14492_v62, %v2820_v36  ;;  %v14494_v16 = vld [vmem:[#allocation28_spill] sm:$0xff] }
 0xc59   :  { %v6273_v55 = vand.u32 4294901760, %v12574_v39  ;;  %6385 = vmatpush.msra.mxu0 %v12574_v39  ;;  %v3288_v34 = vsel %vm3208_vm2, %v12489_v45, %v8124_v13  ;;  %v5450_v57 = vadd.f32 %v5449_v27, %v5328_v14  ;;  %vm6002_vm2 = vcmask 523648  }
 0xc5a   :  { %v5864_v43 = vmin.f32 %v12565_v11, 0.0  ;;  %v12590_v46 = vadd.f32 %v14491_v56, %v3079_v26  ;;  %v3083_v38 = vadd.f32 %v14493_v29, %v2944_v40  ;;  %v14495_v26 = vld [vmem:[#allocation31_spill] sm:$0xff]  ;;  %vm5848_vm5 = vcmp.gt.f32.partialorder %v12565_v11, 0.0  ;;  %v14500_v29 = vld [vmem:[#allocation17_spill] sm:$0xff] }
 0xc5b   :  { %v6274_v5 = vsub.f32 %v12574_v39, %v6273_v55  ;;  %v5572_v13 = vadd.f32 %v5571_v6, %v5450_v57  ;;  %v6038_v6 = vld [vmem:[%s13812_s3 + $0x18] sm:$0xff]  ;;  %v5356_v39 = vadd.f32 %v12364_v31, %v12373_v22 }
 0xc5c   :  { %v8571_v20 = vpop.eup %8570  ;;  %v5886_v21 = vmul.f32 1.442695, %v5864_v43  ;;  %v2700_v43 = vadd.f32 %v14495_v26, %v14494_v16  ;;  %v3227_v45 = vmin.f32 %v12590_v46, 0.0  ;;  %v12618_v62 = vand.u32 4294901760, %v6038_v6  ;;  %v14499_v57 = vld [vmem:[#allocation30_spill] sm:$0xff] }
 0xc5d   :  { %v5710_v7 = vpop.f32.mrf.mxu0  ;;  %v5811_v50 = vpop.f32.mrf.mxu1  ;;  %v8155_v17 = vadd.f32 -1.0, %v8571_v20  ;;  %v6275_v32 = vand.u32 4294901760, %v6274_v5  ;;  %v5332_v20 = vadd.f32 %v12328_v53, %v12332_v8  ;;  %vm3211_vm9 = vcmp.gt.f32.partialorder %v12590_v46, 0.0 }
 0xc5e   :  { %8574 = vpow2.f32 %v5886_v21  ;;  %v5711_v33 = vadd.f32 %v5710_v7, %v5566_v51  ;;  %v8573_v47 = vpop.eup %8572  ;;  %v14497_v21 = vld [vmem:[#allocation83_spill] sm:$0xff]  ;;  %v3252_v56 = vmul.f32 1.442695, %v3227_v45  ;;  %6109 = vmatpush.msra.mxu2 %v12618_v62  ;;  %6496 = vmatpush.msra.mxu1 %v12618_v62 }
 0xc5f   :  { %v5927_v35 = vsel %vm5847_vm3, %v12538_v1, %v8155_v17  ;;  %6276 = vmatpush.msra.mxu3 %v6275_v32  ;;  %8576 = vpow2.f32 %v3250_v18  ;;  %v8125_v48 = vadd.f32 -1.0, %v8573_v47  ;;  %v5459_v51 = vpop.f32.mrf.mxu2  ;;  %v12609_v7 = vadd.f32 %v14497_v21, %v3083_v38 }
 0xc60   :  { %v12596_v23 = vadd.f32 %v5807_v25, %v5711_v33  ;;  %3326 = vrot.lane.b32.xlu2 %v3288_v34, %s8715_s29  ;;  %5964 = vrot.lane.b32.xlu0 %v5927_v35, %s8717_s9  ;;  %v14496_v25 = vld [vmem:[#allocation94_spill] sm:$0xff]  ;;  %v14498_v34 = vld [vmem:[#allocation93_spill] sm:$0xff]  ;;  %v5455_v32 = vadd.f32 %v5454_v9, %v5332_v20  ;;  %v2704_v38 = vadd.f32 %v14500_v29, %v14499_v57  ;;  %v14501_v9 = vld [vmem:[#allocation87_spill] sm:$0xff] }
 0xc61   :  { %v2825_v36 = vadd.f32 %v14496_v25, %v2700_v43  ;;  %v3289_v53 = vsel %vm3209_vm4, %v12531_v41, %v8125_v48  ;;  %v3228_v16 = vmin.f32 %v12609_v7, 0.0  ;;  %v5583_v41 = vpop.f32.mrf.mxu3  ;;  %v14502_v43 = vld [vmem:[#allocation96_spill] sm:$0xff]  ;;  %v14505_v57 = vld [vmem:[#allocation18_spill] sm:$0xff]  ;;  %vm3212_vm11 = vcmp.gt.f32.partialorder %v12609_v7, 0.0 }
 0xc62   :  { %v5865_v1 = vmin.f32 %v12596_v23, 0.0  ;;  %v2830_v45 = vadd.f32 %v14502_v43, %v2704_v38  ;;  %v5578_v25 = vadd.f32 %v5577_v59, %v5455_v32  ;;  %vm5849_vm8 = vcmp.gt.f32.partialorder %v12596_v23, 0.0  ;;  %v14504_v59 = vld [vmem:[#allocation95_spill] sm:$0xff]  ;;  %v14506_v29 = vld [vmem:[#allocation14_spill] sm:$0xff] }
 0xc63   :  { %v2950_v35 = vadd.f32 %v14498_v34, %v2825_v36  ;;  %v5336_v36 = vadd.f32 %v12334_v19, %v12338_v52  ;;  %v3254_v20 = vmul.f32 1.442695, %v3228_v16  ;;  %v2708_v38 = vadd.f32 %v14506_v29, %v14505_v57  ;;  %v14507_v16 = vld [vmem:[#allocation119_spill] sm:$0xff] }
 0xc64   :  { %v8575_v27 = vpop.eup %8574  ;;  %v5888_v14 = vmul.f32 1.442695, %v5865_v1  ;;  %v2956_v19 = vadd.f32 %v14504_v59, %v2830_v45 }
 0xc65   :  { %v5714_v17 = vpop.f32.mrf.mxu0  ;;  %v5815_v5 = vpop.f32.mrf.mxu1  ;;  %v8156_v18 = vadd.f32 -1.0, %v8575_v27 }
 0xc66   :  { %8578 = vpow2.f32 %v5888_v14  ;;  %v5715_v33 = vadd.f32 %v5714_v17, %v5572_v13  ;;  %v8577_v40 = vpop.eup %8576 }
 0xc67   :  { %v5928_v8 = vsel %vm5848_vm5, %v12565_v11, %v8156_v18  ;;  %v12630_v11 = vsub.f32 %v6038_v6, %v12618_v62  ;;  %8580 = vpow2.f32 %v3252_v56  ;;  %v8126_v1 = vadd.f32 -1.0, %v8577_v40  ;;  %v14503_v56 = vld [vmem:[#allocation118_spill] sm:$0xff]  ;;  %v5464_v52 = vpop.f32.mrf.mxu2 }
 0xc68   :  { %v12621_v47 = vadd.f32 %v5811_v50, %v5715_v33  ;;  %3328 = vrot.lane.b32.xlu2 %v3289_v53, %s8715_s29  ;;  %5966 = vrot.lane.b32.xlu0 %v5928_v8, %s8717_s9  ;;  %v3087_v50 = vadd.f32 %v14501_v9, %v2950_v35  ;;  %v5460_v35 = vadd.f32 %v5459_v51, %v5336_v36  ;;  %v14510_v36 = vld [vmem:[#allocation3_spill] sm:$0xff]  ;;  %vm6043_vm5 = vcmask 523264  }
 0xc69   :  { %v6279_v48 = vand.u32 4294901760, %v12630_v11  ;;  %6388 = vmatpush.msra.mxu0 %v12630_v11  ;;  %v3290_v53 = vsel %vm3210_vm0, %v12552_v30, %v8126_v1  ;;  %v3091_v9 = vadd.f32 %v14507_v16, %v2956_v19  ;;  %v5589_v51 = vpop.f32.mrf.mxu3  ;;  %v5340_v1 = vadd.f32 %v12340_v28, %v12344_v60  ;;  %v6037_v28 = vld [vmem:[%s13812_s3 + $0x10] sm:$0xff] }
 0xc6a   :  { %v5866_v26 = vmin.f32 %v12621_v47, 0.0  ;;  %v12645_v33 = vadd.f32 %v14503_v56, %v3087_v50  ;;  %v14508_v50 = vld [vmem:[#allocation98_spill] sm:$0xff]  ;;  %v5584_v45 = vadd.f32 %v5583_v41, %v5460_v35  ;;  %vm5850_vm10 = vcmp.gt.f32.partialorder %v12621_v47, 0.0  ;;  %v14512_v60 = vld [vmem:[#allocation97_spill] sm:$0xff] }
 0xc6b   :  { %v6280_v18 = vsub.f32 %v12630_v11, %v6279_v48  ;;  %v5465_v57 = vadd.f32 %v5464_v52, %v5340_v1 }
 0xc6c   :  { %v8579_v27 = vpop.eup %8578  ;;  %v5890_v13 = vmul.f32 1.442695, %v5866_v26  ;;  %v3229_v30 = vmin.f32 %v12645_v33, 0.0  ;;  %v2835_v26 = vadd.f32 %v14508_v50, %v2708_v38  ;;  %v14515_v50 = vld [vmem:[#allocation99_spill] sm:$0xff]  ;;  %vm3213_vm13 = vcmp.gt.f32.partialorder %v12645_v33, 0.0 }
 0xc6d   :  { %v5718_v14 = vpop.f32.mrf.mxu0  ;;  %v5819_v21 = vpop.f32.mrf.mxu1  ;;  %v8157_v17 = vadd.f32 -1.0, %v8579_v27  ;;  %v6281_v40 = vand.u32 4294901760, %v6280_v18 }
 0xc6e   :  { %8582 = vpow2.f32 %v5890_v13  ;;  %v5719_v6 = vadd.f32 %v5718_v14, %v5578_v25  ;;  %v8581_v34 = vpop.eup %8580  ;;  %v14509_v25 = vld [vmem:[#allocation13_spill] sm:$0xff]  ;;  %v14511_v14 = vld [vmem:[#allocation120_spill] sm:$0xff]  ;;  %v3256_v56 = vmul.f32 1.442695, %v3229_v30  ;;  %v2962_v41 = vadd.f32 %v14512_v60, %v2835_v26  ;;  %v12711_v60 = vpop.permute.xlu1 %4638 }
 0xc6f   :  { %v5929_v8 = vsel %vm5849_vm8, %v12596_v23, %v8157_v17  ;;  %6282 = vmatpush.msra.mxu3 %v6281_v40  ;;  %8584 = vpow2.f32 %v3254_v20  ;;  %v2712_v13 = vadd.f32 %v14510_v36, %v14509_v25  ;;  %v12666_v17 = vadd.f32 %v14511_v14, %v3091_v9  ;;  %v5469_v16 = vpop.f32.mrf.mxu2  ;;  %v14516_v14 = vld [vmem:[#allocation122_spill] sm:$0xff] }
 0xc70   :  { %v12651_v32 = vadd.f32 %v5815_v5, %v5719_v6  ;;  %3330 = vrot.lane.b32.xlu2 %v3290_v53, %s8715_s29  ;;  %5968 = vrot.lane.b32.xlu0 %v5929_v8, %s8717_s9  ;;  %v8127_v5 = vadd.f32 -1.0, %v8581_v34  ;;  %v12676_v8 = vand.u32 4294901760, %v6037_v28  ;;  %v14513_v34 = vld [vmem:[#allocation100_spill] sm:$0xff] }
 0xc71   :  { %v2840_v35 = vadd.f32 %v14513_v34, %v2712_v13  ;;  %v3230_v38 = vmin.f32 %v12666_v17, 0.0  ;;  %vm3214_vm15 = vcmp.gt.f32.partialorder %v12666_v17, 0.0 }
 0xc72   :  { %v5867_v23 = vmin.f32 %v12651_v32, 0.0  ;;  %v3291_v19 = vsel %vm3211_vm9, %v12590_v46, %v8127_v5  ;;  %6111 = vmatpush.msra.mxu2 %v12676_v8  ;;  %v12686_v46 = vsub.f32 %v6037_v28, %v12676_v8  ;;  %6498 = vmatpush.msra.mxu1 %v12676_v8  ;;  %v5590_v5 = vadd.f32 %v5589_v51, %v5465_v57 }
 0xc73   :  { %v2968_v26 = vadd.f32 %v14515_v50, %v2840_v35  ;;  %v3258_v1 = vmul.f32 1.442695, %v3230_v38  ;;  %vm5851_vm12 = vcmp.gt.f32.partialorder %v12651_v32, 0.0  ;;  %v14519_v35 = vld [vmem:[#allocation8_spill] sm:$0xff] }
 0xc74   :  { %v8583_v43 = vpop.eup %8582  ;;  %v5892_v27 = vmul.f32 1.442695, %v5867_v23  ;;  %v6285_v30 = vand.u32 4294901760, %v12686_v46  ;;  %6391 = vmatpush.msra.mxu0 %v12686_v46 }
 0xc75   :  { %v5722_v20 = vpop.f32.mrf.mxu0  ;;  %v8158_v18 = vadd.f32 -1.0, %v8583_v43  ;;  %v5823_v59 = vpop.f32.mrf.mxu1  ;;  %v5344_v43 = vadd.f32 %v12346_v61, %v12350_v63  ;;  %v6036_v61 = vld [vmem:[%s13812_s3 + $0x8] sm:$0xff] }
 0xc76   :  { %8586 = vpow2.f32 %v5892_v27  ;;  %v5723_v6 = vadd.f32 %v5722_v20, %v5584_v45  ;;  %v8585_v40 = vpop.eup %8584  ;;  %v5595_v27 = vpop.f32.mrf.mxu3  ;;  %v6286_v13 = vsub.f32 %v12686_v46, %v6285_v30 }
 0xc77   :  { %v5930_v53 = vsel %vm5850_vm10, %v12621_v47, %v8158_v18  ;;  %8588 = vpow2.f32 %v3256_v56  ;;  %v14514_v47 = vld [vmem:[#allocation121_spill] sm:$0xff]  ;;  %v8128_v52 = vadd.f32 -1.0, %v8585_v40 }
 0xc78   :  { %v12679_v29 = vadd.f32 %v5819_v21, %v5723_v6  ;;  %3332 = vrot.lane.b32.xlu2 %v3291_v19, %s8715_s29  ;;  %5970 = vrot.lane.b32.xlu0 %v5930_v53, %s8717_s9  ;;  %v3095_v9 = vadd.f32 %v14514_v47, %v2962_v41  ;;  %v6287_v56 = vand.u32 4294901760, %v6286_v13  ;;  %v12709_v6 = vand.u32 4294901760, %v6036_v61  ;;  %v14517_v53 = vld [vmem:[#allocation123_spill] sm:$0xff] }
 0xc79   :  { %v3292_v63 = vsel %vm3212_vm11, %v12609_v7, %v8128_v52  ;;  %v5470_v41 = vadd.f32 %v5469_v16, %v5344_v43  ;;  %v3099_v40 = vadd.f32 %v14517_v53, %v2968_v26  ;;  %v5474_v16 = vpop.f32.mrf.mxu2  ;;  %v14520_v52 = vld [vmem:[#allocation102_spill] sm:$0xff]  ;;  %v5348_v26 = vadd.f32 %v12352_v49, %v12356_v37  ;;  %v14521_v43 = vld [vmem:[#allocation124_spill] sm:$0xff]  ;;  %v6035_v49 = vld [vmem:[%s13812_s3] sm:$0xff]  ;;  %s8719_s3 = smov 120  }
 0xc7a   :  { %v5868_v21 = vmin.f32 %v12679_v29, 0.0  ;;  %v12701_v20 = vadd.f32 %v14516_v14, %v3095_v9  ;;  %6288 = vmatpush.msra.mxu3 %v6287_v56  ;;  %v12719_v7 = vsub.f32 %v6036_v61, %v12709_v6  ;;  %6113 = vmatpush.msra.mxu2 %v12709_v6  ;;  %vm5852_vm14 = vcmp.gt.f32.partialorder %v12679_v29, 0.0  ;;  %v14522_v56 = vld [vmem:[#allocation101_spill] sm:$0xff] }
 0xc7b   :  { %6500 = vmatpush.msra.mxu1 %v12709_v6  ;;  %v5596_v50 = vadd.f32 %v5595_v27, %v5470_v41  ;;  %v5475_v41 = vadd.f32 %v5474_v16, %v5348_v26 }
 0xc7c   :  { %v8587_v23 = vpop.eup %8586  ;;  %v5894_v45 = vmul.f32 1.442695, %v5868_v21  ;;  %v6291_v9 = vand.u32 4294901760, %v12719_v7  ;;  %6394 = vmatpush.msra.mxu0 %v12719_v7  ;;  %vm3215_vm3 = vcmp.gt.f32.partialorder %v12701_v20, 0.0 }
 0xc7d   :  { %v5726_v25 = vpop.f32.mrf.mxu0  ;;  %v8159_v36 = vadd.f32 -1.0, %v8587_v23  ;;  %v8589_v28 = vpop.eup %8588 }
 0xc7e   :  { %8590 = vpow2.f32 %v5894_v45  ;;  %v5727_v18 = vadd.f32 %v5726_v25, %v5590_v5  ;;  %v5827_v34 = vpop.f32.mrf.mxu1  ;;  %v8129_v47 = vadd.f32 -1.0, %v8589_v28  ;;  %v12733_v45 = vadd.f32 %v14521_v43, %v3099_v40  ;;  %v5601_v37 = vpop.f32.mrf.mxu3 }
 0xc7f   :  { %v5931_v51 = vsel %vm5851_vm12, %v12651_v32, %v8159_v36  ;;  %v14518_v32 = vld [vmem:[#allocation6_spill] sm:$0xff]  ;;  %8592 = vpow2.f32 %v3258_v1  ;;  %v6292_v36 = vsub.f32 %v12719_v7, %v6291_v9 }
 0xc80   :  { %v12713_v19 = vadd.f32 %v5823_v59, %v5727_v18  ;;  %3334 = vrot.lane.b32.xlu2 %v3292_v63, %s8715_s29  ;;  %5972 = vrot.lane.b32.xlu0 %v5931_v51, %s8717_s9  ;;  %v2716_v57 = vadd.f32 %v14519_v35, %v14518_v32  ;;  %v3231_v59 = vmin.f32 %v12701_v20, 0.0  ;;  %v3293_v27 = vsel %vm3213_vm13, %v12645_v33, %v8129_v47  ;;  %v12758_v35 = vpop.permute.xlu1 %4640 }
 0xc81   :  { %v6293_v61 = vand.u32 4294901760, %v6292_v36  ;;  %v12745_v63 = vand.u32 4294901760, %v6035_v49  ;;  %v3232_v40 = vmin.f32 %v12733_v45, 0.0  ;;  %v5602_v47 = vadd.f32 %v5601_v37, %v5475_v41 }
 0xc82   :  { %v5869_v38 = vmin.f32 %v12713_v19, 0.0  ;;  %v2845_v23 = vadd.f32 %v14520_v52, %v2716_v57  ;;  %v3260_v13 = vmul.f32 1.442695, %v3231_v59  ;;  %vm5853_vm1 = vcmp.gt.f32.partialorder %v12713_v19, 0.0 }
 0xc83   :  { %6294 = vmatpush.msra.mxu3 %v6293_v61  ;;  %v12754_v33 = vsub.f32 %v6035_v49, %v12745_v63  ;;  %6502 = vmatpush.msra.mxu1 %v12745_v63  ;;  %vm3216_vm0 = vcmp.gt.f32.partialorder %v12733_v45, 0.0 }
 0xc84   :  { %v8591_v21 = vpop.eup %8590  ;;  %v5896_v5 = vmul.f32 1.442695, %v5869_v38  ;;  %v2974_v28 = vadd.f32 %v14522_v56, %v2845_v23  ;;  %6115 = vmatpush.msra.mxu2 %v12745_v63  ;;  %v3262_v23 = vmul.f32 1.442695, %v3232_v40 }
 0xc85   :  { %v5730_v1 = vpop.f32.mrf.mxu0  ;;  %v8160_v25 = vadd.f32 -1.0, %v8591_v21  ;;  %v8593_v51 = vpop.eup %8592  ;;  %v6297_v38 = vand.u32 4294901760, %v12754_v33  ;;  %6397 = vmatpush.msra.mxu0 %v12754_v33  ;;  %v5352_v21 = vadd.f32 %v12358_v12, %v12362_v24 }
 0xc86   :  { %8594 = vpow2.f32 %v5896_v5  ;;  %v5731_v14 = vadd.f32 %v5730_v1, %v5596_v50  ;;  %v5831_v57 = vpop.f32.mrf.mxu1  ;;  %v8130_v59 = vadd.f32 -1.0, %v8593_v51  ;;  %6611 = vmatpush.msrb.mxu2 %v6255_v58  ;;  %v5479_v50 = vpop.f32.mrf.mxu2 }
 0xc87   :  { %v5932_v18 = vsel %vm5852_vm14, %v12679_v29, %v8160_v25  ;;  %8596 = vpow2.f32 %v3260_v13  ;;  %v14523_v29 = vld [vmem:[#allocation125_spill] sm:$0xff]  ;;  %v6298_v43 = vsub.f32 %v12754_v33, %v6297_v38  ;;  %v5480_v13 = vadd.f32 %v5479_v50, %v5352_v21  ;;  %v5607_v54 = vpop.f32.mrf.mxu3 }
 0xc88   :  { %v12748_v53 = vadd.f32 %v5827_v34, %v5731_v14  ;;  %3336 = vrot.lane.b32.xlu2 %v3293_v27, %s8715_s29  ;;  %5974 = vrot.lane.b32.xlu0 %v5932_v18, %s8717_s9  ;;  %v3103_v32 = vadd.f32 %v14523_v29, %v2974_v28  ;;  %v3294_v12 = vsel %vm3214_vm15, %v12666_v17, %v8130_v59  ;;  %v12794_v49 = vpop.permute.xlu1 %4642 }
 0xc89   :  { %6615 = vmatpush.msrb.mxu2 %v6261_v4  ;;  %v6299_v25 = vand.u32 4294901760, %v6298_v43  ;;  %v5608_v37 = vadd.f32 %v5607_v54, %v5480_v13 }
 0xc8a   :  { %v5870_v34 = vmin.f32 %v12748_v53, 0.0  ;;  %v12775_v58 = vadd.f32 %v14524_v10, %v3103_v32  ;;  %vm5854_vm4 = vcmp.gt.f32.partialorder %v12748_v53, 0.0 }
 0xc8b   :  { %6619 = vmatpush.msrb.mxu2 %v6267_v42  ;;  %6300 = vmatpush.msra.mxu3 %v6299_v25 }
 0xc8c   :  { %v8595_v16 = vpop.eup %8594  ;;  %v5898_v52 = vmul.f32 1.442695, %v5870_v34  ;;  %v3233_v4 = vmin.f32 %v12775_v58, 0.0  ;;  %vm3217_vm9 = vcmp.gt.f32.partialorder %v12775_v58, 0.0 }
 0xc8d   :  { %v5734_v26 = vpop.f32.mrf.mxu0  ;;  %v8161_v5 = vadd.f32 -1.0, %v8595_v16  ;;  %v8597_v36 = vpop.eup %8596  ;;  %6623 = vmatpush.msrb.mxu2 %v6273_v55  ;;  %6714 = vmatpush.msrb.mxu3 %v12393_v0 }
 0xc8e   :  { %8598 = vpow2.f32 %v5898_v52  ;;  %v5735_v1 = vadd.f32 %v5734_v26, %v5602_v47  ;;  %v8131_v17 = vadd.f32 -1.0, %v8597_v36  ;;  %v5835_v27 = vpop.f32.mrf.mxu1  ;;  %v3264_v11 = vmul.f32 1.442695, %v3233_v4  ;;  %v5484_v61 = vpop.f32.mrf.mxu2 }
 0xc8f   :  { %v5933_v24 = vsel %vm5853_vm1, %v12713_v19, %v8161_v5  ;;  %8600 = vpow2.f32 %v3262_v23  ;;  %6627 = vmatpush.msrb.mxu2 %v6279_v48  ;;  %6716 = vmatpush.msrb.mxu3 %v12436_v3  ;;  %v5485_v51 = vadd.f32 %v5484_v61, %v5356_v39 }
 0xc90   :  { %v12782_v14 = vadd.f32 %v5831_v57, %v5735_v1  ;;  %3338 = vrot.lane.b32.xlu2 %v3294_v12, %s8715_s29  ;;  %5976 = vrot.lane.b32.xlu0 %v5933_v24, %s8717_s9  ;;  %v3295_v31 = vsel %vm3215_vm3, %v12701_v20, %v8131_v17  ;;  %v5613_v20 = vpop.f32.mrf.mxu3  ;;  %v4645_v32 = vpop.permute.xlu1 %4644 }
 0xc91   :  { %6631 = vmatpush.msrb.mxu2 %v6285_v30  ;;  %6718 = vmatpush.msrb.mxu3 %v12498_v15  ;;  %v5614_v41 = vadd.f32 %v5613_v20, %v5485_v51 }
 0xc92   :  { %v5871_v44 = vmin.f32 %v12782_v14, 0.0  ;;  %v5955_v42 = vpop.permute.xlu2 %5954  ;;  %vm5855_vm8 = vcmp.gt.f32.partialorder %v12782_v14, 0.0 }
 0xc93   :  { %6003 = vst.msk [vmem:[#allocation2] sm:$0xff] %vm6002_vm2, %v5955_v42  ;;  %6635 = vmatpush.msrb.mxu2 %v6291_v9  ;;  %6720 = vmatpush.msrb.mxu3 %v12561_v2 }
 0xc94   :  { %v8599_v19 = vpop.eup %8598  ;;  %v5900_v55 = vmul.f32 1.442695, %v5871_v44 }
 0xc95   :  { %v5738_v18 = vpop.f32.mrf.mxu0  ;;  %v8162_v0 = vadd.f32 -1.0, %v8599_v19  ;;  %v8601_v3 = vpop.eup %8600  ;;  %6639 = vmatpush.msrb.mxu2 %v6297_v38  ;;  %6722 = vmatpush.msrb.mxu3 %v12618_v62 }
 0xc96   :  { %8602 = vpow2.f32 %v5900_v55  ;;  %v5739_v48 = vadd.f32 %v5738_v18, %v5608_v37  ;;  %v8132_v9 = vadd.f32 -1.0, %v8601_v3  ;;  %v5839_v34 = vpop.f32.mrf.mxu1 }
 0xc97   :  { %v5934_v22 = vsel %vm5854_vm4, %v12748_v53, %v8162_v0  ;;  %8604 = vpow2.f32 %v3264_v11  ;;  %6724 = vmatpush.msrb.mxu3 %v12676_v8 }
 0xc98   :  { %v5836_v56 = vadd.f32 %v5835_v27, %v5739_v48  ;;  %3340 = vrot.lane.b32.xlu2 %v3295_v31, %s8715_s29  ;;  %5978 = vrot.lane.b32.xlu0 %v5934_v22, %s8717_s9  ;;  %v4647_v5 = vpop.permute.xlu1 %4646 }
 0xc99   :  { %6726 = vmatpush.msrb.mxu3 %v12709_v6 }
 0xc9a   :  { %v5872_v15 = vmin.f32 %v5836_v56, 0.0  ;;  %v3319_v46 = vpop.permute.xlu2 %3318  ;;  %v6019_v30 = vld [vmem:[#allocation2] sm:$0xff]  ;;  %vm5856_vm10 = vcmp.gt.f32.partialorder %v5836_v56, 0.0 }
 0xc9b   :  { %3365 = vst.msk [vmem:[#allocation2 + $0x10] sm:$0xff] %vm3362_vm6, %v3319_v46  ;;  %v6045_v7 = vsel %vm6043_vm5, %v6019_v30, 0  ;;  %6728 = vmatpush.msrb.mxu3 %v12745_v63 }
 0xc9c   :  { %v8603_v28 = vpop.eup %8602  ;;  %v5902_v53 = vmul.f32 1.442695, %v5872_v15  ;;  %4685 = vst.msk [vmem:[#allocation2 + $0x10] sm:$0xff] %vm4682_vm7, %v12711_v60  ;;  %v12818_v2 = vand.u32 4294901760, %v6045_v7  ;;  %v3296_v60 = vsel %vm3216_vm0, %v12733_v45, %v8132_v9 }
 0xc9d   :  { %v5742_v40 = vpop.f32.mrf.mxu0  ;;  %v8163_v33 = vadd.f32 -1.0, %v8603_v28  ;;  %v8605_v59 = vpop.eup %8604 }
 0xc9e   :  { %8606 = vpow2.f32 %v5902_v53  ;;  %v5743_v29 = vadd.f32 %v5742_v40, %v5614_v41  ;;  %6302 = vmatmul.f32.vlgmr.msra.gmra.mxu3 %v12818_v2  ;;  %v6117_v62 = vsub.f32 %v6045_v7, %v12818_v2  ;;  %v8133_v45 = vadd.f32 -1.0, %v8605_v59 }
 0xc9f   :  { %v5935_v57 = vsel %vm5855_vm8, %v12782_v14, %v8163_v33 }
 0xca0   :  { %v5840_v38 = vadd.f32 %v5839_v34, %v5743_v29  ;;  %3342 = vrot.lane.b32.xlu2 %v3296_v60, %s8715_s29  ;;  %5980 = vrot.lane.b32.xlu0 %v5935_v57, %s8717_s9  ;;  %v6118_v8 = vand.u32 4294901760, %v6117_v62  ;;  %v3297_v63 = vsel %vm3217_vm9, %v12775_v58, %v8133_v45  ;;  %v4649_v24 = vpop.permute.xlu1 %4648 }
 0xca1   :  { %6400 = vmatmul.f32.vlgmr.msra.gmra.mxu0 %v6117_v62 }
 0xca2   :  { %v5873_v16 = vmin.f32 %v5840_v38, 0.0  ;;  %v3321_v47 = vpop.permute.xlu2 %3320  ;;  %6506 = vmatmul.f32.vlgmr.msra.gmra.mxu1 %v6118_v8  ;;  %v6119_v21 = vsub.f32 %v6117_v62, %v6118_v8  ;;  %vm5857_vm11 = vcmp.gt.f32.partialorder %v5840_v38, 0.0 }
 0xca3   :  { %3366 = vst.msk [vmem:[#allocation2 + $0x18] sm:$0xff] %vm3362_vm6, %v3321_v47 }
 0xca4   :  { %v8607_v52 = vpop.eup %8606  ;;  %v5904_v23 = vmul.f32 1.442695, %v5873_v16  ;;  %4686 = vst.msk [vmem:[#allocation2 + $0x18] sm:$0xff] %vm4682_vm7, %v12758_v35  ;;  %v6120_v6 = vand.u32 4294901760, %v6119_v21 }
 0xca5   :  { %v8164_v50 = vadd.f32 -1.0, %v8607_v52 }
 0xca6   :  { %8608 = vpow2.f32 %v5904_v23  ;;  %6121 = vmatmul.f32.vlgmr.msra.gmra.mxu2 %v6120_v6 }
 0xca7   :  { %v5936_v26 = vsel %vm5856_vm10, %v5836_v56, %v8164_v50 }
 0xca8   :  { %3344 = vrot.lane.b32.xlu2 %v3297_v63, %s8715_s29  ;;  %5982 = vrot.lane.b32.xlu0 %v5936_v26, %s8717_s9  ;;  %v4651_v14 = vpop.permute.xlu1 %4650 }
 0xcaa   :  { %v3323_v43 = vpop.permute.xlu2 %3322 }
 0xcab   :  { %3367 = vst.msk [vmem:[#allocation2 + $0x20] sm:$0xff] %vm3362_vm6, %v3323_v43 }
 0xcac   :  { %v8609_v10 = vpop.eup %8608  ;;  %4687 = vst.msk [vmem:[#allocation2 + $0x20] sm:$0xff] %vm4682_vm7, %v12794_v49 }
 0xcad   :  { %v8165_v35 = vadd.f32 -1.0, %v8609_v10 }
 0xcaf   :  { %v5937_v1 = vsel %vm5857_vm11, %v5840_v38, %v8165_v35 }
 0xcb0   :  { %5984 = vrot.lane.b32.xlu0 %v5937_v1, %s8717_s9  ;;  %v4653_v18 = vpop.permute.xlu1 %4652 }
 0xcb2   :  { %v3325_v12 = vpop.permute.xlu2 %3324  ;;  %v5957_v58 = vpop.permute.xlu0 %5956 }
 0xcb3   :  { %3368 = vst.msk [vmem:[#allocation2 + $0x28] sm:$0xff] %vm3362_vm6, %v3325_v12 }
 0xcb4   :  { %4688 = vst.msk [vmem:[#allocation2 + $0x28] sm:$0xff] %vm4682_vm7, %v4645_v32 }
 0xcb5   :  { %6004 = vst.msk [vmem:[#allocation2 + $0x8] sm:$0xff] %vm6002_vm2, %v5957_v58 }
 0xcb8   :  { %v4655_v46 = vpop.permute.xlu1 %4654 }
 0xcba   :  { %v3327_v25 = vpop.permute.xlu2 %3326  ;;  %v5959_v36 = vpop.permute.xlu0 %5958 }
 0xcbb   :  { %3369 = vst.msk [vmem:[#allocation2 + $0x30] sm:$0xff] %vm3362_vm6, %v3327_v25 }
 0xcbc   :  { %4689 = vst.msk [vmem:[#allocation2 + $0x30] sm:$0xff] %vm4682_vm7, %v4647_v5  ;;  %v6020_v13 = vld [vmem:[#allocation2 + $0x8] sm:$0xff] }
 0xcbd   :  { %6005 = vst.msk [vmem:[#allocation2 + $0x10] sm:$0xff] %vm6002_vm2, %v5959_v36  ;;  %v6048_v54 = vsel %vm6043_vm5, %v6020_v13, 0 }
 0xcbe   :  { %v12849_v4 = vand.u32 4294901760, %v6048_v54 }
 0xcc0   :  { %6306 = vmatmul.f32.gmra.mxu3 %v12849_v4  ;;  %v6125_v44 = vsub.f32 %v6048_v54, %v12849_v4  ;;  %v4657_v34 = vpop.permute.xlu1 %4656 }
 0xcc2   :  { %6405 = vmatmul.f32.gmra.mxu0 %v6125_v44  ;;  %v3329_v42 = vpop.permute.xlu2 %3328  ;;  %v5961_v17 = vpop.permute.xlu0 %5960  ;;  %v6126_v19 = vand.u32 4294901760, %v6125_v44 }
 0xcc3   :  { %3370 = vst.msk [vmem:[#allocation2 + $0x38] sm:$0xff] %vm3362_vm6, %v3329_v42 }
 0xcc4   :  { %4690 = vst.msk [vmem:[#allocation2 + $0x38] sm:$0xff] %vm4682_vm7, %v4649_v24  ;;  %6512 = vmatmul.f32.gmra.mxu1 %v6126_v19  ;;  %v6127_v49 = vsub.f32 %v6125_v44, %v6126_v19  ;;  %v6021_v37 = vld [vmem:[#allocation2 + $0x10] sm:$0xff] }
 0xcc5   :  { %6006 = vst.msk [vmem:[#allocation2 + $0x18] sm:$0xff] %vm6002_vm2, %v5961_v17  ;;  %v6051_v39 = vsel %vm6043_vm5, %v6021_v37, 0 }
 0xcc6   :  { %v6128_v55 = vand.u32 4294901760, %v6127_v49  ;;  %v12857_v27 = vand.u32 4294901760, %v6051_v39 }
 0xcc8   :  { %6129 = vmatmul.f32.gmra.mxu2 %v6128_v55  ;;  %6310 = vmatmul.f32.gmra.mxu3 %v12857_v27  ;;  %v6133_v0 = vsub.f32 %v6051_v39, %v12857_v27  ;;  %v4659_v6 = vpop.permute.xlu1 %4658 }
 0xcca   :  { %6410 = vmatmul.f32.gmra.mxu0 %v6133_v0  ;;  %v3331_v11 = vpop.permute.xlu2 %3330  ;;  %v5963_v48 = vpop.permute.xlu0 %5962  ;;  %v6134_v61 = vand.u32 4294901760, %v6133_v0 }
 0xccb   :  { %3371 = vst.msk [vmem:[#allocation2 + $0x40] sm:$0xff] %vm3362_vm6, %v3331_v11 }
 0xccc   :  { %4691 = vst.msk [vmem:[#allocation2 + $0x40] sm:$0xff] %vm4682_vm7, %v4651_v14  ;;  %6518 = vmatmul.f32.gmra.mxu1 %v6134_v61  ;;  %v6135_v31 = vsub.f32 %v6133_v0, %v6134_v61  ;;  %v6022_v22 = vld [vmem:[#allocation2 + $0x18] sm:$0xff] }
 0xccd   :  { %6007 = vst.msk [vmem:[#allocation2 + $0x20] sm:$0xff] %vm6002_vm2, %v5963_v48  ;;  %v6054_v3 = vsel %vm6043_vm5, %v6022_v22, 0 }
 0xcce   :  { %v6136_v51 = vand.u32 4294901760, %v6135_v31  ;;  %v12865_v56 = vand.u32 4294901760, %v6054_v3 }
 0xcd0   :  { %6137 = vmatmul.f32.gmra.mxu2 %v6136_v51  ;;  %6314 = vmatmul.f32.gmra.mxu3 %v12865_v56  ;;  %v6141_v15 = vsub.f32 %v6054_v3, %v12865_v56  ;;  %v4661_v36 = vpop.permute.xlu1 %4660 }
 0xcd2   :  { %6415 = vmatmul.f32.gmra.mxu0 %v6141_v15  ;;  %v3333_v30 = vpop.permute.xlu2 %3332  ;;  %v5965_v20 = vpop.permute.xlu0 %5964  ;;  %v6142_v7 = vand.u32 4294901760, %v6141_v15 }
 0xcd3   :  { %3372 = vst.msk [vmem:[#allocation2 + $0x48] sm:$0xff] %vm3362_vm6, %v3333_v30 }
 0xcd4   :  { %4692 = vst.msk [vmem:[#allocation2 + $0x48] sm:$0xff] %vm4682_vm7, %v4653_v18  ;;  %6524 = vmatmul.f32.gmra.mxu1 %v6142_v7  ;;  %v6143_v9 = vsub.f32 %v6141_v15, %v6142_v7  ;;  %v6023_v28 = vld [vmem:[#allocation2 + $0x20] sm:$0xff] }
 0xcd5   :  { %6008 = vst.msk [vmem:[#allocation2 + $0x28] sm:$0xff] %vm6002_vm2, %v5965_v20  ;;  %v6057_v41 = vsel %vm6043_vm5, %v6023_v28, 0 }
 0xcd6   :  { %v6144_v53 = vand.u32 4294901760, %v6143_v9  ;;  %v12873_v40 = vand.u32 4294901760, %v6057_v41 }
 0xcd8   :  { %6145 = vmatmul.f32.gmra.mxu2 %v6144_v53  ;;  %6318 = vmatmul.f32.gmra.mxu3 %v12873_v40  ;;  %v6149_v33 = vsub.f32 %v6057_v41, %v12873_v40  ;;  %v4663_v55 = vpop.permute.xlu1 %4662 }
 0xcda   :  { %6420 = vmatmul.f32.gmra.mxu0 %v6149_v33  ;;  %v3335_v29 = vpop.permute.xlu2 %3334  ;;  %v5967_v62 = vpop.permute.xlu0 %5966  ;;  %v6150_v32 = vand.u32 4294901760, %v6149_v33 }
 0xcdb   :  { %3373 = vst.msk [vmem:[#allocation2 + $0x50] sm:$0xff] %vm3362_vm6, %v3335_v29 }
 0xcdc   :  { %4693 = vst.msk [vmem:[#allocation2 + $0x50] sm:$0xff] %vm4682_vm7, %v4655_v46  ;;  %6530 = vmatmul.f32.gmra.mxu1 %v6150_v32  ;;  %v6151_v60 = vsub.f32 %v6149_v33, %v6150_v32  ;;  %v6024_v57 = vld [vmem:[#allocation2 + $0x28] sm:$0xff] }
 0xcdd   :  { %6009 = vst.msk [vmem:[#allocation2 + $0x30] sm:$0xff] %vm6002_vm2, %v5967_v62  ;;  %v6060_v59 = vsel %vm6043_vm5, %v6024_v57, 0 }
 0xcde   :  { %v6152_v38 = vand.u32 4294901760, %v6151_v60  ;;  %v12881_v8 = vand.u32 4294901760, %v6060_v59 }
 0xce0   :  { %6153 = vmatmul.f32.gmra.mxu2 %v6152_v38  ;;  %6322 = vmatmul.f32.gmra.mxu3 %v12881_v8  ;;  %v6157_v16 = vsub.f32 %v6060_v59, %v12881_v8  ;;  %v4665_v20 = vpop.permute.xlu1 %4664 }
 0xce2   :  { %6425 = vmatmul.f32.gmra.mxu0 %v6157_v16  ;;  %v3337_v47 = vpop.permute.xlu2 %3336  ;;  %v5969_v21 = vpop.permute.xlu0 %5968  ;;  %v6158_v45 = vand.u32 4294901760, %v6157_v16 }
 0xce3   :  { %3374 = vst.msk [vmem:[#allocation2 + $0x58] sm:$0xff] %vm3362_vm6, %v3337_v47 }
 0xce4   :  { %4694 = vst.msk [vmem:[#allocation2 + $0x58] sm:$0xff] %vm4682_vm7, %v4657_v34  ;;  %6536 = vmatmul.f32.gmra.mxu1 %v6158_v45  ;;  %v6159_v52 = vsub.f32 %v6157_v16, %v6158_v45  ;;  %v6025_v23 = vld [vmem:[#allocation2 + $0x30] sm:$0xff] }
 0xce5   :  { %6010 = vst.msk [vmem:[#allocation2 + $0x38] sm:$0xff] %vm6002_vm2, %v5969_v21  ;;  %v6063_v50 = vsel %vm6043_vm5, %v6025_v23, 0 }
 0xce6   :  { %v6160_v63 = vand.u32 4294901760, %v6159_v52  ;;  %v12889_v26 = vand.u32 4294901760, %v6063_v50 }
 0xce8   :  { %6161 = vmatmul.f32.gmra.mxu2 %v6160_v63  ;;  %6326 = vmatmul.f32.gmra.mxu3 %v12889_v26  ;;  %v6165_v5 = vsub.f32 %v6063_v50, %v12889_v26 }
 0xcea   :  { %6430 = vmatmul.f32.gmra.mxu0 %v6165_v5  ;;  %v3339_v43 = vpop.permute.xlu2 %3338  ;;  %v5971_v10 = vpop.permute.xlu0 %5970  ;;  %v6166_v35 = vand.u32 4294901760, %v6165_v5 }
 0xceb   :  { %3375 = vst.msk [vmem:[#allocation2 + $0x60] sm:$0xff] %vm3362_vm6, %v3339_v43 }
 0xcec   :  { %4695 = vst.msk [vmem:[#allocation2 + $0x60] sm:$0xff] %vm4682_vm7, %v4659_v6  ;;  %6542 = vmatmul.f32.gmra.mxu1 %v6166_v35  ;;  %v6167_v1 = vsub.f32 %v6165_v5, %v6166_v35  ;;  %v6026_v12 = vld [vmem:[#allocation2 + $0x38] sm:$0xff] }
 0xced   :  { %6011 = vst.msk [vmem:[#allocation2 + $0x40] sm:$0xff] %vm6002_vm2, %v5971_v10  ;;  %v6066_v58 = vsel %vm6043_vm5, %v6026_v12, 0 }
 0xcee   :  { %v6168_v24 = vand.u32 4294901760, %v6167_v1  ;;  %v12897_v25 = vand.u32 4294901760, %v6066_v58 }
 0xcf0   :  { %6169 = vmatmul.f32.gmra.mxu2 %v6168_v24  ;;  %6330 = vmatmul.f32.gmra.mxu3 %v12897_v25  ;;  %v6173_v13 = vsub.f32 %v6066_v58, %v12897_v25 }
 0xcf2   :  { %6435 = vmatmul.f32.gmra.mxu0 %v6173_v13  ;;  %v3341_v14 = vpop.permute.xlu2 %3340  ;;  %v5973_v54 = vpop.permute.xlu0 %5972  ;;  %v6174_v44 = vand.u32 4294901760, %v6173_v13 }
 0xcf3   :  { %3376 = vst.msk [vmem:[#allocation2 + $0x68] sm:$0xff] %vm3362_vm6, %v3341_v14 }
 0xcf4   :  { %4696 = vst.msk [vmem:[#allocation2 + $0x68] sm:$0xff] %vm4682_vm7, %v4661_v36  ;;  %6548 = vmatmul.f32.gmra.mxu1 %v6174_v44  ;;  %v6175_v42 = vsub.f32 %v6173_v13, %v6174_v44  ;;  %v6027_v17 = vld [vmem:[#allocation2 + $0x40] sm:$0xff] }
 0xcf5   :  { %6012 = vst.msk [vmem:[#allocation2 + $0x48] sm:$0xff] %vm6002_vm2, %v5973_v54  ;;  %v6069_v19 = vsel %vm6043_vm5, %v6027_v17, 0 }
 0xcf6   :  { %v6176_v49 = vand.u32 4294901760, %v6175_v42  ;;  %v12905_v37 = vand.u32 4294901760, %v6069_v19 }
 0xcf8   :  { %6177 = vmatmul.f32.gmra.mxu2 %v6176_v49  ;;  %6334 = vmatmul.f32.gmra.mxu3 %v12905_v37  ;;  %v6181_v39 = vsub.f32 %v6069_v19, %v12905_v37 }
 0xcfa   :  { %6440 = vmatmul.f32.gmra.mxu0 %v6181_v39  ;;  %v3343_v18 = vpop.permute.xlu2 %3342  ;;  %v5975_v0 = vpop.permute.xlu0 %5974  ;;  %v6182_v11 = vand.u32 4294901760, %v6181_v39 }
 0xcfb   :  { %3377 = vst.msk [vmem:[#allocation2 + $0x70] sm:$0xff] %vm3362_vm6, %v3343_v18 }
 0xcfc   :  { %4697 = vst.msk [vmem:[#allocation2 + $0x70] sm:$0xff] %vm4682_vm7, %v4663_v55  ;;  %6554 = vmatmul.f32.gmra.mxu1 %v6182_v11  ;;  %v6183_v48 = vsub.f32 %v6181_v39, %v6182_v11  ;;  %v6028_v61 = vld [vmem:[#allocation2 + $0x48] sm:$0xff] }
 0xcfd   :  { %6013 = vst.msk [vmem:[#allocation2 + $0x50] sm:$0xff] %vm6002_vm2, %v5975_v0  ;;  %v6072_v31 = vsel %vm6043_vm5, %v6028_v61, 0 }
 0xcfe   :  { %v6184_v22 = vand.u32 4294901760, %v6183_v48  ;;  %v12913_v3 = vand.u32 4294901760, %v6072_v31 }
 0xd00   :  { %6185 = vmatmul.f32.gmra.mxu2 %v6184_v22  ;;  %6338 = vmatmul.f32.gmra.mxu3 %v12913_v3  ;;  %v6189_v51 = vsub.f32 %v6072_v31, %v12913_v3 }
 0xd02   :  { %6445 = vmatmul.f32.gmra.mxu0 %v6189_v51  ;;  %v3345_v15 = vpop.permute.xlu2 %3344  ;;  %v5977_v46 = vpop.permute.xlu0 %5976  ;;  %v6190_v30 = vand.u32 4294901760, %v6189_v51 }
 0xd03   :  { %3378 = vst.msk [vmem:[#allocation2 + $0x78] sm:$0xff] %vm3362_vm6, %v3345_v15 }
 0xd04   :  { %4698 = vst.msk [vmem:[#allocation2 + $0x78] sm:$0xff] %vm4682_vm7, %v4665_v20  ;;  %6560 = vmatmul.f32.gmra.mxu1 %v6190_v30  ;;  %v6191_v7 = vsub.f32 %v6189_v51, %v6190_v30  ;;  %v6029_v9 = vld [vmem:[#allocation2 + $0x50] sm:$0xff] }
 0xd05   :  { %6014 = vst.msk [vmem:[#allocation2 + $0x58] sm:$0xff] %vm6002_vm2, %v5977_v46  ;;  %v6075_v28 = vsel %vm6043_vm5, %v6029_v9, 0 }
 0xd06   :  { %v6192_v41 = vand.u32 4294901760, %v6191_v7  ;;  %v12921_v53 = vand.u32 4294901760, %v6075_v28 }
 0xd08   :  { %6193 = vmatmul.f32.gmra.mxu2 %v6192_v41  ;;  %6342 = vmatmul.f32.gmra.mxu3 %v12921_v53  ;;  %v6197_v33 = vsub.f32 %v6075_v28, %v12921_v53 }
 0xd0a   :  { %6450 = vmatmul.f32.gmra.mxu0 %v6197_v33  ;;  %v5979_v29 = vpop.permute.xlu0 %5978  ;;  %v6198_v62 = vand.u32 4294901760, %v6197_v33 }
 0xd0b   :  { %6015 = vst.msk [vmem:[#allocation2 + $0x60] sm:$0xff] %vm6002_vm2, %v5979_v29 }
 0xd0c   :  { %6566 = vmatmul.f32.gmra.mxu1 %v6198_v62  ;;  %v6199_v32 = vsub.f32 %v6197_v33, %v6198_v62  ;;  %v6030_v34 = vld [vmem:[#allocation2 + $0x58] sm:$0xff] }
 0xd0d   :  { %v6078_v60 = vsel %vm6043_vm5, %v6030_v34, 0 }
 0xd0e   :  { %v6200_v57 = vand.u32 4294901760, %v6199_v32  ;;  %v12927_v59 = vand.u32 4294901760, %v6078_v60 }
 0xd10   :  { %6201 = vmatmul.f32.gmra.mxu2 %v6200_v57  ;;  %6346 = vmatmul.f32.gmra.mxu3 %v12927_v59  ;;  %v6205_v38 = vsub.f32 %v6078_v60, %v12927_v59 }
 0xd12   :  { %6455 = vmatmul.f32.gmra.mxu0 %v6205_v38  ;;  %v5981_v16 = vpop.permute.xlu0 %5980  ;;  %v6206_v47 = vand.u32 4294901760, %v6205_v38  ;;  %v6031_v21 = vld [vmem:[#allocation2 + $0x60] sm:$0xff] }
 0xd13   :  { %6016 = vst.msk [vmem:[#allocation2 + $0x68] sm:$0xff] %vm6002_vm2, %v5981_v16  ;;  %v6081_v45 = vsel %vm6043_vm5, %v6031_v21, 0 }
 0xd14   :  { %6572 = vmatmul.f32.gmra.mxu1 %v6206_v47  ;;  %v6207_v52 = vsub.f32 %v6205_v38, %v6206_v47  ;;  %v12933_v23 = vand.u32 4294901760, %v6081_v45 }
 0xd16   :  { %v6208_v6 = vand.u32 4294901760, %v6207_v52  ;;  %v6213_v50 = vsub.f32 %v6081_v45, %v12933_v23 }
 0xd18   :  { %6209 = vmatmul.f32.gmra.mxu2 %v6208_v6  ;;  %6350 = vmatmul.f32.gmra.mxu3 %v12933_v23  ;;  %v6214_v63 = vand.u32 4294901760, %v6213_v50 }
 0xd1a   :  { %6460 = vmatmul.f32.gmra.mxu0 %v6213_v50  ;;  %v5983_v5 = vpop.permute.xlu0 %5982  ;;  %v6215_v43 = vsub.f32 %v6213_v50, %v6214_v63  ;;  %v6032_v10 = vld [vmem:[#allocation2 + $0x68] sm:$0xff] }
 0xd1b   :  { %6017 = vst.msk [vmem:[#allocation2 + $0x70] sm:$0xff] %vm6002_vm2, %v5983_v5  ;;  %v6084_v35 = vsel %vm6043_vm5, %v6032_v10, 0 }
 0xd1c   :  { %6578 = vmatmul.f32.gmra.mxu1 %v6214_v63  ;;  %v6216_v1 = vand.u32 4294901760, %v6215_v43  ;;  %v12939_v12 = vand.u32 4294901760, %v6084_v35  ;;  %v8718_v63 = vmov 8  }
 0xd1d   :  { %8223 = vset.pattern.permute.xlu1 %v8718_v63  ;;  %8224 = vset.pattern.permute.xlu0 %v8718_v63 }
 0xd1e   :  { %v6221_v58 = vsub.f32 %v6084_v35, %v12939_v12  ;;  %v6401_v52 = vpop.f32.mrf.mxu0  ;;  %8225 = vset.pattern.permute.xlu2 %v8718_v63 }
 0xd1f   :  { %v6507_v50 = vpop.f32.mrf.mxu1 }
 0xd20   :  { %6217 = vmatmul.f32.gmra.mxu2 %v6216_v1  ;;  %6354 = vmatmul.f32.gmra.mxu3 %v12939_v12  ;;  %v6222_v24 = vand.u32 4294901760, %v6221_v58 }
 0xd21   :  { %v12955_v22 = vpop.f32.mrf.mxu3 }
 0xd22   :  { %6465 = vmatmul.f32.gmra.mxu0 %v6221_v58  ;;  %v5985_v36 = vpop.permute.xlu0 %5984  ;;  %v6223_v13 = vsub.f32 %v6221_v58, %v6222_v24  ;;  %v6033_v14 = vld [vmem:[#allocation2 + $0x70] sm:$0xff] }
 0xd23   :  { %6018 = vst.msk [vmem:[#allocation2 + $0x78] sm:$0xff] %vm6002_vm2, %v5985_v36  ;;  %v6087_v54 = vsel %vm6043_vm5, %v6033_v14, 0 }
 0xd24   :  { %6584 = vmatmul.f32.gmra.mxu1 %v6222_v24  ;;  %v6224_v44 = vand.u32 4294901760, %v6223_v13  ;;  %v12945_v42 = vand.u32 4294901760, %v6087_v54 }
 0xd26   :  { %v6229_v17 = vsub.f32 %v6087_v54, %v12945_v42 }
 0xd28   :  { %6225 = vmatmul.f32.gmra.mxu2 %v6224_v44  ;;  %6358 = vmatmul.f32.gmra.mxu3 %v12945_v42  ;;  %v6230_v19 = vand.u32 4294901760, %v6229_v17 }
 0xd29   :  { %v12959_v51 = vpop.f32.mrf.mxu2 }
 0xd2a   :  { %6470 = vmatmul.f32.gmra.mxu0 %v6229_v17  ;;  %v6231_v49 = vsub.f32 %v6229_v17, %v6230_v19  ;;  %v6034_v39 = vld [vmem:[#allocation2 + $0x78] sm:$0xff] }
 0xd2b   :  { %v6090_v55 = vsel %vm6043_vm5, %v6034_v39, 0 }
 0xd2c   :  { %6590 = vmatmul.f32.gmra.mxu1 %v6230_v19  ;;  %v6232_v18 = vand.u32 4294901760, %v6231_v49  ;;  %v12950_v0 = vand.u32 4294901760, %v6090_v55 }
 0xd2e   :  { %v6237_v11 = vsub.f32 %v6090_v55, %v12950_v0 }
 0xd30   :  { %6233 = vmatmul.f32.gmra.mxu2 %v6232_v18  ;;  %6362 = vmatmul.f32.gmra.mxu3 %v12950_v0  ;;  %v6238_v48 = vand.u32 4294901760, %v6237_v11 }
 0xd32   :  { %6475 = vmatmul.f32.gmra.mxu0 %v6237_v11  ;;  %v6239_v61 = vsub.f32 %v6237_v11, %v6238_v48 }
 0xd34   :  { %6596 = vmatmul.f32.gmra.mxu1 %v6238_v48  ;;  %v6240_v31 = vand.u32 4294901760, %v6239_v61 }
 0xd38   :  { %6241 = vmatmul.f32.gmra.mxu2 %v6240_v31  ;;  %6730 = vmatmul.f32.vlgmr.msrb.gmra.mxu3 %v12818_v2 }
 0xd40   :  { %6641 = vmatmul.f32.vlgmr.msrb.gmra.mxu2 %v12818_v2  ;;  %6734 = vmatmul.f32.gmra.mxu3 %v12849_v4 }
 0xd43   :  { %v6307_v15 = vpop.f32.mrf.mxu3 }
 0xd48   :  { %6645 = vmatmul.f32.gmra.mxu2 %v12849_v4  ;;  %6738 = vmatmul.f32.gmra.mxu3 %v12857_v27 }
 0xd4b   :  { %v6130_v46 = vpop.f32.mrf.mxu2  ;;  %v6311_v30 = vpop.f32.mrf.mxu3 }
 0xd4c   :  { %v12963_v20 = vadd.f32 %v6307_v15, %v6130_v46 }
 0xd50   :  { %6649 = vmatmul.f32.gmra.mxu2 %v12857_v27  ;;  %6742 = vmatmul.f32.gmra.mxu3 %v12865_v56 }
 0xd53   :  { %v6138_v7 = vpop.f32.mrf.mxu2  ;;  %v6315_v9 = vpop.f32.mrf.mxu3 }
 0xd54   :  { %v12967_v2 = vadd.f32 %v6311_v30, %v6138_v7 }
 0xd58   :  { %6653 = vmatmul.f32.gmra.mxu2 %v12865_v56  ;;  %6746 = vmatmul.f32.gmra.mxu3 %v12873_v40 }
 0xd5b   :  { %v6146_v28 = vpop.f32.mrf.mxu2  ;;  %v6319_v4 = vpop.f32.mrf.mxu3 }
 0xd5c   :  { %v12971_v41 = vadd.f32 %v6315_v9, %v6146_v28 }
 0xd60   :  { %6657 = vmatmul.f32.gmra.mxu2 %v12873_v40  ;;  %6750 = vmatmul.f32.gmra.mxu3 %v12881_v8 }
 0xd63   :  { %v6154_v33 = vpop.f32.mrf.mxu2  ;;  %v6323_v27 = vpop.f32.mrf.mxu3 }
 0xd64   :  { %v12975_v29 = vadd.f32 %v6319_v4, %v6154_v33 }
 0xd68   :  { %6661 = vmatmul.f32.gmra.mxu2 %v12881_v8  ;;  %6754 = vmatmul.f32.gmra.mxu3 %v12889_v26 }
 0xd6b   :  { %v6162_v62 = vpop.f32.mrf.mxu2  ;;  %v6327_v56 = vpop.f32.mrf.mxu3 }
 0xd6c   :  { %v12979_v32 = vadd.f32 %v6323_v27, %v6162_v62 }
 0xd70   :  { %6665 = vmatmul.f32.gmra.mxu2 %v12889_v26  ;;  %6758 = vmatmul.f32.gmra.mxu3 %v12897_v25 }
 0xd73   :  { %v6170_v34 = vpop.f32.mrf.mxu2  ;;  %v6331_v40 = vpop.f32.mrf.mxu3 }
 0xd74   :  { %v12983_v60 = vadd.f32 %v6327_v56, %v6170_v34 }
 0xd78   :  { %6669 = vmatmul.f32.gmra.mxu2 %v12897_v25  ;;  %6762 = vmatmul.f32.gmra.mxu3 %v12905_v37 }
 0xd7b   :  { %v6178_v57 = vpop.f32.mrf.mxu2  ;;  %v12987_v8 = vpop.f32.mrf.mxu3 }
 0xd7c   :  { %v12989_v38 = vadd.f32 %v6331_v40, %v6178_v57 }
 0xd80   :  { %6673 = vmatmul.f32.gmra.mxu2 %v12905_v37  ;;  %6766 = vmatmul.f32.gmra.mxu3 %v12913_v3 }
 0xd83   :  { %v12993_v26 = vpop.f32.mrf.mxu2  ;;  %v12995_v16 = vpop.f32.mrf.mxu3 }
 0xd88   :  { %6677 = vmatmul.f32.gmra.mxu2 %v12913_v3  ;;  %6770 = vmatmul.f32.gmra.mxu3 %v12921_v53 }
 0xd8b   :  { %v12999_v25 = vpop.f32.mrf.mxu2  ;;  %v13001_v47 = vpop.f32.mrf.mxu3 }
 0xd90   :  { %6681 = vmatmul.f32.gmra.mxu2 %v12921_v53  ;;  %6774 = vmatmul.f32.gmra.mxu3 %v12927_v59 }
 0xd93   :  { %v13005_v21 = vpop.f32.mrf.mxu2  ;;  %v13007_v37 = vpop.f32.mrf.mxu3 }
 0xd98   :  { %6685 = vmatmul.f32.gmra.mxu2 %v12927_v59  ;;  %6778 = vmatmul.f32.gmra.mxu3 %v12933_v23  ;;  %v6406_v59 = vpop.f32.mrf.mxu0 }
 0xd99   :  { %v6407_v49 = vadd.f32 %v6406_v59, %v12963_v20 }
 0xd9b   :  { %v13011_v45 = vpop.f32.mrf.mxu2  ;;  %v13013_v3 = vpop.f32.mrf.mxu3 }
 0xda0   :  { %6689 = vmatmul.f32.gmra.mxu2 %v12933_v23  ;;  %6782 = vmatmul.f32.gmra.mxu3 %v12939_v12  ;;  %v6513_v23 = vpop.f32.mrf.mxu1  ;;  %v6411_v10 = vpop.f32.mrf.mxu0 }
 0xda1   :  { %v6412_v31 = vadd.f32 %v6411_v10, %v12967_v2 }
 0xda3   :  { %v13017_v53 = vpop.f32.mrf.mxu2  ;;  %v13019_v6 = vpop.f32.mrf.mxu3 }
 0xda8   :  { %6693 = vmatmul.f32.gmra.mxu2 %v12939_v12  ;;  %6786 = vmatmul.f32.gmra.mxu3 %v12945_v42  ;;  %v6519_v58 = vpop.f32.mrf.mxu1  ;;  %v6304_v12 = vadd.f32 %v12955_v22, %v12959_v51  ;;  %v6416_v13 = vpop.f32.mrf.mxu0 }
 0xda9   :  { %v6520_v15 = vadd.f32 %v6519_v58, %v6412_v31  ;;  %v6417_v9 = vadd.f32 %v6416_v13, %v12971_v41 }
 0xdaa   :  { %v6402_v14 = vadd.f32 %v6401_v52, %v6304_v12 }
 0xdab   :  { %v13023_v5 = vpop.f32.mrf.mxu2  ;;  %v13025_v43 = vpop.f32.mrf.mxu3 }
 0xdac   :  { %v6508_v44 = vadd.f32 %v6507_v50, %v6402_v14 }
 0xdb0   :  { %6697 = vmatmul.f32.gmra.mxu2 %v12945_v42  ;;  %6790 = vmatmul.f32.gmra.mxu3 %v12950_v0  ;;  %v6525_v54 = vpop.f32.mrf.mxu1  ;;  %v6421_v39 = vpop.f32.mrf.mxu0 }
 0xdb1   :  { %v6526_v4 = vadd.f32 %v6525_v54, %v6417_v9  ;;  %v6422_v56 = vadd.f32 %v6421_v39, %v12975_v29 }
 0xdb3   :  { %v13029_v35 = vpop.f32.mrf.mxu2  ;;  %v13031_v1 = vpop.f32.mrf.mxu3 }
 0xdb8   :  { %6701 = vmatmul.f32.gmra.mxu2 %v12950_v0  ;;  %v6531_v18 = vpop.f32.mrf.mxu1  ;;  %v6514_v0 = vadd.f32 %v6513_v23, %v6407_v49  ;;  %v6426_v51 = vpop.f32.mrf.mxu0 }
 0xdb9   :  { %v6532_v41 = vadd.f32 %v6531_v18, %v6422_v56  ;;  %v6427_v59 = vadd.f32 %v6426_v51, %v12979_v32 }
 0xdbb   :  { %v13036_v24 = vpop.f32.mrf.mxu2  ;;  %v6731_v36 = vpop.f32.mrf.mxu3 }
 0xdc0   :  { %v6537_v20 = vpop.f32.mrf.mxu1  ;;  %v6431_v2 = vpop.f32.mrf.mxu0 }
 0xdc1   :  { %v6538_v29 = vadd.f32 %v6537_v20, %v6427_v59  ;;  %v6432_v13 = vadd.f32 %v6431_v2, %v12983_v60  ;;  %v6336_v60 = vadd.f32 %v12987_v8, %v12993_v26 }
 0xdc3   :  { %v6642_v42 = vpop.f32.mrf.mxu2  ;;  %v6735_v17 = vpop.f32.mrf.mxu3 }
 0xdc4   :  { %v6643_v19 = vadd.f32 %v6642_v42, %v6508_v44 }
 0xdc6   :  { %v13039_v55 = vadd.f32 %v6731_v36, %v6643_v19 }
 0xdc8   :  { %6891 = vperm.xlu1 %8223, %v13039_v55   ;;  %6810 = vrot.lane.b32.xlu2 %v13039_v55, %s8719_s3  ;;  %v6543_v34 = vpop.f32.mrf.mxu1  ;;  %v6436_v50 = vpop.f32.mrf.mxu0 }
 0xdc9   :  { %v6544_v44 = vadd.f32 %v6543_v34, %v6432_v13  ;;  %v6437_v49 = vadd.f32 %v6436_v50, %v12989_v38 }
 0xdcb   :  { %v6646_v11 = vpop.f32.mrf.mxu2  ;;  %v6739_v48 = vpop.f32.mrf.mxu3 }
 0xdcc   :  { %v6647_v61 = vadd.f32 %v6646_v11, %v6514_v0 }
 0xdce   :  { %v13045_v22 = vadd.f32 %v6735_v17, %v6647_v61 }
 0xdd0   :  { %6895 = vperm.xlu0 %8224, %v13045_v22   ;;  %6812 = vrot.lane.b32.xlu1 %v13045_v22, %s8719_s3  ;;  %v6549_v10 = vpop.f32.mrf.mxu1  ;;  %v6441_v14 = vpop.f32.mrf.mxu0 }
 0xdd1   :  { %v6550_v0 = vadd.f32 %v6549_v10, %v6437_v49  ;;  %v6442_v51 = vadd.f32 %v6441_v14, %v6336_v60  ;;  %v6360_v60 = vadd.f32 %v13025_v43, %v13029_v35 }
 0xdd3   :  { %v6650_v46 = vpop.f32.mrf.mxu2  ;;  %v6743_v30 = vpop.f32.mrf.mxu3 }
 0xdd4   :  { %v6651_v7 = vadd.f32 %v6650_v46, %v6520_v15  ;;  %v6340_v46 = vadd.f32 %v12995_v16, %v12999_v25 }
 0xdd6   :  { %v13051_v28 = vadd.f32 %v6739_v48, %v6651_v7 }
 0xdd8   :  { %6814 = vrot.lane.b32.xlu0 %v13051_v28, %s8719_s3  ;;  %6899 = vperm.xlu2 %8225, %v13051_v28   ;;  %v6555_v32 = vpop.f32.mrf.mxu1  ;;  %v6446_v18 = vpop.f32.mrf.mxu0 }
 0xdd9   :  { %v6556_v8 = vadd.f32 %v6555_v32, %v6442_v51  ;;  %v6447_v7 = vadd.f32 %v6446_v18, %v6340_v46  ;;  %v6364_v51 = vadd.f32 %v13031_v1, %v13036_v24 }
 0xddb   :  { %v6654_v33 = vpop.f32.mrf.mxu2  ;;  %v6747_v27 = vpop.f32.mrf.mxu3 }
 0xddc   :  { %v6655_v62 = vadd.f32 %v6654_v33, %v6526_v4  ;;  %v6344_v4 = vadd.f32 %v13001_v47, %v13005_v21 }
 0xdde   :  { %v13057_v40 = vadd.f32 %v6743_v30, %v6655_v62 }
 0xde0   :  { %6816 = vrot.lane.b32.xlu2 %v13057_v40, %s8719_s3  ;;  %v6561_v31 = vpop.f32.mrf.mxu1  ;;  %v6451_v38 = vpop.f32.mrf.mxu0 }
 0xde1   :  { %v6562_v33 = vadd.f32 %v6561_v31, %v6447_v7  ;;  %v6452_v56 = vadd.f32 %v6451_v38, %v6344_v4 }
 0xde3   :  { %v6658_v57 = vpop.f32.mrf.mxu2  ;;  %v6751_v52 = vpop.f32.mrf.mxu3 }
 0xde4   :  { %v6659_v63 = vadd.f32 %v6658_v57, %v6532_v41  ;;  %v6348_v57 = vadd.f32 %v13007_v37, %v13011_v45 }
 0xde6   :  { %v13062_v23 = vadd.f32 %v6747_v27, %v6659_v63 }
 0xde8   :  { %6907 = vperm.xlu0 %8224, %v13062_v23   ;;  %6818 = vrot.lane.b32.xlu1 %v13062_v23, %s8719_s3  ;;  %v6567_v2 = vpop.f32.mrf.mxu1  ;;  %v6456_v25 = vpop.f32.mrf.mxu0 }
 0xde9   :  { %6903 = vperm.xlu2 %8225, %v13057_v40   ;;  %v6457_v47 = vadd.f32 %v6456_v25, %v6348_v57 }
 0xdeb   :  { %v6662_v58 = vpop.f32.mrf.mxu2  ;;  %v6755_v12 = vpop.f32.mrf.mxu3 }
 0xdec   :  { %v6663_v36 = vadd.f32 %v6662_v58, %v6538_v29  ;;  %v6352_v29 = vadd.f32 %v13013_v3, %v13017_v53 }
 0xdee   :  { %v13069_v54 = vadd.f32 %v6751_v52, %v6663_v36  ;;  %v6568_v52 = vadd.f32 %v6567_v2, %v6452_v56 }
 0xdf0   :  { %6820 = vrot.lane.b32.xlu0 %v13069_v54, %s8719_s3  ;;  %v6573_v41 = vpop.f32.mrf.mxu1  ;;  %v6461_v10 = vpop.f32.mrf.mxu0 }
 0xdf1   :  { %6911 = vperm.xlu2 %8225, %v13069_v54   ;;  %v6574_v58 = vadd.f32 %v6573_v41, %v6457_v47  ;;  %v6462_v45 = vadd.f32 %v6461_v10, %v6352_v29 }
 0xdf3   :  { %v6666_v42 = vpop.f32.mrf.mxu2  ;;  %v6759_v17 = vpop.f32.mrf.mxu3 }
 0xdf4   :  { %v6667_v19 = vadd.f32 %v6666_v42, %v6544_v44  ;;  %v6356_v44 = vadd.f32 %v13019_v6, %v13023_v5 }
 0xdf6   :  { %v13075_v39 = vadd.f32 %v6755_v12, %v6667_v19 }
 0xdf8   :  { %v6579_v12 = vpop.f32.mrf.mxu1  ;;  %v6466_v32 = vpop.f32.mrf.mxu0 }
 0xdf9   :  { %6822 = vrot.lane.b32.xlu2 %v13075_v39, %s8719_s3  ;;  %v6580_v42 = vadd.f32 %v6579_v12, %v6462_v45  ;;  %v6467_v18 = vadd.f32 %v6466_v32, %v6356_v44 }
 0xdfb   :  { %v6670_v11 = vpop.f32.mrf.mxu2  ;;  %v6763_v48 = vpop.f32.mrf.mxu3 }
 0xdfc   :  { %v6671_v61 = vadd.f32 %v6670_v11, %v6550_v0 }
 0xdfe   :  { %v13081_v15 = vadd.f32 %v6759_v17, %v6671_v61 }
 0xe00   :  { %6919 = vperm.xlu0 %8224, %v13081_v15   ;;  %6824 = vrot.lane.b32.xlu1 %v13081_v15, %s8719_s3  ;;  %v6585_v49 = vpop.f32.mrf.mxu1  ;;  %v6471_v11 = vpop.f32.mrf.mxu0 }
 0xe01   :  { %6915 = vperm.xlu2 %8225, %v13075_v39   ;;  %v6586_v0 = vadd.f32 %v6585_v49, %v6467_v18  ;;  %v6472_v31 = vadd.f32 %v6471_v11, %v6360_v60 }
 0xe03   :  { %v6674_v26 = vpop.f32.mrf.mxu2  ;;  %v6767_v30 = vpop.f32.mrf.mxu3 }
 0xe04   :  { %v6675_v20 = vadd.f32 %v6674_v26, %v6556_v8 }
 0xe06   :  { %v13089_v9 = vadd.f32 %v6763_v48, %v6675_v20 }
 0xe08   :  { %6826 = vrot.lane.b32.xlu0 %v13089_v9, %s8719_s3  ;;  %v6591_v5 = vpop.f32.mrf.mxu1 }
 0xe09   :  { %6923 = vperm.xlu2 %8225, %v13089_v9   ;;  %v6592_v38 = vadd.f32 %v6591_v5, %v6472_v31 }
 0xe0b   :  { %v6678_v27 = vpop.f32.mrf.mxu2  ;;  %v6771_v62 = vpop.f32.mrf.mxu3 }
 0xe0c   :  { %v6679_v16 = vadd.f32 %v6678_v27, %v6562_v33 }
 0xe0e   :  { %v13096_v34 = vadd.f32 %v6767_v30, %v6679_v16  ;;  %v6476_v30 = vpop.f32.mrf.mxu0 }
 0xe0f   :  { %v6477_v43 = vadd.f32 %v6476_v30, %v6364_v51  ;;  %v13253_v51 = vand.u32 4294901760, %v13057_v40 }
 0xe10   :  { %v6597_v20 = vpop.f32.mrf.mxu1  ;;  %v13175_v10 = vand.u32 4294901760, %v13096_v34 }
 0xe11   :  { %6828 = vrot.lane.b32.xlu2 %v13096_v34, %s8719_s3  ;;  %v6598_v7 = vadd.f32 %v6597_v20, %v6477_v43 }
 0xe12   :  { %v13206_v44 = vsub.f32 %v13096_v34, %v13175_v10 }
 0xe13   :  { %v6682_v50 = vpop.f32.mrf.mxu2  ;;  %v6775_v59 = vpop.f32.mrf.mxu3 }
 0xe14   :  { %v6683_v63 = vadd.f32 %v6682_v50, %v6568_v52  ;;  %v7378_v11 = vand.u32 4294901760, %v13206_v44 }
 0xe16   :  { %v13102_v21 = vadd.f32 %v6771_v62, %v6683_v63 }
 0xe18   :  { %6830 = vrot.lane.b32.xlu1 %v13102_v21, %s8719_s3  ;;  %v13165_v50 = vand.u32 4294901760, %v13102_v21 }
 0xe19   :  { %6927 = vperm.xlu2 %8225, %v13096_v34  }
 0xe1b   :  { %v6686_v36 = vpop.f32.mrf.mxu2  ;;  %v6779_v14 = vpop.f32.mrf.mxu3 }
 0xe1c   :  { %v6687_v37 = vadd.f32 %v6686_v36, %v6574_v58  ;;  %v13180_v58 = vand.u32 4294901760, %v13089_v9 }
 0xe1e   :  { %v6776_v13 = vadd.f32 %v6775_v59, %v6687_v37  ;;  %v13192_v37 = vsub.f32 %v13102_v21, %v13165_v50  ;;  %v13219_v18 = vsub.f32 %v13089_v9, %v13180_v58 }
 0xe20   :  { %6832 = vrot.lane.b32.xlu0 %v6776_v13, %s8719_s3  ;;  %v13152_v41 = vand.u32 4294901760, %v6776_v13  ;;  %v7372_v34 = vand.u32 4294901760, %v13192_v37  ;;  %v7384_v5 = vand.u32 4294901760, %v13219_v18 }
 0xe21   :  { %6935 = vperm.xlu2 %8225, %v6776_v13  }
 0xe22   :  { %v13172_v47 = vsub.f32 %v6776_v13, %v13152_v41  ;;  %v13197_v13 = vand.u32 4294901760, %v13081_v15  ;;  %v7373_v31 = vsub.f32 %v13192_v37, %v7372_v34  ;;  %v7385_v43 = vsub.f32 %v13219_v18, %v7384_v5 }
 0xe23   :  { %v6690_v17 = vpop.f32.mrf.mxu2  ;;  %v6783_v53 = vpop.f32.mrf.mxu3 }
 0xe24   :  { %v6691_v19 = vadd.f32 %v6690_v17, %v6580_v42  ;;  %v7366_v42 = vand.u32 4294901760, %v13172_v47  ;;  %v13211_v17 = vand.u32 4294901760, %v13075_v39  ;;  %v13233_v9 = vsub.f32 %v13081_v15, %v13197_v13 }
 0xe25   :  { %v7374_v30 = vand.u32 4294901760, %v7373_v31 }
 0xe26   :  { %v13112_v3 = vadd.f32 %v6779_v14, %v6691_v19  ;;  %v13247_v15 = vsub.f32 %v13075_v39, %v13211_v17 }
 0xe28   :  { %v13141_v16 = vand.u32 4294901760, %v13112_v3  ;;  %v7396_v20 = vand.u32 4294901760, %v13247_v15 }
 0xe29   :  { %6834 = vrot.lane.b32.xlu2 %v13112_v3, %s8719_s3 }
 0xe2a   :  { %v13162_v52 = vsub.f32 %v13112_v3, %v13141_v16 }
 0xe2b   :  { %v6694_v48 = vpop.f32.mrf.mxu2  ;;  %v6787_v46 = vpop.f32.mrf.mxu3 }
 0xe2c   :  { %v6695_v61 = vadd.f32 %v6694_v48, %v6586_v0  ;;  %v7360_v45 = vand.u32 4294901760, %v13162_v52  ;;  %v7367_v0 = vsub.f32 %v13172_v47, %v7366_v42  ;;  %v13239_v48 = vand.u32 4294901760, %v13062_v23 }
 0xe2e   :  { %v13118_v6 = vadd.f32 %v6783_v53, %v6695_v61  ;;  %v7361_v49 = vsub.f32 %v13162_v52, %v7360_v45  ;;  %v13225_v53 = vand.u32 4294901760, %v13069_v54 }
 0xe30   :  { %6836 = vrot.lane.b32.xlu1 %v13118_v6, %s8719_s3  ;;  %v13132_v1 = vand.u32 4294901760, %v13118_v6  ;;  %v7362_v61 = vand.u32 4294901760, %v7361_v49  ;;  %v13261_v39 = vsub.f32 %v13069_v54, %v13225_v53  ;;  %v13275_v54 = vsub.f32 %v13062_v23, %v13239_v48 }
 0xe31   :  { %v13289_v23 = vsub.f32 %v13057_v40, %v13253_v51 }
 0xe32   :  { %v13150_v56 = vsub.f32 %v13118_v6, %v13132_v1 }
 0xe33   :  { %v6698_v8 = vpop.f32.mrf.mxu2  ;;  %v6791_v24 = vpop.f32.mrf.mxu3 }
 0xe34   :  { %v6699_v26 = vadd.f32 %v6698_v8, %v6592_v38  ;;  %v7354_v29 = vand.u32 4294901760, %v13150_v56  ;;  %v7368_v38 = vand.u32 4294901760, %v7367_v0  ;;  %v7390_v8 = vand.u32 4294901760, %v13233_v9 }
 0xe36   :  { %v13124_v35 = vadd.f32 %v6787_v46, %v6699_v26  ;;  %v7355_v32 = vsub.f32 %v13150_v56, %v7354_v29  ;;  %v7379_v46 = vsub.f32 %v13206_v44, %v7378_v11  ;;  %v13267_v26 = vand.u32 4294901760, %v13051_v28 }
 0xe38   :  { %6838 = vrot.lane.b32.xlu0 %v13124_v35, %s8719_s3  ;;  %v13129_v2 = vand.u32 4294901760, %v13124_v35  ;;  %v7356_v60 = vand.u32 4294901760, %v7355_v32  ;;  %v13303_v40 = vsub.f32 %v13051_v28, %v13267_v26  ;;  %v7408_v32 = vand.u32 4294901760, %v13275_v54 }
 0xe39   :  { %v7414_v28 = vand.u32 4294901760, %v13289_v23 }
 0xe3a   :  { %v13138_v62 = vsub.f32 %v13124_v35, %v13129_v2  ;;  %v7409_v31 = vsub.f32 %v13275_v54, %v7408_v32 }
 0xe3b   :  { %v6702_v4 = vpop.f32.mrf.mxu2 }
 0xe3c   :  { %v6703_v33 = vadd.f32 %v6702_v4, %v6598_v7  ;;  %v7348_v63 = vand.u32 4294901760, %v13138_v62  ;;  %v13281_v7 = vand.u32 4294901760, %v13045_v22  ;;  %v7380_v4 = vand.u32 4294901760, %v7379_v46 }
 0xe3e   :  { %v13134_v27 = vadd.f32 %v6791_v24, %v6703_v33  ;;  %v7349_v36 = vsub.f32 %v13138_v62, %v7348_v63  ;;  %v7391_v33 = vsub.f32 %v13233_v9, %v7390_v8  ;;  %v7402_v24 = vand.u32 4294901760, %v13261_v39 }
 0xe3f   :  { %v13314_v0 = vsub.f32 %v13045_v22, %v13281_v7  ;;  %v7420_v22 = vand.u32 4294901760, %v13303_v40 }
 0xe40   :  { %6840 = vrot.lane.b32.xlu2 %v13134_v27, %s8719_s3  ;;  %v13146_v25 = vand.u32 4294901760, %v13134_v27  ;;  %v7350_v19 = vand.u32 4294901760, %v7349_v36  ;;  %v7386_v36 = vand.u32 4294901760, %v7385_v43  ;;  %v7392_v49 = vand.u32 4294901760, %v7391_v33 }
 0xe41   :  { %v7426_v43 = vand.u32 4294901760, %v13314_v0 }
 0xe42   :  { %7180 = vmatpush.msrb.mxu0 %v13146_v25  ;;  %7631 = vmatpush.msra.mxu3 %v13146_v25  ;;  %v13158_v57 = vsub.f32 %v13134_v27, %v13146_v25 }
 0xe44   :  { %7182 = vmatpush.msrb.mxu0 %v13129_v2  ;;  %7503 = vmatpush.msra.mxu2 %v13158_v57  ;;  %v7342_v59 = vand.u32 4294901760, %v13158_v57 }
 0xe45   :  { %7633 = vmatpush.msra.mxu3 %v13129_v2 }
 0xe46   :  { %7184 = vmatpush.msrb.mxu0 %v13132_v1  ;;  %7506 = vmatpush.msra.mxu2 %v13138_v62  ;;  %v7343_v12 = vsub.f32 %v13158_v57, %v7342_v59 }
 0xe47   :  { %7635 = vmatpush.msra.mxu3 %v13132_v1 }
 0xe48   :  { %7186 = vmatpush.msrb.mxu0 %v13141_v16  ;;  %7509 = vmatpush.msra.mxu2 %v13150_v56  ;;  %v7344_v14 = vand.u32 4294901760, %v7343_v12  ;;  %v13295_v12 = vand.u32 4294901760, %v13039_v55 }
 0xe49   :  { %7637 = vmatpush.msra.mxu3 %v13141_v16 }
 0xe4a   :  { %7188 = vmatpush.msrb.mxu0 %v13152_v41  ;;  %7345 = vmatpush.msrb.mxu1 %v7344_v14  ;;  %v7397_v14 = vsub.f32 %v13247_v15, %v7396_v20 }
 0xe4b   :  { %7512 = vmatpush.msra.mxu2 %v13162_v52  ;;  %7639 = vmatpush.msra.mxu3 %v13152_v41 }
 0xe4c   :  { %7190 = vmatpush.msrb.mxu0 %v13165_v50  ;;  %7351 = vmatpush.msrb.mxu1 %v7350_v19  ;;  %v6811_v19 = vpop.permute.xlu2 %6810 }
 0xe4d   :  { %7515 = vmatpush.msra.mxu2 %v13172_v47  ;;  %7641 = vmatpush.msra.mxu3 %v13165_v50 }
 0xe4e   :  { %7192 = vmatpush.msrb.mxu0 %v13175_v10  ;;  %7357 = vmatpush.msrb.mxu1 %v7356_v60  ;;  %v7403_v60 = vsub.f32 %v13261_v39, %v7402_v24 }
 0xe4f   :  { %7518 = vmatpush.msra.mxu2 %v13192_v37  ;;  %7643 = vmatpush.msra.mxu3 %v13175_v10 }
 0xe50   :  { %7194 = vmatpush.msrb.mxu0 %v13180_v58  ;;  %7363 = vmatpush.msrb.mxu1 %v7362_v61  ;;  %v7398_v61 = vand.u32 4294901760, %v7397_v14  ;;  %v7404_v46 = vand.u32 4294901760, %v7403_v60  ;;  %v13350_v60 = vpop.permute.xlu1 %6891 }
 0xe51   :  { %7521 = vmatpush.msra.mxu2 %v13206_v44  ;;  %7645 = vmatpush.msra.mxu3 %v13180_v58 }
 0xe52   :  { %7196 = vmatpush.msrb.mxu0 %v13197_v13  ;;  %7369 = vmatpush.msrb.mxu1 %v7368_v38  ;;  %v13325_v38 = vsub.f32 %v13039_v55, %v13295_v12  ;;  %v7410_v55 = vand.u32 4294901760, %v7409_v31 }
 0xe53   :  { %7524 = vmatpush.msra.mxu2 %v13219_v18  ;;  %7647 = vmatpush.msra.mxu3 %v13197_v13 }
 0xe54   :  { %7198 = vmatpush.msrb.mxu0 %v13211_v17  ;;  %7375 = vmatpush.msrb.mxu1 %v7374_v30  ;;  %v7415_v30 = vsub.f32 %v13289_v23, %v7414_v28  ;;  %v7432_v33 = vand.u32 4294901760, %v13325_v38 }
 0xe55   :  { %7527 = vmatpush.msra.mxu2 %v13233_v9  ;;  %7649 = vmatpush.msra.mxu3 %v13211_v17 }
 0xe56   :  { %7200 = vmatpush.msrb.mxu0 %v13225_v53  ;;  %7381 = vmatpush.msrb.mxu1 %v7380_v4  ;;  %v7421_v4 = vsub.f32 %v13303_v40, %v7420_v22  ;;  %v7416_v14 = vand.u32 4294901760, %v7415_v30  ;;  %v7433_v31 = vsub.f32 %v13325_v38, %v7432_v33  ;;  %v14528_v30 = vld [vmem:[#allocation47_spill] sm:$0xff] }
 0xe57   :  { %7530 = vmatpush.msra.mxu2 %v13247_v15  ;;  %7651 = vmatpush.msra.mxu3 %v13225_v53 }
 0xe58   :  { %7202 = vmatpush.msrb.mxu0 %v13239_v48  ;;  %7387 = vmatpush.msrb.mxu1 %v7386_v36  ;;  %v13344_v36 = vpop.permute.xlu2 %6899  ;;  %v6813_v62 = vpop.permute.xlu1 %6812 }
 0xe59   :  { %7533 = vmatpush.msra.mxu2 %v13261_v39  ;;  %7653 = vmatpush.msra.mxu3 %v13239_v48 }
 0xe5a   :  { %7204 = vmatpush.msrb.mxu0 %v13253_v51  ;;  %7393 = vmatpush.msrb.mxu1 %v7392_v49  ;;  %v7427_v49 = vsub.f32 %v13314_v0, %v7426_v43 }
 0xe5b   :  { %7536 = vmatpush.msra.mxu2 %v13275_v54  ;;  %7655 = vmatpush.msra.mxu3 %v13253_v51  ;;  %v14525_v54 = vld [vmem:[#allocation43_spill] sm:$0xff] }
 0xe5c   :  { %7206 = vmatpush.msrb.mxu0 %v13267_v26  ;;  %7399 = vmatpush.msrb.mxu1 %v7398_v61  ;;  %v7422_v61 = vand.u32 4294901760, %v7421_v4 }
 0xe5d   :  { %7539 = vmatpush.msra.mxu2 %v13289_v23  ;;  %7657 = vmatpush.msra.mxu3 %v13267_v26 }
 0xe5e   :  { %7208 = vmatpush.msrb.mxu0 %v13281_v7  ;;  %7405 = vmatpush.msrb.mxu1 %v7404_v46  ;;  %v7428_v46 = vand.u32 4294901760, %v7427_v49  ;;  %v14529_v49 = vld [vmem:[#allocation49_spill] sm:$0xff] }
 0xe5f   :  { %7542 = vmatpush.msra.mxu2 %v13303_v40  ;;  %7659 = vmatpush.msra.mxu3 %v13281_v7 }
 0xe60   :  { %7210 = vmatpush.msrb.mxu0 %v13295_v12  ;;  %7411 = vmatpush.msrb.mxu1 %v7410_v55  ;;  %v6817_v57 = vpop.permute.xlu2 %6816  ;;  %v6819_v56 = vpop.permute.xlu1 %6818 }
 0xe61   :  { %7545 = vmatpush.msra.mxu2 %v13314_v0  ;;  %7661 = vmatpush.msra.mxu3 %v13295_v12  ;;  %v7434_v0 = vand.u32 4294901760, %v7433_v31 }
 0xe62   :  { %7762 = vmatpush.msra.mxu0 %v7342_v59  ;;  %7417 = vmatpush.msrb.mxu1 %v7416_v14  ;;  %v13363_v59 = vpop.permute.xlu0 %6895 }
 0xe63   :  { %7548 = vmatpush.msra.mxu2 %v13325_v38  ;;  %v14527_v38 = vld [vmem:[#allocation45_spill] sm:$0xff] }
 0xe64   :  { %7766 = vmatpush.msra.mxu0 %v7348_v63  ;;  %7423 = vmatpush.msrb.mxu1 %v7422_v61  ;;  %v14530_v61 = vld [vmem:[#allocation51_spill] sm:$0xff] }
 0xe65   :  { %6858 = vxpose.xlu1.b32.start [1/16] (narrow) %v6811_v19, 8 }
 0xe66   :  { %7770 = vmatpush.msra.mxu0 %v7354_v29  ;;  %7429 = vmatpush.msrb.mxu1 %v7428_v46 }
 0xe68   :  { %7774 = vmatpush.msra.mxu0 %v7360_v45  ;;  %7435 = vmatpush.msrb.mxu1 %v7434_v0 }
 0xe6a   :  { %7889 = vmatpush.msra.mxu1 %v13146_v25  ;;  %7778 = vmatpush.msra.mxu0 %v7366_v42  ;;  %v6815_v25 = vpop.permute.xlu0 %6814 }
 0xe6c   :  { %7891 = vmatpush.msra.mxu1 %v13129_v2  ;;  %7782 = vmatpush.msra.mxu0 %v7372_v34  ;;  %v6904_v2 = vpop.permute.xlu2 %6903 }
 0xe6d   :  { %6859 = vxpose.xlu1.b32.cont [2/16] (narrow) %v6813_v62, 8 }
 0xe6e   :  { %7893 = vmatpush.msra.mxu1 %v13132_v1  ;;  %7786 = vmatpush.msra.mxu0 %v7378_v11 }
 0xe70   :  { %7895 = vmatpush.msra.mxu1 %v13141_v16  ;;  %7790 = vmatpush.msra.mxu0 %v7384_v5 }
 0xe72   :  { %7897 = vmatpush.msra.mxu1 %v13152_v41  ;;  %7794 = vmatpush.msra.mxu0 %v7390_v8  ;;  %v6908_v16 = vpop.permute.xlu0 %6907 }
 0xe74   :  { %7899 = vmatpush.msra.mxu1 %v13165_v50  ;;  %7798 = vmatpush.msra.mxu0 %v7396_v20  ;;  %v6912_v1 = vpop.permute.xlu2 %6911 }
 0xe75   :  { %6860 = vxpose.xlu1.b32.cont [3/16] (narrow) %v6815_v25, 8 }
 0xe76   :  { %7901 = vmatpush.msra.mxu1 %v13175_v10  ;;  %7802 = vmatpush.msra.mxu0 %v7402_v24  ;;  %v6825_v10 = vpop.permute.xlu1 %6824 }
 0xe78   :  { %7903 = vmatpush.msra.mxu1 %v13180_v58  ;;  %7806 = vmatpush.msra.mxu0 %v7408_v32 }
 0xe7a   :  { %7905 = vmatpush.msra.mxu1 %v13197_v13  ;;  %7810 = vmatpush.msra.mxu0 %v7414_v28  ;;  %v6821_v52 = vpop.permute.xlu0 %6820 }
 0xe7c   :  { %7907 = vmatpush.msra.mxu1 %v13211_v17  ;;  %7814 = vmatpush.msra.mxu0 %v7420_v22  ;;  %v6823_v41 = vpop.permute.xlu2 %6822 }
 0xe7d   :  { %6861 = vxpose.xlu1.b32.cont [4/16] (narrow) %v6817_v57, 8  ;;  %v14531_v57 = vld [vmem:[#allocation46_spill] sm:$0xff] }
 0xe7e   :  { %7909 = vmatpush.msra.mxu1 %v13225_v53  ;;  %7818 = vmatpush.msra.mxu0 %v7426_v43 }
 0xe80   :  { %7911 = vmatpush.msra.mxu1 %v13239_v48  ;;  %7822 = vmatpush.msra.mxu0 %v7432_v33 }
 0xe82   :  { %7913 = vmatpush.msra.mxu1 %v13253_v51  ;;  %v6920_v63 = vpop.permute.xlu0 %6919 }
 0xe84   :  { %7915 = vmatpush.msra.mxu1 %v13267_v26  ;;  %v13400_v50 = vpop.permute.xlu2 %6915 }
 0xe85   :  { %6862 = vxpose.xlu1.b32.cont [5/16] (narrow) %v6819_v56, 8 }
 0xe86   :  { %7917 = vmatpush.msra.mxu1 %v13281_v7  ;;  %v14526_v7 = vld [vmem:[#allocation44_spill] sm:$0xff] }
 0xe88   :  { %7919 = vmatpush.msra.mxu1 %v13295_v12 }
 0xe8a   :  { %v6827_v29 = vpop.permute.xlu0 %6826  ;;  %v6831_v45 = vpop.permute.xlu1 %6830 }
 0xe8c   :  { %v13402_v47 = vpop.permute.xlu2 %6923 }
 0xe8d   :  { %6863 = vxpose.xlu1.b32.cont [6/16] (narrow) %v6821_v52, 8 }
 0xe92   :  { %v6833_v44 = vpop.permute.xlu0 %6832 }
 0xe94   :  { %v6829_v58 = vpop.permute.xlu2 %6828 }
 0xe95   :  { %6864 = vxpose.xlu1.b32.cont [7/16] (narrow) %v6823_v41, 8 }
 0xe9c   :  { %v13404_v37 = vpop.permute.xlu2 %6927 }
 0xe9d   :  { %6865 = vxpose.xlu1.b32.cont [8/16] (narrow) %v6825_v10, 8 }
 0xea2   :  { %v6837_v17 = vpop.permute.xlu1 %6836 }
 0xea4   :  { %v13406_v13 = vpop.permute.xlu2 %6935 }
 0xea5   :  { %6866 = vxpose.xlu1.b32.cont [9/16] (narrow) %v6827_v29, 8 }
 0xeaa   :  { %v6839_v18 = vpop.permute.xlu0 %6838 }
 0xeac   :  { %v6835_v42 = vpop.permute.xlu2 %6834 }
 0xead   :  { %6867 = vxpose.xlu1.b32.cont [10/16] (narrow) %v6829_v58, 8 }
 0xeb4   :  { %v6841_v34 = vpop.permute.xlu2 %6840 }
 0xeb5   :  { %6868 = vxpose.xlu1.b32.cont [11/16] (narrow) %v6831_v45, 8 }
 0xebd   :  { %6869 = vxpose.xlu1.b32.cont [12/16] (narrow) %v6833_v44, 8 }
 0xec5   :  { %6870 = vxpose.xlu1.b32.cont [13/16] (narrow) %v6835_v42, 8 }
 0xecd   :  { %6871 = vxpose.xlu1.b32.cont [14/16] (narrow) %v6837_v17, 8 }
 0xed5   :  { %6872 = vxpose.xlu1.b32.cont [15/16] (narrow) %v6839_v18, 8 }
 0xedd   :  { %6873 = vxpose.xlu1.b32.end [16/16] (narrow) %v6841_v34, 8 }
 0xf09   :  { %v6874_v53 = vpop.trf.xlu1 }
 0xf0a   :  { %v13408_v9 = vperm.slane %v6874_v53, 1  ;;  %v14534_v53 = vld [vmem:[#allocation55_spill] sm:$0xff] }
 0xf0c   :  { %v6956_v11 = vadd.f32 %v13408_v9, %v13363_v59  ;;  %v6955_v48 = vadd.f32 %v13408_v9, %v13350_v60  ;;  %v6957_v15 = vadd.f32 %v13408_v9, %v13344_v36  ;;  %v6958_v5 = vadd.f32 %v13408_v9, %v6904_v2 }
 0xf0d   :  { %v6959_v19 = vadd.f32 %v13408_v9, %v6908_v16  ;;  %v6960_v28 = vadd.f32 %v13408_v9, %v6912_v1  ;;  %v6962_v14 = vadd.f32 %v13408_v9, %v6920_v63  ;;  %v6961_v62 = vadd.f32 %v13408_v9, %v13400_v50  ;;  %v14532_v1 = vld [vmem:[#allocation53_spill] sm:$0xff]  ;;  %v14533_v63 = vld [vmem:[#allocation48_spill] sm:$0xff] }
 0xf0e   :  { %vm6972_vm6 = vcmp.gt.f32.partialorder %v6956_v11, 0.0  ;;  %v6988_v51 = vmul.f32 0.2, %v6956_v11  ;;  %vm6971_vm7 = vcmp.gt.f32.partialorder %v6955_v48, 0.0  ;;  %v6987_v39 = vmul.f32 0.2, %v6955_v48 }
 0xf0f   :  { %v6989_v24 = vmul.f32 0.2, %v6957_v15  ;;  %v6990_v12 = vmul.f32 0.2, %v6958_v5  ;;  %vm6973_vm12 = vcmp.gt.f32.partialorder %v6957_v15, 0.0  ;;  %vm6974_vm13 = vcmp.gt.f32.partialorder %v6958_v5, 0.0 }
 0xf10   :  { %v7004_v8 = vsel %vm6972_vm6, %v6956_v11, %v6988_v51  ;;  %v7003_v26 = vsel %vm6971_vm7, %v6955_v48, %v6987_v39  ;;  %v6991_v55 = vmul.f32 0.2, %v6959_v19  ;;  %v6992_v4 = vmul.f32 0.2, %v6960_v28 }
 0xf11   :  { %v7020_v20 = vadd.f32 %v7004_v8, %v14525_v54  ;;  %v7019_v23 = vadd.f32 %v7003_v26, %v14526_v7  ;;  %v7005_v40 = vsel %vm6973_vm12, %v6957_v15, %v6989_v24  ;;  %v7006_v32 = vsel %vm6974_vm13, %v6958_v5, %v6990_v12  ;;  %v14536_v7 = vld [vmem:[#allocation50_spill] sm:$0xff] }
 0xf12   :  { %v7021_v22 = vadd.f32 %v7005_v40, %v14527_v38  ;;  %v13423_v43 = vadd.f32 %v7006_v32, %v14528_v30  ;;  %vm6975_vm14 = vcmp.gt.f32.partialorder %v6959_v19, 0.0  ;;  %vm6976_vm15 = vcmp.gt.f32.partialorder %v6960_v28, 0.0 }
 0xf13   :  { %7037 = vmax.xlane.f32.xlu2 %v7020_v20  ;;  %7035 = vmax.xlane.f32.xlu0 %v7019_v23  ;;  %v7007_v33 = vsel %vm6975_vm14, %v6959_v19, %v6991_v55  ;;  %v7008_v36 = vsel %vm6976_vm15, %v6960_v28, %v6992_v4  ;;  %v6994_v46 = vmul.f32 0.2, %v6962_v14  ;;  %vm6978_vm1 = vcmp.gt.f32.partialorder %v6962_v14, 0.0 }
 0xf14   :  { %v13428_v60 = vadd.f32 %v7007_v33, %v14529_v49  ;;  %v13431_v31 = vadd.f32 %v7008_v36, %v14530_v61  ;;  %v6993_v2 = vmul.f32 0.2, %v6961_v62  ;;  %vm6977_vm2 = vcmp.gt.f32.partialorder %v6961_v62, 0.0 }
 0xf15   :  { %v7010_v0 = vsel %vm6978_vm1, %v6962_v14, %v6994_v46  ;;  %v6963_v56 = vadd.f32 %v13408_v9, %v13402_v47  ;;  %v6964_v42 = vadd.f32 %v13408_v9, %v13404_v37  ;;  %vm8081_vm6 = vcmask 64512  }
 0xf16   :  { %v13436_v59 = vadd.f32 %v7010_v0, %v14531_v57  ;;  %v7009_v25 = vsel %vm6977_vm2, %v6961_v62, %v6993_v2 }
 0xf17   :  { %v13443_v16 = vadd.f32 %v7009_v25, %v14532_v1  ;;  %v6995_v41 = vmul.f32 0.2, %v6963_v56  ;;  %vm6979_vm3 = vcmp.gt.f32.partialorder %v6963_v56, 0.0  ;;  %v6996_v17 = vmul.f32 0.2, %v6964_v42 }
 0xf18   :  { %vm6980_vm4 = vcmp.gt.f32.partialorder %v6964_v42, 0.0 }
 0xf19   :  { %v7011_v52 = vsel %vm6979_vm3, %v6963_v56, %v6995_v41  ;;  %v7012_v34 = vsel %vm6980_vm4, %v6964_v42, %v6996_v17  ;;  %v14538_v17 = vld [vmem:[#allocation54_spill] sm:$0xff] }
 0xf1a   :  { %v13449_v10 = vadd.f32 %v7011_v52, %v14533_v63  ;;  %v13455_v11 = vadd.f32 %v7012_v34, %v14534_v53  ;;  %v14537_v63 = vld [vmem:[#allocation57_spill] sm:$0xff] }
 0xf1b   :  { %7039 = vmax.xlane.f32.xlu2 %v7021_v22  ;;  %7041 = vmax.xlane.f32.xlu0 %v13423_v43 }
 0xf23   :  { %7043 = vmax.xlane.f32.xlu2 %v13428_v60  ;;  %7045 = vmax.xlane.f32.xlu0 %v13431_v31 }
 0xf2b   :  { %7049 = vmax.xlane.f32.xlu0 %v13436_v59 }
 0xf3b   :  { %6939 = vperm.xlu2 %8225, %v13112_v3  }
 0xf3d   :  { %7047 = vmax.xlane.f32.xlu1 %v13443_v16 }
 0xf64   :  { %7051 = vmax.xlane.f32.xlu2 %v13449_v10 }
 0xf86   :  { %v7038_v50 = vpop.xlane.xlu2 %7037  ;;  %v7036_v29 = vpop.xlane.xlu0 %7035 }
 0xf87   :  { %v7068_v58 = vsub.f32 %v7020_v20, %v7038_v50  ;;  %v7067_v3 = vsub.f32 %v7019_v23, %v7036_v29 }
 0xf89   :  { %v7085_v45 = vmul.f32 1.442695, %v7068_v58  ;;  %v7083_v44 = vmul.f32 1.442695, %v7067_v3 }
 0xf8b   :  { %8610 = vpow2.f32 %v7085_v45 }
 0xf8c   :  { %8612 = vpow2.f32 %v7083_v44 }
 0xf8e   :  { %v7040_v48 = vpop.xlane.xlu2 %7039  ;;  %v7042_v24 = vpop.xlane.xlu0 %7041 }
 0xf8f   :  { %v7069_v15 = vsub.f32 %v7021_v22, %v7040_v48  ;;  %v7070_v25 = vsub.f32 %v13423_v43, %v7042_v24 }
 0xf91   :  { %v8611_v47 = vpop.eup %8610  ;;  %v7087_v5 = vmul.f32 1.442695, %v7069_v15  ;;  %v7089_v41 = vmul.f32 1.442695, %v7070_v25 }
 0xf92   :  { %v8613_v18 = vpop.eup %8612  ;;  %7117 = vadd.xlane.f32.xlu0 %v8611_v47 }
 0xf93   :  { %7115 = vadd.xlane.f32.xlu2 %v8613_v18  ;;  %8614 = vpow2.f32 %v7087_v5 }
 0xf96   :  { %v13462_v37 = vpop.xlane.xlu2 %7043  ;;  %v7046_v12 = vpop.xlane.xlu0 %7045 }
 0xf97   :  { %v7071_v3 = vsub.f32 %v13428_v60, %v13462_v37  ;;  %v7072_v48 = vsub.f32 %v13431_v31, %v7046_v12 }
 0xf99   :  { %v13465_v8 = vpop.eup %8614  ;;  %v7091_v42 = vmul.f32 1.442695, %v7071_v3  ;;  %v7093_v5 = vmul.f32 1.442695, %v7072_v48 }
 0xf9a   :  { %7053 = vmax.xlane.f32.xlu0 %v13455_v11 }
 0xf9e   :  { %v6940_v51 = vpop.permute.xlu2 %6939  ;;  %v13478_v40 = vpop.xlane.xlu0 %7049 }
 0xf9f   :  { %v6967_v39 = vadd.f32 %v13408_v9, %v6940_v51  ;;  %v7074_v24 = vsub.f32 %v13436_v59, %v13478_v40 }
 0xfa1   :  { %v6999_v26 = vmul.f32 0.2, %v6967_v39  ;;  %vm6983_vm5 = vcmp.gt.f32.partialorder %v6967_v39, 0.0  ;;  %v7097_v12 = vmul.f32 1.442695, %v7074_v24 }
 0xfab   :  { %6947 = vperm.xlu2 %8225, %v13124_v35   ;;  %v14535_v35 = vld [vmem:[#allocation52_spill] sm:$0xff] }
 0xfae   :  { %6931 = vperm.xlu0 %8224, %v13102_v21   ;;  %v7015_v21 = vsel %vm6983_vm5, %v6967_v39, %v6999_v26  ;;  %v14539_v39 = vld [vmem:[#allocation41_spill] sm:$0xff] }
 0xfb0   :  { %v7048_v51 = vpop.xlane.xlu1 %7047 }
 0xfb6   :  { %6943 = vperm.xlu0 %8224, %v13118_v6   ;;  %v13469_v6 = vadd.f32 %v7015_v21, %v14535_v35 }
 0xfbe   :  { %6951 = vperm.xlu0 %8224, %v13134_v27   ;;  %v6966_v27 = vadd.f32 %v13408_v9, %v13406_v13 }
 0xfc0   :  { %v6998_v54 = vmul.f32 0.2, %v6966_v27  ;;  %vm6982_vm0 = vcmp.gt.f32.partialorder %v6966_v27, 0.0 }
 0xfc2   :  { %v7014_v20 = vsel %vm6982_vm0, %v6966_v27, %v6998_v54  ;;  %v7073_v27 = vsub.f32 %v13443_v16, %v7048_v51 }
 0xfc3   :  { %v13475_v23 = vadd.f32 %v7014_v20, %v14536_v7 }
 0xfc4   :  { %v7095_v54 = vmul.f32 1.442695, %v7073_v27 }
 0xfd4   :  { %7119 = vadd.xlane.f32.xlu2 %v13465_v8 }
 0xfd7   :  { %v13480_v32 = vpop.xlane.xlu2 %7051 }
 0xfd8   :  { %v7075_v16 = vsub.f32 %v13449_v10, %v13480_v32 }
 0xfdc   :  { %7059 = vmax.xlane.f32.xlu2 %v13469_v6 }
 0xfe8   :  { %7057 = vmax.xlane.f32.xlu0 %v13475_v23 }
0x1005   :  { %v7118_v19 = vpop.xlane.xlu0 %7117 }
0x1006   :  { %v7116_v28 = vpop.xlane.xlu2 %7115  ;;  %8616 = vrcp.f32 %v7118_v19 }
0x1007   :  { %8618 = vrcp.f32 %v7116_v28 }
0x1008   :  { %8620 = vpow2.f32 %v7089_v41 }
0x1009   :  { %8622 = vpow2.f32 %v7091_v42 }
0x100a   :  { %8624 = vpow2.f32 %v7093_v5 }
0x100b   :  { %8626 = vpow2.f32 %v7095_v54 }
0x100c   :  { %v8617_v13 = vpop.eup %8616 }
0x100d   :  { %v8619_v38 = vpop.eup %8618  ;;  %v7164_v22 = vmul.f32 %v8617_v13, %v8611_v47  ;;  %v13489_v61 = vpop.xlane.xlu0 %7053  ;;  %v7099_v13 = vmul.f32 1.442695, %v7075_v16 }
0x100e   :  { %v7163_v30 = vmul.f32 %v8619_v38, %v8613_v18  ;;  %v6948_v29 = vpop.permute.xlu2 %6947  ;;  %v13505_v34 = vpop.eup %8620  ;;  %v7076_v59 = vsub.f32 %v13455_v11, %v13489_v61 }
0x100f   :  { %v13484_v4 = vand.u32 4294901760, %v7164_v22  ;;  %v6969_v45 = vadd.f32 %v13408_v9, %v6948_v29  ;;  %v13514_v21 = vpop.eup %8622 }
0x1010   :  { %v13482_v55 = vand.u32 4294901760, %v7163_v30  ;;  %v13522_v7 = vpop.eup %8624 }
0x1011   :  { %v7220_v14 = vsub.f32 %v7164_v22, %v13484_v4  ;;  %v7001_v53 = vmul.f32 0.2, %v6969_v45  ;;  %vm6985_vm10 = vcmp.gt.f32.partialorder %v6969_v45, 0.0  ;;  %v13528_v19 = vpop.eup %8626 }
0x1012   :  { %v7212_v33 = vsub.f32 %v7163_v30, %v13482_v55  ;;  %7437 = vmatmul.f32.vlgmr.msrb.gmra.mxu1 %v13482_v55 }
0x1013   :  { %v7221_v0 = vand.u32 4294901760, %v7220_v14  ;;  %v7017_v15 = vsel %vm6985_vm10, %v6969_v45, %v7001_v53 }
0x1014   :  { %7551 = vmatmul.f32.vlgmr.msra.gmra.mxu2 %v7212_v33  ;;  %v7213_v36 = vand.u32 4294901760, %v7212_v33  ;;  %v13512_v26 = vadd.f32 %v7017_v15, %v14539_v39 }
0x1015   :  { %v7222_v57 = vsub.f32 %v7220_v14, %v7221_v0 }
0x1016   :  { %7665 = vmatmul.f32.vlgmr.msra.gmra.mxu3 %v7213_v36  ;;  %v7214_v49 = vsub.f32 %v7212_v33, %v7213_v36  ;;  %v7101_v36 = vmul.f32 1.442695, %v7076_v59 }
0x1017   :  { %v7223_v2 = vand.u32 4294901760, %v7222_v57 }
0x1018   :  { %v7215_v46 = vand.u32 4294901760, %v7214_v49 }
0x101a   :  { %7216 = vmatmul.f32.vlgmr.msrb.gmra.mxu0 %v7215_v46  ;;  %7441 = vmatmul.f32.gmra.mxu1 %v13484_v4 }
0x101c   :  { %7556 = vmatmul.f32.gmra.mxu2 %v7220_v14 }
0x101e   :  { %7671 = vmatmul.f32.gmra.mxu3 %v7221_v0 }
0x1020   :  { %v6932_v62 = vpop.permute.xlu0 %6931 }
0x1021   :  { %v6965_v1 = vadd.f32 %v13408_v9, %v6932_v62 }
0x1022   :  { %7224 = vmatmul.f32.gmra.mxu0 %v7223_v2 }
0x1023   :  { %vm6981_vm8 = vcmp.gt.f32.partialorder %v6965_v1, 0.0  ;;  %v6997_v56 = vmul.f32 0.2, %v6965_v1 }
0x1025   :  { %v7013_v52 = vsel %vm6981_vm8, %v6965_v1, %v6997_v56 }
0x1026   :  { %v13495_v50 = vadd.f32 %v7013_v52, %v14537_v63 }
0x1028   :  { %7055 = vmax.xlane.f32.xlu1 %v13495_v50  ;;  %v6944_v58 = vpop.permute.xlu0 %6943 }
0x1029   :  { %v6968_v43 = vadd.f32 %v13408_v9, %v6944_v58 }
0x102b   :  { %vm6984_vm9 = vcmp.gt.f32.partialorder %v6968_v43, 0.0  ;;  %v7000_v44 = vmul.f32 0.2, %v6968_v43 }
0x102d   :  { %v7016_v47 = vsel %vm6984_vm9, %v6968_v43, %v7000_v44 }
0x102e   :  { %v13503_v18 = vadd.f32 %v7016_v47, %v14538_v17 }
0x1030   :  { %7121 = vadd.xlane.f32.xlu1 %v13505_v34  ;;  %7061 = vmax.xlane.f32.xlu2 %v13503_v18  ;;  %v6952_v60 = vpop.permute.xlu0 %6951 }
0x1031   :  { %v6970_v37 = vadd.f32 %v13408_v9, %v6952_v60  ;;  %v14540_v9 = vld [vmem:[#allocation56_spill] sm:$0xff] }
0x1033   :  { %v7002_v35 = vmul.f32 0.2, %v6970_v37  ;;  %vm6986_vm11 = vcmp.gt.f32.partialorder %v6970_v37, 0.0 }
0x1035   :  { %v7018_v31 = vsel %vm6986_vm11, %v6970_v37, %v7002_v35 }
0x1036   :  { %v13520_v20 = vadd.f32 %v7018_v31, %v14540_v9 }
0x1038   :  { %7123 = vadd.xlane.f32.xlu1 %v13514_v21  ;;  %7063 = vmax.xlane.f32.xlu2 %v13512_v26 }
0x1040   :  { %7125 = vadd.xlane.f32.xlu1 %v13522_v7  ;;  %7065 = vmax.xlane.f32.xlu2 %v13520_v20 }
0x1047   :  { %v7120_v28 = vpop.xlane.xlu2 %7119 }
0x1048   :  { %8628 = vrcp.f32 %v7120_v28  ;;  %7127 = vadd.xlane.f32.xlu1 %v13528_v19 }
0x1049   :  { %8630 = vpow2.f32 %v7097_v12 }
0x104a   :  { %8632 = vpow2.f32 %v7099_v13 }
0x104b   :  { %8634 = vpow2.f32 %v7101_v36 }
0x104e   :  { %v8629_v38 = vpop.eup %8628 }
0x104f   :  { %v13533_v22 = vpop.eup %8630  ;;  %v7165_v30 = vmul.f32 %v8629_v38, %v13465_v8  ;;  %v7060_v32 = vpop.xlane.xlu2 %7059 }
0x1050   :  { %7129 = vadd.xlane.f32.xlu1 %v13533_v22  ;;  %v13543_v14 = vpop.eup %8632  ;;  %v7079_v49 = vsub.f32 %v13469_v6, %v7060_v32 }
0x1051   :  { %v13539_v40 = vand.u32 4294901760, %v7165_v30  ;;  %v13548_v62 = vpop.eup %8634 }
0x1052   :  { %v7107_v0 = vmul.f32 1.442695, %v7079_v49 }
0x1053   :  { %7445 = vmatmul.f32.gmra.mxu1 %v13539_v40  ;;  %v7228_v33 = vsub.f32 %v7165_v30, %v13539_v40 }
0x1055   :  { %7561 = vmatmul.f32.gmra.mxu2 %v7228_v33  ;;  %v7229_v10 = vand.u32 4294901760, %v7228_v33 }
0x1057   :  { %7677 = vmatmul.f32.gmra.mxu3 %v7229_v10  ;;  %v7230_v8 = vsub.f32 %v7228_v33, %v7229_v10 }
0x1058   :  { %7131 = vadd.xlane.f32.xlu1 %v13543_v14 }
0x1059   :  { %v7231_v11 = vand.u32 4294901760, %v7230_v8 }
0x105b   :  { %7232 = vmatmul.f32.gmra.mxu0 %v7231_v11  ;;  %v7058_v61 = vpop.xlane.xlu0 %7057 }
0x105c   :  { %v7078_v46 = vsub.f32 %v13475_v23, %v7058_v61 }
0x105e   :  { %v7105_v57 = vmul.f32 1.442695, %v7078_v46 }
0x1060   :  { %8636 = vpow2.f32 %v7105_v57  ;;  %7133 = vadd.xlane.f32.xlu1 %v13548_v62 }
0x1061   :  { %8638 = vpow2.f32 %v7107_v0 }
0x1066   :  { %v13551_v2 = vpop.eup %8636 }
0x1067   :  { %v13553_v25 = vpop.eup %8638  ;;  %7137 = vadd.xlane.f32.xlu2 %v13551_v2 }
0x1068   :  { %7139 = vadd.xlane.f32.xlu1 %v13553_v25 }
0x109b   :  { %v7056_v6 = vpop.xlane.xlu1 %7055 }
0x109c   :  { %v7077_v1 = vsub.f32 %v13495_v50, %v7056_v6 }
0x109e   :  { %v7103_v23 = vmul.f32 1.442695, %v7077_v1 }
0x10a0   :  { %8640 = vpow2.f32 %v7103_v23 }
0x10a3   :  { %v7122_v56 = vpop.xlane.xlu1 %7121  ;;  %v7062_v41 = vpop.xlane.xlu2 %7061 }
0x10a4   :  { %8642 = vrcp.f32 %v7122_v56  ;;  %v7080_v52 = vsub.f32 %v13503_v18, %v7062_v41 }
0x10a6   :  { %v13559_v63 = vpop.eup %8640  ;;  %v7109_v29 = vmul.f32 1.442695, %v7080_v52 }
0x10a7   :  { %7135 = vadd.xlane.f32.xlu0 %v13559_v63 }
0x10a8   :  { %8644 = vpow2.f32 %v7109_v29 }
0x10aa   :  { %v8643_v58 = vpop.eup %8642 }
0x10ab   :  { %v7166_v3 = vmul.f32 %v8643_v58, %v13505_v34  ;;  %v7124_v43 = vpop.xlane.xlu1 %7123  ;;  %v7064_v45 = vpop.xlane.xlu2 %7063 }
0x10ac   :  { %8646 = vrcp.f32 %v7124_v43  ;;  %v7081_v50 = vsub.f32 %v13512_v26, %v7064_v45 }
0x10ad   :  { %v13564_v44 = vand.u32 4294901760, %v7166_v3 }
0x10ae   :  { %v13566_v42 = vpop.eup %8644  ;;  %v7111_v47 = vmul.f32 1.442695, %v7081_v50 }
0x10af   :  { %7141 = vadd.xlane.f32.xlu0 %v13566_v42  ;;  %7449 = vmatmul.f32.gmra.mxu1 %v13564_v44  ;;  %v7236_v17 = vsub.f32 %v7166_v3, %v13564_v44 }
0x10b0   :  { %8648 = vpow2.f32 %v7111_v47 }
0x10b1   :  { %7566 = vmatmul.f32.gmra.mxu2 %v7236_v17  ;;  %v7237_v18 = vand.u32 4294901760, %v7236_v17 }
0x10b2   :  { %v8647_v34 = vpop.eup %8646 }
0x10b3   :  { %v7167_v53 = vmul.f32 %v8647_v34, %v13514_v21  ;;  %v7126_v60 = vpop.xlane.xlu1 %7125  ;;  %v7066_v48 = vpop.xlane.xlu2 %7065  ;;  %7683 = vmatmul.f32.gmra.mxu3 %v7237_v18  ;;  %v7238_v37 = vsub.f32 %v7236_v17, %v7237_v18 }
0x10b4   :  { %8650 = vrcp.f32 %v7126_v60  ;;  %v7082_v15 = vsub.f32 %v13520_v20, %v7066_v48  ;;  %v13608_v18 = vpop.f32.mrf.mxu1 }
0x10b5   :  { %v7239_v5 = vand.u32 4294901760, %v7238_v37  ;;  %v13573_v51 = vand.u32 4294901760, %v7167_v53 }
0x10b6   :  { %v13575_v39 = vpop.eup %8648  ;;  %v7113_v26 = vmul.f32 1.442695, %v7082_v15 }
0x10b7   :  { %7143 = vadd.xlane.f32.xlu2 %v13575_v39  ;;  %7240 = vmatmul.f32.gmra.mxu0 %v7239_v5  ;;  %v7244_v35 = vsub.f32 %v7167_v53, %v13573_v51 }
0x10b8   :  { %8652 = vpow2.f32 %v7113_v26  ;;  %7453 = vmatmul.f32.gmra.mxu1 %v13573_v51 }
0x10b9   :  { %7571 = vmatmul.f32.gmra.mxu2 %v7244_v35  ;;  %v7245_v21 = vand.u32 4294901760, %v7244_v35 }
0x10ba   :  { %v8651_v27 = vpop.eup %8650 }
0x10bb   :  { %v7168_v31 = vmul.f32 %v8651_v27, %v13522_v7  ;;  %v7128_v54 = vpop.xlane.xlu1 %7127  ;;  %7689 = vmatmul.f32.gmra.mxu3 %v7245_v21  ;;  %v7246_v9 = vsub.f32 %v7244_v35, %v7245_v21 }
0x10bc   :  { %8654 = vrcp.f32 %v7128_v54  ;;  %v13612_v60 = vpop.f32.mrf.mxu1 }
0x10bd   :  { %v7247_v20 = vand.u32 4294901760, %v7246_v9  ;;  %v13581_v24 = vand.u32 4294901760, %v7168_v31 }
0x10be   :  { %v13583_v12 = vpop.eup %8652 }
0x10bf   :  { %7145 = vadd.xlane.f32.xlu1 %v13583_v12  ;;  %7248 = vmatmul.f32.gmra.mxu0 %v7247_v20  ;;  %v7252_v28 = vsub.f32 %v7168_v31, %v13581_v24 }
0x10c0   :  { %7457 = vmatmul.f32.gmra.mxu1 %v13581_v24 }
0x10c1   :  { %7576 = vmatmul.f32.gmra.mxu2 %v7252_v28  ;;  %v7253_v16 = vand.u32 4294901760, %v7252_v28 }
0x10c2   :  { %v8655_v13 = vpop.eup %8654 }
0x10c3   :  { %v7169_v7 = vmul.f32 %v8655_v13, %v13528_v19  ;;  %v7130_v38 = vpop.xlane.xlu1 %7129  ;;  %7695 = vmatmul.f32.gmra.mxu3 %v7253_v16  ;;  %v7254_v30 = vsub.f32 %v7252_v28, %v7253_v16 }
0x10c4   :  { %8656 = vrcp.f32 %v7130_v38 }
0x10c5   :  { %v7255_v59 = vand.u32 4294901760, %v7254_v30  ;;  %v13589_v33 = vand.u32 4294901760, %v7169_v7 }
0x10c7   :  { %7256 = vmatmul.f32.gmra.mxu0 %v7255_v59  ;;  %v7260_v36 = vsub.f32 %v7169_v7, %v13589_v33 }
0x10c8   :  { %7461 = vmatmul.f32.gmra.mxu1 %v13589_v33 }
0x10c9   :  { %7581 = vmatmul.f32.gmra.mxu2 %v7260_v36  ;;  %v7261_v10 = vand.u32 4294901760, %v7260_v36 }
0x10ca   :  { %v8657_v32 = vpop.eup %8656 }
0x10cb   :  { %v7170_v8 = vmul.f32 %v8657_v32, %v13533_v22  ;;  %v7132_v49 = vpop.xlane.xlu1 %7131  ;;  %7701 = vmatmul.f32.gmra.mxu3 %v7261_v10  ;;  %v7262_v19 = vsub.f32 %v7260_v36, %v7261_v10 }
0x10cc   :  { %8658 = vrcp.f32 %v7132_v49 }
0x10cd   :  { %v7263_v11 = vand.u32 4294901760, %v7262_v19  ;;  %v13594_v61 = vand.u32 4294901760, %v7170_v8 }
0x10cf   :  { %7264 = vmatmul.f32.gmra.mxu0 %v7263_v11  ;;  %v7268_v46 = vsub.f32 %v7170_v8, %v13594_v61 }
0x10d0   :  { %7465 = vmatmul.f32.gmra.mxu1 %v13594_v61  ;;  %v13618_v21 = vpop.f32.mrf.mxu1 }
0x10d1   :  { %7586 = vmatmul.f32.gmra.mxu2 %v7268_v46  ;;  %v7269_v0 = vand.u32 4294901760, %v7268_v46 }
0x10d2   :  { %v8659_v57 = vpop.eup %8658 }
0x10d3   :  { %v7171_v6 = vmul.f32 %v8659_v57, %v13543_v14  ;;  %v7134_v1 = vpop.xlane.xlu1 %7133  ;;  %7707 = vmatmul.f32.gmra.mxu3 %v7269_v0  ;;  %v7270_v22 = vsub.f32 %v7268_v46, %v7269_v0 }
0x10d4   :  { %8660 = vrcp.f32 %v7134_v1 }
0x10d5   :  { %v7271_v23 = vand.u32 4294901760, %v7270_v22  ;;  %v13599_v56 = vand.u32 4294901760, %v7171_v6 }
0x10d7   :  { %7272 = vmatmul.f32.gmra.mxu0 %v7271_v23  ;;  %v7276_v41 = vsub.f32 %v7171_v6, %v13599_v56 }
0x10d8   :  { %7469 = vmatmul.f32.gmra.mxu1 %v13599_v56 }
0x10d9   :  { %7591 = vmatmul.f32.gmra.mxu2 %v7276_v41  ;;  %v7277_v52 = vand.u32 4294901760, %v7276_v41 }
0x10da   :  { %v8661_v29 = vpop.eup %8660  ;;  %v7138_v34 = vpop.xlane.xlu2 %7137 }
0x10db   :  { %v7172_v58 = vmul.f32 %v8661_v29, %v13548_v62  ;;  %7713 = vmatmul.f32.gmra.mxu3 %v7277_v52  ;;  %v7278_v3 = vsub.f32 %v7276_v41, %v7277_v52  ;;  %8662 = vrcp.f32 %v7138_v34  ;;  %v13610_v62 = vpop.f32.mrf.mxu0  ;;  %v7140_v48 = vpop.xlane.xlu1 %7139 }
0x10dd   :  { %v7279_v14 = vand.u32 4294901760, %v7278_v3  ;;  %v13604_v43 = vand.u32 4294901760, %v7172_v58 }
0x10df   :  { %7280 = vmatmul.f32.gmra.mxu0 %v7279_v14  ;;  %v7284_v45 = vsub.f32 %v7172_v58, %v13604_v43 }
0x10e0   :  { %7473 = vmatmul.f32.gmra.mxu1 %v13604_v43 }
0x10e1   :  { %7596 = vmatmul.f32.gmra.mxu2 %v7284_v45  ;;  %v7285_v50 = vand.u32 4294901760, %v7284_v45  ;;  %v8663_v37 = vpop.eup %8662 }
0x10e2   :  { %v7174_v15 = vmul.f32 %v8663_v37, %v13551_v2 }
0x10e3   :  { %7719 = vmatmul.f32.gmra.mxu3 %v7285_v50  ;;  %v7286_v47 = vsub.f32 %v7284_v45, %v7285_v50  ;;  %v13616_v35 = vpop.f32.mrf.mxu0 }
0x10e4   :  { %v13622_v54 = vand.u32 4294901760, %v7174_v15 }
0x10e5   :  { %v7287_v17 = vand.u32 4294901760, %v7286_v47 }
0x10e7   :  { %7288 = vmatmul.f32.gmra.mxu0 %v7287_v17 }
0x10eb   :  { %v13628_v13 = vpop.f32.mrf.mxu0 }
0x111a   :  { %v7136_v53 = vpop.xlane.xlu0 %7135 }
0x111b   :  { %8664 = vrcp.f32 %v7136_v53 }
0x111c   :  { %8666 = vrcp.f32 %v7140_v48 }
0x1121   :  { %v8665_v5 = vpop.eup %8664 }
0x1122   :  { %v7173_v26 = vmul.f32 %v8665_v5, %v13559_v63  ;;  %v7142_v27 = vpop.xlane.xlu0 %7141  ;;  %v8667_v9 = vpop.eup %8666  ;;  %v7300_v63 = vsub.f32 %v7174_v15, %v13622_v54 }
0x1123   :  { %8668 = vrcp.f32 %v7142_v27  ;;  %v7175_v2 = vmul.f32 %v8667_v9, %v13553_v25 }
0x1124   :  { %v13620_v31 = vand.u32 4294901760, %v7173_v26  ;;  %v7301_v59 = vand.u32 4294901760, %v7300_v63 }
0x1125   :  { %v13632_v36 = vand.u32 4294901760, %v7175_v2 }
0x1126   :  { %7477 = vmatmul.f32.gmra.mxu1 %v13620_v31  ;;  %v7292_v20 = vsub.f32 %v7173_v26, %v13620_v31  ;;  %v7302_v32 = vsub.f32 %v7300_v63, %v7301_v59 }
0x1127   :  { %v7308_v8 = vsub.f32 %v7175_v2, %v13632_v36 }
0x1128   :  { %7601 = vmatmul.f32.gmra.mxu2 %v7292_v20  ;;  %v7293_v28 = vand.u32 4294901760, %v7292_v20  ;;  %v7303_v11 = vand.u32 4294901760, %v7302_v32 }
0x1129   :  { %v8669_v10 = vpop.eup %8668  ;;  %v7309_v46 = vand.u32 4294901760, %v7308_v8 }
0x112a   :  { %7725 = vmatmul.f32.gmra.mxu3 %v7293_v28  ;;  %v7294_v16 = vsub.f32 %v7292_v20, %v7293_v28  ;;  %v7144_v7 = vpop.xlane.xlu2 %7143  ;;  %v7176_v25 = vmul.f32 %v8669_v10, %v13566_v42 }
0x112b   :  { %8670 = vrcp.f32 %v7144_v7  ;;  %v7310_v1 = vsub.f32 %v7308_v8, %v7309_v46  ;;  %v7552_v7 = vpop.f32.mrf.mxu2 }
0x112c   :  { %v13630_v38 = vpop.f32.mrf.mxu1  ;;  %v7295_v30 = vand.u32 4294901760, %v7294_v16  ;;  %v13639_v0 = vand.u32 4294901760, %v7176_v25 }
0x112d   :  { %v7311_v41 = vand.u32 4294901760, %v7310_v1 }
0x112e   :  { %7296 = vmatmul.f32.gmra.mxu0 %v7295_v30  ;;  %7481 = vmatmul.f32.gmra.mxu1 %v13622_v54  ;;  %v7316_v22 = vsub.f32 %v7176_v25, %v13639_v0 }
0x1130   :  { %7606 = vmatmul.f32.gmra.mxu2 %v7300_v63  ;;  %v7317_v52 = vand.u32 4294901760, %v7316_v22 }
0x1131   :  { %v8671_v57 = vpop.eup %8670 }
0x1132   :  { %7731 = vmatmul.f32.gmra.mxu3 %v7301_v59  ;;  %v7146_v49 = vpop.xlane.xlu1 %7145  ;;  %v7177_v42 = vmul.f32 %v8671_v57, %v13575_v39  ;;  %v7318_v39 = vsub.f32 %v7316_v22, %v7317_v52 }
0x1133   :  { %8672 = vrcp.f32 %v7146_v49  ;;  %v7557_v32 = vpop.f32.mrf.mxu2 }
0x1134   :  { %v13637_v19 = vpop.f32.mrf.mxu0  ;;  %v13648_v29 = vand.u32 4294901760, %v7177_v42  ;;  %v7319_v47 = vand.u32 4294901760, %v7318_v39 }
0x1135   :  { %v13641_v6 = vpop.f32.mrf.mxu1 }
0x1136   :  { %7304 = vmatmul.f32.gmra.mxu0 %v7303_v11  ;;  %7485 = vmatmul.f32.gmra.mxu1 %v13632_v36  ;;  %v7324_v45 = vsub.f32 %v7177_v42, %v13648_v29 }
0x1138   :  { %7611 = vmatmul.f32.gmra.mxu2 %v7308_v8  ;;  %v7325_v17 = vand.u32 4294901760, %v7324_v45 }
0x1139   :  { %v8673_v58 = vpop.eup %8672 }
0x113a   :  { %7737 = vmatmul.f32.gmra.mxu3 %v7309_v46  ;;  %v7178_v14 = vmul.f32 %v8673_v58, %v13583_v12  ;;  %v7326_v48 = vsub.f32 %v7324_v45, %v7325_v17  ;;  %v7443_v58 = vadd.f32 %v13612_v60, %v13616_v35 }
0x113b   :  { %v7562_v46 = vpop.f32.mrf.mxu2 }
0x113c   :  { %v13646_v23 = vpop.f32.mrf.mxu0  ;;  %v13657_v34 = vand.u32 4294901760, %v7178_v14  ;;  %v7327_v15 = vand.u32 4294901760, %v7326_v48 }
0x113d   :  { %v13650_v3 = vpop.f32.mrf.mxu1 }
0x113e   :  { %7312 = vmatmul.f32.gmra.mxu0 %v7311_v41  ;;  %7489 = vmatmul.f32.gmra.mxu1 %v13639_v0  ;;  %v7332_v12 = vsub.f32 %v7178_v14, %v13657_v34 }
0x1140   :  { %7616 = vmatmul.f32.gmra.mxu2 %v7316_v22  ;;  %v7333_v5 = vand.u32 4294901760, %v7332_v12 }
0x1142   :  { %7743 = vmatmul.f32.gmra.mxu3 %v7317_v52  ;;  %v7334_v26 = vsub.f32 %v7332_v12, %v7333_v5 }
0x1143   :  { %v7567_v41 = vpop.f32.mrf.mxu2 }
0x1144   :  { %v13655_v50 = vpop.f32.mrf.mxu0  ;;  %v7335_v20 = vand.u32 4294901760, %v7334_v26 }
0x1145   :  { %v13660_v53 = vpop.f32.mrf.mxu1 }
0x1146   :  { %7320 = vmatmul.f32.gmra.mxu0 %v7319_v47  ;;  %7493 = vmatmul.f32.gmra.mxu1 %v13648_v29  ;;  %v7558_v47 = vadd.f32 %v7557_v32, %v7443_v58  ;;  %v7455_v32 = vadd.f32 %v13641_v6, %v13646_v23  ;;  %v7459_v23 = vadd.f32 %v13650_v3, %v13655_v50 }
0x1148   :  { %7621 = vmatmul.f32.gmra.mxu2 %v7324_v45 }
0x114a   :  { %7749 = vmatmul.f32.gmra.mxu3 %v7325_v17 }
0x114c   :  { %v13663_v37 = vpop.f32.mrf.mxu0 }
0x114d   :  { %v13666_v27 = vpop.f32.mrf.mxu1  ;;  %v7463_v3 = vadd.f32 %v13660_v53, %v13663_v37 }
0x114e   :  { %7328 = vmatmul.f32.gmra.mxu0 %v7327_v15  ;;  %7497 = vmatmul.f32.gmra.mxu1 %v13657_v34 }
0x1150   :  { %7626 = vmatmul.f32.gmra.mxu2 %v7332_v12  ;;  %v7447_v12 = vadd.f32 %v13618_v21, %v13628_v13 }
0x1152   :  { %7755 = vmatmul.f32.gmra.mxu3 %v7333_v5 }
0x1154   :  { %v13668_v9 = vpop.f32.mrf.mxu0 }
0x1155   :  { %v7470_v2 = vpop.f32.mrf.mxu1  ;;  %v7467_v37 = vadd.f32 %v13666_v27, %v13668_v9 }
0x1156   :  { %7336 = vmatmul.f32.gmra.mxu0 %v7335_v20  ;;  %7921 = vmatmul.f32.vlgmr.msra.gmra.mxu1 %v13482_v55 }
0x115c   :  { %v7281_v28 = vpop.f32.mrf.mxu0 }
0x115d   :  { %v13671_v63 = vadd.f32 %v7470_v2, %v7281_v28  ;;  %v7563_v2 = vadd.f32 %v7562_v46, %v7447_v12 }
0x115e   :  { %7824 = vmatmul.f32.vlgmr.msra.gmra.mxu0 %v13482_v55  ;;  %7925 = vmatmul.f32.gmra.mxu1 %v13484_v4  ;;  %v13689_v55 = vpop.f32.mrf.mxu1 }
0x1166   :  { %7828 = vmatmul.f32.gmra.mxu0 %v13484_v4  ;;  %7929 = vmatmul.f32.gmra.mxu1 %v13539_v40  ;;  %v13693_v4 = vpop.f32.mrf.mxu0 }
0x116e   :  { %7832 = vmatmul.f32.gmra.mxu0 %v13539_v40  ;;  %7933 = vmatmul.f32.gmra.mxu1 %v13564_v44 }
0x1176   :  { %7836 = vmatmul.f32.gmra.mxu0 %v13564_v44  ;;  %7937 = vmatmul.f32.gmra.mxu1 %v13573_v51 }
0x117e   :  { %7840 = vmatmul.f32.gmra.mxu0 %v13573_v51  ;;  %7941 = vmatmul.f32.gmra.mxu1 %v13581_v24 }
0x1186   :  { %7844 = vmatmul.f32.gmra.mxu0 %v13581_v24  ;;  %7945 = vmatmul.f32.gmra.mxu1 %v13589_v33 }
0x118e   :  { %7848 = vmatmul.f32.gmra.mxu0 %v13589_v33  ;;  %7949 = vmatmul.f32.gmra.mxu1 %v13594_v61 }
0x1196   :  { %7852 = vmatmul.f32.gmra.mxu0 %v13594_v61  ;;  %7953 = vmatmul.f32.gmra.mxu1 %v13599_v56 }
0x119e   :  { %7856 = vmatmul.f32.gmra.mxu0 %v13599_v56  ;;  %7957 = vmatmul.f32.gmra.mxu1 %v13604_v43 }
0x11a3   :  { %v7478_v40 = vpop.f32.mrf.mxu1 }
0x11a6   :  { %7860 = vmatmul.f32.gmra.mxu0 %v13604_v43  ;;  %7961 = vmatmul.f32.gmra.mxu1 %v13620_v31 }
0x11ab   :  { %v7297_v44 = vpop.f32.mrf.mxu0  ;;  %v7482_v51 = vpop.f32.mrf.mxu1 }
0x11ac   :  { %v13697_v24 = vadd.f32 %v7478_v40, %v7297_v44  ;;  %v7451_v44 = vadd.f32 %v13630_v38, %v13637_v19 }
0x11ae   :  { %7864 = vmatmul.f32.gmra.mxu0 %v13620_v31  ;;  %7965 = vmatmul.f32.gmra.mxu1 %v13622_v54  ;;  %v7666_v31 = vpop.f32.mrf.mxu3 }
0x11b3   :  { %v7305_v33 = vpop.f32.mrf.mxu0  ;;  %v7486_v61 = vpop.f32.mrf.mxu1 }
0x11b4   :  { %v13701_v56 = vadd.f32 %v7482_v51, %v7305_v33 }
0x11b6   :  { %7868 = vmatmul.f32.gmra.mxu0 %v13622_v54  ;;  %7969 = vmatmul.f32.gmra.mxu1 %v13632_v36  ;;  %v7672_v54 = vpop.f32.mrf.mxu3 }
0x11b7   :  { %v7673_v48 = vadd.f32 %v7672_v54, %v7558_v47 }
0x11bb   :  { %v7313_v16 = vpop.f32.mrf.mxu0  ;;  %v7490_v43 = vpop.f32.mrf.mxu1 }
0x11bc   :  { %v13705_v30 = vadd.f32 %v7486_v61, %v7313_v16 }
0x11be   :  { %7872 = vmatmul.f32.gmra.mxu0 %v13632_v36  ;;  %7973 = vmatmul.f32.gmra.mxu1 %v13639_v0  ;;  %v7439_v36 = vadd.f32 %v13608_v18, %v13610_v62  ;;  %v7678_v57 = vpop.f32.mrf.mxu3  ;;  %v7572_v18 = vpop.f32.mrf.mxu2 }
0x11bf   :  { %v7679_v40 = vadd.f32 %v7678_v57, %v7563_v2 }
0x11c3   :  { %v7321_v59 = vpop.f32.mrf.mxu0  ;;  %v7494_v10 = vpop.f32.mrf.mxu1 }
0x11c4   :  { %v13709_v25 = vadd.f32 %v7490_v43, %v7321_v59 }
0x11c6   :  { %7876 = vmatmul.f32.gmra.mxu0 %v13639_v0  ;;  %7977 = vmatmul.f32.gmra.mxu1 %v13648_v29  ;;  %v7553_v0 = vadd.f32 %v7552_v7, %v7439_v36  ;;  %v7684_v14 = vpop.f32.mrf.mxu3  ;;  %v7577_v51 = vpop.f32.mrf.mxu2  ;;  %v7568_v7 = vadd.f32 %v7567_v41, %v7451_v44 }
0x11c8   :  { %v7667_v52 = vadd.f32 %v7666_v31, %v7553_v0  ;;  %v7685_v19 = vadd.f32 %v7684_v14, %v7568_v7 }
0x11cb   :  { %v7329_v8 = vpop.f32.mrf.mxu0  ;;  %v7498_v49 = vpop.f32.mrf.mxu1 }
0x11cc   :  { %v13713_v11 = vadd.f32 %v7494_v10, %v7329_v8 }
0x11ce   :  { %7880 = vmatmul.f32.gmra.mxu0 %v13648_v29  ;;  %7981 = vmatmul.f32.gmra.mxu1 %v13657_v34  ;;  %v7582_v36 = vpop.f32.mrf.mxu2 }
0x11d3   :  { %v7337_v42 = vpop.f32.mrf.mxu0  ;;  %v7922_v1 = vpop.f32.mrf.mxu1 }
0x11d4   :  { %v13719_v22 = vadd.f32 %v7498_v49, %v7337_v42 }
0x11d6   :  { %7884 = vmatmul.f32.gmra.mxu0 %v13657_v34  ;;  %v7690_v34 = vpop.f32.mrf.mxu3 }
0x11db   :  { %v7825_v29 = vpop.f32.mrf.mxu0  ;;  %v7926_v39 = vpop.f32.mrf.mxu1 }
0x11dc   :  { %v7826_v45 = vadd.f32 %v7825_v29, %v7667_v52 }
0x11de   :  { %v7923_v17 = vadd.f32 %v7922_v1, %v7826_v45  ;;  %v7696_v31 = vpop.f32.mrf.mxu3  ;;  %v7573_v1 = vadd.f32 %v7572_v18, %v7455_v32  ;;  %v7578_v18 = vadd.f32 %v7577_v51, %v7459_v23 }
0x11e0   :  { %v8001_v62 = vmin.f32 %v7923_v17, 0.0  ;;  %vm7985_vm7 = vcmp.gt.f32.partialorder %v7923_v17, 0.0  ;;  %v7691_v6 = vadd.f32 %v7690_v34, %v7573_v1 }
0x11e2   :  { %v8017_v15 = vmul.f32 1.442695, %v8001_v62  ;;  %v7587_v62 = vpop.f32.mrf.mxu2 }
0x11e3   :  { %v7829_v5 = vpop.f32.mrf.mxu0  ;;  %v7930_v26 = vpop.f32.mrf.mxu1 }
0x11e4   :  { %8674 = vpow2.f32 %v8017_v15  ;;  %v7830_v20 = vadd.f32 %v7829_v5, %v7673_v48  ;;  %v7697_v5 = vadd.f32 %v7696_v31, %v7578_v18 }
0x11e6   :  { %v7927_v60 = vadd.f32 %v7926_v39, %v7830_v20  ;;  %v7702_v41 = vpop.f32.mrf.mxu3 }
0x11e8   :  { %v8002_v35 = vmin.f32 %v7927_v60, 0.0  ;;  %vm7986_vm12 = vcmp.gt.f32.partialorder %v7927_v60, 0.0 }
0x11ea   :  { %v8675_v28 = vpop.eup %8674  ;;  %v8019_v33 = vmul.f32 1.442695, %v8002_v35  ;;  %v7592_v44 = vpop.f32.mrf.mxu2 }
0x11eb   :  { %v8166_v61 = vadd.f32 -1.0, %v8675_v28  ;;  %v7833_v16 = vpop.f32.mrf.mxu0  ;;  %v7934_v21 = vpop.f32.mrf.mxu1  ;;  %v7583_v28 = vadd.f32 %v7582_v36, %v7463_v3 }
0x11ec   :  { %8676 = vpow2.f32 %v8019_v33  ;;  %v7834_v13 = vadd.f32 %v7833_v16, %v7679_v40 }
0x11ed   :  { %v8065_v43 = vsel %vm7985_vm7, %v7923_v17, %v8166_v61  ;;  %v7703_v53 = vadd.f32 %v7702_v41, %v7583_v28 }
0x11ee   :  { %8082 = vst.msk [vmem:[%s13813_s4] sm:$0xff] %vm8081_vm6, %v8065_v43  ;;  %v7931_v59 = vadd.f32 %v7930_v26, %v7834_v13  ;;  %v7708_v50 = vpop.f32.mrf.mxu3 }
0x11f0   :  { %v8003_v10 = vmin.f32 %v7931_v59, 0.0  ;;  %vm7987_vm13 = vcmp.gt.f32.partialorder %v7931_v59, 0.0 }
0x11f2   :  { %v8677_v38 = vpop.eup %8676  ;;  %v8021_v54 = vmul.f32 1.442695, %v8003_v10  ;;  %v7597_v27 = vpop.f32.mrf.mxu2 }
0x11f3   :  { %v8167_v8 = vadd.f32 -1.0, %v8677_v38  ;;  %v7837_v49 = vpop.f32.mrf.mxu0  ;;  %v7938_v46 = vpop.f32.mrf.mxu1 }
0x11f4   :  { %8678 = vpow2.f32 %v8021_v54  ;;  %v7838_v57 = vadd.f32 %v7837_v49, %v7685_v19 }
0x11f5   :  { %v8066_v42 = vsel %vm7986_vm12, %v7927_v60, %v8167_v8 }
0x11f6   :  { %8083 = vst.msk [vmem:[%s13813_s4 + $0x8] sm:$0xff] %vm8081_vm6, %v8066_v42  ;;  %v7935_v0 = vadd.f32 %v7934_v21, %v7838_v57  ;;  %v7714_v7 = vpop.f32.mrf.mxu3  ;;  %v7593_v57 = vadd.f32 %v7592_v44, %v13671_v63 }
0x11f8   :  { %v8004_v52 = vmin.f32 %v7935_v0, 0.0  ;;  %vm7988_vm14 = vcmp.gt.f32.partialorder %v7935_v0, 0.0 }
0x11fa   :  { %v8679_v58 = vpop.eup %8678  ;;  %v8023_v14 = vmul.f32 1.442695, %v8004_v52  ;;  %v7715_v52 = vadd.f32 %v7714_v7, %v7593_v57 }
0x11fb   :  { %v8168_v29 = vadd.f32 -1.0, %v8679_v58  ;;  %v7841_v39 = vpop.f32.mrf.mxu0  ;;  %v7942_v45 = vpop.f32.mrf.mxu1  ;;  %v7475_v58 = vadd.f32 %v13689_v55, %v13693_v4 }
0x11fc   :  { %8680 = vpow2.f32 %v8023_v14  ;;  %v7842_v47 = vadd.f32 %v7841_v39, %v7691_v6  ;;  %v7602_v6 = vpop.f32.mrf.mxu2 }
0x11fd   :  { %v8067_v17 = vsel %vm7987_vm13, %v7931_v59, %v8168_v29  ;;  %v7588_v59 = vadd.f32 %v7587_v62, %v7467_v37 }
0x11fe   :  { %8084 = vst.msk [vmem:[%s13813_s4 + $0x10] sm:$0xff] %vm8081_vm6, %v8067_v17  ;;  %v7939_v48 = vadd.f32 %v7938_v46, %v7842_v47  ;;  %v7720_v1 = vpop.f32.mrf.mxu3  ;;  %v7598_v47 = vadd.f32 %v7597_v27, %v7475_v58 }
0x11ff   :  { %v7709_v32 = vadd.f32 %v7708_v50, %v7588_v59 }
0x1200   :  { %v8005_v12 = vmin.f32 %v7939_v48, 0.0  ;;  %vm7989_vm15 = vcmp.gt.f32.partialorder %v7939_v48, 0.0  ;;  %v7721_v55 = vadd.f32 %v7720_v1, %v7598_v47 }
0x1202   :  { %v8681_v15 = vpop.eup %8680  ;;  %v8025_v26 = vmul.f32 1.442695, %v8005_v12 }
0x1203   :  { %v8169_v34 = vadd.f32 -1.0, %v8681_v15  ;;  %v7845_v20 = vpop.f32.mrf.mxu0  ;;  %v7946_v2 = vpop.f32.mrf.mxu1 }
0x1204   :  { %8682 = vpow2.f32 %v8025_v26  ;;  %v7846_v60 = vadd.f32 %v7845_v20, %v7697_v5  ;;  %v7607_v50 = vpop.f32.mrf.mxu2 }
0x1205   :  { %v8068_v35 = vsel %vm7988_vm14, %v7935_v0, %v8169_v34  ;;  %v7603_v34 = vadd.f32 %v7602_v6, %v13697_v24  ;;  %v7608_v24 = vadd.f32 %v7607_v50, %v13701_v56 }
0x1206   :  { %8085 = vst.msk [vmem:[%s13813_s4 + $0x18] sm:$0xff] %vm8081_vm6, %v8068_v35  ;;  %v7943_v40 = vadd.f32 %v7942_v45, %v7846_v60  ;;  %v7726_v18 = vpop.f32.mrf.mxu3 }
0x1207   :  { %v7727_v28 = vadd.f32 %v7726_v18, %v7603_v34 }
0x1208   :  { %v8006_v51 = vmin.f32 %v7943_v40, 0.0  ;;  %vm7990_vm1 = vcmp.gt.f32.partialorder %v7943_v40, 0.0 }
0x120a   :  { %v8683_v33 = vpop.eup %8682  ;;  %v8027_v61 = vmul.f32 1.442695, %v8006_v51 }
0x120b   :  { %v8170_v16 = vadd.f32 -1.0, %v8683_v33  ;;  %v7849_v21 = vpop.f32.mrf.mxu0  ;;  %v7950_v13 = vpop.f32.mrf.mxu1 }
0x120c   :  { %8684 = vpow2.f32 %v8027_v61  ;;  %v7850_v43 = vadd.f32 %v7849_v21, %v7703_v53 }
0x120d   :  { %v8069_v31 = vsel %vm7989_vm15, %v7939_v48, %v8170_v16  ;;  %v7612_v16 = vpop.f32.mrf.mxu2 }
0x120e   :  { %8086 = vst.msk [vmem:[%s13813_s4 + $0x20] sm:$0xff] %vm8081_vm6, %v8069_v31  ;;  %v7947_v10 = vadd.f32 %v7946_v2, %v7850_v43  ;;  %v7732_v60 = vpop.f32.mrf.mxu3  ;;  %v7613_v56 = vadd.f32 %v7612_v16, %v13705_v30 }
0x120f   :  { %v7733_v43 = vadd.f32 %v7732_v60, %v7608_v24 }
0x1210   :  { %v8007_v38 = vmin.f32 %v7947_v10, 0.0  ;;  %vm7991_vm2 = vcmp.gt.f32.partialorder %v7947_v10, 0.0 }
0x1212   :  { %v8685_v19 = vpop.eup %8684  ;;  %v8029_v9 = vmul.f32 1.442695, %v8007_v38 }
0x1213   :  { %v8171_v54 = vadd.f32 -1.0, %v8685_v19  ;;  %v7853_v8 = vpop.f32.mrf.mxu0  ;;  %v7954_v49 = vpop.f32.mrf.mxu1 }
0x1214   :  { %8686 = vpow2.f32 %v8029_v9  ;;  %v7854_v46 = vadd.f32 %v7853_v8, %v7709_v32 }
0x1215   :  { %v8070_v36 = vsel %vm7990_vm1, %v7943_v40, %v8171_v54  ;;  %v7617_v54 = vpop.f32.mrf.mxu2 }
0x1216   :  { %8087 = vst.msk [vmem:[%s13813_s4 + $0x28] sm:$0xff] %vm8081_vm6, %v8070_v36  ;;  %v7951_v42 = vadd.f32 %v7950_v13, %v7854_v46  ;;  %v7738_v31 = vpop.f32.mrf.mxu3  ;;  %v7618_v30 = vadd.f32 %v7617_v54, %v13709_v25 }
0x1218   :  { %v8008_v0 = vmin.f32 %v7951_v42, 0.0  ;;  %vm7992_vm3 = vcmp.gt.f32.partialorder %v7951_v42, 0.0 }
0x121a   :  { %v8687_v41 = vpop.eup %8686  ;;  %v8031_v23 = vmul.f32 1.442695, %v8008_v0 }
0x121b   :  { %v8172_v14 = vadd.f32 -1.0, %v8687_v41  ;;  %v7857_v29 = vpop.f32.mrf.mxu0  ;;  %v7958_v39 = vpop.f32.mrf.mxu1 }
0x121c   :  { %8688 = vpow2.f32 %v8031_v23  ;;  %v7858_v63 = vadd.f32 %v7857_v29, %v7715_v52 }
0x121d   :  { %v8071_v45 = vsel %vm7991_vm2, %v7947_v10, %v8172_v14  ;;  %v7622_v29 = vpop.f32.mrf.mxu2 }
0x121e   :  { %8088 = vst.msk [vmem:[%s13813_s4 + $0x30] sm:$0xff] %vm8081_vm6, %v8071_v45  ;;  %v7955_v17 = vadd.f32 %v7954_v49, %v7858_v63  ;;  %v7739_v49 = vadd.f32 %v7738_v31, %v7613_v56  ;;  %v7744_v1 = vpop.f32.mrf.mxu3  ;;  %v7623_v25 = vadd.f32 %v7622_v29, %v13713_v11 }
0x121f   :  { %v7745_v23 = vadd.f32 %v7744_v1, %v7618_v30 }
0x1220   :  { %v8009_v62 = vmin.f32 %v7955_v17, 0.0  ;;  %vm7993_vm4 = vcmp.gt.f32.partialorder %v7955_v17, 0.0 }
0x1222   :  { %v8689_v48 = vpop.eup %8688  ;;  %v8033_v4 = vmul.f32 1.442695, %v8009_v62 }
0x1223   :  { %v8173_v12 = vadd.f32 -1.0, %v8689_v48  ;;  %v7861_v15 = vpop.f32.mrf.mxu0  ;;  %v7962_v5 = vpop.f32.mrf.mxu1 }
0x1224   :  { %8690 = vpow2.f32 %v8033_v4  ;;  %v7862_v3 = vadd.f32 %v7861_v15, %v7721_v55 }
0x1225   :  { %v8072_v26 = vsel %vm7992_vm3, %v7951_v42, %v8173_v12  ;;  %v7627_v50 = vpop.f32.mrf.mxu2 }
0x1226   :  { %8089 = vst.msk [vmem:[%s13813_s4 + $0x38] sm:$0xff] %vm8081_vm6, %v8072_v26  ;;  %v7959_v20 = vadd.f32 %v7958_v39, %v7862_v3  ;;  %v7750_v18 = vpop.f32.mrf.mxu3  ;;  %v7628_v11 = vadd.f32 %v7627_v50, %v13719_v22 }
0x1227   :  { %v7751_v55 = vadd.f32 %v7750_v18, %v7623_v25 }
0x1228   :  { %v8010_v2 = vmin.f32 %v7959_v20, 0.0  ;;  %vm7994_vm5 = vcmp.gt.f32.partialorder %v7959_v20, 0.0 }
0x122a   :  { %v8691_v35 = vpop.eup %8690  ;;  %v8035_v40 = vmul.f32 1.442695, %v8010_v2 }
0x122b   :  { %v8174_v44 = vadd.f32 -1.0, %v8691_v35  ;;  %v7865_v51 = vpop.f32.mrf.mxu0  ;;  %v7966_v37 = vpop.f32.mrf.mxu1 }
0x122c   :  { %8692 = vpow2.f32 %v8035_v40  ;;  %v7866_v33 = vadd.f32 %v7865_v51, %v7727_v28 }
0x122d   :  { %v8073_v53 = vsel %vm7993_vm4, %v7955_v17, %v8174_v44 }
0x122e   :  { %8090 = vst.msk [vmem:[%s13813_s4 + $0x40] sm:$0xff] %vm8081_vm6, %v8073_v53  ;;  %v7963_v61 = vadd.f32 %v7962_v5, %v7866_v33  ;;  %v7756_v2 = vpop.f32.mrf.mxu3 }
0x122f   :  { %v7757_v35 = vadd.f32 %v7756_v2, %v7628_v11 }
0x1230   :  { %v8011_v21 = vmin.f32 %v7963_v61, 0.0  ;;  %vm7995_vm0 = vcmp.gt.f32.partialorder %v7963_v61, 0.0 }
0x1232   :  { %v8693_v13 = vpop.eup %8692  ;;  %v8037_v7 = vmul.f32 1.442695, %v8011_v21 }
0x1233   :  { %v8175_v59 = vadd.f32 -1.0, %v8693_v13  ;;  %v7869_v10 = vpop.f32.mrf.mxu0  ;;  %v7970_v27 = vpop.f32.mrf.mxu1 }
0x1234   :  { %8694 = vpow2.f32 %v8037_v7  ;;  %v7870_v38 = vadd.f32 %v7869_v10, %v7733_v43 }
0x1235   :  { %v8074_v19 = vsel %vm7994_vm5, %v7959_v20, %v8175_v59 }
0x1236   :  { %8091 = vst.msk [vmem:[%s13813_s4 + $0x48] sm:$0xff] %vm8081_vm6, %v8074_v19  ;;  %v7967_v32 = vadd.f32 %v7966_v37, %v7870_v38 }
0x1238   :  { %v8012_v9 = vmin.f32 %v7967_v32, 0.0  ;;  %vm7996_vm8 = vcmp.gt.f32.partialorder %v7967_v32, 0.0 }
0x123a   :  { %v8695_v8 = vpop.eup %8694  ;;  %v8039_v46 = vmul.f32 1.442695, %v8012_v9 }
0x123b   :  { %v8176_v36 = vadd.f32 -1.0, %v8695_v8  ;;  %v7873_v57 = vpop.f32.mrf.mxu0  ;;  %v7974_v58 = vpop.f32.mrf.mxu1 }
0x123c   :  { %8696 = vpow2.f32 %v8039_v46  ;;  %v7874_v42 = vadd.f32 %v7873_v57, %v7739_v49 }
0x123d   :  { %v8075_v0 = vsel %vm7995_vm0, %v7963_v61, %v8176_v36 }
0x123e   :  { %8092 = vst.msk [vmem:[%s13813_s4 + $0x50] sm:$0xff] %vm8081_vm6, %v8075_v0  ;;  %v7971_v41 = vadd.f32 %v7970_v27, %v7874_v42 }
0x1240   :  { %v8013_v52 = vmin.f32 %v7971_v41, 0.0  ;;  %vm7997_vm9 = vcmp.gt.f32.partialorder %v7971_v41, 0.0 }
0x1242   :  { %v8697_v6 = vpop.eup %8696  ;;  %v8041_v14 = vmul.f32 1.442695, %v8013_v52 }
0x1243   :  { %v8177_v39 = vadd.f32 -1.0, %v8697_v6  ;;  %v7877_v63 = vpop.f32.mrf.mxu0  ;;  %v7978_v15 = vpop.f32.mrf.mxu1 }
0x1244   :  { %8698 = vpow2.f32 %v8041_v14  ;;  %v7878_v45 = vadd.f32 %v7877_v63, %v7745_v23 }
0x1245   :  { %v8076_v47 = vsel %vm7996_vm8, %v7967_v32, %v8177_v39 }
0x1246   :  { %8093 = vst.msk [vmem:[%s13813_s4 + $0x58] sm:$0xff] %vm8081_vm6, %v8076_v47  ;;  %v7975_v17 = vadd.f32 %v7974_v58, %v7878_v45 }
0x1248   :  { %v8014_v62 = vmin.f32 %v7975_v17, 0.0  ;;  %vm7998_vm10 = vcmp.gt.f32.partialorder %v7975_v17, 0.0 }
0x124a   :  { %v8699_v48 = vpop.eup %8698  ;;  %v8043_v4 = vmul.f32 1.442695, %v8014_v62 }
0x124b   :  { %v8178_v12 = vadd.f32 -1.0, %v8699_v48  ;;  %v7881_v5 = vpop.f32.mrf.mxu0  ;;  %v7982_v53 = vpop.f32.mrf.mxu1 }
0x124c   :  { %8700 = vpow2.f32 %v8043_v4  ;;  %v7882_v3 = vadd.f32 %v7881_v5, %v7751_v55 }
0x124d   :  { %v8077_v26 = vsel %vm7997_vm9, %v7971_v41, %v8178_v12 }
0x124e   :  { %8094 = vst.msk [vmem:[%s13813_s4 + $0x60] sm:$0xff] %vm8081_vm6, %v8077_v26  ;;  %v7979_v34 = vadd.f32 %v7978_v15, %v7882_v3 }
0x1250   :  { %v8015_v20 = vmin.f32 %v7979_v34, 0.0  ;;  %vm7999_vm11 = vcmp.gt.f32.partialorder %v7979_v34, 0.0 }
0x1252   :  { %v8701_v60 = vpop.eup %8700  ;;  %v8045_v28 = vmul.f32 1.442695, %v8015_v20 }
0x1253   :  { %v8179_v40 = vadd.f32 -1.0, %v8701_v60  ;;  %v7885_v44 = vpop.f32.mrf.mxu0 }
0x1254   :  { %8702 = vpow2.f32 %v8045_v28  ;;  %v7886_v51 = vadd.f32 %v7885_v44, %v7757_v35 }
0x1255   :  { %v8078_v33 = vsel %vm7998_vm10, %v7975_v17, %v8179_v40 }
0x1256   :  { %8095 = vst.msk [vmem:[%s13813_s4 + $0x68] sm:$0xff] %vm8081_vm6, %v8078_v33  ;;  %v7983_v22 = vadd.f32 %v7982_v53, %v7886_v51 }
0x1258   :  { %v8016_v37 = vmin.f32 %v7983_v22, 0.0  ;;  %vm8000_vm7 = vcmp.gt.f32.partialorder %v7983_v22, 0.0 }
0x125a   :  { %v8703_v24 = vpop.eup %8702  ;;  %v8047_v61 = vmul.f32 1.442695, %v8016_v37 }
0x125b   :  { %v8180_v16 = vadd.f32 -1.0, %v8703_v24 }
0x125c   :  { %8704 = vpow2.f32 %v8047_v61 }
0x125d   :  { %v8079_v21 = vsel %vm7999_vm11, %v7979_v34, %v8180_v16 }
0x125e   :  { %8096 = vst.msk [vmem:[%s13813_s4 + $0x70] sm:$0xff] %vm8081_vm6, %v8079_v21 }
0x1262   :  { %v8705_v13 = vpop.eup %8704 }
0x1263   :  { %v8181_v43 = vadd.f32 -1.0, %v8705_v13 }
0x1265   :  { %v8080_v7 = vsel %vm8000_vm7, %v7983_v22, %v8181_v43 }
0x1266   :  { %8097 = vst.msk [vmem:[%s13813_s4 + $0x78] sm:$0xff] %vm8081_vm6, %v8080_v7 }

</bundles_post_ra>
